<compile_context>
chip_gen: v7x
topology: tpu7x:2x2x1
jax: 0.10.0
libtpu: 0.0.40
codegen_flags: <defaults>
</compile_context>

<pallas_src>
import functools

import jax
import jax.numpy as jnp
from jax.experimental import pallas as pl
from jax.experimental.pallas import tpu as pltpu

LANE = 128
_BN_EPS = 1e-5


def _round_up(x, m):
    return (x + m - 1) // m * m


def _pick_tile(m, max_tile, gran=16):
    """Row-tile size, number of tiles, padded row count (cdiv-style tiling)."""
    nt = -(-m // max_tile)                    # cdiv
    tm = _round_up(-(-m // nt), gran)
    return tm, nt, nt * tm


# ----------------------------------------------------------------------------
# Kernel A: fused 1x1 conv (two lane-aligned matmuls) + bias + MFM max
#           + per-tile BatchNorm partial statistics (sum, sum of squares).
# ----------------------------------------------------------------------------
def _mfm1x1_stats_kernel(x_ref, wlo_ref, whi_ref, blo_ref, bhi_ref,
                         o_ref, s_ref, sq_ref, *, m_real, need_mask):
    x = x_ref[...]                                              # (tm, Cpi) bf16
    y_lo = jnp.dot(x, wlo_ref[...], preferred_element_type=jnp.float32)
    y_hi = jnp.dot(x, whi_ref[...], preferred_element_type=jnp.float32)
    h = jnp.maximum(y_lo + blo_ref[...], y_hi + bhi_ref[...])   # (tm, Cpo) f32
    o_ref[...] = h

    if need_mask:  # zero out padded rows so they do not pollute the BN stats
        tm = x_ref.shape[0]
        row = pl.program_id(0) * tm + jax.lax.broadcasted_iota(
            jnp.int32, (tm, 1), 0)
        h = jnp.where(row < m_real, h, 0.0)

    s = jnp.sum(h, axis=0, keepdims=True)                       # (1, Cpo)
    ss = jnp.sum(h * h, axis=0, keepdims=True)
    s_ref[...] = jnp.broadcast_to(s, s_ref.shape)               # (8, Cpo)
    sq_ref[...] = jnp.broadcast_to(ss, sq_ref.shape)


def mfm_conv1x1_with_stats(x, w_lo, w_hi, b_lo, b_hi):
    m_real, cpi = x.shape
    cpo = w_lo.shape[1]
    tm, nt, m_pad = _pick_tile(m_real, 1024, gran=16)
    if m_pad != m_real:
        x = jnp.pad(x, ((0, m_pad - m_real), (0, 0)))
    kern = functools.partial(_mfm1x1_stats_kernel, m_real=m_real,
                             need_mask=(m_pad != m_real))
    h, s, sq = pl.pallas_call(
        kern,
        out_shape=(jax.ShapeDtypeStruct((m_pad, cpo), jnp.float32),
                   jax.ShapeDtypeStruct((nt * 8, cpo), jnp.float32),
                   jax.ShapeDtypeStruct((nt * 8, cpo), jnp.float32)),
        grid=(nt,),
        in_specs=[
            pl.BlockSpec((tm, cpi), lambda i: (i, 0)),
            pl.BlockSpec((cpi, cpo), lambda i: (0, 0)),
            pl.BlockSpec((cpi, cpo), lambda i: (0, 0)),
            pl.BlockSpec((1, cpo), lambda i: (0, 0)),
            pl.BlockSpec((1, cpo), lambda i: (0, 0)),
        ],
        out_specs=(
            pl.BlockSpec((tm, cpo), lambda i: (i, 0)),
            pl.BlockSpec((8, cpo), lambda i: (i, 0)),
            pl.BlockSpec((8, cpo), lambda i: (i, 0)),
        ),
        compiler_params=pltpu.CompilerParams(
            dimension_semantics=("parallel",)),
    )(x, w_lo, w_hi, b_lo, b_hi)
    return h[:m_real], s, sq


# ----------------------------------------------------------------------------
# Kernel B: kxk mfm conv per image.  bn_a normalize is fused on the input,
# im2col is done in VMEM (zero-padded scratch + k^2 accumulated matmuls),
# BN partial stats for the second BatchNorm are produced as extra outputs.
# ----------------------------------------------------------------------------
def _mfm_convkxk_stats_kernel(h_ref, sc_ref, sh_ref, wlo_ref, whi_ref,
                              blo_ref, bhi_ref, o_ref, s_ref, sq_ref,
                              pad_ref, *, k, stride, pad_amt, ho, wo):
    H, W = h_ref.shape[1], h_ref.shape[2]
    cpi = h_ref.shape[3]
    cpo = o_ref.shape[2]

    # Fused bn_a normalize of the input image, written into a zero-padded
    # bf16 VMEM scratch (spatial zero padding done on-chip, never in HBM).
    hv = h_ref[0] * sc_ref[...] + sh_ref[...]                   # (H, W, Cpi) f32
    if pad_amt > 0:
        pad_ref[...] = jnp.zeros(pad_ref.shape, pad_ref.dtype)
    pad_ref[pad_amt:pad_amt + H, pad_amt:pad_amt + W, :] = hv.astype(pad_ref.dtype)

    acc_lo = jnp.zeros((ho * wo, cpo), jnp.float32)
    acc_hi = jnp.zeros((ho * wo, cpo), jnp.float32)
    for kh in range(k):                    # in-kernel im2col: k*k shifted
        for kw in range(k):                # windows, accumulated MXU matmuls
            if stride == 1:
                win = pad_ref[kh:kh + ho, kw:kw + wo, :]
            else:
                win = jax.lax.slice(
                    pad_ref[...],
                    (kh, kw, 0),
                    (kh + (ho - 1) * stride + 1,
                     kw + (wo - 1) * stride + 1, cpi),
                    (stride, stride, 1))
            win = win.reshape(ho * wo, cpi)                     # bf16
            idx = kh * k + kw
            acc_lo = acc_lo + jnp.dot(win, wlo_ref[idx],
                                      preferred_element_type=jnp.float32)
            acc_hi = acc_hi + jnp.dot(win, whi_ref[idx],
                                      preferred_element_type=jnp.float32)

    y = jnp.maximum(acc_lo + blo_ref[...], acc_hi + bhi_ref[...])
    o_ref[0] = y

    s = jnp.sum(y, axis=0, keepdims=True)
    ss = jnp.sum(y * y, axis=0, keepdims=True)
    s_ref[...] = jnp.broadcast_to(s, s_ref.shape)
    sq_ref[...] = jnp.broadcast_to(ss, sq_ref.shape)


def mfm_convkxk_with_stats(h, scale_a, shift_a, w_lo, w_hi, b_lo, b_hi,
                           k, stride, pad_amt):
    n, H, W, cpi = h.shape
    cpo = w_lo.shape[-1]
    ho = (H + 2 * pad_amt - k) // stride + 1
    wo = (W + 2 * pad_amt - k) // stride + 1
    hp, wp = H + 2 * pad_amt, W + 2 * pad_amt
    kern = functools.partial(_mfm_convkxk_stats_kernel, k=k, stride=stride,
                             pad_amt=pad_amt, ho=ho, wo=wo)
    y, s, sq = pl.pallas_call(
        kern,
        out_shape=(jax.ShapeDtypeStruct((n, ho * wo, cpo), jnp.float32),
                   jax.ShapeDtypeStruct((n * 8, cpo), jnp.float32),
                   jax.ShapeDtypeStruct((n * 8, cpo), jnp.float32)),
        grid=(n,),
        in_specs=[
            pl.BlockSpec((1, H, W, cpi), lambda i: (i, 0, 0, 0)),
            pl.BlockSpec((1, cpi), lambda i: (0, 0)),
            pl.BlockSpec((1, cpi), lambda i: (0, 0)),
            pl.BlockSpec((k * k, cpi, cpo), lambda i: (0, 0, 0)),
            pl.BlockSpec((k * k, cpi, cpo), lambda i: (0, 0, 0)),
            pl.BlockSpec((1, cpo), lambda i: (0, 0)),
            pl.BlockSpec((1, cpo), lambda i: (0, 0)),
        ],
        out_specs=(
            pl.BlockSpec((1, ho * wo, cpo), lambda i: (i, 0, 0)),
            pl.BlockSpec((8, cpo), lambda i: (i, 0)),
            pl.BlockSpec((8, cpo), lambda i: (i, 0)),
        ),
        scratch_shapes=[pltpu.VMEM((hp, wp, cpi), jnp.bfloat16)],
        compiler_params=pltpu.CompilerParams(
            dimension_semantics=("parallel",),
            vmem_limit_bytes=64 * 1024 * 1024),
    )(h, scale_a, shift_a, w_lo, w_hi, b_lo, b_hi)
    return y, s, sq, ho, wo


# ----------------------------------------------------------------------------
# Kernel C: tiled, lane-dense BatchNorm normalize pass (y = x * scale + shift).
# ----------------------------------------------------------------------------
def _bn_affine_kernel(x_ref, sc_ref, sh_ref, o_ref):
    o_ref[...] = x_ref[...] * sc_ref[...] + sh_ref[...]


def bn_affine(x, scale, shift):
    m_real, cp = x.shape
    tm, nt, m_pad = _pick_tile(m_real, 2048, gran=8)
    if m_pad != m_real:
        x = jnp.pad(x, ((0, m_pad - m_real), (0, 0)))
    y = pl.pallas_call(
        _bn_affine_kernel,
        out_shape=jax.ShapeDtypeStruct((m_pad, cp), jnp.float32),
        grid=(nt,),
        in_specs=[
            pl.BlockSpec((tm, cp), lambda i: (i, 0)),
            pl.BlockSpec((1, cp), lambda i: (0, 0)),
            pl.BlockSpec((1, cp), lambda i: (0, 0)),
        ],
        out_specs=pl.BlockSpec((tm, cp), lambda i: (i, 0)),
        compiler_params=pltpu.CompilerParams(
            dimension_semantics=("parallel",)),
    )(x, scale, shift)
    return y[:m_real]


# ----------------------------------------------------------------------------
# Host-side (tiny) reduction of the per-tile partial stats -> BN scale/shift.
# ----------------------------------------------------------------------------
def _bn_scale_shift(sum_blocks, sq_blocks, n_rows, gamma_p, beta_p, eps=_BN_EPS):
    cp = sum_blocks.shape[-1]
    total = jnp.sum(sum_blocks.reshape(-1, 8, cp)[:, 0, :], axis=0)
    total_sq = jnp.sum(sq_blocks.reshape(-1, 8, cp)[:, 0, :], axis=0)
    mean = total / n_rows
    var = jnp.maximum(total_sq / n_rows - mean * mean, 0.0)     # biased (train BN)
    inv = jax.lax.rsqrt(var + eps)
    scale = gamma_p * inv
    shift = beta_p - mean * scale
    return scale.reshape(1, cp), shift.reshape(1, cp)


# ----------------------------------------------------------------------------
# Full `group` forward (Pallas-backed)
# ----------------------------------------------------------------------------
@functools.partial(jax.jit, static_argnums=(2, 3, 4))
def group_forward(x_nchw, params, kernel_size, stride, padding):
    n, cin, H, W = x_nchw.shape
    cout = params["w"].shape[0] // 2
    k = kernel_size
    cpi = _round_up(cin, LANE)
    cpo = _round_up(cout, LANE)
    f32, bf16 = jnp.float32, jnp.bfloat16

    # --- lane-padded, MFM-split weights (host-side, tiny) ---
    wa = params["w_a"].reshape(2 * cin, cin).astype(f32)        # OIHW 1x1 -> (O, I)
    wa_lo = jnp.zeros((cpi, cpi), f32).at[:cin, :cin].set(wa[:cin].T).astype(bf16)
    wa_hi = jnp.zeros((cpi, cpi), f32).at[:cin, :cin].set(wa[cin:].T).astype(bf16)
    ba_lo = jnp.zeros((1, cpi), f32).at[0, :cin].set(params["b_a"][:cin])
    ba_hi = jnp.zeros((1, cpi), f32).at[0, :cin].set(params["b_a"][cin:])
    gamma_a = jnp.zeros((cpi,), f32).at[:cin].set(params["gamma_a"])
    beta_a = jnp.zeros((cpi,), f32).at[:cin].set(params["beta_a"])

    w = params["w"].astype(f32)                                 # (2*cout, cin, k, k)
    w_lo = jnp.transpose(w[:cout], (2, 3, 1, 0)).reshape(k * k, cin, cout)
    w_hi = jnp.transpose(w[cout:], (2, 3, 1, 0)).reshape(k * k, cin, cout)
    wl = jnp.zeros((k * k, cpi, cpo), f32).at[:, :cin, :cout].set(w_lo).astype(bf16)
    wh = jnp.zeros((k * k, cpi, cpo), f32).at[:, :cin, :cout].set(w_hi).astype(bf16)
    b_lo = jnp.zeros((1, cpo), f32).at[0, :cout].set(params["b"][:cout])
    b_hi = jnp.zeros((1, cpo), f32).at[0, :cout].set(params["b"][cout:])
    gamma2 = jnp.zeros((cpo,), f32).at[:cout].set(params["gamma"])
    beta2 = jnp.zeros((cpo,), f32).at[:cout].set(params["beta"])

    # --- activations: NCHW -> NHWC, channel-pad to the 128-lane width, bf16 ---
    x = jnp.transpose(x_nchw, (0, 2, 3, 1))
    x = jnp.pad(x, ((0, 0), (0, 0), (0, 0), (0, cpi - cin)))
    xb = x.reshape(n * H * W, cpi).astype(bf16)

    # --- stage 1: 1x1 mfm conv + bn_a partial stats (Pallas) ---
    m1 = n * H * W
    h, s1, sq1 = mfm_conv1x1_with_stats(xb, wa_lo, wa_hi, ba_lo, ba_hi)
    sc1, sh1 = _bn_scale_shift(s1, sq1, m1, gamma_a, beta_a)

    # --- stage 2: kxk mfm conv with bn_a normalize fused at its input,
    #     in-kernel im2col, + bn partial stats (Pallas) ---
    y2, s2, sq2, ho, wo = mfm_convkxk_with_stats(
        h.reshape(n, H, W, cpi), sc1, sh1, wl, wh, b_lo, b_hi,
        k, stride, padding)
    sc2, sh2 = _bn_scale_shift(s2, sq2, n * ho * wo, gamma2, beta2)

    # --- stage 3: bn normalize (tiled lane-dense elementwise Pallas pass) ---
    yn = bn_affine(y2.reshape(n * ho * wo, cpo), sc2, sh2)

    out = yn[:, :cout].reshape(n, ho, wo, cout)
    return jnp.transpose(out, (0, 3, 1, 2))                     # back to NCHW


# ----------------------------------------------------------------------------
# Pure-JAX reference (XLA conv) for correctness checking.
# ----------------------------------------------------------------------------
def _ref_conv(x, w, b, stride, pad):
    y = jax.lax.conv_general_dilated(
        x, w, window_strides=(stride, stride),
        padding=((pad, pad), (pad, pad)),
        dimension_numbers=("NCHW", "OIHW", "NCHW"),
        precision=jax.lax.Precision.HIGHEST)
    return y + b[None, :, None, None]


def _ref_bn(x, gamma, beta, eps=_BN_EPS):
    mean = jnp.mean(x, axis=(0, 2, 3), keepdims=True)
    var = jnp.var(x, axis=(0, 2, 3), keepdims=True)             # biased, like BN train
    return (x - mean) / jnp.sqrt(var + eps) * gamma[None, :, None, None] \
        + beta[None, :, None, None]


def _ref_mfm(y, c):
    return jnp.maximum(y[:, :c], y[:, c:2 * c])


def group_forward_ref(x, params, k, s, p, quantize_bf16=False):
    # quantize_bf16=True mimics the kernel's bf16 MXU inputs (f32 accumulation).
    def q(a):
        return a.astype(jnp.bfloat16).astype(jnp.float32) if quantize_bf16 else a
    cin = x.shape[1]
    cout = params["w"].shape[0] // 2
    h = _ref_mfm(_ref_conv(q(x), q(params["w_a"]), params["b_a"], 1, 0), cin)
    h = _ref_bn(h, params["gamma_a"], params["beta_a"])
    y = _ref_mfm(_ref_conv(q(h), q(params["w"]), params["b"], s, p), cout)
    return _ref_bn(y, params["gamma"], params["beta"])


# ----------------------------------------------------------------------------
if __name__ == "__main__":
    N, Cin, H, W = 2, 4, 16, 16
    Cout, K, S, P = 8, 3, 1, 1

    key = jax.random.PRNGKey(0)
    ks = jax.random.split(key, 9)
    params = {
        "w_a": 0.2 * jax.random.normal(ks[0], (2 * Cin, Cin, 1, 1), jnp.float32),
        "b_a": 0.1 * jax.random.normal(ks[1], (2 * Cin,), jnp.float32),
        "gamma_a": 1.0 + 0.1 * jax.random.normal(ks[2], (Cin,), jnp.float32),
        "beta_a": 0.1 * jax.random.normal(ks[3], (Cin,), jnp.float32),
        "w": 0.2 * jax.random.normal(ks[4], (2 * Cout, Cin, K, K), jnp.float32),
        "b": 0.1 * jax.random.normal(ks[5], (2 * Cout,), jnp.float32),
        "gamma": 1.0 + 0.1 * jax.random.normal(ks[6], (Cout,), jnp.float32),
        "beta": 0.1 * jax.random.normal(ks[7], (Cout,), jnp.float32),
    }
    x = jax.random.normal(ks[8], (N, Cin, H, W), jnp.float32)

    out = jax.block_until_ready(group_forward(x, params, K, S, P))
    assert out.shape == (N, Cout, H, W), out.shape

    # Primary check: reference with the same bf16 input quantization the kernel
    # applies at its MXU matmuls (f32 accumulation everywhere) -> tight tolerance.
    ref_q = jax.block_until_ready(group_forward_ref(x, params, K, S, P, True))
    err_q = float(jnp.max(jnp.abs(out - ref_q)))
    assert jnp.allclose(out, ref_q, atol=1e-2, rtol=1e-2), err_q

    # Sanity check against the exact f32 reference (loose: bf16 MXU inputs).
    ref = jax.block_until_ready(group_forward_ref(x, params, K, S, P, False))
    err = float(jnp.max(jnp.abs(out - ref)))
    assert jnp.allclose(out, ref, atol=5e-2, rtol=5e-2), err

    print("KERNEL_OK")
</pallas_src>

<mosaic_0001>
module attributes {stable_mosaic.version = 11 : i64} {
  func.func @_mfm_convkxk_stats_kernel(%arg0: i32, %arg1: memref<1x16x16x128xf32, #tpu.memory_space<vmem>>, %arg2: memref<1x128xf32, #tpu.memory_space<vmem>>, %arg3: memref<1x128xf32, #tpu.memory_space<vmem>>, %arg4: memref<9x128x128xbf16, #tpu.memory_space<vmem>>, %arg5: memref<9x128x128xbf16, #tpu.memory_space<vmem>>, %arg6: memref<1x128xf32, #tpu.memory_space<vmem>>, %arg7: memref<1x128xf32, #tpu.memory_space<vmem>>, %arg8: memref<1x256x128xf32, #tpu.memory_space<vmem>>, %arg9: memref<8x128xf32, #tpu.memory_space<vmem>>, %arg10: memref<8x128xf32, #tpu.memory_space<vmem>>, %arg11: memref<18x18x128xbf16, #tpu.memory_space<vmem>>) attributes {dimension_semantics = [#tpu.dimension_semantics<parallel>], iteration_bounds = array<i64: 2>, scalar_prefetch = 0 : i64, scratch_operands = 1 : i64, tpu.core_type = #tpu.core_type<tc>, window_params = [{transform_indices = @transform_0, window_bounds = array<i64: 1, 16, 16, 128>}, {pipeline_mode = #tpu.pipeline_mode<synchronous>, transform_indices = @transform_1, window_bounds = array<i64: 1, 128>}, {pipeline_mode = #tpu.pipeline_mode<synchronous>, transform_indices = @transform_2, window_bounds = array<i64: 1, 128>}, {pipeline_mode = #tpu.pipeline_mode<synchronous>, transform_indices = @transform_3, window_bounds = array<i64: 9, 128, 128>}, {pipeline_mode = #tpu.pipeline_mode<synchronous>, transform_indices = @transform_4, window_bounds = array<i64: 9, 128, 128>}, {pipeline_mode = #tpu.pipeline_mode<synchronous>, transform_indices = @transform_5, window_bounds = array<i64: 1, 128>}, {pipeline_mode = #tpu.pipeline_mode<synchronous>, transform_indices = @transform_6, window_bounds = array<i64: 1, 128>}, {transform_indices = @transform_7, window_bounds = array<i64: 1, 256, 128>}, {transform_indices = @transform_8, window_bounds = array<i64: 8, 128>}, {transform_indices = @transform_9, window_bounds = array<i64: 8, 128>}]} {
    %c0 = arith.constant 0 : index
    %c0_0 = arith.constant 0 : index
    %c0_1 = arith.constant 0 : index
    %c0_2 = arith.constant 0 : index
    %0 = vector.load %arg1[%c0, %c0_0, %c0_1, %c0_2] : memref<1x16x16x128xf32, #tpu.memory_space<vmem>>, vector<1x16x16x128xf32>
    %1 = vector.shape_cast %0 : vector<1x16x16x128xf32> to vector<16x16x128xf32>
    %c0_3 = arith.constant 0 : index
    %c0_4 = arith.constant 0 : index
    %2 = vector.load %arg2[%c0_3, %c0_4] : memref<1x128xf32, #tpu.memory_space<vmem>>, vector<1x128xf32>
    %3 = vector.shape_cast %2 : vector<1x128xf32> to vector<1x1x128xf32>
    %4 = vector.broadcast %3 : vector<1x1x128xf32> to vector<16x16x128xf32>
    %5 = arith.mulf %1, %4 : vector<16x16x128xf32>
    %c0_5 = arith.constant 0 : index
    %c0_6 = arith.constant 0 : index
    %6 = vector.load %arg3[%c0_5, %c0_6] : memref<1x128xf32, #tpu.memory_space<vmem>>, vector<1x128xf32>
    %7 = vector.shape_cast %6 : vector<1x128xf32> to vector<1x1x128xf32>
    %8 = vector.broadcast %7 : vector<1x1x128xf32> to vector<16x16x128xf32>
    %9 = arith.addf %5, %8 : vector<16x16x128xf32>
    %cst = arith.constant 0.000000e+00 : bf16
    %10 = vector.broadcast %cst : bf16 to vector<18x18x128xbf16>
    %c0_7 = arith.constant 0 : index
    %c0_8 = arith.constant 0 : index
    %c0_9 = arith.constant 0 : index
    %11 = vector.load %arg11[%c0_7, %c0_8, %c0_9] : memref<18x18x128xbf16, #tpu.memory_space<vmem>>, vector<18x18x128xbf16>
    tpu.vector_store %arg11[%c0_7, %c0_8, %c0_9], %10 {strides = array<i32>} : memref<18x18x128xbf16, #tpu.memory_space<vmem>>, vector<18x18x128xbf16>,
    %12 = arith.truncf %9 : vector<16x16x128xf32> to vector<16x16x128xbf16>
    %c1 = arith.constant 1 : index
    %c1_10 = arith.constant 1 : index
    %c0_11 = arith.constant 0 : index
    %13 = vector.load %arg11[%c1, %c1_10, %c0_11] : memref<18x18x128xbf16, #tpu.memory_space<vmem>>, vector<16x16x128xbf16>
    tpu.vector_store %arg11[%c1, %c1_10, %c0_11], %12 {strides = array<i32>} : memref<18x18x128xbf16, #tpu.memory_space<vmem>>, vector<16x16x128xbf16>,
    %cst_12 = arith.constant 0.000000e+00 : f32
    %14 = vector.broadcast %cst_12 : f32 to vector<256x128xf32>
    %cst_13 = arith.constant 0.000000e+00 : f32
    %15 = vector.broadcast %cst_13 : f32 to vector<256x128xf32>
    %c0_14 = arith.constant 0 : index
    %c0_15 = arith.constant 0 : index
    %c0_16 = arith.constant 0 : index
    %16 = vector.load %arg11[%c0_14, %c0_15, %c0_16] : memref<18x18x128xbf16, #tpu.memory_space<vmem>>, vector<16x16x128xbf16>
    %17 = vector.shape_cast %16 : vector<16x16x128xbf16> to vector<256x128xbf16>
    %c0_17 = arith.constant 0 : index
    %c0_18 = arith.constant 0 : index
    %c0_19 = arith.constant 0 : index
    %18 = vector.load %arg4[%c0_17, %c0_18, %c0_19] : memref<9x128x128xbf16, #tpu.memory_space<vmem>>, vector<1x128x128xbf16>
    %19 = vector.shape_cast %18 : vector<1x128x128xbf16> to vector<128x128xbf16>
    %cst_20 = arith.constant dense<0.000000e+00> : vector<256x128xf32>
    %20 = tpu.matmul %17, %19, %cst_20 {dimension_numbers = #tpu.dot_dimension_numbers<[1], [0], [0], [1], [0, 0, 1, 1], [], []>} : vector<256x128xbf16>, vector<128x128xbf16>, vector<256x128xf32> -> vector<256x128xf32>
    %21 = arith.addf %14, %20 : vector<256x128xf32>
    %c0_21 = arith.constant 0 : index
    %c0_22 = arith.constant 0 : index
    %c0_23 = arith.constant 0 : index
    %22 = vector.load %arg5[%c0_21, %c0_22, %c0_23] : memref<9x128x128xbf16, #tpu.memory_space<vmem>>, vector<1x128x128xbf16>
    %23 = vector.shape_cast %22 : vector<1x128x128xbf16> to vector<128x128xbf16>
    %cst_24 = arith.constant dense<0.000000e+00> : vector<256x128xf32>
    %24 = tpu.matmul %17, %23, %cst_24 {dimension_numbers = #tpu.dot_dimension_numbers<[1], [0], [0], [1], [0, 0, 1, 1], [], []>} : vector<256x128xbf16>, vector<128x128xbf16>, vector<256x128xf32> -> vector<256x128xf32>
    %25 = arith.addf %15, %24 : vector<256x128xf32>
    %c0_25 = arith.constant 0 : index
    %c1_26 = arith.constant 1 : index
    %c0_27 = arith.constant 0 : index
    %26 = vector.load %arg11[%c0_25, %c1_26, %c0_27] : memref<18x18x128xbf16, #tpu.memory_space<vmem>>, vector<16x16x128xbf16>
    %27 = vector.shape_cast %26 : vector<16x16x128xbf16> to vector<256x128xbf16>
    %c1_28 = arith.constant 1 : index
    %c0_29 = arith.constant 0 : index
    %c0_30 = arith.constant 0 : index
    %28 = vector.load %arg4[%c1_28, %c0_29, %c0_30] : memref<9x128x128xbf16, #tpu.memory_space<vmem>>, vector<1x128x128xbf16>
    %29 = vector.shape_cast %28 : vector<1x128x128xbf16> to vector<128x128xbf16>
    %cst_31 = arith.constant dense<0.000000e+00> : vector<256x128xf32>
    %30 = tpu.matmul %27, %29, %cst_31 {dimension_numbers = #tpu.dot_dimension_numbers<[1], [0], [0], [1], [0, 0, 1, 1], [], []>} : vector<256x128xbf16>, vector<128x128xbf16>, vector<256x128xf32> -> vector<256x128xf32>
    %31 = arith.addf %21, %30 : vector<256x128xf32>
    %c1_32 = arith.constant 1 : index
    %c0_33 = arith.constant 0 : index
    %c0_34 = arith.constant 0 : index
    %32 = vector.load %arg5[%c1_32, %c0_33, %c0_34] : memref<9x128x128xbf16, #tpu.memory_space<vmem>>, vector<1x128x128xbf16>
    %33 = vector.shape_cast %32 : vector<1x128x128xbf16> to vector<128x128xbf16>
    %cst_35 = arith.constant dense<0.000000e+00> : vector<256x128xf32>
    %34 = tpu.matmul %27, %33, %cst_35 {dimension_numbers = #tpu.dot_dimension_numbers<[1], [0], [0], [1], [0, 0, 1, 1], [], []>} : vector<256x128xbf16>, vector<128x128xbf16>, vector<256x128xf32> -> vector<256x128xf32>
    %35 = arith.addf %25, %34 : vector<256x128xf32>
    %c0_36 = arith.constant 0 : index
    %c2 = arith.constant 2 : index
    %c0_37 = arith.constant 0 : index
    %36 = vector.load %arg11[%c0_36, %c2, %c0_37] : memref<18x18x128xbf16, #tpu.memory_space<vmem>>, vector<16x16x128xbf16>
    %37 = vector.shape_cast %36 : vector<16x16x128xbf16> to vector<256x128xbf16>
    %c2_38 = arith.constant 2 : index
    %c0_39 = arith.constant 0 : index
    %c0_40 = arith.constant 0 : index
    %38 = vector.load %arg4[%c2_38, %c0_39, %c0_40] : memref<9x128x128xbf16, #tpu.memory_space<vmem>>, vector<1x128x128xbf16>
    %39 = vector.shape_cast %38 : vector<1x128x128xbf16> to vector<128x128xbf16>
    %cst_41 = arith.constant dense<0.000000e+00> : vector<256x128xf32>
    %40 = tpu.matmul %37, %39, %cst_41 {dimension_numbers = #tpu.dot_dimension_numbers<[1], [0], [0], [1], [0, 0, 1, 1], [], []>} : vector<256x128xbf16>, vector<128x128xbf16>, vector<256x128xf32> -> vector<256x128xf32>
    %41 = arith.addf %31, %40 : vector<256x128xf32>
    %c2_42 = arith.constant 2 : index
    %c0_43 = arith.constant 0 : index
    %c0_44 = arith.constant 0 : index
    %42 = vector.load %arg5[%c2_42, %c0_43, %c0_44] : memref<9x128x128xbf16, #tpu.memory_space<vmem>>, vector<1x128x128xbf16>
    %43 = vector.shape_cast %42 : vector<1x128x128xbf16> to vector<128x128xbf16>
    %cst_45 = arith.constant dense<0.000000e+00> : vector<256x128xf32>
    %44 = tpu.matmul %37, %43, %cst_45 {dimension_numbers = #tpu.dot_dimension_numbers<[1], [0], [0], [1], [0, 0, 1, 1], [], []>} : vector<256x128xbf16>, vector<128x128xbf16>, vector<256x128xf32> -> vector<256x128xf32>
    %45 = arith.addf %35, %44 : vector<256x128xf32>
    %c1_46 = arith.constant 1 : index
    %c0_47 = arith.constant 0 : index
    %c0_48 = arith.constant 0 : index
    %46 = vector.load %arg11[%c1_46, %c0_47, %c0_48] : memref<18x18x128xbf16, #tpu.memory_space<vmem>>, vector<16x16x128xbf16>
    %47 = vector.shape_cast %46 : vector<16x16x128xbf16> to vector<256x128xbf16>
    %c3 = arith.constant 3 : index
    %c0_49 = arith.constant 0 : index
    %c0_50 = arith.constant 0 : index
    %48 = vector.load %arg4[%c3, %c0_49, %c0_50] : memref<9x128x128xbf16, #tpu.memory_space<vmem>>, vector<1x128x128xbf16>
    %49 = vector.shape_cast %48 : vector<1x128x128xbf16> to vector<128x128xbf16>
    %cst_51 = arith.constant dense<0.000000e+00> : vector<256x128xf32>
    %50 = tpu.matmul %47, %49, %cst_51 {dimension_numbers = #tpu.dot_dimension_numbers<[1], [0], [0], [1], [0, 0, 1, 1], [], []>} : vector<256x128xbf16>, vector<128x128xbf16>, vector<256x128xf32> -> vector<256x128xf32>
    %51 = arith.addf %41, %50 : vector<256x128xf32>
    %c3_52 = arith.constant 3 : index
    %c0_53 = arith.constant 0 : index
    %c0_54 = arith.constant 0 : index
    %52 = vector.load %arg5[%c3_52, %c0_53, %c0_54] : memref<9x128x128xbf16, #tpu.memory_space<vmem>>, vector<1x128x128xbf16>
    %53 = vector.shape_cast %52 : vector<1x128x128xbf16> to vector<128x128xbf16>
    %cst_55 = arith.constant dense<0.000000e+00> : vector<256x128xf32>
    %54 = tpu.matmul %47, %53, %cst_55 {dimension_numbers = #tpu.dot_dimension_numbers<[1], [0], [0], [1], [0, 0, 1, 1], [], []>} : vector<256x128xbf16>, vector<128x128xbf16>, vector<256x128xf32> -> vector<256x128xf32>
    %55 = arith.addf %45, %54 : vector<256x128xf32>
    %c1_56 = arith.constant 1 : index
    %c1_57 = arith.constant 1 : index
    %c0_58 = arith.constant 0 : index
    %56 = vector.load %arg11[%c1_56, %c1_57, %c0_58] : memref<18x18x128xbf16, #tpu.memory_space<vmem>>, vector<16x16x128xbf16>
    %57 = vector.shape_cast %56 : vector<16x16x128xbf16> to vector<256x128xbf16>
    %c4 = arith.constant 4 : index
    %c0_59 = arith.constant 0 : index
    %c0_60 = arith.constant 0 : index
    %58 = vector.load %arg4[%c4, %c0_59, %c0_60] : memref<9x128x128xbf16, #tpu.memory_space<vmem>>, vector<1x128x128xbf16>
    %59 = vector.shape_cast %58 : vector<1x128x128xbf16> to vector<128x128xbf16>
    %cst_61 = arith.constant dense<0.000000e+00> : vector<256x128xf32>
    %60 = tpu.matmul %57, %59, %cst_61 {dimension_numbers = #tpu.dot_dimension_numbers<[1], [0], [0], [1], [0, 0, 1, 1], [], []>} : vector<256x128xbf16>, vector<128x128xbf16>, vector<256x128xf32> -> vector<256x128xf32>
    %61 = arith.addf %51, %60 : vector<256x128xf32>
    %c4_62 = arith.constant 4 : index
    %c0_63 = arith.constant 0 : index
    %c0_64 = arith.constant 0 : index
    %62 = vector.load %arg5[%c4_62, %c0_63, %c0_64] : memref<9x128x128xbf16, #tpu.memory_space<vmem>>, vector<1x128x128xbf16>
    %63 = vector.shape_cast %62 : vector<1x128x128xbf16> to vector<128x128xbf16>
    %cst_65 = arith.constant dense<0.000000e+00> : vector<256x128xf32>
    %64 = tpu.matmul %57, %63, %cst_65 {dimension_numbers = #tpu.dot_dimension_numbers<[1], [0], [0], [1], [0, 0, 1, 1], [], []>} : vector<256x128xbf16>, vector<128x128xbf16>, vector<256x128xf32> -> vector<256x128xf32>
    %65 = arith.addf %55, %64 : vector<256x128xf32>
    %c1_66 = arith.constant 1 : index
    %c2_67 = arith.constant 2 : index
    %c0_68 = arith.constant 0 : index
    %66 = vector.load %arg11[%c1_66, %c2_67, %c0_68] : memref<18x18x128xbf16, #tpu.memory_space<vmem>>, vector<16x16x128xbf16>
    %67 = vector.shape_cast %66 : vector<16x16x128xbf16> to vector<256x128xbf16>
    %c5 = arith.constant 5 : index
    %c0_69 = arith.constant 0 : index
    %c0_70 = arith.constant 0 : index
    %68 = vector.load %arg4[%c5, %c0_69, %c0_70] : memref<9x128x128xbf16, #tpu.memory_space<vmem>>, vector<1x128x128xbf16>
    %69 = vector.shape_cast %68 : vector<1x128x128xbf16> to vector<128x128xbf16>
    %cst_71 = arith.constant dense<0.000000e+00> : vector<256x128xf32>
    %70 = tpu.matmul %67, %69, %cst_71 {dimension_numbers = #tpu.dot_dimension_numbers<[1], [0], [0], [1], [0, 0, 1, 1], [], []>} : vector<256x128xbf16>, vector<128x128xbf16>, vector<256x128xf32> -> vector<256x128xf32>
    %71 = arith.addf %61, %70 : vector<256x128xf32>
    %c5_72 = arith.constant 5 : index
    %c0_73 = arith.constant 0 : index
    %c0_74 = arith.constant 0 : index
    %72 = vector.load %arg5[%c5_72, %c0_73, %c0_74] : memref<9x128x128xbf16, #tpu.memory_space<vmem>>, vector<1x128x128xbf16>
    %73 = vector.shape_cast %72 : vector<1x128x128xbf16> to vector<128x128xbf16>
    %cst_75 = arith.constant dense<0.000000e+00> : vector<256x128xf32>
    %74 = tpu.matmul %67, %73, %cst_75 {dimension_numbers = #tpu.dot_dimension_numbers<[1], [0], [0], [1], [0, 0, 1, 1], [], []>} : vector<256x128xbf16>, vector<128x128xbf16>, vector<256x128xf32> -> vector<256x128xf32>
    %75 = arith.addf %65, %74 : vector<256x128xf32>
    %c2_76 = arith.constant 2 : index
    %c0_77 = arith.constant 0 : index
    %c0_78 = arith.constant 0 : index
    %76 = vector.load %arg11[%c2_76, %c0_77, %c0_78] : memref<18x18x128xbf16, #tpu.memory_space<vmem>>, vector<16x16x128xbf16>
    %77 = vector.shape_cast %76 : vector<16x16x128xbf16> to vector<256x128xbf16>
    %c6 = arith.constant 6 : index
    %c0_79 = arith.constant 0 : index
    %c0_80 = arith.constant 0 : index
    %78 = vector.load %arg4[%c6, %c0_79, %c0_80] : memref<9x128x128xbf16, #tpu.memory_space<vmem>>, vector<1x128x128xbf16>
    %79 = vector.shape_cast %78 : vector<1x128x128xbf16> to vector<128x128xbf16>
    %cst_81 = arith.constant dense<0.000000e+00> : vector<256x128xf32>
    %80 = tpu.matmul %77, %79, %cst_81 {dimension_numbers = #tpu.dot_dimension_numbers<[1], [0], [0], [1], [0, 0, 1, 1], [], []>} : vector<256x128xbf16>, vector<128x128xbf16>, vector<256x128xf32> -> vector<256x128xf32>
    %81 = arith.addf %71, %80 : vector<256x128xf32>
    %c6_82 = arith.constant 6 : index
    %c0_83 = arith.constant 0 : index
    %c0_84 = arith.constant 0 : index
    %82 = vector.load %arg5[%c6_82, %c0_83, %c0_84] : memref<9x128x128xbf16, #tpu.memory_space<vmem>>, vector<1x128x128xbf16>
    %83 = vector.shape_cast %82 : vector<1x128x128xbf16> to vector<128x128xbf16>
    %cst_85 = arith.constant dense<0.000000e+00> : vector<256x128xf32>
    %84 = tpu.matmul %77, %83, %cst_85 {dimension_numbers = #tpu.dot_dimension_numbers<[1], [0], [0], [1], [0, 0, 1, 1], [], []>} : vector<256x128xbf16>, vector<128x128xbf16>, vector<256x128xf32> -> vector<256x128xf32>
    %85 = arith.addf %75, %84 : vector<256x128xf32>
    %c2_86 = arith.constant 2 : index
    %c1_87 = arith.constant 1 : index
    %c0_88 = arith.constant 0 : index
    %86 = vector.load %arg11[%c2_86, %c1_87, %c0_88] : memref<18x18x128xbf16, #tpu.memory_space<vmem>>, vector<16x16x128xbf16>
    %87 = vector.shape_cast %86 : vector<16x16x128xbf16> to vector<256x128xbf16>
    %c7 = arith.constant 7 : index
    %c0_89 = arith.constant 0 : index
    %c0_90 = arith.constant 0 : index
    %88 = vector.load %arg4[%c7, %c0_89, %c0_90] : memref<9x128x128xbf16, #tpu.memory_space<vmem>>, vector<1x128x128xbf16>
    %89 = vector.shape_cast %88 : vector<1x128x128xbf16> to vector<128x128xbf16>
    %cst_91 = arith.constant dense<0.000000e+00> : vector<256x128xf32>
    %90 = tpu.matmul %87, %89, %cst_91 {dimension_numbers = #tpu.dot_dimension_numbers<[1], [0], [0], [1], [0, 0, 1, 1], [], []>} : vector<256x128xbf16>, vector<128x128xbf16>, vector<256x128xf32> -> vector<256x128xf32>
    %91 = arith.addf %81, %90 : vector<256x128xf32>
    %c7_92 = arith.constant 7 : index
    %c0_93 = arith.constant 0 : index
    %c0_94 = arith.constant 0 : index
    %92 = vector.load %arg5[%c7_92, %c0_93, %c0_94] : memref<9x128x128xbf16, #tpu.memory_space<vmem>>, vector<1x128x128xbf16>
    %93 = vector.shape_cast %92 : vector<1x128x128xbf16> to vector<128x128xbf16>
    %cst_95 = arith.constant dense<0.000000e+00> : vector<256x128xf32>
    %94 = tpu.matmul %87, %93, %cst_95 {dimension_numbers = #tpu.dot_dimension_numbers<[1], [0], [0], [1], [0, 0, 1, 1], [], []>} : vector<256x128xbf16>, vector<128x128xbf16>, vector<256x128xf32> -> vector<256x128xf32>
    %95 = arith.addf %85, %94 : vector<256x128xf32>
    %c2_96 = arith.constant 2 : index
    %c2_97 = arith.constant 2 : index
    %c0_98 = arith.constant 0 : index
    %96 = vector.load %arg11[%c2_96, %c2_97, %c0_98] : memref<18x18x128xbf16, #tpu.memory_space<vmem>>, vector<16x16x128xbf16>
    %97 = vector.shape_cast %96 : vector<16x16x128xbf16> to vector<256x128xbf16>
    %c8 = arith.constant 8 : index
    %c0_99 = arith.constant 0 : index
    %c0_100 = arith.constant 0 : index
    %98 = vector.load %arg4[%c8, %c0_99, %c0_100] : memref<9x128x128xbf16, #tpu.memory_space<vmem>>, vector<1x128x128xbf16>
    %99 = vector.shape_cast %98 : vector<1x128x128xbf16> to vector<128x128xbf16>
    %cst_101 = arith.constant dense<0.000000e+00> : vector<256x128xf32>
    %100 = tpu.matmul %97, %99, %cst_101 {dimension_numbers = #tpu.dot_dimension_numbers<[1], [0], [0], [1], [0, 0, 1, 1], [], []>} : vector<256x128xbf16>, vector<128x128xbf16>, vector<256x128xf32> -> vector<256x128xf32>
    %101 = arith.addf %91, %100 : vector<256x128xf32>
    %c8_102 = arith.constant 8 : index
    %c0_103 = arith.constant 0 : index
    %c0_104 = arith.constant 0 : index
    %102 = vector.load %arg5[%c8_102, %c0_103, %c0_104] : memref<9x128x128xbf16, #tpu.memory_space<vmem>>, vector<1x128x128xbf16>
    %103 = vector.shape_cast %102 : vector<1x128x128xbf16> to vector<128x128xbf16>
    %cst_105 = arith.constant dense<0.000000e+00> : vector<256x128xf32>
    %104 = tpu.matmul %97, %103, %cst_105 {dimension_numbers = #tpu.dot_dimension_numbers<[1], [0], [0], [1], [0, 0, 1, 1], [], []>} : vector<256x128xbf16>, vector<128x128xbf16>, vector<256x128xf32> -> vector<256x128xf32>
    %105 = arith.addf %95, %104 : vector<256x128xf32>
    %c0_106 = arith.constant 0 : index
    %c0_107 = arith.constant 0 : index
    %106 = vector.load %arg6[%c0_106, %c0_107] : memref<1x128xf32, #tpu.memory_space<vmem>>, vector<1x128xf32>
    %107 = vector.broadcast %106 : vector<1x128xf32> to vector<256x128xf32>
    %108 = arith.addf %101, %107 : vector<256x128xf32>
    %c0_108 = arith.constant 0 : index
    %c0_109 = arith.constant 0 : index
    %109 = vector.load %arg7[%c0_108, %c0_109] : memref<1x128xf32, #tpu.memory_space<vmem>>, vector<1x128xf32>
    %110 = vector.broadcast %109 : vector<1x128xf32> to vector<256x128xf32>
    %111 = arith.addf %105, %110 : vector<256x128xf32>
    %112 = arith.maximumf %108, %111 : vector<256x128xf32>
    %c0_110 = arith.constant 0 : index
    %c0_111 = arith.constant 0 : index
    %c0_112 = arith.constant 0 : index
    %113 = vector.load %arg8[%c0_110, %c0_111, %c0_112] : memref<1x256x128xf32, #tpu.memory_space<vmem>>, vector<1x256x128xf32>
    %114 = vector.shape_cast %113 : vector<1x256x128xf32> to vector<256x128xf32>
    %115 = vector.shape_cast %112 : vector<256x128xf32> to vector<1x256x128xf32>
    tpu.vector_store %arg8[%c0_110, %c0_111, %c0_112], %115 {strides = array<i32>} : memref<1x256x128xf32, #tpu.memory_space<vmem>>, vector<1x256x128xf32>,
    %cst_113 = arith.constant dense<0.000000e+00> : vector<128xf32>
    %116 = vector.multi_reduction <add>, %112, %cst_113 [0] : vector<256x128xf32> to vector<128xf32>
    %117 = vector.shape_cast %116 : vector<128xf32> to vector<1x128xf32>
    %118 = arith.mulf %112, %112 : vector<256x128xf32>
    %cst_114 = arith.constant dense<0.000000e+00> : vector<128xf32>
    %119 = vector.multi_reduction <add>, %118, %cst_114 [0] : vector<256x128xf32> to vector<128xf32>
    %120 = vector.shape_cast %119 : vector<128xf32> to vector<1x128xf32>
    %121 = vector.shape_cast %117 : vector<1x128xf32> to vector<1x128xf32>
    %122 = vector.broadcast %121 : vector<1x128xf32> to vector<8x128xf32>
    %c0_115 = arith.constant 0 : index
    %c0_116 = arith.constant 0 : index
    %123 = vector.load %arg9[%c0_115, %c0_116] : memref<8x128xf32, #tpu.memory_space<vmem>>, vector<8x128xf32>
    tpu.vector_store %arg9[%c0_115, %c0_116], %122 {strides = array<i32>} : memref<8x128xf32, #tpu.memory_space<vmem>>, vector<8x128xf32>,
    %124 = vector.shape_cast %120 : vector<1x128xf32> to vector<1x128xf32>
    %125 = vector.broadcast %124 : vector<1x128xf32> to vector<8x128xf32>
    %c0_117 = arith.constant 0 : index
    %c0_118 = arith.constant 0 : index
    %126 = vector.load %arg10[%c0_117, %c0_118] : memref<8x128xf32, #tpu.memory_space<vmem>>, vector<8x128xf32>
    tpu.vector_store %arg10[%c0_117, %c0_118], %125 {strides = array<i32>} : memref<8x128xf32, #tpu.memory_space<vmem>>, vector<8x128xf32>,
    return
  }
  func.func @transform_0(%arg0: i32) -> (i32, i32, i32, i32) {
    %c0_i32 = arith.constant 0 : i32
    %c0_i32_0 = arith.constant 0 : i32
    %c0_i32_1 = arith.constant 0 : i32
    %c0_i32_2 = arith.constant 0 : i32
    return %arg0, %c0_i32, %c0_i32_0, %c0_i32_1 : i32, i32, i32, i32
  }
  func.func @transform_1(%arg0: i32) -> (i32, i32) {
    %c0_i32 = arith.constant 0 : i32
    %c0_i32_0 = arith.constant 0 : i32
    %c0_i32_1 = arith.constant 0 : i32
    return %c0_i32, %c0_i32_0 : i32, i32
  }
  func.func @transform_2(%arg0: i32) -> (i32, i32) {
    %c0_i32 = arith.constant 0 : i32
    %c0_i32_0 = arith.constant 0 : i32
    %c0_i32_1 = arith.constant 0 : i32
    return %c0_i32, %c0_i32_0 : i32, i32
  }
  func.func @transform_3(%arg0: i32) -> (i32, i32, i32) {
    %c0_i32 = arith.constant 0 : i32
    %c0_i32_0 = arith.constant 0 : i32
    %c0_i32_1 = arith.constant 0 : i32
    %c0_i32_2 = arith.constant 0 : i32
    return %c0_i32, %c0_i32_0, %c0_i32_1 : i32, i32, i32
  }
  func.func @transform_4(%arg0: i32) -> (i32, i32, i32) {
    %c0_i32 = arith.constant 0 : i32
    %c0_i32_0 = arith.constant 0 : i32
    %c0_i32_1 = arith.constant 0 : i32
    %c0_i32_2 = arith.constant 0 : i32
    return %c0_i32, %c0_i32_0, %c0_i32_1 : i32, i32, i32
  }
  func.func @transform_5(%arg0: i32) -> (i32, i32) {
    %c0_i32 = arith.constant 0 : i32
    %c0_i32_0 = arith.constant 0 : i32
    %c0_i32_1 = arith.constant 0 : i32
    return %c0_i32, %c0_i32_0 : i32, i32
  }
  func.func @transform_6(%arg0: i32) -> (i32, i32) {
    %c0_i32 = arith.constant 0 : i32
    %c0_i32_0 = arith.constant 0 : i32
    %c0_i32_1 = arith.constant 0 : i32
    return %c0_i32, %c0_i32_0 : i32, i32
  }
  func.func @transform_7(%arg0: i32) -> (i32, i32, i32) {
    %c0_i32 = arith.constant 0 : i32
    %c0_i32_0 = arith.constant 0 : i32
    %c0_i32_1 = arith.constant 0 : i32
    return %arg0, %c0_i32, %c0_i32_0 : i32, i32, i32
  }
  func.func @transform_8(%arg0: i32) -> (i32, i32) {
    %c0_i32 = arith.constant 0 : i32
    %c0_i32_0 = arith.constant 0 : i32
    return %arg0, %c0_i32 : i32, i32
  }
  func.func @transform_9(%arg0: i32) -> (i32, i32) {
    %c0_i32 = arith.constant 0 : i32
    %c0_i32_0 = arith.constant 0 : i32
    return %arg0, %c0_i32 : i32, i32
  }
}

module attributes {stable_mosaic.version = 11 : i64} {
  func.func @_mfm1x1_stats_kernel(%arg0: i32, %arg1: memref<512x128xbf16, #tpu.memory_space<vmem>>, %arg2: memref<128x128xbf16, #tpu.memory_space<vmem>>, %arg3: memref<128x128xbf16, #tpu.memory_space<vmem>>, %arg4: memref<1x128xf32, #tpu.memory_space<vmem>>, %arg5: memref<1x128xf32, #tpu.memory_space<vmem>>, %arg6: memref<512x128xf32, #tpu.memory_space<vmem>>, %arg7: memref<8x128xf32, #tpu.memory_space<vmem>>, %arg8: memref<8x128xf32, #tpu.memory_space<vmem>>) attributes {dimension_semantics = [#tpu.dimension_semantics<parallel>], iteration_bounds = array<i64: 1>, scalar_prefetch = 0 : i64, scratch_operands = 0 : i64, tpu.core_type = #tpu.core_type<tc>, window_params = [{transform_indices = @transform_0, window_bounds = array<i64: 512, 128>}, {pipeline_mode = #tpu.pipeline_mode<synchronous>, transform_indices = @transform_1, window_bounds = array<i64: 128, 128>}, {pipeline_mode = #tpu.pipeline_mode<synchronous>, transform_indices = @transform_2, window_bounds = array<i64: 128, 128>}, {pipeline_mode = #tpu.pipeline_mode<synchronous>, transform_indices = @transform_3, window_bounds = array<i64: 1, 128>}, {pipeline_mode = #tpu.pipeline_mode<synchronous>, transform_indices = @transform_4, window_bounds = array<i64: 1, 128>}, {transform_indices = @transform_5, window_bounds = array<i64: 512, 128>}, {transform_indices = @transform_6, window_bounds = array<i64: 8, 128>}, {transform_indices = @transform_7, window_bounds = array<i64: 8, 128>}]} {
    %c0 = arith.constant 0 : index
    %c0_0 = arith.constant 0 : index
    %0 = vector.load %arg1[%c0, %c0_0] : memref<512x128xbf16, #tpu.memory_space<vmem>>, vector<512x128xbf16>
    %c0_1 = arith.constant 0 : index
    %c0_2 = arith.constant 0 : index
    %1 = vector.load %arg2[%c0_1, %c0_2] : memref<128x128xbf16, #tpu.memory_space<vmem>>, vector<128x128xbf16>
    %cst = arith.constant dense<0.000000e+00> : vector<512x128xf32>
    %2 = tpu.matmul %0, %1, %cst {dimension_numbers = #tpu.dot_dimension_numbers<[1], [0], [0], [1], [0, 0, 1, 1], [], []>} : vector<512x128xbf16>, vector<128x128xbf16>, vector<512x128xf32> -> vector<512x128xf32>
    %c0_3 = arith.constant 0 : index
    %c0_4 = arith.constant 0 : index
    %3 = vector.load %arg3[%c0_3, %c0_4] : memref<128x128xbf16, #tpu.memory_space<vmem>>, vector<128x128xbf16>
    %cst_5 = arith.constant dense<0.000000e+00> : vector<512x128xf32>
    %4 = tpu.matmul %0, %3, %cst_5 {dimension_numbers = #tpu.dot_dimension_numbers<[1], [0], [0], [1], [0, 0, 1, 1], [], []>} : vector<512x128xbf16>, vector<128x128xbf16>, vector<512x128xf32> -> vector<512x128xf32>
    %c0_6 = arith.constant 0 : index
    %c0_7 = arith.constant 0 : index
    %5 = vector.load %arg4[%c0_6, %c0_7] : memref<1x128xf32, #tpu.memory_space<vmem>>, vector<1x128xf32>
    %6 = vector.broadcast %5 : vector<1x128xf32> to vector<512x128xf32>
    %7 = arith.addf %2, %6 : vector<512x128xf32>
    %c0_8 = arith.constant 0 : index
    %c0_9 = arith.constant 0 : index
    %8 = vector.load %arg5[%c0_8, %c0_9] : memref<1x128xf32, #tpu.memory_space<vmem>>, vector<1x128xf32>
    %9 = vector.broadcast %8 : vector<1x128xf32> to vector<512x128xf32>
    %10 = arith.addf %4, %9 : vector<512x128xf32>
    %11 = arith.maximumf %7, %10 : vector<512x128xf32>
    %c0_10 = arith.constant 0 : index
    %c0_11 = arith.constant 0 : index
    %12 = vector.load %arg6[%c0_10, %c0_11] : memref<512x128xf32, #tpu.memory_space<vmem>>, vector<512x128xf32>
    tpu.vector_store %arg6[%c0_10, %c0_11], %11 {strides = array<i32>} : memref<512x128xf32, #tpu.memory_space<vmem>>, vector<512x128xf32>,
    %cst_12 = arith.constant dense<0.000000e+00> : vector<128xf32>
    %13 = vector.multi_reduction <add>, %11, %cst_12 [0] : vector<512x128xf32> to vector<128xf32>
    %14 = vector.shape_cast %13 : vector<128xf32> to vector<1x128xf32>
    %15 = arith.mulf %11, %11 : vector<512x128xf32>
    %cst_13 = arith.constant dense<0.000000e+00> : vector<128xf32>
    %16 = vector.multi_reduction <add>, %15, %cst_13 [0] : vector<512x128xf32> to vector<128xf32>
    %17 = vector.shape_cast %16 : vector<128xf32> to vector<1x128xf32>
    %18 = vector.shape_cast %14 : vector<1x128xf32> to vector<1x128xf32>
    %19 = vector.broadcast %18 : vector<1x128xf32> to vector<8x128xf32>
    %c0_14 = arith.constant 0 : index
    %c0_15 = arith.constant 0 : index
    %20 = vector.load %arg7[%c0_14, %c0_15] : memref<8x128xf32, #tpu.memory_space<vmem>>, vector<8x128xf32>
    tpu.vector_store %arg7[%c0_14, %c0_15], %19 {strides = array<i32>} : memref<8x128xf32, #tpu.memory_space<vmem>>, vector<8x128xf32>,
    %21 = vector.shape_cast %17 : vector<1x128xf32> to vector<1x128xf32>
    %22 = vector.broadcast %21 : vector<1x128xf32> to vector<8x128xf32>
    %c0_16 = arith.constant 0 : index
    %c0_17 = arith.constant 0 : index
    %23 = vector.load %arg8[%c0_16, %c0_17] : memref<8x128xf32, #tpu.memory_space<vmem>>, vector<8x128xf32>
    tpu.vector_store %arg8[%c0_16, %c0_17], %22 {strides = array<i32>} : memref<8x128xf32, #tpu.memory_space<vmem>>, vector<8x128xf32>,
    return
  }
  func.func @transform_0(%arg0: i32) -> (i32, i32) {
    %c0_i32 = arith.constant 0 : i32
    %c0_i32_0 = arith.constant 0 : i32
    return %arg0, %c0_i32 : i32, i32
  }
  func.func @transform_1(%arg0: i32) -> (i32, i32) {
    %c0_i32 = arith.constant 0 : i32
    %c0_i32_0 = arith.constant 0 : i32
    %c0_i32_1 = arith.constant 0 : i32
    return %c0_i32, %c0_i32_0 : i32, i32
  }
  func.func @transform_2(%arg0: i32) -> (i32, i32) {
    %c0_i32 = arith.constant 0 : i32
    %c0_i32_0 = arith.constant 0 : i32
    %c0_i32_1 = arith.constant 0 : i32
    return %c0_i32, %c0_i32_0 : i32, i32
  }
  func.func @transform_3(%arg0: i32) -> (i32, i32) {
    %c0_i32 = arith.constant 0 : i32
    %c0_i32_0 = arith.constant 0 : i32
    %c0_i32_1 = arith.constant 0 : i32
    return %c0_i32, %c0_i32_0 : i32, i32
  }
  func.func @transform_4(%arg0: i32) -> (i32, i32) {
    %c0_i32 = arith.constant 0 : i32
    %c0_i32_0 = arith.constant 0 : i32
    %c0_i32_1 = arith.constant 0 : i32
    return %c0_i32, %c0_i32_0 : i32, i32
  }
  func.func @transform_5(%arg0: i32) -> (i32, i32) {
    %c0_i32 = arith.constant 0 : i32
    %c0_i32_0 = arith.constant 0 : i32
    return %arg0, %c0_i32 : i32, i32
  }
  func.func @transform_6(%arg0: i32) -> (i32, i32) {
    %c0_i32 = arith.constant 0 : i32
    %c0_i32_0 = arith.constant 0 : i32
    return %arg0, %c0_i32 : i32, i32
  }
  func.func @transform_7(%arg0: i32) -> (i32, i32) {
    %c0_i32 = arith.constant 0 : i32
    %c0_i32_0 = arith.constant 0 : i32
    return %arg0, %c0_i32 : i32, i32
  }
}

module attributes {stable_mosaic.version = 11 : i64} {
  func.func @_bn_affine_kernel(%arg0: i32, %arg1: memref<512x128xf32, #tpu.memory_space<vmem>>, %arg2: memref<1x128xf32, #tpu.memory_space<vmem>>, %arg3: memref<1x128xf32, #tpu.memory_space<vmem>>, %arg4: memref<512x128xf32, #tpu.memory_space<vmem>>) attributes {dimension_semantics = [#tpu.dimension_semantics<parallel>], iteration_bounds = array<i64: 1>, scalar_prefetch = 0 : i64, scratch_operands = 0 : i64, tpu.core_type = #tpu.core_type<tc>, window_params = [{transform_indices = @transform_0, window_bounds = array<i64: 512, 128>}, {pipeline_mode = #tpu.pipeline_mode<synchronous>, transform_indices = @transform_1, window_bounds = array<i64: 1, 128>}, {pipeline_mode = #tpu.pipeline_mode<synchronous>, transform_indices = @transform_2, window_bounds = array<i64: 1, 128>}, {transform_indices = @transform_3, window_bounds = array<i64: 512, 128>}]} {
    %c0 = arith.constant 0 : index
    %c0_0 = arith.constant 0 : index
    %0 = vector.load %arg1[%c0, %c0_0] : memref<512x128xf32, #tpu.memory_space<vmem>>, vector<512x128xf32>
    %c0_1 = arith.constant 0 : index
    %c0_2 = arith.constant 0 : index
    %1 = vector.load %arg2[%c0_1, %c0_2] : memref<1x128xf32, #tpu.memory_space<vmem>>, vector<1x128xf32>
    %2 = vector.broadcast %1 : vector<1x128xf32> to vector<512x128xf32>
    %3 = arith.mulf %0, %2 : vector<512x128xf32>
    %c0_3 = arith.constant 0 : index
    %c0_4 = arith.constant 0 : index
    %4 = vector.load %arg3[%c0_3, %c0_4] : memref<1x128xf32, #tpu.memory_space<vmem>>, vector<1x128xf32>
    %5 = vector.broadcast %4 : vector<1x128xf32> to vector<512x128xf32>
    %6 = arith.addf %3, %5 : vector<512x128xf32>
    %c0_5 = arith.constant 0 : index
    %c0_6 = arith.constant 0 : index
    %7 = vector.load %arg4[%c0_5, %c0_6] : memref<512x128xf32, #tpu.memory_space<vmem>>, vector<512x128xf32>
    tpu.vector_store %arg4[%c0_5, %c0_6], %6 {strides = array<i32>} : memref<512x128xf32, #tpu.memory_space<vmem>>, vector<512x128xf32>,
    return
  }
  func.func @transform_0(%arg0: i32) -> (i32, i32) {
    %c0_i32 = arith.constant 0 : i32
    %c0_i32_0 = arith.constant 0 : i32
    return %arg0, %c0_i32 : i32, i32
  }
  func.func @transform_1(%arg0: i32) -> (i32, i32) {
    %c0_i32 = arith.constant 0 : i32
    %c0_i32_0 = arith.constant 0 : i32
    %c0_i32_1 = arith.constant 0 : i32
    return %c0_i32, %c0_i32_0 : i32, i32
  }
  func.func @transform_2(%arg0: i32) -> (i32, i32) {
    %c0_i32 = arith.constant 0 : i32
    %c0_i32_0 = arith.constant 0 : i32
    %c0_i32_1 = arith.constant 0 : i32
    return %c0_i32, %c0_i32_0 : i32, i32
  }
  func.func @transform_3(%arg0: i32) -> (i32, i32) {
    %c0_i32 = arith.constant 0 : i32
    %c0_i32_0 = arith.constant 0 : i32
    return %arg0, %c0_i32 : i32, i32
  }
}

</mosaic_0001>

<bundles_post_ra>
// kernel: group_forward.5
= control target key start
LH: loop header
LB: loop body
LE: loop exit
PB: predicated region body
PF: predicated region fallthrough
CT: control target
= control target key end

     0   :  { %8 = vsyncpa [#allocation3], 0  ;;  %s332_s12 = smov [#allocation2]   ;;  %s697_s0 = inlined_call_operand.hbm [shape: f32[512,128], index: 0, kind: input, shape index: {}]   ;;  %s698_s1 = inlined_call_operand.vmem [shape: f32[1,128], index: 1, kind: input, shape index: {}]   ;;  %s699_s2 = inlined_call_operand.vmem [shape: f32[1,128], index: 2, kind: input, shape index: {}]   ;;  %s700_s3 = inlined_call_operand.vmem [shape: f32[512,128], index: 3, kind: output, shape index: {}]  }
   0x1   :  { %s14_s13 = sshll.u32 %s332_s12, 4  ;;  %s308_s16 = scalar_lea.hbm %s697_s0, 8192  ;;  %s15_s13 = int_to_ptr.vmem [resolvable:$true] %s14_s13 }
   0x2   :  { %p309_p0 = scmp.ne.s32.totalorder %s697_s0, %s308_s16  ;;  %p312_p1 = scmp.lt.u32.totalorder %s308_s16, %s697_s0 }
   0x4   :  { %p314_p2 = pnand %p312_p1, %p309_p0 }
   0x6   :  { %317 = shalt.err (!%p314_p2)
}
   0x7   :  { %s318_s21 = scalar_lea.vmem %s15_s13, 8192  ;;  %p323_p4 = scmp.lt.s32.totalorder %s15_s13, %s15_s13 }
   0x8   :  { %p319_p3 = scmp.ne.s32.totalorder %s15_s13, %s318_s21  ;;  %p324_p5 = scmp.lt.s32.totalorder %s318_s21, %s318_s21 }
   0xa   :  { %p325_p6 = por %p324_p5, %p323_p4 }
   0xc   :  { %p326_p7 = pnand %p325_p6, %p319_p3 }
   0xe   :  { %329 = shalt.err (!%p326_p7)
}
   0xf   :  { %s333_s22 = smov 128   ;;  %s334_s23 = smov 8  }
  0x10   :  { %20 = dma.hbm_to_vmem [thread:$0]  %s697_s0, 8192, %s15_s13, [#allocation3], %s333_s22, %s333_s22, %s334_s23  }
  0x11   :  { %330 = dma.done.wait [#allocation3], 8192  }
  0x12   :  { %331 = vsyncadd [#allocation3], 4294959104  ;;  %v28_v0 = vld [vmem:[#allocation2] sm:$0xff]  ;;  %v29_v4 = vld [vmem:[#allocation2 + $0x8] sm:$0xff] }
  0x13   :  { %v370_v1 = vld [vmem:[%s698_s1] ss:$0 sm:$0xff]  ;;  %v30_v5 = vld [vmem:[#allocation2 + $0x10] sm:$0xff]  ;;  %v31_v6 = vld [vmem:[#allocation2 + $0x18] sm:$0xff] }
  0x14   :  { %v375_v2 = vld [vmem:[%s699_s2] ss:$0 sm:$0xff]  ;;  %v99_v3 = vmul.f32 %v370_v1, %v28_v0  ;;  %v100_v7 = vmul.f32 %v370_v1, %v29_v4  ;;  %v101_v8 = vmul.f32 %v370_v1, %v30_v5  ;;  %v102_v9 = vmul.f32 %v370_v1, %v31_v6  ;;  %v33_v11 = vld [vmem:[#allocation2 + $0x28] sm:$0xff]  ;;  %v34_v12 = vld [vmem:[#allocation2 + $0x30] sm:$0xff] }
  0x15   :  { %v32_v10 = vld [vmem:[#allocation2 + $0x20] sm:$0xff]  ;;  %v104_v15 = vmul.f32 %v370_v1, %v33_v11  ;;  %v105_v16 = vmul.f32 %v370_v1, %v34_v12  ;;  %v35_v17 = vld [vmem:[#allocation2 + $0x38] sm:$0xff]  ;;  %v37_v19 = vld [vmem:[#allocation2 + $0x48] sm:$0xff] }
  0x16   :  { %v170_v13 = vadd.f32 %v375_v2, %v99_v3  ;;  %v103_v14 = vmul.f32 %v370_v1, %v32_v10  ;;  %v36_v18 = vld [vmem:[#allocation2 + $0x40] sm:$0xff]  ;;  %v171_v20 = vadd.f32 %v375_v2, %v100_v7  ;;  %v172_v21 = vadd.f32 %v375_v2, %v101_v8  ;;  %v38_v24 = vld [vmem:[#allocation2 + $0x50] sm:$0xff]  ;;  %v39_v25 = vld [vmem:[#allocation2 + $0x58] sm:$0xff] }
  0x17   :  { %v173_v22 = vadd.f32 %v375_v2, %v102_v9  ;;  %v106_v23 = vmul.f32 %v370_v1, %v35_v17  ;;  %v40_v26 = vld [vmem:[#allocation2 + $0x60] sm:$0xff]  ;;  %v175_v28 = vadd.f32 %v375_v2, %v104_v15  ;;  %v176_v29 = vadd.f32 %v375_v2, %v105_v16  ;;  %v41_v31 = vld [vmem:[#allocation2 + $0x68] sm:$0xff]  ;;  %v42_v32 = vld [vmem:[#allocation2 + $0x70] sm:$0xff] }
  0x18   :  { %234 = vst [vmem:[%s700_s3] sm:$0xff] %v170_v13  ;;  %v174_v27 = vadd.f32 %v375_v2, %v103_v14  ;;  %v107_v30 = vmul.f32 %v370_v1, %v36_v18  ;;  %v43_v33 = vld [vmem:[#allocation2 + $0x78] sm:$0xff]  ;;  %235 = vst [vmem:[%s700_s3 + $0x8] sm:$0xff] %v171_v20  ;;  %v108_v35 = vmul.f32 %v370_v1, %v37_v19  ;;  %v44_v38 = vld [vmem:[#allocation2 + $0x80] sm:$0xff] }
  0x19   :  { %236 = vst [vmem:[%s700_s3 + $0x10] sm:$0xff] %v172_v21  ;;  %237 = vst [vmem:[%s700_s3 + $0x18] sm:$0xff] %v173_v22  ;;  %v177_v34 = vadd.f32 %v375_v2, %v106_v23  ;;  %v109_v36 = vmul.f32 %v370_v1, %v38_v24  ;;  %v110_v37 = vmul.f32 %v370_v1, %v39_v25  ;;  %v45_v43 = vld [vmem:[#allocation2 + $0x88] sm:$0xff]  ;;  %v46_v44 = vld [vmem:[#allocation2 + $0x90] sm:$0xff] }
  0x1a   :  { %238 = vst [vmem:[%s700_s3 + $0x20] sm:$0xff] %v174_v27  ;;  %239 = vst [vmem:[%s700_s3 + $0x28] sm:$0xff] %v175_v28  ;;  %v178_v39 = vadd.f32 %v375_v2, %v107_v30  ;;  %v111_v40 = vmul.f32 %v370_v1, %v40_v26  ;;  %v112_v41 = vmul.f32 %v370_v1, %v41_v31  ;;  %v47_v45 = vld [vmem:[#allocation2 + $0x98] sm:$0xff]  ;;  %v48_v50 = vld [vmem:[#allocation2 + $0xa0] sm:$0xff] }
  0x1b   :  { %240 = vst [vmem:[%s700_s3 + $0x30] sm:$0xff] %v176_v29  ;;  %v113_v42 = vmul.f32 %v370_v1, %v42_v32  ;;  %241 = vst [vmem:[%s700_s3 + $0x38] sm:$0xff] %v177_v34  ;;  %v179_v46 = vadd.f32 %v375_v2, %v108_v35  ;;  %v180_v47 = vadd.f32 %v375_v2, %v109_v36  ;;  %v49_v51 = vld [vmem:[#allocation2 + $0xa8] sm:$0xff]  ;;  %v50_v52 = vld [vmem:[#allocation2 + $0xb0] sm:$0xff] }
  0x1c   :  { %v181_v48 = vadd.f32 %v375_v2, %v110_v37  ;;  %v114_v49 = vmul.f32 %v370_v1, %v43_v33  ;;  %242 = vst [vmem:[%s700_s3 + $0x40] sm:$0xff] %v178_v39  ;;  %v182_v53 = vadd.f32 %v375_v2, %v111_v40  ;;  %v183_v54 = vadd.f32 %v375_v2, %v112_v41  ;;  %v51_v57 = vld [vmem:[#allocation2 + $0xb8] sm:$0xff]  ;;  %v52_v62 = vld [vmem:[#allocation2 + $0xc0] sm:$0xff]  ;;  %v53_v5 = vld [vmem:[#allocation2 + $0xc8] sm:$0xff] }
  0x1d   :  { %v184_v55 = vadd.f32 %v375_v2, %v113_v42  ;;  %v115_v56 = vmul.f32 %v370_v1, %v44_v38  ;;  %243 = vst [vmem:[%s700_s3 + $0x48] sm:$0xff] %v179_v46  ;;  %244 = vst [vmem:[%s700_s3 + $0x50] sm:$0xff] %v180_v47  ;;  %v116_v59 = vmul.f32 %v370_v1, %v45_v43  ;;  %v54_v6 = vld [vmem:[#allocation2 + $0xd0] sm:$0xff]  ;;  %v55_v7 = vld [vmem:[#allocation2 + $0xd8] sm:$0xff] }
  0x1e   :  { %245 = vst [vmem:[%s700_s3 + $0x58] sm:$0xff] %v181_v48  ;;  %v185_v58 = vadd.f32 %v375_v2, %v114_v49  ;;  %v117_v60 = vmul.f32 %v370_v1, %v46_v44  ;;  %v118_v61 = vmul.f32 %v370_v1, %v47_v45  ;;  %246 = vst [vmem:[%s700_s3 + $0x60] sm:$0xff] %v182_v53  ;;  %v56_v12 = vld [vmem:[#allocation2 + $0xe0] sm:$0xff]  ;;  %v57_v13 = vld [vmem:[#allocation2 + $0xe8] sm:$0xff] }
  0x1f   :  { %247 = vst [vmem:[%s700_s3 + $0x68] sm:$0xff] %v183_v54  ;;  %248 = vst [vmem:[%s700_s3 + $0x70] sm:$0xff] %v184_v55  ;;  %v186_v63 = vadd.f32 %v375_v2, %v115_v56  ;;  %v119_v0 = vmul.f32 %v370_v1, %v48_v50  ;;  %v120_v3 = vmul.f32 %v370_v1, %v49_v51  ;;  %v58_v14 = vld [vmem:[#allocation2 + $0xf0] sm:$0xff]  ;;  %v59_v19 = vld [vmem:[#allocation2 + $0xf8] sm:$0xff] }
  0x20   :  { %v121_v4 = vmul.f32 %v370_v1, %v50_v52  ;;  %249 = vst [vmem:[%s700_s3 + $0x78] sm:$0xff] %v185_v58  ;;  %v187_v8 = vadd.f32 %v375_v2, %v116_v59  ;;  %v188_v9 = vadd.f32 %v375_v2, %v117_v60  ;;  %v189_v10 = vadd.f32 %v375_v2, %v118_v61  ;;  %v60_v24 = vld [vmem:[#allocation2 + $0x100] sm:$0xff]  ;;  %v61_v29 = vld [vmem:[#allocation2 + $0x108] sm:$0xff]  ;;  %v62_v30 = vld [vmem:[#allocation2 + $0x110] sm:$0xff] }
  0x21   :  { %v122_v11 = vmul.f32 %v370_v1, %v51_v57  ;;  %250 = vst [vmem:[%s700_s3 + $0x80] sm:$0xff] %v186_v63  ;;  %v190_v15 = vadd.f32 %v375_v2, %v119_v0  ;;  %v191_v16 = vadd.f32 %v375_v2, %v120_v3  ;;  %v123_v18 = vmul.f32 %v370_v1, %v52_v62  ;;  %v63_v31 = vld [vmem:[#allocation2 + $0x118] sm:$0xff]  ;;  %v64_v36 = vld [vmem:[#allocation2 + $0x120] sm:$0xff]  ;;  %v65_v37 = vld [vmem:[#allocation2 + $0x128] sm:$0xff] }
  0x22   :  { %v192_v17 = vadd.f32 %v375_v2, %v121_v4  ;;  %251 = vst [vmem:[%s700_s3 + $0x88] sm:$0xff] %v187_v8  ;;  %252 = vst [vmem:[%s700_s3 + $0x90] sm:$0xff] %v188_v9  ;;  %v124_v21 = vmul.f32 %v370_v1, %v53_v5  ;;  %v125_v22 = vmul.f32 %v370_v1, %v54_v6  ;;  %v66_v38 = vld [vmem:[#allocation2 + $0x130] sm:$0xff]  ;;  %v67_v43 = vld [vmem:[#allocation2 + $0x138] sm:$0xff] }
  0x23   :  { %253 = vst [vmem:[%s700_s3 + $0x98] sm:$0xff] %v189_v10  ;;  %v193_v20 = vadd.f32 %v375_v2, %v122_v11  ;;  %v126_v23 = vmul.f32 %v370_v1, %v55_v7  ;;  %254 = vst [vmem:[%s700_s3 + $0xa0] sm:$0xff] %v190_v15  ;;  %v194_v25 = vadd.f32 %v375_v2, %v123_v18  ;;  %v68_v48 = vld [vmem:[#allocation2 + $0x140] sm:$0xff]  ;;  %v69_v53 = vld [vmem:[#allocation2 + $0x148] sm:$0xff] }
  0x24   :  { %255 = vst [vmem:[%s700_s3 + $0xa8] sm:$0xff] %v191_v16  ;;  %256 = vst [vmem:[%s700_s3 + $0xb0] sm:$0xff] %v192_v17  ;;  %v127_v26 = vmul.f32 %v370_v1, %v56_v12  ;;  %v128_v27 = vmul.f32 %v370_v1, %v57_v13  ;;  %v129_v28 = vmul.f32 %v370_v1, %v58_v14  ;;  %v70_v54 = vld [vmem:[#allocation2 + $0x150] sm:$0xff]  ;;  %v71_v55 = vld [vmem:[#allocation2 + $0x158] sm:$0xff] }
  0x25   :  { %257 = vst [vmem:[%s700_s3 + $0xb8] sm:$0xff] %v193_v20  ;;  %v195_v32 = vadd.f32 %v375_v2, %v124_v21  ;;  %v196_v33 = vadd.f32 %v375_v2, %v125_v22  ;;  %v197_v34 = vadd.f32 %v375_v2, %v126_v23  ;;  %v130_v35 = vmul.f32 %v370_v1, %v59_v19  ;;  %v72_v60 = vld [vmem:[#allocation2 + $0x160] sm:$0xff]  ;;  %v73_v61 = vld [vmem:[#allocation2 + $0x168] sm:$0xff]  ;;  %v74_v62 = vld [vmem:[#allocation2 + $0x170] sm:$0xff] }
  0x26   :  { %258 = vst [vmem:[%s700_s3 + $0xc0] sm:$0xff] %v194_v25  ;;  %v198_v39 = vadd.f32 %v375_v2, %v127_v26  ;;  %v199_v40 = vadd.f32 %v375_v2, %v128_v27  ;;  %v200_v41 = vadd.f32 %v375_v2, %v129_v28  ;;  %v131_v42 = vmul.f32 %v370_v1, %v60_v24  ;;  %v75_v5 = vld [vmem:[#allocation2 + $0x178] sm:$0xff]  ;;  %v76_v10 = vld [vmem:[#allocation2 + $0x180] sm:$0xff]  ;;  %v77_v15 = vld [vmem:[#allocation2 + $0x188] sm:$0xff] }
  0x27   :  { %259 = vst [vmem:[%s700_s3 + $0xc8] sm:$0xff] %v195_v32  ;;  %260 = vst [vmem:[%s700_s3 + $0xd0] sm:$0xff] %v196_v33  ;;  %v201_v44 = vadd.f32 %v375_v2, %v130_v35  ;;  %v132_v45 = vmul.f32 %v370_v1, %v61_v29  ;;  %v133_v46 = vmul.f32 %v370_v1, %v62_v30  ;;  %v78_v16 = vld [vmem:[#allocation2 + $0x190] sm:$0xff]  ;;  %v79_v17 = vld [vmem:[#allocation2 + $0x198] sm:$0xff] }
  0x28   :  { %261 = vst [vmem:[%s700_s3 + $0xd8] sm:$0xff] %v197_v34  ;;  %v134_v47 = vmul.f32 %v370_v1, %v63_v31  ;;  %262 = vst [vmem:[%s700_s3 + $0xe0] sm:$0xff] %v198_v39  ;;  %v202_v49 = vadd.f32 %v375_v2, %v131_v42  ;;  %v135_v50 = vmul.f32 %v370_v1, %v64_v36  ;;  %v80_v22 = vld [vmem:[#allocation2 + $0x1a0] sm:$0xff]  ;;  %v81_v23 = vld [vmem:[#allocation2 + $0x1a8] sm:$0xff] }
  0x29   :  { %263 = vst [vmem:[%s700_s3 + $0xe8] sm:$0xff] %v199_v40  ;;  %264 = vst [vmem:[%s700_s3 + $0xf0] sm:$0xff] %v200_v41  ;;  %v136_v51 = vmul.f32 %v370_v1, %v65_v37  ;;  %v137_v52 = vmul.f32 %v370_v1, %v66_v38  ;;  %v203_v56 = vadd.f32 %v375_v2, %v132_v45  ;;  %v82_v24 = vld [vmem:[#allocation2 + $0x1b0] sm:$0xff]  ;;  %v83_v29 = vld [vmem:[#allocation2 + $0x1b8] sm:$0xff] }
  0x2a   :  { %265 = vst [vmem:[%s700_s3 + $0xf8] sm:$0xff] %v201_v44  ;;  %v204_v57 = vadd.f32 %v375_v2, %v133_v46  ;;  %v205_v58 = vadd.f32 %v375_v2, %v134_v47  ;;  %v138_v59 = vmul.f32 %v370_v1, %v67_v43  ;;  %266 = vst [vmem:[%s700_s3 + $0x100] sm:$0xff] %v202_v49  ;;  %v84_v34 = vld [vmem:[#allocation2 + $0x1c0] sm:$0xff]  ;;  %v85_v39 = vld [vmem:[#allocation2 + $0x1c8] sm:$0xff] }
  0x2b   :  { %v206_v63 = vadd.f32 %v375_v2, %v135_v50  ;;  %v207_v0 = vadd.f32 %v375_v2, %v136_v51  ;;  %v208_v3 = vadd.f32 %v375_v2, %v137_v52  ;;  %v139_v4 = vmul.f32 %v370_v1, %v68_v48  ;;  %267 = vst [vmem:[%s700_s3 + $0x108] sm:$0xff] %v203_v56  ;;  %v86_v40 = vld [vmem:[#allocation2 + $0x1d0] sm:$0xff]  ;;  %v87_v41 = vld [vmem:[#allocation2 + $0x1d8] sm:$0xff]  ;;  %v88_v46 = vld [vmem:[#allocation2 + $0x1e0] sm:$0xff] }
  0x2c   :  { %268 = vst [vmem:[%s700_s3 + $0x110] sm:$0xff] %v204_v57  ;;  %269 = vst [vmem:[%s700_s3 + $0x118] sm:$0xff] %v205_v58  ;;  %v209_v6 = vadd.f32 %v375_v2, %v138_v59  ;;  %v140_v7 = vmul.f32 %v370_v1, %v69_v53  ;;  %v141_v8 = vmul.f32 %v370_v1, %v70_v54  ;;  %v89_v47 = vld [vmem:[#allocation2 + $0x1e8] sm:$0xff]  ;;  %v90_v48 = vld [vmem:[#allocation2 + $0x1f0] sm:$0xff] }
  0x2d   :  { %v142_v9 = vmul.f32 %v370_v1, %v71_v55  ;;  %270 = vst [vmem:[%s700_s3 + $0x120] sm:$0xff] %v206_v63  ;;  %271 = vst [vmem:[%s700_s3 + $0x128] sm:$0xff] %v207_v0  ;;  %v210_v11 = vadd.f32 %v375_v2, %v139_v4  ;;  %v143_v12 = vmul.f32 %v370_v1, %v72_v60  ;;  %v91_v53 = vld [vmem:[#allocation2 + $0x1f8] sm:$0xff] }
  0x2e   :  { %272 = vst [vmem:[%s700_s3 + $0x130] sm:$0xff] %v208_v3  ;;  %v144_v13 = vmul.f32 %v370_v1, %v73_v61  ;;  %v145_v14 = vmul.f32 %v370_v1, %v74_v62  ;;  %273 = vst [vmem:[%s700_s3 + $0x138] sm:$0xff] %v209_v6  ;;  %v211_v18 = vadd.f32 %v375_v2, %v140_v7 }
  0x2f   :  { %v212_v19 = vadd.f32 %v375_v2, %v141_v8  ;;  %v213_v20 = vadd.f32 %v375_v2, %v142_v9  ;;  %v146_v21 = vmul.f32 %v370_v1, %v75_v5  ;;  %274 = vst [vmem:[%s700_s3 + $0x140] sm:$0xff] %v210_v11  ;;  %v214_v25 = vadd.f32 %v375_v2, %v143_v12 }
  0x30   :  { %v215_v26 = vadd.f32 %v375_v2, %v144_v13  ;;  %v216_v27 = vadd.f32 %v375_v2, %v145_v14  ;;  %v147_v28 = vmul.f32 %v370_v1, %v76_v10  ;;  %275 = vst [vmem:[%s700_s3 + $0x148] sm:$0xff] %v211_v18  ;;  %v148_v31 = vmul.f32 %v370_v1, %v77_v15 }
  0x31   :  { %276 = vst [vmem:[%s700_s3 + $0x150] sm:$0xff] %v212_v19  ;;  %277 = vst [vmem:[%s700_s3 + $0x158] sm:$0xff] %v213_v20  ;;  %v217_v30 = vadd.f32 %v375_v2, %v146_v21  ;;  %v149_v32 = vmul.f32 %v370_v1, %v78_v16  ;;  %v150_v33 = vmul.f32 %v370_v1, %v79_v17 }
  0x32   :  { %278 = vst [vmem:[%s700_s3 + $0x160] sm:$0xff] %v214_v25  ;;  %279 = vst [vmem:[%s700_s3 + $0x168] sm:$0xff] %v215_v26  ;;  %v218_v35 = vadd.f32 %v375_v2, %v147_v28  ;;  %v151_v36 = vmul.f32 %v370_v1, %v80_v22  ;;  %v152_v37 = vmul.f32 %v370_v1, %v81_v23 }
  0x33   :  { %280 = vst [vmem:[%s700_s3 + $0x170] sm:$0xff] %v216_v27  ;;  %v153_v38 = vmul.f32 %v370_v1, %v82_v24  ;;  %281 = vst [vmem:[%s700_s3 + $0x178] sm:$0xff] %v217_v30  ;;  %v219_v42 = vadd.f32 %v375_v2, %v148_v31  ;;  %v220_v43 = vadd.f32 %v375_v2, %v149_v32 }
  0x34   :  { %v221_v44 = vadd.f32 %v375_v2, %v150_v33  ;;  %v154_v45 = vmul.f32 %v370_v1, %v83_v29  ;;  %282 = vst [vmem:[%s700_s3 + $0x180] sm:$0xff] %v218_v35  ;;  %v222_v49 = vadd.f32 %v375_v2, %v151_v36  ;;  %v223_v50 = vadd.f32 %v375_v2, %v152_v37 }
  0x35   :  { %v224_v51 = vadd.f32 %v375_v2, %v153_v38  ;;  %v155_v52 = vmul.f32 %v370_v1, %v84_v34  ;;  %283 = vst [vmem:[%s700_s3 + $0x188] sm:$0xff] %v219_v42  ;;  %284 = vst [vmem:[%s700_s3 + $0x190] sm:$0xff] %v220_v43  ;;  %v156_v55 = vmul.f32 %v370_v1, %v85_v39 }
  0x36   :  { %285 = vst [vmem:[%s700_s3 + $0x198] sm:$0xff] %v221_v44  ;;  %v225_v54 = vadd.f32 %v375_v2, %v154_v45  ;;  %v157_v56 = vmul.f32 %v370_v1, %v86_v40  ;;  %v158_v57 = vmul.f32 %v370_v1, %v87_v41  ;;  %286 = vst [vmem:[%s700_s3 + $0x1a0] sm:$0xff] %v222_v49 }
  0x37   :  { %287 = vst [vmem:[%s700_s3 + $0x1a8] sm:$0xff] %v223_v50  ;;  %288 = vst [vmem:[%s700_s3 + $0x1b0] sm:$0xff] %v224_v51  ;;  %v226_v58 = vadd.f32 %v375_v2, %v155_v52  ;;  %v159_v59 = vmul.f32 %v370_v1, %v88_v46  ;;  %v160_v60 = vmul.f32 %v370_v1, %v89_v47 }
  0x38   :  { %v161_v61 = vmul.f32 %v370_v1, %v90_v48  ;;  %289 = vst [vmem:[%s700_s3 + $0x1b8] sm:$0xff] %v225_v54  ;;  %v227_v62 = vadd.f32 %v375_v2, %v156_v55  ;;  %v228_v63 = vadd.f32 %v375_v2, %v157_v56  ;;  %v229_v0 = vadd.f32 %v375_v2, %v158_v57 }
  0x39   :  { %v162_v3 = vmul.f32 %v370_v1, %v91_v53  ;;  %290 = vst [vmem:[%s700_s3 + $0x1c0] sm:$0xff] %v226_v58  ;;  %v230_v4 = vadd.f32 %v375_v2, %v159_v59  ;;  %v231_v5 = vadd.f32 %v375_v2, %v160_v60 }
  0x3a   :  { %v232_v6 = vadd.f32 %v375_v2, %v161_v61  ;;  %291 = vst [vmem:[%s700_s3 + $0x1c8] sm:$0xff] %v227_v62  ;;  %292 = vst [vmem:[%s700_s3 + $0x1d0] sm:$0xff] %v228_v63 }
  0x3b   :  { %293 = vst [vmem:[%s700_s3 + $0x1d8] sm:$0xff] %v229_v0  ;;  %v233_v1 = vadd.f32 %v375_v2, %v162_v3  ;;  %294 = vst [vmem:[%s700_s3 + $0x1e0] sm:$0xff] %v230_v4 }
  0x3c   :  { %295 = vst [vmem:[%s700_s3 + $0x1e8] sm:$0xff] %v231_v5  ;;  %296 = vst [vmem:[%s700_s3 + $0x1f0] sm:$0xff] %v232_v6 }
  0x3d   :  { %297 = vst [vmem:[%s700_s3 + $0x1f8] sm:$0xff] %v233_v1 }
  0x3e   :  { %302 = vsyncpa [#allocation3], 1 }

// kernel: group_forward.3
= control target key start
LH: loop header
LB: loop body
LE: loop exit
PB: predicated region body
PF: predicated region fallthrough
CT: control target
= control target key end

     0   :  { %s2062_s0 = inlined_call_operand.vmem [shape: bf16[512,128], index: 0, kind: input, shape index: {}]   ;;  %s2063_s1 = inlined_call_operand.vmem [shape: bf16[128,128], index: 1, kind: input, shape index: {}]   ;;  %s2064_s2 = inlined_call_operand.vmem [shape: bf16[128,128], index: 2, kind: input, shape index: {}]   ;;  %s2065_s3 = inlined_call_operand.vmem [shape: f32[1,128], index: 3, kind: input, shape index: {}]   ;;  %s2066_s4 = inlined_call_operand.vmem [shape: f32[1,128], index: 4, kind: input, shape index: {}]   ;;  %s2067_s5 = inlined_call_operand.hbm [shape: f32[512,128], index: 5, kind: output, shape index: {0}]   ;;  %s2068_s6 = inlined_call_operand.vmem [shape: f32[8,128], index: 6, kind: output, shape index: {1}]   ;;  %s2069_s7 = inlined_call_operand.vmem [shape: f32[8,128], index: 7, kind: output, shape index: {2}]  }
   0x1   :  { %v1650_v0 = vld [vmem:[%s2063_s1] sm:$0xff]   ;;  %v1652_v2 = vld [vmem:[%s2063_s1 + $0x8] sm:$0xff]   ;;  %v1654_v4 = vld [vmem:[%s2063_s1 + $0x10] sm:$0xff]  }
   0x2   :  { %v1651_v1 = vld [vmem:[%s2064_s2] sm:$0xff]   ;;  %1487 = vmatprep.subr.bf16.mxu0 %v1650_v0  ;;  %v1653_v3 = vld [vmem:[%s2064_s2 + $0x8] sm:$0xff]   ;;  %v1655_v5 = vld [vmem:[%s2064_s2 + $0x10] sm:$0xff]  }
   0x3   :  { %1567 = vmatprep.subr.bf16.mxu1 %v1651_v1  ;;  %1488 = vmatpush3.bf16.msra.mxu0 %v1650_v0  ;;  %v1656_v6 = vld [vmem:[%s2063_s1 + $0x18] sm:$0xff]   ;;  %v1658_v8 = vld [vmem:[%s2063_s1 + $0x20] sm:$0xff]   ;;  %v1660_v10 = vld [vmem:[%s2063_s1 + $0x28] sm:$0xff]  }
   0x4   :  { %1568 = vmatpush3.bf16.msra.mxu1 %v1651_v1  ;;  %1489 = vmatprep.subr.bf16.mxu0 %v1652_v2  ;;  %v1657_v7 = vld [vmem:[%s2064_s2 + $0x18] sm:$0xff]   ;;  %v1659_v9 = vld [vmem:[%s2064_s2 + $0x20] sm:$0xff]   ;;  %v1661_v12 = vld [vmem:[%s2064_s2 + $0x28] sm:$0xff]  }
   0x5   :  { %1569 = vmatprep.subr.bf16.mxu1 %v1653_v3  ;;  %v1666_v11 = vld [vmem:[%s2062_s0] sm:$0xff]   ;;  %v1662_v13 = vld [vmem:[%s2063_s1 + $0x30] sm:$0xff]   ;;  %v1664_v15 = vld [vmem:[%s2063_s1 + $0x38] sm:$0xff]  }
   0x6   :  { %1503 = vmatprep.mubr.bf16.mxu0 %v1666_v11  ;;  %1583 = vmatprep.mubr.bf16.mxu1 %v1666_v11  ;;  %v1663_v14 = vld [vmem:[%s2064_s2 + $0x30] sm:$0xff]   ;;  %v1665_v16 = vld [vmem:[%s2064_s2 + $0x38] sm:$0xff]   ;;  %v1667_v17 = vld [vmem:[%s2062_s0 + $0x8] sm:$0xff]  }
   0x7   :  { %1490 = vmatpush3.bf16.msra.mxu0 %v1652_v2  ;;  %v1668_v18 = vld [vmem:[%s2062_s0 + $0x10] sm:$0xff]   ;;  %v1669_v19 = vld [vmem:[%s2062_s0 + $0x18] sm:$0xff]   ;;  %v1670_v20 = vld [vmem:[%s2062_s0 + $0x20] sm:$0xff]  }
   0x8   :  { %1570 = vmatpush3.bf16.msra.mxu1 %v1653_v3  ;;  %1491 = vmatprep.subr.bf16.mxu0 %v1654_v4  ;;  %v1671_v21 = vld [vmem:[%s2062_s0 + $0x28] sm:$0xff]   ;;  %v1672_v22 = vld [vmem:[%s2062_s0 + $0x30] sm:$0xff]  }
   0x9   :  { %1571 = vmatprep.subr.bf16.mxu1 %v1655_v5 }
   0xb   :  { %1492 = vmatpush3.bf16.msra.mxu0 %v1654_v4 }
   0xc   :  { %1572 = vmatpush3.bf16.msra.mxu1 %v1655_v5  ;;  %1493 = vmatprep.subr.bf16.mxu0 %v1656_v6 }
   0xd   :  { %1573 = vmatprep.subr.bf16.mxu1 %v1657_v7 }
   0xf   :  { %1494 = vmatpush3.bf16.msra.mxu0 %v1656_v6 }
  0x10   :  { %1574 = vmatpush3.bf16.msra.mxu1 %v1657_v7  ;;  %1495 = vmatprep.subr.bf16.mxu0 %v1658_v8 }
  0x11   :  { %1575 = vmatprep.subr.bf16.mxu1 %v1659_v9 }
  0x13   :  { %1496 = vmatpush3.bf16.msra.mxu0 %v1658_v8 }
  0x14   :  { %1576 = vmatpush3.bf16.msra.mxu1 %v1659_v9  ;;  %1497 = vmatprep.subr.bf16.mxu0 %v1660_v10 }
  0x15   :  { %1577 = vmatprep.subr.bf16.mxu1 %v1661_v12 }
  0x17   :  { %1498 = vmatpush3.bf16.msra.mxu0 %v1660_v10 }
  0x18   :  { %1578 = vmatpush3.bf16.msra.mxu1 %v1661_v12  ;;  %1499 = vmatprep.subr.bf16.mxu0 %v1662_v13 }
  0x19   :  { %1579 = vmatprep.subr.bf16.mxu1 %v1663_v14 }
  0x1b   :  { %1500 = vmatpush3.bf16.msra.mxu0 %v1662_v13 }
  0x1c   :  { %1580 = vmatpush3.bf16.msra.mxu1 %v1663_v14  ;;  %1501 = vmatprep.subr.bf16.mxu0 %v1664_v15 }
  0x1d   :  { %1581 = vmatprep.subr.bf16.mxu1 %v1665_v16 }
  0x1f   :  { %1502 = vmatpush3.bf16.msra.mxu0 %v1664_v15 }
  0x20   :  { %1582 = vmatpush3.bf16.msra.mxu1 %v1665_v16 }
  0x22   :  { %1504 = vmatmul.mubr.bf16.vlgmr.msra.gmra.mrb[0].mxu0 %v1667_v17 }
  0x23   :  { %1584 = vmatmul.mubr.bf16.vlgmr.msra.gmra.mrb[0].mxu1 %v1667_v17  ;;  %1507 = vmatprep.mubr.bf16.mxu0 %v1668_v18 }
  0x24   :  { %1587 = vmatprep.mubr.bf16.mxu1 %v1668_v18 }
  0x2a   :  { %1508 = vmatmul.mubr.bf16.gmra.mrb[4].mxu0 %v1669_v19 }
  0x2b   :  { %1588 = vmatmul.mubr.bf16.gmra.mrb[4].mxu1 %v1669_v19  ;;  %1511 = vmatprep.mubr.bf16.mxu0 %v1670_v20 }
  0x2c   :  { %1591 = vmatprep.mubr.bf16.mxu1 %v1670_v20 }
  0x2d   :  { %13 = vsyncpa [#allocation3], 0  ;;  %v1673_v23 = vld [vmem:[%s2062_s0 + $0x38] sm:$0xff]   ;;  %v1674_v24 = vld [vmem:[%s2062_s0 + $0x40] sm:$0xff]  }
  0x2e   :  { %v1675_v25 = vld [vmem:[%s2062_s0 + $0x48] sm:$0xff]   ;;  %v1676_v26 = vld [vmem:[%s2062_s0 + $0x50] sm:$0xff]   ;;  %v1677_v27 = vld [vmem:[%s2062_s0 + $0x58] sm:$0xff]  }
  0x2f   :  { %v1678_v28 = vld [vmem:[%s2062_s0 + $0x60] sm:$0xff]   ;;  %v1679_v29 = vld [vmem:[%s2062_s0 + $0x68] sm:$0xff]   ;;  %v1680_v30 = vld [vmem:[%s2062_s0 + $0x70] sm:$0xff]  }
  0x30   :  { %v1681_v31 = vld [vmem:[%s2062_s0 + $0x78] sm:$0xff]   ;;  %v1682_v32 = vld [vmem:[%s2062_s0 + $0x80] sm:$0xff]   ;;  %v1683_v33 = vld [vmem:[%s2062_s0 + $0x88] sm:$0xff]  }
  0x31   :  { %v1684_v34 = vld [vmem:[%s2062_s0 + $0x90] sm:$0xff]   ;;  %v1685_v35 = vld [vmem:[%s2062_s0 + $0x98] sm:$0xff]   ;;  %v1686_v36 = vld [vmem:[%s2062_s0 + $0xa0] sm:$0xff]  }
  0x32   :  { %1512 = vmatmul.mubr.bf16.gmra.mrb[8].mxu0 %v1671_v21  ;;  %v1687_v37 = vld [vmem:[%s2062_s0 + $0xa8] sm:$0xff]   ;;  %v1688_v38 = vld [vmem:[%s2062_s0 + $0xb0] sm:$0xff]   ;;  %v1689_v39 = vld [vmem:[%s2062_s0 + $0xb8] sm:$0xff]  }
  0x33   :  { %1592 = vmatmul.mubr.bf16.gmra.mrb[8].mxu1 %v1671_v21  ;;  %1515 = vmatprep.mubr.bf16.mxu0 %v1672_v22  ;;  %v1690_v40 = vld [vmem:[%s2062_s0 + $0xc0] sm:$0xff]   ;;  %v1691_v41 = vld [vmem:[%s2062_s0 + $0xc8] sm:$0xff]   ;;  %v1692_v42 = vld [vmem:[%s2062_s0 + $0xd0] sm:$0xff]  }
  0x34   :  { %1595 = vmatprep.mubr.bf16.mxu1 %v1672_v22  ;;  %v1693_v43 = vld [vmem:[%s2062_s0 + $0xd8] sm:$0xff]   ;;  %v1694_v44 = vld [vmem:[%s2062_s0 + $0xe0] sm:$0xff]   ;;  %v1695_v45 = vld [vmem:[%s2062_s0 + $0xe8] sm:$0xff]  }
  0x35   :  { %v1696_v46 = vld [vmem:[%s2062_s0 + $0xf0] sm:$0xff]   ;;  %v1697_v47 = vld [vmem:[%s2062_s0 + $0xf8] sm:$0xff]   ;;  %v1914_v48 = vld [vmem:[%s2065_s3] ss:$0 sm:$0xff] }
  0x36   :  { %v1919_v49 = vld [vmem:[%s2066_s4] ss:$0 sm:$0xff] }
  0x3a   :  { %1516 = vmatmul.mubr.bf16.gmra.mrb[12].mxu0 %v1673_v23 }
  0x3b   :  { %1596 = vmatmul.mubr.bf16.gmra.mrb[12].mxu1 %v1673_v23  ;;  %1519 = vmatprep.mubr.bf16.mxu0 %v1674_v24 }
  0x3c   :  { %1599 = vmatprep.mubr.bf16.mxu1 %v1674_v24 }
  0x42   :  { %1520 = vmatmul.mubr.bf16.gmra.mrb[16].mxu0 %v1675_v25 }
  0x43   :  { %1600 = vmatmul.mubr.bf16.gmra.mrb[16].mxu1 %v1675_v25  ;;  %1523 = vmatprep.mubr.bf16.mxu0 %v1676_v26 }
  0x44   :  { %1603 = vmatprep.mubr.bf16.mxu1 %v1676_v26 }
  0x4a   :  { %1524 = vmatmul.mubr.bf16.gmra.mrb[20].mxu0 %v1677_v27 }
  0x4b   :  { %1604 = vmatmul.mubr.bf16.gmra.mrb[20].mxu1 %v1677_v27  ;;  %1527 = vmatprep.mubr.bf16.mxu0 %v1678_v28 }
  0x4c   :  { %1607 = vmatprep.mubr.bf16.mxu1 %v1678_v28 }
  0x52   :  { %1528 = vmatmul.mubr.bf16.gmra.mrb[24].mxu0 %v1679_v29 }
  0x53   :  { %1608 = vmatmul.mubr.bf16.gmra.mrb[24].mxu1 %v1679_v29  ;;  %1531 = vmatprep.mubr.bf16.mxu0 %v1680_v30 }
  0x54   :  { %1611 = vmatprep.mubr.bf16.mxu1 %v1680_v30 }
  0x5a   :  { %1532 = vmatmul.mubr.bf16.gmra.mrb[28].mxu0 %v1681_v31 }
  0x5b   :  { %1612 = vmatmul.mubr.bf16.gmra.mrb[28].mxu1 %v1681_v31  ;;  %1535 = vmatprep.mubr.bf16.mxu0 %v1682_v32 }
  0x5c   :  { %1615 = vmatprep.mubr.bf16.mxu1 %v1682_v32 }
  0x62   :  { %1536 = vmatmul.mubr.bf16.gmra.mrb[32].mxu0 %v1683_v33 }
  0x63   :  { %1616 = vmatmul.mubr.bf16.gmra.mrb[32].mxu1 %v1683_v33  ;;  %1539 = vmatprep.mubr.bf16.mxu0 %v1684_v34 }
  0x64   :  { %1619 = vmatprep.mubr.bf16.mxu1 %v1684_v34 }
  0x6a   :  { %1540 = vmatmul.mubr.bf16.gmra.mrb[36].mxu0 %v1685_v35 }
  0x6b   :  { %1620 = vmatmul.mubr.bf16.gmra.mrb[36].mxu1 %v1685_v35  ;;  %1543 = vmatprep.mubr.bf16.mxu0 %v1686_v36 }
  0x6c   :  { %1623 = vmatprep.mubr.bf16.mxu1 %v1686_v36 }
  0x72   :  { %1544 = vmatmul.mubr.bf16.gmra.mrb[40].mxu0 %v1687_v37 }
  0x73   :  { %1624 = vmatmul.mubr.bf16.gmra.mrb[40].mxu1 %v1687_v37  ;;  %1547 = vmatprep.mubr.bf16.mxu0 %v1688_v38 }
  0x74   :  { %1627 = vmatprep.mubr.bf16.mxu1 %v1688_v38 }
  0x7a   :  { %1548 = vmatmul.mubr.bf16.gmra.mrb[44].mxu0 %v1689_v39 }
  0x7b   :  { %1628 = vmatmul.mubr.bf16.gmra.mrb[44].mxu1 %v1689_v39  ;;  %1551 = vmatprep.mubr.bf16.mxu0 %v1690_v40 }
  0x7c   :  { %1631 = vmatprep.mubr.bf16.mxu1 %v1690_v40 }
  0x82   :  { %1552 = vmatmul.mubr.bf16.gmra.mrb[48].mxu0 %v1691_v41 }
  0x83   :  { %1632 = vmatmul.mubr.bf16.gmra.mrb[48].mxu1 %v1691_v41  ;;  %1555 = vmatprep.mubr.bf16.mxu0 %v1692_v42 }
  0x84   :  { %1635 = vmatprep.mubr.bf16.mxu1 %v1692_v42 }
  0x8a   :  { %1556 = vmatmul.mubr.bf16.gmra.mrb[52].mxu0 %v1693_v43 }
  0x8b   :  { %1636 = vmatmul.mubr.bf16.gmra.mrb[52].mxu1 %v1693_v43  ;;  %1559 = vmatprep.mubr.bf16.mxu0 %v1694_v44 }
  0x8c   :  { %1639 = vmatprep.mubr.bf16.mxu1 %v1694_v44 }
  0x92   :  { %1560 = vmatmul.mubr.bf16.gmra.mrb[56].mxu0 %v1695_v45 }
  0x93   :  { %1640 = vmatmul.mubr.bf16.gmra.mrb[56].mxu1 %v1695_v45  ;;  %1563 = vmatprep.mubr.bf16.mxu0 %v1696_v46 }
  0x94   :  { %1643 = vmatprep.mubr.bf16.mxu1 %v1696_v46 }
  0x9a   :  { %1564 = vmatmul.mubr.bf16.gmra.mrb[60].mxu0 %v1697_v47 }
  0x9b   :  { %1644 = vmatmul.mubr.bf16.gmra.mrb[60].mxu1 %v1697_v47 }
  0xf5   :  { %v1505_v50 = vpop.f32.mrb[0].mxu0 }
  0xf6   :  { %v411_v51 = vadd.f32 %v1505_v50, %v1914_v48  ;;  %v1585_v52 = vpop.f32.mrb[0].mxu1  ;;  %v402_v53 = vpop.f32.mrb[1].mxu0 }
  0xf7   :  { %v755_v54 = vadd.f32 %v1585_v52, %v1919_v49  ;;  %v403_v55 = vadd.f32 %v1914_v48, %v402_v53  ;;  %v746_v56 = vpop.f32.mrb[1].mxu1  ;;  %v1506_v57 = vpop.f32.mrb[2].mxu0 }
  0xf8   :  { %v747_v58 = vadd.f32 %v1919_v49, %v746_v56  ;;  %v414_v59 = vadd.f32 %v1506_v57, %v1914_v48  ;;  %v1586_v60 = vpop.f32.mrb[2].mxu1  ;;  %v405_v61 = vpop.f32.mrb[3].mxu0 }
  0xf9   :  { %v1003_v62 = vmax.f32 %v411_v51, %v755_v54  ;;  %v758_v63 = vadd.f32 %v1586_v60, %v1919_v49  ;;  %v406_v0 = vadd.f32 %v1914_v48, %v405_v61  ;;  %v749_v1 = vpop.f32.mrb[3].mxu1 }
  0xfa   :  { %v1001_v2 = vmax.f32 %v403_v55, %v747_v58  ;;  %v750_v3 = vadd.f32 %v1919_v49, %v749_v1 }
  0xfb   :  { %1067 = vst [vmem:[#allocation2 + $0x10] sm:$0xff] %v1003_v62  ;;  %v1004_v4 = vmax.f32 %v414_v59, %v758_v63  ;;  %v1200_v13 = vmul.f32 %v1003_v62, %v1003_v62 }
  0xfc   :  { %1065 = vst [vmem:[#allocation2] sm:$0xff] %v1001_v2  ;;  %v1002_v5 = vmax.f32 %v406_v0, %v750_v3  ;;  %v1198_v7 = vmul.f32 %v1001_v2, %v1001_v2 }
  0xfd   :  { %1068 = vst [vmem:[#allocation2 + $0x18] sm:$0xff] %v1004_v4  ;;  %v1509_v6 = vpop.f32.mrb[4].mxu0  ;;  %v1201_v24 = vmul.f32 %v1004_v4, %v1004_v4 }
  0xfe   :  { %1066 = vst [vmem:[#allocation2 + $0x8] sm:$0xff] %v1002_v5  ;;  %v1129_v8 = vadd.f32 %v1002_v5, %v1001_v2  ;;  %v1199_v9 = vmul.f32 %v1002_v5, %v1002_v5  ;;  %v427_v10 = vadd.f32 %v1509_v6, %v1914_v48  ;;  %v1589_v11 = vpop.f32.mrb[4].mxu1  ;;  %v418_v12 = vpop.f32.mrb[5].mxu0 }
  0xff   :  { %v771_v14 = vadd.f32 %v1589_v11, %v1919_v49  ;;  %v419_v15 = vadd.f32 %v1914_v48, %v418_v12  ;;  %v762_v16 = vpop.f32.mrb[5].mxu1  ;;  %v1510_v17 = vpop.f32.mrb[6].mxu0 }
 0x100   :  { %v1130_v18 = vadd.f32 %v1129_v8, %v1003_v62  ;;  %v1262_v19 = vadd.f32 %v1199_v9, %v1198_v7  ;;  %v763_v20 = vadd.f32 %v1919_v49, %v762_v16  ;;  %v430_v21 = vadd.f32 %v1510_v17, %v1914_v48  ;;  %v1590_v22 = vpop.f32.mrb[6].mxu1  ;;  %v421_v23 = vpop.f32.mrb[7].mxu0 }
 0x101   :  { %v1007_v25 = vmax.f32 %v427_v10, %v771_v14  ;;  %v774_v26 = vadd.f32 %v1590_v22, %v1919_v49  ;;  %v422_v27 = vadd.f32 %v1914_v48, %v421_v23  ;;  %v765_v28 = vpop.f32.mrb[7].mxu1 }
 0x102   :  { %v1263_v29 = vadd.f32 %v1262_v19, %v1200_v13  ;;  %v1005_v30 = vmax.f32 %v419_v15, %v763_v20  ;;  %v1131_v31 = vadd.f32 %v1130_v18, %v1004_v4  ;;  %v766_v32 = vadd.f32 %v1919_v49, %v765_v28 }
 0x103   :  { %1071 = vst [vmem:[#allocation2 + $0x30] sm:$0xff] %v1007_v25  ;;  %v1008_v33 = vmax.f32 %v430_v21, %v774_v26  ;;  %v1204_v45 = vmul.f32 %v1007_v25, %v1007_v25 }
 0x104   :  { %1069 = vst [vmem:[#allocation2 + $0x20] sm:$0xff] %v1005_v30  ;;  %v1132_v34 = vadd.f32 %v1131_v31, %v1005_v30  ;;  %v1202_v35 = vmul.f32 %v1005_v30, %v1005_v30  ;;  %v1264_v36 = vadd.f32 %v1263_v29, %v1201_v24  ;;  %v1006_v37 = vmax.f32 %v422_v27, %v766_v32 }
 0x105   :  { %1072 = vst [vmem:[#allocation2 + $0x38] sm:$0xff] %v1008_v33  ;;  %v1513_v38 = vpop.f32.mrb[8].mxu0  ;;  %v1205_v58 = vmul.f32 %v1008_v33, %v1008_v33 }
 0x106   :  { %v1265_v39 = vadd.f32 %v1264_v36, %v1202_v35  ;;  %1070 = vst [vmem:[#allocation2 + $0x28] sm:$0xff] %v1006_v37  ;;  %v1133_v40 = vadd.f32 %v1132_v34, %v1006_v37  ;;  %v1203_v41 = vmul.f32 %v1006_v37, %v1006_v37  ;;  %v443_v42 = vadd.f32 %v1513_v38, %v1914_v48  ;;  %v1593_v43 = vpop.f32.mrb[8].mxu1  ;;  %v434_v44 = vpop.f32.mrb[9].mxu0 }
 0x107   :  { %v787_v46 = vadd.f32 %v1593_v43, %v1919_v49  ;;  %v435_v47 = vadd.f32 %v1914_v48, %v434_v44  ;;  %v778_v50 = vpop.f32.mrb[9].mxu1  ;;  %v1514_v51 = vpop.f32.mrb[10].mxu0 }
 0x108   :  { %v1134_v52 = vadd.f32 %v1133_v40, %v1007_v25  ;;  %v1266_v53 = vadd.f32 %v1265_v39, %v1203_v41  ;;  %v779_v54 = vadd.f32 %v1919_v49, %v778_v50  ;;  %v446_v55 = vadd.f32 %v1514_v51, %v1914_v48  ;;  %v1594_v56 = vpop.f32.mrb[10].mxu1  ;;  %v437_v57 = vpop.f32.mrb[11].mxu0 }
 0x109   :  { %v1011_v59 = vmax.f32 %v443_v42, %v787_v46  ;;  %v790_v60 = vadd.f32 %v1594_v56, %v1919_v49  ;;  %v438_v61 = vadd.f32 %v1914_v48, %v437_v57  ;;  %v781_v62 = vpop.f32.mrb[11].mxu1 }
 0x10a   :  { %v1267_v63 = vadd.f32 %v1266_v53, %v1204_v45  ;;  %v1009_v0 = vmax.f32 %v435_v47, %v779_v54  ;;  %v1135_v1 = vadd.f32 %v1134_v52, %v1008_v33  ;;  %v782_v2 = vadd.f32 %v1919_v49, %v781_v62 }
 0x10b   :  { %1075 = vst [vmem:[#allocation2 + $0x50] sm:$0xff] %v1011_v59  ;;  %v1012_v3 = vmax.f32 %v446_v55, %v790_v60  ;;  %v1208_v15 = vmul.f32 %v1011_v59, %v1011_v59 }
 0x10c   :  { %1073 = vst [vmem:[#allocation2 + $0x40] sm:$0xff] %v1009_v0  ;;  %v1136_v4 = vadd.f32 %v1135_v1, %v1009_v0  ;;  %v1206_v5 = vmul.f32 %v1009_v0, %v1009_v0  ;;  %v1268_v6 = vadd.f32 %v1267_v63, %v1205_v58  ;;  %v1010_v7 = vmax.f32 %v438_v61, %v782_v2 }
 0x10d   :  { %1076 = vst [vmem:[#allocation2 + $0x58] sm:$0xff] %v1012_v3  ;;  %v1517_v8 = vpop.f32.mrb[12].mxu0  ;;  %v1209_v26 = vmul.f32 %v1012_v3, %v1012_v3 }
 0x10e   :  { %v1269_v9 = vadd.f32 %v1268_v6, %v1206_v5  ;;  %1074 = vst [vmem:[#allocation2 + $0x48] sm:$0xff] %v1010_v7  ;;  %v1137_v10 = vadd.f32 %v1136_v4, %v1010_v7  ;;  %v1207_v11 = vmul.f32 %v1010_v7, %v1010_v7  ;;  %v459_v12 = vadd.f32 %v1517_v8, %v1914_v48  ;;  %v1597_v13 = vpop.f32.mrb[12].mxu1  ;;  %v450_v14 = vpop.f32.mrb[13].mxu0 }
 0x10f   :  { %v803_v16 = vadd.f32 %v1597_v13, %v1919_v49  ;;  %v451_v17 = vadd.f32 %v1914_v48, %v450_v14  ;;  %v794_v18 = vpop.f32.mrb[13].mxu1  ;;  %v1518_v19 = vpop.f32.mrb[14].mxu0 }
 0x110   :  { %v1138_v20 = vadd.f32 %v1137_v10, %v1011_v59  ;;  %v1270_v21 = vadd.f32 %v1269_v9, %v1207_v11  ;;  %v795_v22 = vadd.f32 %v1919_v49, %v794_v18  ;;  %v462_v23 = vadd.f32 %v1518_v19, %v1914_v48  ;;  %v1598_v24 = vpop.f32.mrb[14].mxu1  ;;  %v453_v25 = vpop.f32.mrb[15].mxu0 }
 0x111   :  { %v1015_v27 = vmax.f32 %v459_v12, %v803_v16  ;;  %v806_v28 = vadd.f32 %v1598_v24, %v1919_v49  ;;  %v454_v29 = vadd.f32 %v1914_v48, %v453_v25  ;;  %v797_v30 = vpop.f32.mrb[15].mxu1 }
 0x112   :  { %v1271_v31 = vadd.f32 %v1270_v21, %v1208_v15  ;;  %v1013_v32 = vmax.f32 %v451_v17, %v795_v22  ;;  %v1139_v33 = vadd.f32 %v1138_v20, %v1012_v3  ;;  %v798_v34 = vadd.f32 %v1919_v49, %v797_v30 }
 0x113   :  { %1079 = vst [vmem:[#allocation2 + $0x70] sm:$0xff] %v1015_v27  ;;  %v1016_v35 = vmax.f32 %v462_v23, %v806_v28  ;;  %v1212_v47 = vmul.f32 %v1015_v27, %v1015_v27 }
 0x114   :  { %1077 = vst [vmem:[#allocation2 + $0x60] sm:$0xff] %v1013_v32  ;;  %v1140_v36 = vadd.f32 %v1139_v33, %v1013_v32  ;;  %v1210_v37 = vmul.f32 %v1013_v32, %v1013_v32  ;;  %v1272_v38 = vadd.f32 %v1271_v31, %v1209_v26  ;;  %v1014_v39 = vmax.f32 %v454_v29, %v798_v34 }
 0x115   :  { %1080 = vst [vmem:[#allocation2 + $0x78] sm:$0xff] %v1016_v35  ;;  %v1521_v40 = vpop.f32.mrb[16].mxu0  ;;  %v1213_v60 = vmul.f32 %v1016_v35, %v1016_v35 }
 0x116   :  { %v1273_v41 = vadd.f32 %v1272_v38, %v1210_v37  ;;  %1078 = vst [vmem:[#allocation2 + $0x68] sm:$0xff] %v1014_v39  ;;  %v1141_v42 = vadd.f32 %v1140_v36, %v1014_v39  ;;  %v1211_v43 = vmul.f32 %v1014_v39, %v1014_v39  ;;  %v475_v44 = vadd.f32 %v1521_v40, %v1914_v48  ;;  %v1601_v45 = vpop.f32.mrb[16].mxu1  ;;  %v466_v46 = vpop.f32.mrb[17].mxu0 }
 0x117   :  { %v819_v50 = vadd.f32 %v1601_v45, %v1919_v49  ;;  %v467_v51 = vadd.f32 %v1914_v48, %v466_v46  ;;  %v810_v52 = vpop.f32.mrb[17].mxu1  ;;  %v1522_v53 = vpop.f32.mrb[18].mxu0 }
 0x118   :  { %v1142_v54 = vadd.f32 %v1141_v42, %v1015_v27  ;;  %v1274_v55 = vadd.f32 %v1273_v41, %v1211_v43  ;;  %v811_v56 = vadd.f32 %v1919_v49, %v810_v52  ;;  %v478_v57 = vadd.f32 %v1522_v53, %v1914_v48  ;;  %v1602_v58 = vpop.f32.mrb[18].mxu1  ;;  %v469_v59 = vpop.f32.mrb[19].mxu0 }
 0x119   :  { %v1019_v61 = vmax.f32 %v475_v44, %v819_v50  ;;  %v822_v62 = vadd.f32 %v1602_v58, %v1919_v49  ;;  %v470_v63 = vadd.f32 %v1914_v48, %v469_v59  ;;  %v813_v0 = vpop.f32.mrb[19].mxu1 }
 0x11a   :  { %v1275_v1 = vadd.f32 %v1274_v55, %v1212_v47  ;;  %v1017_v2 = vmax.f32 %v467_v51, %v811_v56  ;;  %v1143_v3 = vadd.f32 %v1142_v54, %v1016_v35  ;;  %v814_v4 = vadd.f32 %v1919_v49, %v813_v0 }
 0x11b   :  { %1083 = vst [vmem:[#allocation2 + $0x90] sm:$0xff] %v1019_v61  ;;  %v1020_v5 = vmax.f32 %v478_v57, %v822_v62  ;;  %v1216_v17 = vmul.f32 %v1019_v61, %v1019_v61 }
 0x11c   :  { %1081 = vst [vmem:[#allocation2 + $0x80] sm:$0xff] %v1017_v2  ;;  %v1144_v6 = vadd.f32 %v1143_v3, %v1017_v2  ;;  %v1214_v7 = vmul.f32 %v1017_v2, %v1017_v2  ;;  %v1276_v8 = vadd.f32 %v1275_v1, %v1213_v60  ;;  %v1018_v9 = vmax.f32 %v470_v63, %v814_v4 }
 0x11d   :  { %1084 = vst [vmem:[#allocation2 + $0x98] sm:$0xff] %v1020_v5  ;;  %v1525_v10 = vpop.f32.mrb[20].mxu0  ;;  %v1217_v28 = vmul.f32 %v1020_v5, %v1020_v5 }
 0x11e   :  { %v1277_v11 = vadd.f32 %v1276_v8, %v1214_v7  ;;  %1082 = vst [vmem:[#allocation2 + $0x88] sm:$0xff] %v1018_v9  ;;  %v1145_v12 = vadd.f32 %v1144_v6, %v1018_v9  ;;  %v1215_v13 = vmul.f32 %v1018_v9, %v1018_v9  ;;  %v491_v14 = vadd.f32 %v1525_v10, %v1914_v48  ;;  %v1605_v15 = vpop.f32.mrb[20].mxu1  ;;  %v482_v16 = vpop.f32.mrb[21].mxu0 }
 0x11f   :  { %v835_v18 = vadd.f32 %v1605_v15, %v1919_v49  ;;  %v483_v19 = vadd.f32 %v1914_v48, %v482_v16  ;;  %v826_v20 = vpop.f32.mrb[21].mxu1  ;;  %v1526_v21 = vpop.f32.mrb[22].mxu0 }
 0x120   :  { %v1146_v22 = vadd.f32 %v1145_v12, %v1019_v61  ;;  %v1278_v23 = vadd.f32 %v1277_v11, %v1215_v13  ;;  %v827_v24 = vadd.f32 %v1919_v49, %v826_v20  ;;  %v494_v25 = vadd.f32 %v1526_v21, %v1914_v48  ;;  %v1606_v26 = vpop.f32.mrb[22].mxu1  ;;  %v485_v27 = vpop.f32.mrb[23].mxu0 }
 0x121   :  { %v1023_v29 = vmax.f32 %v491_v14, %v835_v18  ;;  %v838_v30 = vadd.f32 %v1606_v26, %v1919_v49  ;;  %v486_v31 = vadd.f32 %v1914_v48, %v485_v27  ;;  %v829_v32 = vpop.f32.mrb[23].mxu1 }
 0x122   :  { %v1279_v33 = vadd.f32 %v1278_v23, %v1216_v17  ;;  %v1021_v34 = vmax.f32 %v483_v19, %v827_v24  ;;  %v1147_v35 = vadd.f32 %v1146_v22, %v1020_v5  ;;  %v830_v36 = vadd.f32 %v1919_v49, %v829_v32 }
 0x123   :  { %1087 = vst [vmem:[#allocation2 + $0xb0] sm:$0xff] %v1023_v29  ;;  %v1024_v37 = vmax.f32 %v494_v25, %v838_v30  ;;  %v1220_v51 = vmul.f32 %v1023_v29, %v1023_v29 }
 0x124   :  { %1085 = vst [vmem:[#allocation2 + $0xa0] sm:$0xff] %v1021_v34  ;;  %v1148_v38 = vadd.f32 %v1147_v35, %v1021_v34  ;;  %v1218_v39 = vmul.f32 %v1021_v34, %v1021_v34  ;;  %v1280_v40 = vadd.f32 %v1279_v33, %v1217_v28  ;;  %v1022_v41 = vmax.f32 %v486_v31, %v830_v36 }
 0x125   :  { %1088 = vst [vmem:[#allocation2 + $0xb8] sm:$0xff] %v1024_v37  ;;  %v1529_v42 = vpop.f32.mrb[24].mxu0  ;;  %v1221_v62 = vmul.f32 %v1024_v37, %v1024_v37 }
 0x126   :  { %v1281_v43 = vadd.f32 %v1280_v40, %v1218_v39  ;;  %1086 = vst [vmem:[#allocation2 + $0xa8] sm:$0xff] %v1022_v41  ;;  %v1149_v44 = vadd.f32 %v1148_v38, %v1022_v41  ;;  %v1219_v45 = vmul.f32 %v1022_v41, %v1022_v41  ;;  %v507_v46 = vadd.f32 %v1529_v42, %v1914_v48  ;;  %v1609_v47 = vpop.f32.mrb[24].mxu1  ;;  %v498_v50 = vpop.f32.mrb[25].mxu0 }
 0x127   :  { %v851_v52 = vadd.f32 %v1609_v47, %v1919_v49  ;;  %v499_v53 = vadd.f32 %v1914_v48, %v498_v50  ;;  %v842_v54 = vpop.f32.mrb[25].mxu1  ;;  %v1530_v55 = vpop.f32.mrb[26].mxu0 }
 0x128   :  { %v1150_v56 = vadd.f32 %v1149_v44, %v1023_v29  ;;  %v1282_v57 = vadd.f32 %v1281_v43, %v1219_v45  ;;  %v843_v58 = vadd.f32 %v1919_v49, %v842_v54  ;;  %v510_v59 = vadd.f32 %v1530_v55, %v1914_v48  ;;  %v1610_v60 = vpop.f32.mrb[26].mxu1  ;;  %v501_v61 = vpop.f32.mrb[27].mxu0 }
 0x129   :  { %v1027_v63 = vmax.f32 %v507_v46, %v851_v52  ;;  %v854_v0 = vadd.f32 %v1610_v60, %v1919_v49  ;;  %v502_v1 = vadd.f32 %v1914_v48, %v501_v61  ;;  %v845_v2 = vpop.f32.mrb[27].mxu1 }
 0x12a   :  { %v1283_v3 = vadd.f32 %v1282_v57, %v1220_v51  ;;  %v1025_v4 = vmax.f32 %v499_v53, %v843_v58  ;;  %v1151_v5 = vadd.f32 %v1150_v56, %v1024_v37  ;;  %v846_v6 = vadd.f32 %v1919_v49, %v845_v2 }
 0x12b   :  { %1091 = vst [vmem:[#allocation2 + $0xd0] sm:$0xff] %v1027_v63  ;;  %v1028_v7 = vmax.f32 %v510_v59, %v854_v0  ;;  %v1224_v19 = vmul.f32 %v1027_v63, %v1027_v63 }
 0x12c   :  { %1089 = vst [vmem:[#allocation2 + $0xc0] sm:$0xff] %v1025_v4  ;;  %v1152_v8 = vadd.f32 %v1151_v5, %v1025_v4  ;;  %v1222_v9 = vmul.f32 %v1025_v4, %v1025_v4  ;;  %v1284_v10 = vadd.f32 %v1283_v3, %v1221_v62  ;;  %v1026_v11 = vmax.f32 %v502_v1, %v846_v6 }
 0x12d   :  { %1092 = vst [vmem:[#allocation2 + $0xd8] sm:$0xff] %v1028_v7  ;;  %v1533_v12 = vpop.f32.mrb[28].mxu0  ;;  %v1225_v30 = vmul.f32 %v1028_v7, %v1028_v7 }
 0x12e   :  { %v1285_v13 = vadd.f32 %v1284_v10, %v1222_v9  ;;  %1090 = vst [vmem:[#allocation2 + $0xc8] sm:$0xff] %v1026_v11  ;;  %v1153_v14 = vadd.f32 %v1152_v8, %v1026_v11  ;;  %v1223_v15 = vmul.f32 %v1026_v11, %v1026_v11  ;;  %v523_v16 = vadd.f32 %v1533_v12, %v1914_v48  ;;  %v1613_v17 = vpop.f32.mrb[28].mxu1  ;;  %v514_v18 = vpop.f32.mrb[29].mxu0 }
 0x12f   :  { %v867_v20 = vadd.f32 %v1613_v17, %v1919_v49  ;;  %v515_v21 = vadd.f32 %v1914_v48, %v514_v18  ;;  %v858_v22 = vpop.f32.mrb[29].mxu1  ;;  %v1534_v23 = vpop.f32.mrb[30].mxu0 }
 0x130   :  { %v1154_v24 = vadd.f32 %v1153_v14, %v1027_v63  ;;  %v1286_v25 = vadd.f32 %v1285_v13, %v1223_v15  ;;  %v859_v26 = vadd.f32 %v1919_v49, %v858_v22  ;;  %v526_v27 = vadd.f32 %v1534_v23, %v1914_v48  ;;  %v1614_v28 = vpop.f32.mrb[30].mxu1  ;;  %v517_v29 = vpop.f32.mrb[31].mxu0 }
 0x131   :  { %v1031_v31 = vmax.f32 %v523_v16, %v867_v20  ;;  %v870_v32 = vadd.f32 %v1614_v28, %v1919_v49  ;;  %v518_v33 = vadd.f32 %v1914_v48, %v517_v29  ;;  %v861_v34 = vpop.f32.mrb[31].mxu1 }
 0x132   :  { %v1287_v35 = vadd.f32 %v1286_v25, %v1224_v19  ;;  %v1029_v36 = vmax.f32 %v515_v21, %v859_v26  ;;  %v1155_v37 = vadd.f32 %v1154_v24, %v1028_v7  ;;  %v862_v38 = vadd.f32 %v1919_v49, %v861_v34 }
 0x133   :  { %1095 = vst [vmem:[#allocation2 + $0xf0] sm:$0xff] %v1031_v31  ;;  %v1032_v39 = vmax.f32 %v526_v27, %v870_v32  ;;  %v1228_v53 = vmul.f32 %v1031_v31, %v1031_v31 }
 0x134   :  { %1093 = vst [vmem:[#allocation2 + $0xe0] sm:$0xff] %v1029_v36  ;;  %v1156_v40 = vadd.f32 %v1155_v37, %v1029_v36  ;;  %v1226_v41 = vmul.f32 %v1029_v36, %v1029_v36  ;;  %v1288_v42 = vadd.f32 %v1287_v35, %v1225_v30  ;;  %v1030_v43 = vmax.f32 %v518_v33, %v862_v38 }
 0x135   :  { %1096 = vst [vmem:[#allocation2 + $0xf8] sm:$0xff] %v1032_v39  ;;  %v1537_v44 = vpop.f32.mrb[32].mxu0  ;;  %v1229_v0 = vmul.f32 %v1032_v39, %v1032_v39 }
 0x136   :  { %v1289_v45 = vadd.f32 %v1288_v42, %v1226_v41  ;;  %1094 = vst [vmem:[#allocation2 + $0xe8] sm:$0xff] %v1030_v43  ;;  %v1157_v46 = vadd.f32 %v1156_v40, %v1030_v43  ;;  %v1227_v47 = vmul.f32 %v1030_v43, %v1030_v43  ;;  %v539_v50 = vadd.f32 %v1537_v44, %v1914_v48  ;;  %v1617_v51 = vpop.f32.mrb[32].mxu1  ;;  %v530_v52 = vpop.f32.mrb[33].mxu0 }
 0x137   :  { %v883_v54 = vadd.f32 %v1617_v51, %v1919_v49  ;;  %v531_v55 = vadd.f32 %v1914_v48, %v530_v52  ;;  %v874_v56 = vpop.f32.mrb[33].mxu1  ;;  %v1538_v57 = vpop.f32.mrb[34].mxu0 }
 0x138   :  { %v1158_v58 = vadd.f32 %v1157_v46, %v1031_v31  ;;  %v1290_v59 = vadd.f32 %v1289_v45, %v1227_v47  ;;  %v875_v60 = vadd.f32 %v1919_v49, %v874_v56  ;;  %v542_v61 = vadd.f32 %v1538_v57, %v1914_v48  ;;  %v1618_v62 = vpop.f32.mrb[34].mxu1  ;;  %v533_v63 = vpop.f32.mrb[35].mxu0 }
 0x139   :  { %v1035_v1 = vmax.f32 %v539_v50, %v883_v54  ;;  %v886_v2 = vadd.f32 %v1618_v62, %v1919_v49  ;;  %v534_v3 = vadd.f32 %v1914_v48, %v533_v63  ;;  %v877_v4 = vpop.f32.mrb[35].mxu1 }
 0x13a   :  { %v1291_v5 = vadd.f32 %v1290_v59, %v1228_v53  ;;  %v1033_v6 = vmax.f32 %v531_v55, %v875_v60  ;;  %v1159_v7 = vadd.f32 %v1158_v58, %v1032_v39  ;;  %v878_v8 = vadd.f32 %v1919_v49, %v877_v4 }
 0x13b   :  { %1099 = vst [vmem:[#allocation2 + $0x110] sm:$0xff] %v1035_v1  ;;  %v1036_v9 = vmax.f32 %v542_v61, %v886_v2  ;;  %v1232_v21 = vmul.f32 %v1035_v1, %v1035_v1 }
 0x13c   :  { %1097 = vst [vmem:[#allocation2 + $0x100] sm:$0xff] %v1033_v6  ;;  %v1160_v10 = vadd.f32 %v1159_v7, %v1033_v6  ;;  %v1230_v11 = vmul.f32 %v1033_v6, %v1033_v6  ;;  %v1292_v12 = vadd.f32 %v1291_v5, %v1229_v0  ;;  %v1034_v13 = vmax.f32 %v534_v3, %v878_v8 }
 0x13d   :  { %1100 = vst [vmem:[#allocation2 + $0x118] sm:$0xff] %v1036_v9  ;;  %v1541_v14 = vpop.f32.mrb[36].mxu0  ;;  %v1233_v32 = vmul.f32 %v1036_v9, %v1036_v9 }
 0x13e   :  { %v1293_v15 = vadd.f32 %v1292_v12, %v1230_v11  ;;  %1098 = vst [vmem:[#allocation2 + $0x108] sm:$0xff] %v1034_v13  ;;  %v1161_v16 = vadd.f32 %v1160_v10, %v1034_v13  ;;  %v1231_v17 = vmul.f32 %v1034_v13, %v1034_v13  ;;  %v555_v18 = vadd.f32 %v1541_v14, %v1914_v48  ;;  %v1621_v19 = vpop.f32.mrb[36].mxu1  ;;  %v546_v20 = vpop.f32.mrb[37].mxu0 }
 0x13f   :  { %v899_v22 = vadd.f32 %v1621_v19, %v1919_v49  ;;  %v547_v23 = vadd.f32 %v1914_v48, %v546_v20  ;;  %v890_v24 = vpop.f32.mrb[37].mxu1  ;;  %v1542_v25 = vpop.f32.mrb[38].mxu0 }
 0x140   :  { %v1162_v26 = vadd.f32 %v1161_v16, %v1035_v1  ;;  %v1294_v27 = vadd.f32 %v1293_v15, %v1231_v17  ;;  %v891_v28 = vadd.f32 %v1919_v49, %v890_v24  ;;  %v558_v29 = vadd.f32 %v1542_v25, %v1914_v48  ;;  %v1622_v30 = vpop.f32.mrb[38].mxu1  ;;  %v549_v31 = vpop.f32.mrb[39].mxu0 }
 0x141   :  { %v1039_v33 = vmax.f32 %v555_v18, %v899_v22  ;;  %v902_v34 = vadd.f32 %v1622_v30, %v1919_v49  ;;  %v550_v35 = vadd.f32 %v1914_v48, %v549_v31  ;;  %v893_v36 = vpop.f32.mrb[39].mxu1 }
 0x142   :  { %v1295_v37 = vadd.f32 %v1294_v27, %v1232_v21  ;;  %v1037_v38 = vmax.f32 %v547_v23, %v891_v28  ;;  %v1163_v39 = vadd.f32 %v1162_v26, %v1036_v9  ;;  %v894_v40 = vadd.f32 %v1919_v49, %v893_v36 }
 0x143   :  { %1103 = vst [vmem:[#allocation2 + $0x130] sm:$0xff] %v1039_v33  ;;  %v1040_v41 = vmax.f32 %v558_v29, %v902_v34  ;;  %v1236_v55 = vmul.f32 %v1039_v33, %v1039_v33 }
 0x144   :  { %1101 = vst [vmem:[#allocation2 + $0x120] sm:$0xff] %v1037_v38  ;;  %v1164_v42 = vadd.f32 %v1163_v39, %v1037_v38  ;;  %v1234_v43 = vmul.f32 %v1037_v38, %v1037_v38  ;;  %v1296_v44 = vadd.f32 %v1295_v37, %v1233_v32  ;;  %v1038_v45 = vmax.f32 %v550_v35, %v894_v40 }
 0x145   :  { %1104 = vst [vmem:[#allocation2 + $0x138] sm:$0xff] %v1040_v41  ;;  %v1545_v46 = vpop.f32.mrb[40].mxu0  ;;  %v1237_v2 = vmul.f32 %v1040_v41, %v1040_v41 }
 0x146   :  { %v1297_v47 = vadd.f32 %v1296_v44, %v1234_v43  ;;  %1102 = vst [vmem:[#allocation2 + $0x128] sm:$0xff] %v1038_v45  ;;  %v1165_v50 = vadd.f32 %v1164_v42, %v1038_v45  ;;  %v1235_v51 = vmul.f32 %v1038_v45, %v1038_v45  ;;  %v571_v52 = vadd.f32 %v1545_v46, %v1914_v48  ;;  %v1625_v53 = vpop.f32.mrb[40].mxu1  ;;  %v562_v54 = vpop.f32.mrb[41].mxu0 }
 0x147   :  { %v915_v56 = vadd.f32 %v1625_v53, %v1919_v49  ;;  %v563_v57 = vadd.f32 %v1914_v48, %v562_v54  ;;  %v906_v58 = vpop.f32.mrb[41].mxu1  ;;  %v1546_v59 = vpop.f32.mrb[42].mxu0 }
 0x148   :  { %v1166_v60 = vadd.f32 %v1165_v50, %v1039_v33  ;;  %v1298_v61 = vadd.f32 %v1297_v47, %v1235_v51  ;;  %v907_v62 = vadd.f32 %v1919_v49, %v906_v58  ;;  %v574_v63 = vadd.f32 %v1546_v59, %v1914_v48  ;;  %v1626_v0 = vpop.f32.mrb[42].mxu1  ;;  %v565_v1 = vpop.f32.mrb[43].mxu0 }
 0x149   :  { %v1043_v3 = vmax.f32 %v571_v52, %v915_v56  ;;  %v918_v4 = vadd.f32 %v1626_v0, %v1919_v49  ;;  %v566_v5 = vadd.f32 %v1914_v48, %v565_v1  ;;  %v909_v6 = vpop.f32.mrb[43].mxu1 }
 0x14a   :  { %v1299_v7 = vadd.f32 %v1298_v61, %v1236_v55  ;;  %v1041_v8 = vmax.f32 %v563_v57, %v907_v62  ;;  %v1167_v9 = vadd.f32 %v1166_v60, %v1040_v41  ;;  %v910_v10 = vadd.f32 %v1919_v49, %v909_v6 }
 0x14b   :  { %1107 = vst [vmem:[#allocation2 + $0x150] sm:$0xff] %v1043_v3  ;;  %v1044_v11 = vmax.f32 %v574_v63, %v918_v4  ;;  %v1240_v23 = vmul.f32 %v1043_v3, %v1043_v3 }
 0x14c   :  { %1105 = vst [vmem:[#allocation2 + $0x140] sm:$0xff] %v1041_v8  ;;  %v1168_v12 = vadd.f32 %v1167_v9, %v1041_v8  ;;  %v1238_v13 = vmul.f32 %v1041_v8, %v1041_v8  ;;  %v1300_v14 = vadd.f32 %v1299_v7, %v1237_v2  ;;  %v1042_v15 = vmax.f32 %v566_v5, %v910_v10 }
 0x14d   :  { %1108 = vst [vmem:[#allocation2 + $0x158] sm:$0xff] %v1044_v11  ;;  %v1549_v16 = vpop.f32.mrb[44].mxu0  ;;  %v1241_v34 = vmul.f32 %v1044_v11, %v1044_v11 }
 0x14e   :  { %v1301_v17 = vadd.f32 %v1300_v14, %v1238_v13  ;;  %1106 = vst [vmem:[#allocation2 + $0x148] sm:$0xff] %v1042_v15  ;;  %v1169_v18 = vadd.f32 %v1168_v12, %v1042_v15  ;;  %v1239_v19 = vmul.f32 %v1042_v15, %v1042_v15  ;;  %v587_v20 = vadd.f32 %v1549_v16, %v1914_v48  ;;  %v1629_v21 = vpop.f32.mrb[44].mxu1  ;;  %v578_v22 = vpop.f32.mrb[45].mxu0 }
 0x14f   :  { %v931_v24 = vadd.f32 %v1629_v21, %v1919_v49  ;;  %v579_v25 = vadd.f32 %v1914_v48, %v578_v22  ;;  %v922_v26 = vpop.f32.mrb[45].mxu1  ;;  %v1550_v27 = vpop.f32.mrb[46].mxu0 }
 0x150   :  { %v1170_v28 = vadd.f32 %v1169_v18, %v1043_v3  ;;  %v1302_v29 = vadd.f32 %v1301_v17, %v1239_v19  ;;  %v923_v30 = vadd.f32 %v1919_v49, %v922_v26  ;;  %v590_v31 = vadd.f32 %v1550_v27, %v1914_v48  ;;  %v1630_v32 = vpop.f32.mrb[46].mxu1  ;;  %v581_v33 = vpop.f32.mrb[47].mxu0 }
 0x151   :  { %v1047_v35 = vmax.f32 %v587_v20, %v931_v24  ;;  %v934_v36 = vadd.f32 %v1630_v32, %v1919_v49  ;;  %v582_v37 = vadd.f32 %v1914_v48, %v581_v33  ;;  %v925_v38 = vpop.f32.mrb[47].mxu1 }
 0x152   :  { %v1303_v39 = vadd.f32 %v1302_v29, %v1240_v23  ;;  %v1045_v40 = vmax.f32 %v579_v25, %v923_v30  ;;  %v1171_v41 = vadd.f32 %v1170_v28, %v1044_v11  ;;  %v926_v42 = vadd.f32 %v1919_v49, %v925_v38 }
 0x153   :  { %1111 = vst [vmem:[#allocation2 + $0x170] sm:$0xff] %v1047_v35  ;;  %v1048_v43 = vmax.f32 %v590_v31, %v934_v36  ;;  %v1244_v57 = vmul.f32 %v1047_v35, %v1047_v35 }
 0x154   :  { %1109 = vst [vmem:[#allocation2 + $0x160] sm:$0xff] %v1045_v40  ;;  %v1172_v44 = vadd.f32 %v1171_v41, %v1045_v40  ;;  %v1242_v45 = vmul.f32 %v1045_v40, %v1045_v40  ;;  %v1304_v46 = vadd.f32 %v1303_v39, %v1241_v34  ;;  %v1046_v47 = vmax.f32 %v582_v37, %v926_v42 }
 0x155   :  { %1112 = vst [vmem:[#allocation2 + $0x178] sm:$0xff] %v1048_v43  ;;  %v1553_v50 = vpop.f32.mrb[48].mxu0  ;;  %v1245_v4 = vmul.f32 %v1048_v43, %v1048_v43 }
 0x156   :  { %v1305_v51 = vadd.f32 %v1304_v46, %v1242_v45  ;;  %1110 = vst [vmem:[#allocation2 + $0x168] sm:$0xff] %v1046_v47  ;;  %v1173_v52 = vadd.f32 %v1172_v44, %v1046_v47  ;;  %v1243_v53 = vmul.f32 %v1046_v47, %v1046_v47  ;;  %v603_v54 = vadd.f32 %v1553_v50, %v1914_v48  ;;  %v1633_v55 = vpop.f32.mrb[48].mxu1  ;;  %v594_v56 = vpop.f32.mrb[49].mxu0 }
 0x157   :  { %v947_v58 = vadd.f32 %v1633_v55, %v1919_v49  ;;  %v595_v59 = vadd.f32 %v1914_v48, %v594_v56  ;;  %v938_v60 = vpop.f32.mrb[49].mxu1  ;;  %v1554_v61 = vpop.f32.mrb[50].mxu0 }
 0x158   :  { %v1174_v62 = vadd.f32 %v1173_v52, %v1047_v35  ;;  %v1306_v63 = vadd.f32 %v1305_v51, %v1243_v53  ;;  %v939_v0 = vadd.f32 %v1919_v49, %v938_v60  ;;  %v606_v1 = vadd.f32 %v1554_v61, %v1914_v48  ;;  %v1634_v2 = vpop.f32.mrb[50].mxu1  ;;  %v597_v3 = vpop.f32.mrb[51].mxu0 }
 0x159   :  { %v1051_v5 = vmax.f32 %v603_v54, %v947_v58  ;;  %v950_v6 = vadd.f32 %v1634_v2, %v1919_v49  ;;  %v598_v7 = vadd.f32 %v1914_v48, %v597_v3  ;;  %v941_v8 = vpop.f32.mrb[51].mxu1 }
 0x15a   :  { %v1307_v9 = vadd.f32 %v1306_v63, %v1244_v57  ;;  %v1049_v10 = vmax.f32 %v595_v59, %v939_v0  ;;  %v1175_v11 = vadd.f32 %v1174_v62, %v1048_v43  ;;  %v942_v12 = vadd.f32 %v1919_v49, %v941_v8  ;;  %v1698_v8 = vld [vmem:[%s2066_s4] ss:$0 sm:$0xff] }
 0x15b   :  { %1115 = vst [vmem:[#allocation2 + $0x190] sm:$0xff] %v1051_v5  ;;  %v1052_v13 = vmax.f32 %v606_v1, %v950_v6  ;;  %v1248_v25 = vmul.f32 %v1051_v5, %v1051_v5 }
 0x15c   :  { %1113 = vst [vmem:[#allocation2 + $0x180] sm:$0xff] %v1049_v10  ;;  %v1176_v14 = vadd.f32 %v1175_v11, %v1049_v10  ;;  %v1246_v15 = vmul.f32 %v1049_v10, %v1049_v10  ;;  %v1308_v16 = vadd.f32 %v1307_v9, %v1245_v4  ;;  %v1050_v17 = vmax.f32 %v598_v7, %v942_v12  ;;  %v1699_v10 = vld [vmem:[%s2065_s3] ss:$0 sm:$0xff]  ;;  %s1724_s3 = smov [#allocation2]  }
 0x15d   :  { %1116 = vst [vmem:[#allocation2 + $0x198] sm:$0xff] %v1052_v13  ;;  %v1557_v18 = vpop.f32.mrb[52].mxu0  ;;  %v1249_v36 = vmul.f32 %v1052_v13, %v1052_v13  ;;  %s1338_s4 = sshll.u32 %s1724_s3, 4  ;;  %s1339_s4 = int_to_ptr.vmem [resolvable:$true] %s1338_s4 }
 0x15e   :  { %v1309_v19 = vadd.f32 %v1308_v16, %v1246_v15  ;;  %1114 = vst [vmem:[#allocation2 + $0x188] sm:$0xff] %v1050_v17  ;;  %v1177_v20 = vadd.f32 %v1176_v14, %v1050_v17  ;;  %v1247_v21 = vmul.f32 %v1050_v17, %v1050_v17  ;;  %v619_v22 = vadd.f32 %v1557_v18, %v1914_v48  ;;  %v1637_v23 = vpop.f32.mrb[52].mxu1  ;;  %v610_v24 = vpop.f32.mrb[53].mxu0  ;;  %s1700_s29 = scalar_lea.vmem %s1339_s4, 8192  ;;  %p1705_p1 = scmp.lt.s32.totalorder %s1339_s4, %s1339_s4 }
 0x15f   :  { %v963_v26 = vadd.f32 %v1637_v23, %v1919_v49  ;;  %v611_v27 = vadd.f32 %v1914_v48, %v610_v24  ;;  %v954_v28 = vpop.f32.mrb[53].mxu1  ;;  %v1558_v29 = vpop.f32.mrb[54].mxu0  ;;  %p1701_p0 = scmp.ne.s32.totalorder %s1339_s4, %s1700_s29  ;;  %p1706_p2 = scmp.lt.s32.totalorder %s1700_s29, %s1700_s29 }
 0x160   :  { %v1178_v30 = vadd.f32 %v1177_v20, %v1051_v5  ;;  %v1310_v31 = vadd.f32 %v1309_v19, %v1247_v21  ;;  %v955_v32 = vadd.f32 %v1919_v49, %v954_v28  ;;  %v622_v33 = vadd.f32 %v1558_v29, %v1914_v48  ;;  %v1638_v34 = vpop.f32.mrb[54].mxu1  ;;  %v613_v35 = vpop.f32.mrb[55].mxu0 }
 0x161   :  { %v1055_v37 = vmax.f32 %v619_v22, %v963_v26  ;;  %v966_v38 = vadd.f32 %v1638_v34, %v1919_v49  ;;  %v614_v39 = vadd.f32 %v1914_v48, %v613_v35  ;;  %v957_v40 = vpop.f32.mrb[55].mxu1  ;;  %p1707_p3 = por %p1706_p2, %p1705_p1 }
 0x162   :  { %v1311_v41 = vadd.f32 %v1310_v31, %v1248_v25  ;;  %v1053_v42 = vmax.f32 %v611_v27, %v955_v32  ;;  %v1179_v43 = vadd.f32 %v1178_v30, %v1052_v13  ;;  %v958_v44 = vadd.f32 %v1919_v49, %v957_v40 }
 0x163   :  { %1119 = vst [vmem:[#allocation2 + $0x1b0] sm:$0xff] %v1055_v37  ;;  %v1056_v45 = vmax.f32 %v622_v33, %v966_v38  ;;  %v1252_v59 = vmul.f32 %v1055_v37, %v1055_v37  ;;  %p1708_p4 = pnand %p1707_p3, %p1701_p0 }
 0x164   :  { %1117 = vst [vmem:[#allocation2 + $0x1a0] sm:$0xff] %v1053_v42  ;;  %v1180_v46 = vadd.f32 %v1179_v43, %v1053_v42  ;;  %v1250_v47 = vmul.f32 %v1053_v42, %v1053_v42  ;;  %v1312_v50 = vadd.f32 %v1311_v41, %v1249_v36  ;;  %v1054_v51 = vmax.f32 %v614_v39, %v958_v44 }
 0x165   :  { %1120 = vst [vmem:[#allocation2 + $0x1b8] sm:$0xff] %v1056_v45  ;;  %v1561_v52 = vpop.f32.mrb[56].mxu0  ;;  %v1253_v6 = vmul.f32 %v1056_v45, %v1056_v45 }
 0x166   :  { %v1313_v53 = vadd.f32 %v1312_v50, %v1250_v47  ;;  %1118 = vst [vmem:[#allocation2 + $0x1a8] sm:$0xff] %v1054_v51  ;;  %v1181_v54 = vadd.f32 %v1180_v46, %v1054_v51  ;;  %v1251_v55 = vmul.f32 %v1054_v51, %v1054_v51  ;;  %v635_v56 = vadd.f32 %v1561_v52, %v1914_v48  ;;  %v1641_v57 = vpop.f32.mrb[56].mxu1  ;;  %v626_v58 = vpop.f32.mrb[57].mxu0 }
 0x167   :  { %v979_v60 = vadd.f32 %v1641_v57, %v1919_v49  ;;  %v627_v61 = vadd.f32 %v1914_v48, %v626_v58  ;;  %v970_v62 = vpop.f32.mrb[57].mxu1  ;;  %v1562_v63 = vpop.f32.mrb[58].mxu0 }
 0x168   :  { %v1182_v0 = vadd.f32 %v1181_v54, %v1055_v37  ;;  %v1314_v1 = vadd.f32 %v1313_v53, %v1251_v55  ;;  %v971_v2 = vadd.f32 %v1919_v49, %v970_v62  ;;  %v638_v3 = vadd.f32 %v1562_v63, %v1914_v48  ;;  %v1642_v4 = vpop.f32.mrb[58].mxu1  ;;  %v629_v5 = vpop.f32.mrb[59].mxu0 }
 0x169   :  { %v1059_v7 = vmax.f32 %v635_v56, %v979_v60  ;;  %v982_v9 = vadd.f32 %v1698_v8, %v1642_v4  ;;  %v630_v11 = vadd.f32 %v1699_v10, %v629_v5  ;;  %v973_v12 = vpop.f32.mrb[59].mxu1 }
 0x16a   :  { %v1315_v13 = vadd.f32 %v1314_v1, %v1252_v59  ;;  %v1057_v14 = vmax.f32 %v627_v61, %v971_v2  ;;  %v1183_v49 = vadd.f32 %v1182_v0, %v1056_v45  ;;  %v974_v15 = vadd.f32 %v1698_v8, %v973_v12 }
 0x16b   :  { %1123 = vst [vmem:[#allocation2 + $0x1d0] sm:$0xff] %v1059_v7  ;;  %v1060_v48 = vmax.f32 %v638_v3, %v982_v9  ;;  %v1256_v27 = vmul.f32 %v1059_v7, %v1059_v7 }
 0x16c   :  { %1121 = vst [vmem:[#allocation2 + $0x1c0] sm:$0xff] %v1057_v14  ;;  %v1184_v16 = vadd.f32 %v1183_v49, %v1057_v14  ;;  %v1254_v17 = vmul.f32 %v1057_v14, %v1057_v14  ;;  %v1316_v18 = vadd.f32 %v1315_v13, %v1253_v6  ;;  %v1058_v19 = vmax.f32 %v630_v11, %v974_v15 }
 0x16d   :  { %1124 = vst [vmem:[#allocation2 + $0x1d8] sm:$0xff] %v1060_v48  ;;  %v1565_v20 = vpop.f32.mrb[60].mxu0  ;;  %v1257_v38 = vmul.f32 %v1060_v48, %v1060_v48 }
 0x16e   :  { %v1317_v21 = vadd.f32 %v1316_v18, %v1254_v17  ;;  %1122 = vst [vmem:[#allocation2 + $0x1c8] sm:$0xff] %v1058_v19  ;;  %v1185_v22 = vadd.f32 %v1184_v16, %v1058_v19  ;;  %v1255_v23 = vmul.f32 %v1058_v19, %v1058_v19  ;;  %v651_v24 = vadd.f32 %v1699_v10, %v1565_v20  ;;  %v1645_v25 = vpop.f32.mrb[60].mxu1  ;;  %v642_v26 = vpop.f32.mrb[61].mxu0 }
 0x16f   :  { %v995_v28 = vadd.f32 %v1698_v8, %v1645_v25  ;;  %v643_v29 = vadd.f32 %v1699_v10, %v642_v26  ;;  %v986_v30 = vpop.f32.mrb[61].mxu1  ;;  %v1566_v31 = vpop.f32.mrb[62].mxu0 }
 0x170   :  { %v1186_v32 = vadd.f32 %v1185_v22, %v1059_v7  ;;  %v1318_v33 = vadd.f32 %v1317_v21, %v1255_v23  ;;  %v987_v34 = vadd.f32 %v1698_v8, %v986_v30  ;;  %v654_v35 = vadd.f32 %v1699_v10, %v1566_v31  ;;  %v1646_v36 = vpop.f32.mrb[62].mxu1  ;;  %v645_v37 = vpop.f32.mrb[63].mxu0 }
 0x171   :  { %v1063_v39 = vmax.f32 %v651_v24, %v995_v28  ;;  %v998_v40 = vadd.f32 %v1698_v8, %v1646_v36  ;;  %v646_v41 = vadd.f32 %v1699_v10, %v645_v37  ;;  %v989_v42 = vpop.f32.mrb[63].mxu1 }
 0x172   :  { %v1319_v43 = vadd.f32 %v1318_v33, %v1256_v27  ;;  %v1061_v44 = vmax.f32 %v643_v29, %v987_v34  ;;  %v1187_v45 = vadd.f32 %v1186_v32, %v1060_v48  ;;  %v990_v46 = vadd.f32 %v1698_v8, %v989_v42 }
 0x173   :  { %1127 = vst [vmem:[#allocation2 + $0x1f0] sm:$0xff] %v1063_v39  ;;  %v1064_v47 = vmax.f32 %v654_v35, %v998_v40 }
 0x174   :  { %1125 = vst [vmem:[#allocation2 + $0x1e0] sm:$0xff] %v1061_v44  ;;  %v1188_v50 = vadd.f32 %v1187_v45, %v1061_v44  ;;  %v1258_v51 = vmul.f32 %v1061_v44, %v1061_v44  ;;  %v1320_v52 = vadd.f32 %v1319_v43, %v1257_v38  ;;  %v1062_v53 = vmax.f32 %v646_v41, %v990_v46 }
 0x175   :  { %1128 = vst [vmem:[#allocation2 + $0x1f8] sm:$0xff] %v1064_v47 }
 0x176   :  { %v1321_v54 = vadd.f32 %v1320_v52, %v1258_v51  ;;  %1126 = vst [vmem:[#allocation2 + $0x1e8] sm:$0xff] %v1062_v53  ;;  %v1189_v55 = vadd.f32 %v1188_v50, %v1062_v53  ;;  %v1259_v56 = vmul.f32 %v1062_v53, %v1062_v53 }
 0x177   :  { %1711 = shalt.err (!%p1708_p4)
}
 0x178   :  { %s1712_s9 = scalar_lea.hbm %s2067_s5, 8192 }
 0x179   :  { %p1713_p5 = scmp.ne.s32.totalorder %s2067_s5, %s1712_s9  ;;  %p1716_p6 = scmp.lt.u32.totalorder %s1712_s9, %s2067_s5 }
 0x17b   :  { %p1718_p7 = pnand %p1716_p6, %p1713_p5 }
 0x17d   :  { %1721 = shalt.err (!%p1718_p7)
}
 0x17e   :  { %s1725_s14 = smov 128   ;;  %s1726_s15 = smov 8   ;;  %v1260_v57 = vmul.f32 %v1063_v39, %v1063_v39  ;;  %v1190_v58 = vadd.f32 %v1189_v55, %v1063_v39  ;;  %v1322_v59 = vadd.f32 %v1321_v54, %v1259_v56  ;;  %v1261_v60 = vmul.f32 %v1064_v47, %v1064_v47 }
 0x17f   :  { %1344 = dma.vmem_to_hbm [thread:$0]  %s1339_s4, 8192, %s2067_s5, [#allocation3], %s1725_s14, %s1725_s14, %s1726_s15  }
 0x180   :  { %v1191_v61 = vadd.f32 %v1190_v58, %v1064_v47  ;;  %v1323_v62 = vadd.f32 %v1322_v59, %v1260_v57 }
 0x182   :  { %v1192_v63 = vrot.slane %v1191_v61, 4  ;;  %v1324_v0 = vadd.f32 %v1323_v62, %v1261_v60 }
 0x184   :  { %v1193_v1 = vadd.f32 %v1192_v63, %v1191_v61  ;;  %v1325_v2 = vrot.slane %v1324_v0, 4 }
 0x186   :  { %v1194_v3 = vrot.slane %v1193_v1, 2  ;;  %v1326_v4 = vadd.f32 %v1325_v2, %v1324_v0 }
 0x188   :  { %v1195_v5 = vadd.f32 %v1194_v3, %v1193_v1  ;;  %v1327_v6 = vrot.slane %v1326_v4, 2 }
 0x18a   :  { %v1196_v7 = vrot.slane %v1195_v5, 1  ;;  %v1328_v8 = vadd.f32 %v1327_v6, %v1326_v4 }
 0x18c   :  { %v1197_v9 = vadd.f32 %v1196_v7, %v1195_v5  ;;  %v1329_v10 = vrot.slane %v1328_v8, 1 }
 0x18e   :  { %v1330_v11 = vadd.f32 %v1329_v10, %v1328_v8  ;;  %1331 = vst [vmem:[%s2068_s6] sm:$0xff] %v1197_v9 }
 0x190   :  { %1332 = vst [vmem:[%s2069_s7] sm:$0xff] %v1330_v11 }
 0x191   :  { %1722 = dma.done.wait [#allocation3], 8192  }
 0x192   :  { %1723 = vsyncadd [#allocation3], 4294959104 }
 0x193   :  { %1356 = vsyncpa [#allocation3], 1 }

// kernel: group_forward.4
= control target key start
LH: loop header
LB: loop body
LE: loop exit
PB: predicated region body
PF: predicated region fallthrough
CT: control target
= control target key end

     0   :  { %s13646_s0 = inlined_call_operand.hbm [shape: f32[2,16,16,128], index: 0, kind: input, shape index: {}]   ;;  %s13647_s1 = inlined_call_operand.hbm [shape: f32[1,128], index: 1, kind: input, shape index: {}]   ;;  %s13648_s2 = inlined_call_operand.hbm [shape: f32[1,128], index: 2, kind: input, shape index: {}]   ;;  %s13649_s3 = inlined_call_operand.hbm [shape: bf16[9,128,128], index: 3, kind: input, shape index: {}]   ;;  %s13650_s4 = inlined_call_operand.hbm [shape: bf16[9,128,128], index: 4, kind: input, shape index: {}]   ;;  %s13651_s5 = inlined_call_operand.hbm [shape: f32[1,128], index: 5, kind: input, shape index: {}]   ;;  %s13652_s6 = inlined_call_operand.hbm [shape: f32[1,128], index: 6, kind: input, shape index: {}]   ;;  %s13653_s7 = inlined_call_operand.hbm [shape: f32[2,256,128], index: 7, kind: output, shape index: {0}]   ;;  %s13654_s8 = inlined_call_operand.hbm [shape: f32[16,128], index: 8, kind: output, shape index: {1}]   ;;  %s13655_s9 = inlined_call_operand.hbm [shape: f32[16,128], index: 9, kind: output, shape index: {2}]  }
   0x1   :  { %13681 = sst [smem:[#allocation35_spill]] %s13646_s0 }
   0x2   :  { %13682 = sst [smem:[#allocation36_spill]] %s13647_s1 }
   0x3   :  { %15 = vsyncpa [#allocation4], 0 }
   0x4   :  { %17 = vsyncpa [#allocation4 + $0x1], 0 }
   0x5   :  { %18 = vsyncpa [#allocation7], 0 }
   0x6   :  { %19 = vsyncpa [#allocation10], 0 }
   0x7   :  { %20 = vsyncpa [#allocation13], 0 }
   0x8   :  { %21 = vsyncpa [#allocation5], 0 }
   0x9   :  { %23 = vsyncpa [#allocation5 + $0x1], 0 }
   0xa   :  { %24 = vsyncpa [#allocation17], 0 }
   0xb   :  { %26 = vsyncpa [#allocation17 + $0x1], 0  ;;  %s11711_s30 = smov 0   ;;  %s11713_s10 = smov 0  }
   0xc   :  { %s11715_s11 = smov 0   ;;  %s11717_s12 = smov 0  }
   0xd LB: > { %s11644_s13 = smov [#allocation6]   ;;  %s11732_s15 = sadd.s32 4294967295, %s11642_s12   ;;  %s11642_s12 = sphi %s11717_s12, %s13758_s12   ;;  %s11638_s11 = sphi %s11715_s11, %s13757_s11   ;;  %s11634_s10 = sphi %s11713_s10, %s13756_s10   ;;  %s11630_s30 = sphi %s11711_s30, %s13755_s30  }
   0xe   : > { %s280_s14 = sshll.u32 %s11644_s13, 4  ;;  %p8707_p0 = scmp.ge.s32.totalorder %s11642_s12, 1  ;;  %s11737_s14 = int_to_ptr.vmem [resolvable:$true] %s280_s14 }
   0xf   : > { %p13658_p1 = scmp.eq.s32.totalorder %s11732_s15, 0  ;;  %p267_p2 = scmp.lt.s32.totalorder %s11642_s12, 3 }
  0x10   : > { %s11645_s17 = smov [#allocation9]   ;;  %s11646_s20 = smov [#allocation12]  }
  0x11   : > { %p11739_p3 = pnand %p8707_p0, %p267_p2  ;;  %s301_s18 = sshll.u32 %s11645_s17, 4  ;;  %s11746_s18 = int_to_ptr.vmem [resolvable:$true] %s301_s18 }
  0x12   : > { %s328_s21 = sshll.u32 %s11646_s20, 4  ;;  %s13685_s1 = sld [smem:[#allocation36_spill]]  ;;  %s11754_s21 = int_to_ptr.vmem [resolvable:$true] %s328_s21 }
  0x13   : > { %s13683_s16 = scalar_select %p11739_p3, 1, 0 }
  0x14   : > { %p10984_p5 = pneg %p11739_p3 }
  0x16   : > { %p11750_p6 = pnand %p10984_p5, %p13658_p1 }
  0x18   : > { %s11306_s24 = scalar_lea.hbm %s13685_s1, 16  ;;  %p11764_p8 = pneg %p11750_p6 }
  0x19   : > { %p11307_p7 = scmp.ne.s32.totalorder %s13685_s1, %s11306_s24  ;;  %p11313_p11 = scmp.lt.u32.totalorder %s11306_s24, %s13685_s1 }
  0x1b   : > { %p11309_p9 = pnand %p11764_p8, %p11307_p7 }
  0x1d   : > { %p11310_p10 = pneg %p11309_p9 }
  0x1f   : > { %p11315_p12 = pnand %p11313_p11, %p11310_p10 }
  0x21   : > { %11318 = shalt.err (!%p11315_p12)
}
  0x22   : > { %s11319_s13 = scalar_lea.vmem %s11737_s14, 16  ;;  %s11326_s17 = scalar_lea.vmem %s11737_s14, 32 }
  0x23   : > { %p11320_p13 = scmp.ne.s32.totalorder %s11737_s14, %s11319_s13  ;;  %p11327_p5 = scmp.lt.s32.totalorder %s11737_s14, %s11737_s14 }
  0x24   : > { %p11328_p7 = scmp.lt.s32.totalorder %s11326_s17, %s11319_s13 }
  0x25   : > { %p11322_p0 = pnand %p11320_p13, %p11764_p8 }
  0x26   : > { %p11329_p9 = por %p11328_p7, %p11327_p5 }
  0x27   : > { %p11323_p2 = pneg %p11322_p0 }
  0x29   : > { %p11330_p4 = pnand %p11329_p9, %p11323_p2 }
  0x2b   : > { %11333 = shalt.err (!%p11330_p4)
}
  0x2c   : > { %10987 = dma.hbm_to_vmem [thread:$0]  (!%p11750_p6), %s13685_s1, 16, %s11737_s14, [#allocation7]  }
  0x2d   : > { %s11334_s25 = scalar_lea.hbm %s13649_s3, 9216 }
  0x2e   : > { %p11335_p10 = scmp.ne.s32.totalorder %s13649_s3, %s11334_s25  ;;  %p11341_p4 = scmp.lt.u32.totalorder %s11334_s25, %s13649_s3 }
  0x30   : > { %p11337_p11 = pnand %p11335_p10, %p11764_p8 }
  0x32   : > { %p11338_p12 = pneg %p11337_p11 }
  0x34   : > { %p11343_p13 = pnand %p11341_p4, %p11338_p12 }
  0x36   : > { %11346 = shalt.err (!%p11343_p13)
}
  0x37   : > { %s11347_s14 = scalar_lea.vmem %s11746_s18, 9216  ;;  %p11355_p7 = scmp.lt.s32.totalorder %s11746_s18, %s11746_s18 }
  0x38   : > { %p11348_p0 = scmp.ne.s32.totalorder %s11746_s18, %s11347_s14  ;;  %p11356_p9 = scmp.lt.s32.totalorder %s11347_s14, %s11347_s14 }
  0x3a   : > { %p11350_p2 = pnand %p11348_p0, %p11764_p8  ;;  %p11357_p10 = por %p11356_p9, %p11355_p7 }
  0x3c   : > { %p11351_p5 = pneg %p11350_p2 }
  0x3e   : > { %p11358_p11 = pnand %p11357_p10, %p11351_p5 }
  0x40   : > { %11361 = shalt.err (!%p11358_p11)
}
  0x41   : > { %s13656_s17 = smov 64   ;;  %s13657_s20 = smov 4  }
  0x42   : > { %10993 = dma.hbm_to_vmem [thread:$0]  (!%p11750_p6), %s13649_s3, 9216, %s11746_s18, [#allocation10], %s13656_s17, %s13656_s17, %s13657_s20  }
  0x43   : > { %s11362_s26 = scalar_lea.hbm %s13651_s5, 16 }
  0x44   : > { %p11363_p12 = scmp.ne.s32.totalorder %s13651_s5, %s11362_s26  ;;  %p11369_p0 = scmp.lt.u32.totalorder %s11362_s26, %s13651_s5 }
  0x46   : > { %p11365_p4 = pnand %p11363_p12, %p11764_p8 }
  0x48   : > { %p11366_p13 = pneg %p11365_p4 }
  0x4a   : > { %p11371_p2 = pnand %p11369_p0, %p11366_p13 }
  0x4c   : > { %11374 = shalt.err (!%p11371_p2)
}
  0x4d   : > { %s11375_s18 = scalar_lea.vmem %s11754_s21, 16  ;;  %s11382_s22 = scalar_lea.vmem %s11754_s21, 32 }
  0x4e   : > { %p11376_p5 = scmp.ne.s32.totalorder %s11754_s21, %s11375_s18  ;;  %p11383_p10 = scmp.lt.s32.totalorder %s11754_s21, %s11754_s21 }
  0x4f   : > { %p11384_p11 = scmp.lt.s32.totalorder %s11382_s22, %s11375_s18 }
  0x50   : > { %p11378_p7 = pnand %p11376_p5, %p11764_p8 }
  0x51   : > { %p11385_p12 = por %p11384_p11, %p11383_p10 }
  0x52   : > { %p11379_p9 = pneg %p11378_p7 }
  0x54   : > { %p11386_p4 = pnand %p11385_p12, %p11379_p9 }
  0x56   : > { %11389 = shalt.err (!%p11386_p4)
}
  0x57   : > { %10999 = dma.hbm_to_vmem [thread:$0]  (!%p11750_p6), %s13651_s5, 16, %s11754_s21, [#allocation13]  }
  0x58   : > { %s11649_s25 = smov [#allocation8]   ;;  %s11650_s28 = smov [#allocation11]  }
  0x59   : > { %s291_s26 = sshll.u32 %s11649_s25, 4  ;;  %s314_s29 = sshll.u32 %s11650_s28, 4  ;;  %s292_s26 = int_to_ptr.vmem [resolvable:$true] %s291_s26  ;;  %s315_s29 = int_to_ptr.vmem [resolvable:$true] %s314_s29 }
  0x5a   : > { %s11390_s18 = scalar_lea.hbm %s13648_s2, 16 }
  0x5b   : > { %p11391_p13 = scmp.ne.s32.totalorder %s13648_s2, %s11390_s18  ;;  %p11397_p5 = scmp.lt.u32.totalorder %s11390_s18, %s13648_s2 }
  0x5d   : > { %p11393_p0 = pnand %p11391_p13, %p11764_p8 }
  0x5f   : > { %p11394_p2 = pneg %p11393_p0 }
  0x61   : > { %p11399_p7 = pnand %p11397_p5, %p11394_p2 }
  0x63   : > { %11402 = shalt.err (!%p11399_p7)
}
  0x64   : > { %s11403_s21 = scalar_lea.vmem %s292_s26, 16  ;;  %s11410_s24 = scalar_lea.vmem %s292_s26, 32 }
  0x65   : > { %p11404_p9 = scmp.ne.s32.totalorder %s292_s26, %s11403_s21  ;;  %p11411_p12 = scmp.lt.s32.totalorder %s292_s26, %s292_s26 }
  0x66   : > { %p11412_p4 = scmp.lt.s32.totalorder %s11410_s24, %s11403_s21 }
  0x67   : > { %p11406_p10 = pnand %p11404_p9, %p11764_p8 }
  0x68   : > { %p11413_p1 = por %p11412_p4, %p11411_p12 }
  0x69   : > { %p11407_p11 = pneg %p11406_p10 }
  0x6b   : > { %p11414_p3 = pnand %p11413_p1, %p11407_p11 }
  0x6d   : > { %11417 = shalt.err (!%p11414_p3)
}
  0x6e   : > { %10990 = dma.hbm_to_vmem [thread:$0]  (!%p11750_p6), %s13648_s2, 16, %s292_s26, [#allocation7]  }
  0x6f   : > { %s11418_s13 = scalar_lea.hbm %s13650_s4, 9216 }
  0x70   : > { %p11419_p13 = scmp.ne.s32.totalorder %s13650_s4, %s11418_s13  ;;  %p11425_p3 = scmp.lt.u32.totalorder %s11418_s13, %s13650_s4 }
  0x72   : > { %p11421_p0 = pnand %p11419_p13, %p11764_p8 }
  0x74   : > { %p11422_p1 = pneg %p11421_p0 }
  0x76   : > { %p11427_p2 = pnand %p11425_p3, %p11422_p1 }
  0x78   : > { %11430 = shalt.err (!%p11427_p2)
}
  0x79   : > { %s11431_s21 = scalar_lea.vmem %s315_s29, 9216  ;;  %p11439_p10 = scmp.lt.s32.totalorder %s315_s29, %s315_s29 }
  0x7a   : > { %p11432_p5 = scmp.ne.s32.totalorder %s315_s29, %s11431_s21  ;;  %p11440_p11 = scmp.lt.s32.totalorder %s11431_s21, %s11431_s21 }
  0x7c   : > { %p11434_p7 = pnand %p11432_p5, %p11764_p8  ;;  %p11441_p12 = por %p11440_p11, %p11439_p10 }
  0x7e   : > { %p11435_p9 = pneg %p11434_p7 }
  0x80   : > { %p11442_p4 = pnand %p11441_p12, %p11435_p9 }
  0x82   : > { %11445 = shalt.err (!%p11442_p4)
}
  0x83   : > { %s13687_s26 = smov 4   ;;  %s13688_s24 = smov 64  }
  0x84   : > { %10996 = dma.hbm_to_vmem [thread:$0]  (!%p11750_p6), %s13650_s4, 9216, %s315_s29, [#allocation10], %s13688_s24, %s13688_s24, %s13687_s26  }
  0x85   : > { %s11651_s20 = smov [#allocation14]   ;;  %s11446_s18 = scalar_lea.hbm %s13652_s6, 16 }
  0x86   : > { %s339_s28 = sshll.u32 %s11651_s20, 4  ;;  %p11447_p13 = scmp.ne.s32.totalorder %s13652_s6, %s11446_s18  ;;  %s340_s28 = int_to_ptr.vmem [resolvable:$true] %s339_s28 }
  0x87   : > { %p11453_p3 = scmp.lt.u32.totalorder %s11446_s18, %s13652_s6 }
  0x88   : > { %p11449_p0 = pnand %p11447_p13, %p11764_p8 }
  0x8a   : > { %p11450_p1 = pneg %p11449_p0 }
  0x8c   : > { %p11455_p2 = pnand %p11453_p3, %p11450_p1 }
  0x8e   : > { %11458 = shalt.err (!%p11455_p2)
}
  0x8f   : > { %s11459_s29 = scalar_lea.vmem %s340_s28, 16  ;;  %s11466_s26 = scalar_lea.vmem %s340_s28, 32 }
  0x90   : > { %p11460_p5 = scmp.ne.s32.totalorder %s340_s28, %s11459_s29  ;;  %p11467_p10 = scmp.lt.s32.totalorder %s340_s28, %s340_s28 }
  0x91   : > { %p11468_p11 = scmp.lt.s32.totalorder %s11466_s26, %s11459_s29 }
  0x92   : > { %p11462_p7 = pnand %p11460_p5, %p11764_p8 }
  0x93   : > { %p11469_p12 = por %p11468_p11, %p11467_p10 }
  0x94   : > { %p11463_p9 = pneg %p11462_p7 }
  0x96   : > { %p11470_p4 = pnand %p11469_p12, %p11463_p9 }
  0x98   : > { %11473 = shalt.err (!%p11470_p4)
}
  0x99   : > { %11002 = dma.hbm_to_vmem [thread:$0]  (!%p11750_p6), %s13652_s6, 16, %s340_s28, [#allocation13]  }
  0x9a   : > { %s13660_s1 = sadd.s32 4294967294, %s11642_s12   ;;  %s11895_s19 = sadd.s32 1, %s11642_s12  }
  0x9b   : > { %s36_s27 = ssub.s32 %s11642_s12, %s11895_s19  ;;  %s39_s25 = sadd.s32 1, %s11638_s11 }
  0x9c   : > { %p37_p8 = scmp.eq.s32.totalorder %s36_s27, 0  ;;  %p46_p13 = scmp.ne.s32.totalorder %s11638_s11, %s11634_s10 }
  0x9d   : > { %p47_p0 = scmp.eq.s32.totalorder %s11642_s12, 0  ;;  %p52_p1 = scmp.ne.s32.totalorder %s11634_s10, %s11630_s30 }
  0x9e   : > { %s11906_s20 = scalar_select %p37_p8, %s11638_s11, %s39_s25  }
  0x9f   : > { %p11908_p3 = por %p47_p0, %p46_p13  ;;  %p13690_p2 = scmp.eq.s32.totalorder %s11732_s15, 0 }
  0xa0   : > { %p202_p5 = scmp.eq.s32.totalorder %s11732_s15, 1  ;;  %p208_p7 = scmp.eq.s32.totalorder %s13660_s1, 1 }
  0xa1   : > { %p11914_p6 = por %p13690_p2, %p52_p1  ;;  %p11023_p9 = scmp.lt.s32.totalorder %s11642_s12, 2 }
  0xa2   : > { %s350_s14 = sand.u32 1, %s11638_s11   ;;  %p11923_p10 = por %p202_p5, %p46_p13 }
  0xa3   : > { %p11927_p11 = por %p208_p7, %p52_p1  ;;  %s8715_s23 = sshll.u32 %s350_s14, 8 }
  0xa4   : > { %s13692_s18 = scalar_select %p11923_p10, 1, 0 }
  0xa5   : > { %s13693_s22 = scalar_select %p11927_p11, 1, 0 }
  0xa6   : > { %s9110_s21 = sshll.u32 %s11642_s12, 12  ;;  %s13694_s0 = sld [smem:[#allocation35_spill]] }
  0xa7   : > { %s354_s17 = scalar_lea.vmem [#allocation3], %s8715_s23  ;;  %p11941_p12 = pnand %p11023_p9, %p11908_p3 }
  0xa8   : > { %s361_s27 = sshll.u32 %s354_s17, 4  ;;  %s11945_s1 = scalar_lea.sflag [#allocation4], %s350_s14  ;;  %s11937_s27 = int_to_ptr.vmem [resolvable:$true] %s361_s27 }
  0xa9   : > { %p11476_p8 = pneg %p11941_p12 }
  0xac   : > { %s11935_s24 = scalar_lea.hbm %s13694_s0, %s9110_s21  ;;  %s11479_s13 = scalar_lea.hbm %s13694_s0, 8192 }
  0xad   : > { %s11474_s29 = scalar_lea.hbm %s11935_s24, 4096  ;;  %p11480_p1 = scmp.lt.u32.totalorder %s11935_s24, %s13694_s0 }
  0xae   : > { %p11475_p4 = scmp.ne.s32.totalorder %s11935_s24, %s11474_s29  ;;  %p11481_p3 = scmp.lt.u32.totalorder %s11479_s13, %s11474_s29 }
  0xaf   : > { %p11483_p5 = scmp.lt.u32.totalorder %s11474_s29, %s11935_s24 }
  0xb0   : > { %p11477_p13 = pnand %p11476_p8, %p11475_p4  ;;  %p11482_p2 = por %p11481_p3, %p11480_p1 }
  0xb2   : > { %p11478_p0 = pneg %p11477_p13  ;;  %p11484_p7 = por %p11483_p5, %p11482_p2 }
  0xb4   : > { %p11485_p9 = pnand %p11484_p7, %p11478_p0 }
  0xb6   : > { %11488 = shalt.err (!%p11485_p9)
}
  0xb7   : > { %s11489_s14 = scalar_lea.vmem %s11937_s27, 4096  ;;  %s11652_s23 = smov [#allocation3]  }
  0xb8   : > { %p11490_p4 = scmp.ne.s32.totalorder %s11937_s27, %s11489_s14  ;;  %s11494_s21 = sshll.u32 %s11652_s23, 4  ;;  %s11495_s21 = int_to_ptr.vmem [resolvable:$false] %s11494_s21 }
  0xb9   : > { %s11496_s26 = scalar_lea.vmem %s11495_s21, 8192  ;;  %p11497_p10 = scmp.lt.s32.totalorder %s11937_s27, %s11495_s21 }
  0xba   : > { %p11492_p13 = pnand %p11490_p4, %p11476_p8  ;;  %p11498_p1 = scmp.lt.s32.totalorder %s11496_s26, %s11489_s14 }
  0xbc   : > { %p11493_p11 = pneg %p11492_p13  ;;  %p11499_p3 = por %p11498_p1, %p11497_p10 }
  0xbe   : > { %p11500_p2 = pnand %p11499_p3, %p11493_p11 }
  0xc0   : > { %11503 = shalt.err (!%p11500_p2)
}
  0xc1   : > { %s11653_s29 = smov 128   ;;  %s11654_s13 = smov 8  }
  0xc2   : > { %11006 = dma.hbm_to_vmem [thread:$0]  (!%p11941_p12), %s11935_s24, 4096, %s11937_s27, %s11945_s1, %s11653_s29, %s11653_s29, %s11654_s13  }
  0xc3   : > { %p13696_p8 = scmp.ne.s32.totalorder %s13683_s16, 0 }
  0xc5   : > { %373 = sbr.rel (%p13696_p8) target bundleno = 1192 (0x4a8), region = 48 }
  0xcc   : > { %s11976_s17 = sand.u32 1, %s11634_s10  }
  0xcd   : > { %s8719_s14 = sshll.u32 %s11976_s17, 8  ;;  %s376_s23 = scalar_lea.sflag [#allocation4], %s11976_s17 }
  0xce   : > { %s11982_s21 = scalar_lea.vmem [#allocation3], %s8719_s14 }
  0xcf   : > { %11605 = dma.done.wait (%p11914_p6), %s376_s23, 4096  }
  0xd0   : > { %11607 = vsyncadd (%p11914_p6), %s376_s23, 4294963200  ;;  %p13697_p10 = scmp.eq.s32.totalorder %s11732_s15, 0 }
  0xd2   : > { %11609 = dma.done.wait (%p13697_p10), [#allocation7], 32   ;;  %p13698_p11 = pmov %p13697_p10 }
  0xd3   : > { %p13699_p12 = pmov %p13697_p10 }
  0xd4   : > { %11611 = vsyncadd (%p13698_p11), [#allocation7], 4294967264 }
  0xd5   : > { %11613 = dma.done.wait (%p13699_p12), [#allocation10], 18432   ;;  %p13700_p0 = pmov %p13697_p10 }
  0xd7   : > { %11615 = vsyncadd (%p13700_p0), [#allocation10], 4294948864  ;;  %p13701_p5 = pmov %p13700_p0 }
  0xd8   : > { %p13702_p7 = pmov %p13700_p0 }
  0xd9   : > { %11617 = dma.done.wait (%p13701_p5), [#allocation13], 32  }
  0xda   : > { %11619 = vsyncadd (%p13702_p7), [#allocation13], 4294967264  ;;  %v11655_v0 = vmov 0   ;;  %v11076_v1 = vld [vmem:[#allocation9 + $0x40] sm:$0xff]   ;;  %v11078_v3 = vld [vmem:[#allocation9 + $0x48] sm:$0xff]   ;;  %vm1033_vm3 = vcmask 1043456  }
  0xdb   : > { %559 = vst [vmem:[#allocation2] sm:$0xf] %v11655_v0  ;;  %560 = vst [vmem:[#allocation2 + $0x4] sm:$0xf] %v11655_v0  ;;  %v11077_v2 = vld [vmem:[#allocation11 + $0x40] sm:$0xff]   ;;  %9576 = vmatprep.subr.bf16.mxu0 %v11076_v1  ;;  %v11079_v4 = vld [vmem:[#allocation11 + $0x48] sm:$0xff]  }
  0xdc   : > { %561 = vst [vmem:[#allocation2 + $0x8] sm:$0x1] %v11655_v0  ;;  %562 = vst [vmem:[#allocation2 + $0xc] sm:$0xf] %v11655_v0  ;;  %9672 = vmatprep.subr.bf16.mxu1 %v11077_v2  ;;  %9577 = vmatpush3.bf16.msra.mxu0 %v11076_v1  ;;  %v11080_v5 = vld [vmem:[#allocation9 + $0x50] sm:$0xff]   ;;  %v11082_v7 = vld [vmem:[#allocation9 + $0x58] sm:$0xff]  }
  0xdd   : > { %563 = vst [vmem:[#allocation2 + $0x10] sm:$0xf] %v11655_v0  ;;  %564 = vst [vmem:[#allocation2 + $0x14] sm:$0x1] %v11655_v0  ;;  %9673 = vmatpush3.bf16.msra.mxu1 %v11077_v2  ;;  %9578 = vmatprep.subr.bf16.mxu0 %v11078_v3  ;;  %v11081_v6 = vld [vmem:[#allocation11 + $0x50] sm:$0xff]   ;;  %v11083_v8 = vld [vmem:[#allocation11 + $0x58] sm:$0xff]  }
  0xde   : > { %565 = vst [vmem:[#allocation2 + $0x18] sm:$0xf] %v11655_v0  ;;  %566 = vst [vmem:[#allocation2 + $0x1c] sm:$0xf] %v11655_v0  ;;  %9674 = vmatprep.subr.bf16.mxu1 %v11079_v4  ;;  %vm1230_vm0 = vsmask.f32 3328 }
  0xdf   : > { %567 = vst [vmem:[#allocation2 + $0x20] sm:$0x1] %v11655_v0  ;;  %568 = vst [vmem:[#allocation2 + $0x24] sm:$0xf] %v11655_v0  ;;  %vm1231_vm1 = vsmask.f32 7440 }
  0xe0   : > { %569 = vst [vmem:[#allocation2 + $0x28] sm:$0xf] %v11655_v0  ;;  %570 = vst [vmem:[#allocation2 + $0x2c] sm:$0x1] %v11655_v0  ;;  %9579 = vmatpush3.bf16.msra.mxu0 %v11078_v3  ;;  %v11084_v9 = vld [vmem:[#allocation9 + $0x60] sm:$0xff]   ;;  %v11086_v11 = vld [vmem:[#allocation9 + $0x68] sm:$0xff]  }
  0xe1   : > { %571 = vst [vmem:[#allocation2 + $0x30] sm:$0xf] %v11655_v0  ;;  %572 = vst [vmem:[#allocation2 + $0x34] sm:$0xf] %v11655_v0  ;;  %9675 = vmatpush3.bf16.msra.mxu1 %v11079_v4  ;;  %9580 = vmatprep.subr.bf16.mxu0 %v11080_v5  ;;  %v11085_v10 = vld [vmem:[#allocation11 + $0x60] sm:$0xff]   ;;  %v11087_v12 = vld [vmem:[#allocation11 + $0x68] sm:$0xff]  }
  0xe2   : > { %573 = vst [vmem:[#allocation2 + $0x38] sm:$0x1] %v11655_v0  ;;  %574 = vst [vmem:[#allocation2 + $0x3c] sm:$0xf] %v11655_v0  ;;  %9676 = vmatprep.subr.bf16.mxu1 %v11081_v6  ;;  %v1150_v13 = vld [vmem:[#allocation2] sm:$0xf] }
  0xe3   : > { %575 = vst [vmem:[#allocation2 + $0x40] sm:$0xf] %v11655_v0  ;;  %576 = vst [vmem:[#allocation2 + $0x44] sm:$0x1] %v11655_v0  ;;  %v1151_v14 = vld [vmem:[#allocation2 + $0x4] sm:$0xf] }
  0xe4   : > { %577 = vst [vmem:[#allocation2 + $0x48] sm:$0xf] %v11655_v0  ;;  %578 = vst [vmem:[#allocation2 + $0x4c] sm:$0xf] %v11655_v0  ;;  %9581 = vmatpush3.bf16.msra.mxu0 %v11080_v5  ;;  %v1214_v15 = vld [vmem:[#allocation2 + $0x8] sm:$0x1] }
  0xe5   : > { %579 = vst [vmem:[#allocation2 + $0x50] sm:$0x1] %v11655_v0  ;;  %580 = vst [vmem:[#allocation2 + $0x54] sm:$0xf] %v11655_v0  ;;  %9677 = vmatpush3.bf16.msra.mxu1 %v11081_v6  ;;  %9582 = vmatprep.subr.bf16.mxu0 %v11082_v7  ;;  %v1234_v16 = vshrl.u32 %v1150_v13, 16  ;;  %v1237_v17 = vshll.u32 %v1150_v13, 16 }
  0xe6   : > { %581 = vst [vmem:[#allocation2 + $0x58] sm:$0xf] %v11655_v0  ;;  %582 = vst [vmem:[#allocation2 + $0x5c] sm:$0x1] %v11655_v0  ;;  %9678 = vmatprep.subr.bf16.mxu1 %v11083_v8  ;;  %v1243_v18 = vshll.u32 %v1151_v14, 16  ;;  %v1247_v19 = vshrl.u32 %v1151_v14, 16 }
  0xe7   : > { %583 = vst [vmem:[#allocation2 + $0x60] sm:$0xf] %v11655_v0  ;;  %584 = vst [vmem:[#allocation2 + $0x64] sm:$0xf] %v11655_v0  ;;  %v449_v20 = vld [vmem:[%s11982_s21] sm:$0xff]  ;;  %v450_v21 = vld [vmem:[%s11982_s21 + $0x8] sm:$0xff] }
  0xe8   : > { %585 = vst [vmem:[#allocation2 + $0x68] sm:$0x1] %v11655_v0  ;;  %586 = vst [vmem:[#allocation2 + $0x6c] sm:$0xf] %v11655_v0  ;;  %9583 = vmatpush3.bf16.msra.mxu0 %v11082_v7  ;;  %v1253_v22 = vshll.u32 %v1214_v15, 16  ;;  %v1236_v24 = vrot.slane %v1234_v16, 4 }
  0xe9   : > { %587 = vst [vmem:[#allocation2 + $0x70] sm:$0xf] %v11655_v0  ;;  %588 = vst [vmem:[#allocation2 + $0x74] sm:$0x1] %v11655_v0  ;;  %9679 = vmatpush3.bf16.msra.mxu1 %v11083_v8  ;;  %9584 = vmatprep.subr.bf16.mxu0 %v11084_v9  ;;  %v12002_v23 = vld [vmem:[#allocation6] ss:$0 sm:$0xff] }
  0xea   : > { %589 = vst [vmem:[#allocation2 + $0x78] sm:$0xf] %v11655_v0  ;;  %590 = vst [vmem:[#allocation2 + $0x7c] sm:$0xf] %v11655_v0  ;;  %9680 = vmatprep.subr.bf16.mxu1 %v11085_v10  ;;  %vm709_vm2 = vsmask.f32 256  ;;  %v488_v32 = vmul.f32 %v12002_v23, %v449_v20  ;;  %v489_v33 = vmul.f32 %v12002_v23, %v450_v21 }
  0xeb   : > { %591 = vst [vmem:[#allocation2 + $0x80] sm:$0x1] %v11655_v0  ;;  %592 = vst [vmem:[#allocation2 + $0x84] sm:$0xf] %v11655_v0  ;;  %v1239_v25 = vrot.slane %v1237_v17, 5  ;;  %v1245_v26 = vrot.slane %v1243_v18, 5 }
  0xec   : > { %593 = vst [vmem:[#allocation2 + $0x88] sm:$0xf] %v11655_v0  ;;  %594 = vst [vmem:[#allocation2 + $0x8c] sm:$0x1] %v11655_v0  ;;  %9585 = vmatpush3.bf16.msra.mxu0 %v11084_v9  ;;  %v1249_v27 = vrot.slane %v1247_v19, 4  ;;  %v11088_v29 = vld [vmem:[#allocation9 + $0x70] sm:$0xff]  }
  0xed   : > { %595 = vst [vmem:[#allocation2 + $0x90] sm:$0xf] %v11655_v0  ;;  %596 = vst [vmem:[#allocation2 + $0x94] sm:$0xf] %v11655_v0  ;;  %v12004_v28 = vld [vmem:[#allocation8] ss:$0 sm:$0xff]  ;;  %9681 = vmatpush3.bf16.msra.mxu1 %v11085_v10  ;;  %9586 = vmatprep.subr.bf16.mxu0 %v11086_v11  ;;  %v1240_v34 = vor.u32 %v1239_v25, %v1236_v24 }
  0xee   : > { %597 = vst [vmem:[#allocation2 + $0x98] sm:$0x1] %v11655_v0  ;;  %598 = vst [vmem:[#allocation2 + $0x9c] sm:$0xf] %v11655_v0  ;;  %v11089_v30 = vld [vmem:[#allocation11 + $0x70] sm:$0xff]   ;;  %v1255_v31 = vrot.slane %v1253_v22, 5  ;;  %9682 = vmatprep.subr.bf16.mxu1 %v11087_v12  ;;  %v1250_v35 = vor.u32 %v1249_v27, %v1245_v26  ;;  %v527_v37 = vadd.f32 %v12004_v28, %v488_v32 }
  0xef   : > { %599 = vst [vmem:[#allocation2 + $0xa0] sm:$0xf] %v11655_v0  ;;  %600 = vst [vmem:[#allocation2 + $0xa4] sm:$0x1] %v11655_v0  ;;  %v528_v38 = vadd.f32 %v12004_v28, %v489_v33  ;;  %vm710_vm5 = vsmask.f32 4368 }
  0xf0   : > { %601 = vst [vmem:[#allocation2 + $0xa8] sm:$0xf] %v11655_v0  ;;  %602 = vst [vmem:[#allocation2 + $0xac] sm:$0xf] %v11655_v0  ;;  %vm1034_vm6 = vsmask.f32 7938  ;;  %9587 = vmatpush3.bf16.msra.mxu0 %v11086_v11  ;;  %v9111_v47 = vpack.c.bf16 %v527_v37, %v527_v37 }
  0xf1   : > { %603 = vst [vmem:[#allocation2 + $0xb0] sm:$0x1] %v11655_v0  ;;  %604 = vst [vmem:[#allocation2 + $0xb4] sm:$0xf] %v11655_v0  ;;  %v451_v39 = vld [vmem:[%s11982_s21 + $0x10] sm:$0xff]  ;;  %v452_v40 = vld [vmem:[%s11982_s21 + $0x18] sm:$0xff]  ;;  %9683 = vmatpush3.bf16.msra.mxu1 %v11087_v12  ;;  %9588 = vmatprep.subr.bf16.mxu0 %v11088_v29  ;;  %v9112_v48 = vpack.c.bf16 %v528_v38, %v528_v38 }
  0xf2   : > { %605 = vst [vmem:[#allocation2 + $0xb8] sm:$0xf] %v11655_v0  ;;  %606 = vst [vmem:[#allocation2 + $0xbc] sm:$0x1] %v11655_v0  ;;  %v1241_v41 = vrot.slane %v1240_v34, 4  ;;  %v1251_v42 = vrot.slane %v1250_v35, 4  ;;  %v490_v43 = vmul.f32 %v12002_v23, %v451_v39  ;;  %v491_v44 = vmul.f32 %v12002_v23, %v452_v40  ;;  %9684 = vmatprep.subr.bf16.mxu1 %v11089_v30 }
  0xf3   : > { %607 = vst [vmem:[#allocation2 + $0xc0] sm:$0xf] %v11655_v0  ;;  %608 = vst [vmem:[#allocation2 + $0xc4] sm:$0xf] %v11655_v0  ;;  %v453_v45 = vld [vmem:[%s11982_s21 + $0x20] sm:$0xff]  ;;  %vm1040_vm7 = vcmask 1040384  }
  0xf4   : > { %609 = vst [vmem:[#allocation2 + $0xc8] sm:$0x1] %v11655_v0  ;;  %610 = vst [vmem:[#allocation2 + $0xcc] sm:$0xf] %v11655_v0  ;;  %v11090_v46 = vld [vmem:[#allocation9 + $0x78] sm:$0xff]   ;;  %v454_v49 = vld [vmem:[%s11982_s21 + $0x28] sm:$0xff]  ;;  %v492_v50 = vmul.f32 %v12002_v23, %v453_v45  ;;  %v529_v54 = vadd.f32 %v12004_v28, %v490_v43  ;;  %v530_v55 = vadd.f32 %v12004_v28, %v491_v44  ;;  %9589 = vmatpush3.bf16.msra.mxu0 %v11088_v29 }
  0xf5   : > { %611 = vst [vmem:[#allocation2 + $0xd0] sm:$0xf] %v11655_v0  ;;  %612 = vst [vmem:[#allocation2 + $0xd4] sm:$0x1] %v11655_v0  ;;  %v11091_v51 = vld [vmem:[#allocation11 + $0x78] sm:$0xff]   ;;  %v713_v57 = vshrl.u32 %v9111_v47, 16  ;;  %v493_v1 = vmul.f32 %v12002_v23, %v454_v49  ;;  %9685 = vmatpush3.bf16.msra.mxu1 %v11089_v30  ;;  %9590 = vmatprep.subr.bf16.mxu0 %v11090_v46 }
  0xf6   : > { %vm12010_vm4 = vmor %vm1230_vm0, %vm1231_vm1  ;;  %v716_v58 = vshll.u32 %v9111_v47, 16  ;;  %v721_v59 = vshrl.u32 %v9112_v48, 16  ;;  %v724_v61 = vshll.u32 %v9112_v48, 16  ;;  %v12035_v62 = vld [vmem:[#allocation9] sm:$0xff]   ;;  %v9113_v63 = vpack.c.bf16 %v529_v54, %v529_v54  ;;  %v455_v2 = vld [vmem:[%s11982_s21 + $0x30] sm:$0xff]  ;;  %9686 = vmatprep.subr.bf16.mxu1 %v11091_v51  ;;  %s13436_s16 = scalar_lea.vmem [#allocation15], %s8719_s14 }
  0xf7   : > { %v1246_v52 = vsel %vm12010_vm4, %v1241_v41, %v1245_v26  ;;  %v1256_v53 = vsel %vm12010_vm4, %v1251_v42, %v1255_v31  ;;  %vm12031_vm8 = vmor %vm709_vm2, %vm710_vm5  ;;  %v9114_v0 = vpack.c.bf16 %v530_v55, %v530_v55  ;;  %v715_v3 = vrot.slane %v713_v57, 7  ;;  %v1036_v6 = vld [vmem:[#allocation2 + $0xc] sm:$0xf]  ;;  %v1042_v7 = vld [vmem:[#allocation2 + $0x14] sm:$0x1]  ;;  %s9143_s1 = sshll.u32 %s11732_s15, 12 }
  0xf8   : > { %v8763_v56 = vcombine.low %v1246_v52, %v1256_v53  ;;  %v723_v4 = vrot.slane %v721_v59, 7  ;;  %vm12041_vm9 = vmand %vm1033_vm3, %vm1034_vm6  ;;  %v531_v8 = vadd.f32 %v12004_v28, %v492_v50  ;;  %v494_v9 = vmul.f32 %v12002_v23, %v455_v2  ;;  %v12053_v11 = vld [vmem:[#allocation11] sm:$0xff]   ;;  %v1045_v20 = vld [vmem:[#allocation2 + $0x18] sm:$0xf]  ;;  %9591 = vmatpush3.bf16.msra.mxu0 %v11090_v46  ;;  %s8489_s28 = sshll.u32 %s13436_s16, 4  ;;  %s13528_s25 = scalar_lea.hbm %s13653_s7, %s9143_s1  ;;  %s13530_s28 = int_to_ptr.vmem [resolvable:$true] %s8489_s28 }
  0xf9   : > { %vm12049_vm10 = vmand %vm1040_vm7, %vm709_vm2  ;;  %v730_v12 = vshrl.u32 %v9113_v63, 16  ;;  %v733_v13 = vshll.u32 %v9113_v63, 16  ;;  %v738_v14 = vshrl.u32 %v9114_v0, 16  ;;  %v741_v15 = vshll.u32 %v9114_v0, 16  ;;  %v456_v26 = vld [vmem:[%s11982_s21 + $0x38] sm:$0xff]  ;;  %9687 = vmatpush3.bf16.msra.mxu1 %v11091_v51  ;;  %9624 = vmatprep.subr.bf16.mxu0 %v12035_v62  ;;  %v457_v41 = vld [vmem:[%s11982_s21 + $0x40] sm:$0xff] }
  0xfa   : > { %9592 = vmatprep.mubr.bf16.mxu0 %v8763_v56  ;;  %9688 = vmatprep.mubr.bf16.mxu1 %v8763_v56  ;;  %v718_v16 = vor.u32 %v716_v58, %v715_v3  ;;  %v719_v17 = vrot.slane %v715_v3, 4  ;;  %v726_v18 = vor.u32 %v724_v61, %v723_v4  ;;  %v728_v19 = vrot.slane %v723_v4, 4  ;;  %v1049_v31 = vld [vmem:[#allocation2 + $0x20] sm:$0x1]  ;;  %v1052_v46 = vld [vmem:[#allocation2 + $0x24] sm:$0xf] }
  0xfb   : > { %v732_v21 = vrot.slane %v730_v12, 7  ;;  %v740_v22 = vrot.slane %v738_v14, 7  ;;  %v532_v24 = vadd.f32 %v12004_v28, %v493_v1  ;;  %v9115_v25 = vpack.c.bf16 %v531_v8, %v531_v8  ;;  %9720 = vmatprep.subr.bf16.mxu1 %v12053_v11  ;;  %v458_v42 = vld [vmem:[%s11982_s21 + $0x48] sm:$0xff]  ;;  %v459_v48 = vld [vmem:[%s11982_s21 + $0x50] sm:$0xff]  ;;  %v460_v56 = vld [vmem:[%s11982_s21 + $0x58] sm:$0xff]  ;;  %s8466_s26 = scalar_lea.sflag [#allocation5], %s11976_s17 }
  0xfc   : > { %v727_v27 = vsel %vm12031_vm8, %v719_v17, %v726_v18  ;;  %v1037_v29 = vsel %vm12041_vm9, %v718_v16, %v1036_v6  ;;  %v1043_v30 = vsel %vm12049_vm10, %v728_v19, %v1042_v7  ;;  %v495_v40 = vmul.f32 %v12002_v23, %v456_v26  ;;  %v1056_v17 = vld [vmem:[#allocation2 + $0x2c] sm:$0x1]  ;;  %s11504_s29 = scalar_lea.vmem %s13530_s28, 4096  ;;  %p13751_p9 = scmp.ne.s32.totalorder %s13692_s18, 0 }
  0xfd   : > { %1038 = vst [vmem:[#allocation2 + $0xc] sm:$0xf] %v1037_v29  ;;  %1039 = vst [vmem:[#allocation2 + $0x10] sm:$0xf] %v727_v27  ;;  %v735_v32 = vor.u32 %v733_v13, %v732_v21  ;;  %v736_v33 = vrot.slane %v732_v21, 4  ;;  %v743_v34 = vor.u32 %v741_v15, %v740_v22  ;;  %v745_v35 = vrot.slane %v740_v22, 4  ;;  %p11505_p6 = scmp.ne.s32.totalorder %s13530_s28, %s11504_s29 }
  0xfe   : > { %1044 = vst [vmem:[#allocation2 + $0x14] sm:$0x1] %v1043_v30  ;;  %v9116_v37 = vpack.c.bf16 %v532_v24, %v532_v24  ;;  %v747_v38 = vshrl.u32 %v9115_v25, 16  ;;  %v750_v39 = vshll.u32 %v9115_v25, 16  ;;  %v533_v47 = vadd.f32 %v12004_v28, %v494_v9  ;;  %s11656_s13 = smov [#allocation15]  }
  0xff   : > { %v744_v43 = vsel %vm12031_vm8, %v736_v33, %v743_v34  ;;  %v1046_v44 = vsel %vm12041_vm9, %v735_v32, %v1045_v20  ;;  %v1050_v45 = vsel %vm12049_vm10, %v745_v35, %v1049_v31  ;;  %v534_v52 = vadd.f32 %v12004_v28, %v495_v40  ;;  %p11506_p4 = pnand %p11505_p6, %p13751_p9  ;;  %s11508_s14 = sshll.u32 %s11656_s13, 4  ;;  %s11509_s14 = int_to_ptr.vmem [resolvable:$false] %s11508_s14 }
 0x100   : > { %1047 = vst [vmem:[#allocation2 + $0x18] sm:$0xf] %v1046_v44  ;;  %1048 = vst [vmem:[#allocation2 + $0x1c] sm:$0xf] %v744_v43  ;;  %v749_v49 = vrot.slane %v747_v38, 7  ;;  %v755_v50 = vshrl.u32 %v9116_v37, 16  ;;  %v9117_v53 = vpack.c.bf16 %v533_v47, %v533_v47  ;;  %v496_v54 = vmul.f32 %v12002_v23, %v457_v41  ;;  %p11511_p1 = scmp.lt.s32.totalorder %s13530_s28, %s11509_s14 }
 0x101   : > { %1051 = vst [vmem:[#allocation2 + $0x20] sm:$0x1] %v1050_v45  ;;  %v758_v51 = vshll.u32 %v9116_v37, 16  ;;  %v497_v55 = vmul.f32 %v12002_v23, %v458_v42  ;;  %v498_v61 = vmul.f32 %v12002_v23, %v459_v48  ;;  %v12081_v63 = vpack.c.bf16 %v534_v52, %v534_v52  ;;  %p11507_p13 = pneg %p11506_p4  ;;  %s11510_s23 = scalar_lea.vmem %s11509_s14, 8192 }
 0x102   : > { %v752_v57 = vor.u32 %v750_v39, %v749_v49  ;;  %v753_v58 = vrot.slane %v749_v49, 4  ;;  %v757_v59 = vrot.slane %v755_v50, 7  ;;  %v764_v0 = vshrl.u32 %v9117_v53, 16  ;;  %p11512_p3 = scmp.lt.s32.totalorder %s11510_s23, %s11504_s29 }
 0x103   : > { %v767_v1 = vshll.u32 %v9117_v53, 16  ;;  %v535_v2 = vadd.f32 %v12004_v28, %v496_v54  ;;  %v12087_v9 = vadd.f32 %v12004_v28, %v497_v55  ;;  %v12090_v12 = vmul.f32 %v12002_v23, %v460_v56 }
 0x104   : > { %v1152_v3 = vld [vmem:[#allocation2 + $0xc] sm:$0xf]  ;;  %v1153_v4 = vld [vmem:[#allocation2 + $0x10] sm:$0xf]  ;;  %v760_v7 = vor.u32 %v758_v51, %v757_v59  ;;  %v1053_v8 = vsel %vm12041_vm9, %v752_v57, %v1052_v46  ;;  %v762_v20 = vrot.slane %v757_v59, 4  ;;  %v12095_v21 = vadd.f32 %v12004_v28, %v498_v61  ;;  %p11513_p2 = por %p11512_p3, %p11511_p1 }
 0x105   : > { %v1215_v6 = vld [vmem:[#allocation2 + $0x14] sm:$0x1]  ;;  %v1258_v13 = vshrl.u32 %v1152_v3, 16  ;;  %v1261_v14 = vshll.u32 %v1152_v3, 16  ;;  %v1267_v15 = vshll.u32 %v1153_v4, 16  ;;  %v1271_v16 = vshrl.u32 %v1153_v4, 16 }
 0x106   : > { %1054 = vst [vmem:[#allocation2 + $0x24] sm:$0xf] %v1053_v8  ;;  %v1277_v18 = vshll.u32 %v1215_v6, 16  ;;  %v761_v19 = vsel %vm12031_vm8, %v753_v58, %v760_v7  ;;  %v1057_v33 = vsel %vm12049_vm10, %v762_v20, %v1056_v17  ;;  %v12099_v34 = vpack.c.bf16 %v535_v2, %v535_v2  ;;  %v11095_v2 = vld [vmem:[#allocation11 + $0x8] sm:$0xff]   ;;  %v1059_v8 = vld [vmem:[#allocation2 + $0x30] sm:$0xf]  ;;  %p11514_p8 = pnand %p11513_p2, %p11507_p13 }
 0x107   : > { %v1260_v22 = vrot.slane %v1258_v13, 4  ;;  %v1263_v24 = vrot.slane %v1261_v14, 5  ;;  %v1269_v25 = vrot.slane %v1267_v15, 5  ;;  %v1273_v26 = vrot.slane %v1271_v16, 4  ;;  %v1154_v27 = vld [vmem:[#allocation2 + $0x18] sm:$0xf] }
 0x108   : > { %1055 = vst [vmem:[#allocation2 + $0x28] sm:$0xf] %v761_v19  ;;  %v1279_v29 = vrot.slane %v1277_v18, 5  ;;  %v1155_v30 = vld [vmem:[#allocation2 + $0x1c] sm:$0xf]  ;;  %v1282_v32 = vshrl.u32 %v1154_v27, 16 }
 0x109   : > { %v1216_v31 = vld [vmem:[#allocation2 + $0x20] sm:$0x1]  ;;  %v1264_v35 = vor.u32 %v1263_v24, %v1260_v22  ;;  %v1274_v37 = vor.u32 %v1273_v26, %v1269_v25  ;;  %v1285_v38 = vshll.u32 %v1154_v27, 16  ;;  %v1291_v39 = vshll.u32 %v1155_v30, 16  ;;  %1058 = vst [vmem:[#allocation2 + $0x2c] sm:$0x1] %v1057_v33 }
 0x10a   : > { %v1284_v40 = vrot.slane %v1282_v32, 4  ;;  %v1295_v41 = vshrl.u32 %v1155_v30, 16  ;;  %v1301_v42 = vshll.u32 %v1216_v31, 16  ;;  %v766_v43 = vrot.slane %v764_v0, 7  ;;  %v11094_v0 = vld [vmem:[#allocation9 + $0x8] sm:$0xff]   ;;  %v11097_v32 = vld [vmem:[#allocation11 + $0x10] sm:$0xff]  }
 0x10b   : > { %v1265_v44 = vrot.slane %v1264_v35, 4  ;;  %v1275_v45 = vrot.slane %v1274_v37, 4  ;;  %v1287_v46 = vrot.slane %v1285_v38, 5  ;;  %v1293_v47 = vrot.slane %v1291_v39, 5  ;;  %v1063_v24 = vld [vmem:[#allocation2 + $0x38] sm:$0x1] }
 0x10c   : > { %v1297_v48 = vrot.slane %v1295_v41, 4  ;;  %v1303_v49 = vrot.slane %v1301_v42, 5  ;;  %v769_v51 = vor.u32 %v767_v1, %v766_v43  ;;  %v770_v52 = vrot.slane %v766_v43, 4  ;;  %v461_v39 = vld [vmem:[%s11982_s21 + $0x60] sm:$0xff] }
 0x10d   : > { %v1156_v50 = vld [vmem:[#allocation2 + $0x24] sm:$0xf]  ;;  %v1270_v53 = vsel %vm12010_vm4, %v1265_v44, %v1269_v25  ;;  %v1280_v54 = vsel %vm12010_vm4, %v1275_v45, %v1279_v29  ;;  %v1288_v55 = vor.u32 %v1287_v46, %v1284_v40  ;;  %v772_v3 = vshrl.u32 %v12081_v63, 16  ;;  %v11096_v29 = vld [vmem:[#allocation9 + $0x10] sm:$0xff]   ;;  %v1066_v46 = vld [vmem:[#allocation2 + $0x3c] sm:$0xf] }
 0x10e   : > { %v1306_v56 = vshrl.u32 %v1156_v50, 16  ;;  %v8764_v57 = vcombine.low %v1270_v53, %v1280_v54  ;;  %v1298_v58 = vor.u32 %v1297_v48, %v1293_v47  ;;  %v1309_v61 = vshll.u32 %v1156_v50, 16  ;;  %v462_v48 = vld [vmem:[%s11982_s21 + $0x68] sm:$0xff]  ;;  %v11099_v53 = vld [vmem:[#allocation11 + $0x18] sm:$0xff]  }
 0x10f   : > { %v1157_v59 = vld [vmem:[#allocation2 + $0x28] sm:$0xf]  ;;  %v1289_v4 = vrot.slane %v1288_v55, 4  ;;  %v774_v16 = vrot.slane %v772_v3, 7  ;;  %v775_v17 = vshll.u32 %v12081_v63, 16  ;;  %v1060_v31 = vsel %vm12041_vm9, %v769_v51, %v1059_v8 }
 0x110   : > { %v1308_v6 = vrot.slane %v1306_v56, 4  ;;  %v1315_v1 = vshll.u32 %v1157_v59, 16  ;;  %v1319_v7 = vshrl.u32 %v1157_v59, 16  ;;  %9593 = vmatmul.mubr.bf16.vlgmr.msra.gmra.mrb[0].mxu0 %v8764_v57  ;;  %9689 = vmatmul.mubr.bf16.vlgmr.msra.gmra.mrb[0].mxu1 %v8764_v57  ;;  %v1299_v13 = vrot.slane %v1298_v58, 4  ;;  %v1217_v14 = vld [vmem:[#allocation2 + $0x2c] sm:$0x1] }
 0x111   : > { %v1311_v15 = vrot.slane %v1309_v61, 5  ;;  %9625 = vmatpush3.bf16.msra.mxu0 %v12035_v62  ;;  %9721 = vmatpush3.bf16.msra.mxu1 %v12053_v11  ;;  %v1294_v18 = vsel %vm12010_vm4, %v1289_v4, %v1293_v47  ;;  %v1325_v22 = vshll.u32 %v1217_v14, 16  ;;  %v777_v27 = vor.u32 %v775_v17, %v774_v16  ;;  %1061 = vst [vmem:[#allocation2 + $0x30] sm:$0xf] %v1060_v31  ;;  %v1070_v51 = vld [vmem:[#allocation2 + $0x44] sm:$0x1] }
 0x112   : > { %v1317_v19 = vrot.slane %v1315_v1, 5  ;;  %v1321_v20 = vrot.slane %v1319_v7, 4  ;;  %v1304_v25 = vsel %vm12010_vm4, %v1299_v13, %v1303_v49  ;;  %9626 = vmatprep.subr.bf16.mxu0 %v11094_v0  ;;  %9722 = vmatprep.subr.bf16.mxu1 %v11095_v2  ;;  %v779_v63 = vrot.slane %v774_v16, 4  ;;  %v11098_v49 = vld [vmem:[#allocation9 + $0x18] sm:$0xff]   ;;  %v463_v58 = vld [vmem:[%s11982_s21 + $0x70] sm:$0xff]  ;;  %v11100_v16 = vld [vmem:[#allocation9 + $0x20] sm:$0xff]  }
 0x113   : > { %v1312_v26 = vor.u32 %v1311_v15, %v1308_v6  ;;  %v8765_v62 = vcombine.low %v1294_v18, %v1304_v25  ;;  %v1327_v11 = vrot.slane %v1325_v22, 5  ;;  %v778_v35 = vsel %vm12031_vm8, %v770_v52, %v777_v27  ;;  %v1073_v13 = vld [vmem:[#allocation2 + $0x48] sm:$0xf]  ;;  %v1077_v25 = vld [vmem:[#allocation2 + $0x50] sm:$0x1] }
 0x114   : > { %v1322_v30 = vor.u32 %v1321_v20, %v1317_v19  ;;  %v1064_v37 = vsel %vm12049_vm10, %v779_v63, %v1063_v24  ;;  %v9120_v38 = vpack.c.bf16 %v12087_v9, %v12087_v9  ;;  %1062 = vst [vmem:[#allocation2 + $0x34] sm:$0xf] %v778_v35  ;;  %v781_v41 = vshrl.u32 %v12099_v34, 16  ;;  %v465_v35 = vld [vmem:[%s11982_s21 + $0x80] sm:$0xff] }
 0x115   : > { %v1313_v33 = vrot.slane %v1312_v26, 4  ;;  %9596 = vmatprep.mubr.bf16.mxu0 %v8765_v62  ;;  %9692 = vmatprep.mubr.bf16.mxu1 %v8765_v62  ;;  %1065 = vst [vmem:[#allocation2 + $0x38] sm:$0x1] %v1064_v37  ;;  %v784_v42 = vshll.u32 %v12099_v34, 16  ;;  %v538_v43 = vadd.f32 %v12004_v28, %v12090_v12  ;;  %v9121_v47 = vpack.c.bf16 %v12095_v21, %v12095_v21  ;;  %v464_v62 = vld [vmem:[%s11982_s21 + $0x78] sm:$0xff]  ;;  %v11102_v37 = vld [vmem:[#allocation9 + $0x28] sm:$0xff]  }
 0x116   : > { %v1323_v40 = vrot.slane %v1322_v30, 4  ;;  %9627 = vmatpush3.bf16.msra.mxu0 %v11094_v0  ;;  %9723 = vmatpush3.bf16.msra.mxu1 %v11095_v2  ;;  %v789_v9 = vshrl.u32 %v9120_v38, 16  ;;  %v792_v45 = vshll.u32 %v9120_v38, 16  ;;  %v783_v50 = vrot.slane %v781_v41, 7  ;;  %v11101_v30 = vld [vmem:[#allocation11 + $0x20] sm:$0xff]   ;;  %v11103_v38 = vld [vmem:[#allocation11 + $0x28] sm:$0xff]  }
 0x117   : > { %v1318_v44 = vsel %vm12010_vm4, %v1313_v33, %v1317_v19  ;;  %9628 = vmatprep.subr.bf16.mxu0 %v11096_v29  ;;  %9724 = vmatprep.subr.bf16.mxu1 %v11097_v32  ;;  %v9122_v12 = vpack.c.bf16 %v538_v43, %v538_v43  ;;  %v500_v52 = vmul.f32 %v12002_v23, %v461_v39  ;;  %v798_v56 = vshrl.u32 %v9121_v47, 16 }
 0x118   : > { %v1328_v34 = vsel %vm12010_vm4, %v1323_v40, %v1327_v11  ;;  %v791_v55 = vrot.slane %v789_v9, 7  ;;  %v801_v57 = vshll.u32 %v9121_v47, 16  ;;  %v786_v59 = vor.u32 %v784_v42, %v783_v50  ;;  %v1158_v1 = vld [vmem:[#allocation2 + $0x30] sm:$0xf] }
 0x119   : > { %v8766_v54 = vcombine.low %v1318_v44, %v1328_v34  ;;  %v787_v21 = vrot.slane %v783_v50, 4  ;;  %v806_v61 = vshrl.u32 %v9122_v12, 16  ;;  %v809_v0 = vshll.u32 %v9122_v12, 16 }
 0x11a   : > { %v794_v2 = vor.u32 %v792_v45, %v791_v55  ;;  %v796_v3 = vrot.slane %v791_v55, 4  ;;  %v800_v4 = vrot.slane %v798_v56, 7  ;;  %v501_v6 = vmul.f32 %v12002_v23, %v462_v48  ;;  %9629 = vmatpush3.bf16.msra.mxu0 %v11096_v29  ;;  %9725 = vmatpush3.bf16.msra.mxu1 %v11097_v32 }
 0x11b   : > { %9597 = vmatmul.mubr.bf16.gmra.mrb[4].mxu0 %v8766_v54  ;;  %9693 = vmatmul.mubr.bf16.gmra.mrb[4].mxu1 %v8766_v54  ;;  %v1067_v7 = vsel %vm12041_vm9, %v786_v59, %v1066_v46  ;;  %v808_v8 = vrot.slane %v806_v61, 7  ;;  %v539_v14 = vadd.f32 %v12004_v28, %v500_v52  ;;  %v502_v15 = vmul.f32 %v12002_v23, %v463_v58  ;;  %v1159_v17 = vld [vmem:[#allocation2 + $0x34] sm:$0xf] }
 0x11c   : > { %v1218_v18 = vld [vmem:[#allocation2 + $0x38] sm:$0x1]  ;;  %v1330_v19 = vshrl.u32 %v1158_v1, 16  ;;  %v1333_v20 = vshll.u32 %v1158_v1, 16  ;;  %v795_v22 = vsel %vm12031_vm8, %v787_v21, %v794_v2  ;;  %1068 = vst [vmem:[#allocation2 + $0x3c] sm:$0xf] %v1067_v7  ;;  %v1071_v24 = vsel %vm12049_vm10, %v796_v3, %v1070_v51  ;;  %9630 = vmatprep.subr.bf16.mxu0 %v11098_v49  ;;  %9726 = vmatprep.subr.bf16.mxu1 %v11099_v53 }
 0x11d   : > { %v1339_v26 = vshll.u32 %v1159_v17, 16  ;;  %v1343_v27 = vshrl.u32 %v1159_v17, 16  ;;  %v1349_v63 = vshll.u32 %v1218_v18, 16  ;;  %1069 = vst [vmem:[#allocation2 + $0x40] sm:$0xf] %v795_v22  ;;  %v803_v29 = vor.u32 %v801_v57, %v800_v4  ;;  %v11104_v57 = vld [vmem:[#allocation9 + $0x30] sm:$0xff]  }
 0x11e   : > { %1072 = vst [vmem:[#allocation2 + $0x44] sm:$0x1] %v1071_v24  ;;  %v1332_v11 = vrot.slane %v1330_v19, 4  ;;  %v1335_v31 = vrot.slane %v1333_v20, 5  ;;  %v804_v32 = vrot.slane %v800_v4, 4  ;;  %v811_v33 = vor.u32 %v809_v0, %v808_v8  ;;  %9631 = vmatpush3.bf16.msra.mxu0 %v11098_v49  ;;  %9727 = vmatpush3.bf16.msra.mxu1 %v11099_v53  ;;  %v11105_v7 = vld [vmem:[#allocation11 + $0x30] sm:$0xff]  }
 0x11f   : > { %v1341_v39 = vrot.slane %v1339_v26, 5  ;;  %v1345_v40 = vrot.slane %v1343_v27, 4  ;;  %v1351_v41 = vrot.slane %v1349_v63, 5  ;;  %v813_v42 = vrot.slane %v808_v8, 4  ;;  %9632 = vmatprep.subr.bf16.mxu0 %v11100_v16  ;;  %9728 = vmatprep.subr.bf16.mxu1 %v11101_v30  ;;  %v11107_v17 = vld [vmem:[#allocation11 + $0x38] sm:$0xff]  }
 0x120   : > { %v1336_v43 = vor.u32 %v1335_v31, %v1332_v11  ;;  %v812_v44 = vsel %vm12031_vm8, %v804_v32, %v811_v33  ;;  %v1074_v9 = vsel %vm12041_vm9, %v803_v29, %v1073_v13  ;;  %v540_v45 = vadd.f32 %v12004_v28, %v501_v6  ;;  %v12563_v10 = vld [vmem:[#allocation2 + $0x38] sm:$0x1] }
 0x121   : > { %v1346_v46 = vor.u32 %v1345_v40, %v1341_v39  ;;  %1075 = vst [vmem:[#allocation2 + $0x48] sm:$0xf] %v1074_v9  ;;  %1076 = vst [vmem:[#allocation2 + $0x4c] sm:$0xf] %v812_v44  ;;  %v1078_v47 = vsel %vm12049_vm10, %v813_v42, %v1077_v25  ;;  %v9123_v48 = vpack.c.bf16 %v539_v14, %v539_v14  ;;  %v1084_v40 = vld [vmem:[#allocation2 + $0x5c] sm:$0x1] }
 0x122   : > { %v503_v49 = vmul.f32 %v12002_v23, %v464_v62  ;;  %v1337_v34 = vrot.slane %v1336_v43, 4  ;;  %1079 = vst [vmem:[#allocation2 + $0x50] sm:$0x1] %v1078_v47  ;;  %v12154_v50 = vpack.c.bf16 %v540_v45, %v540_v45  ;;  %v541_v51 = vadd.f32 %v12004_v28, %v502_v15  ;;  %9633 = vmatpush3.bf16.msra.mxu0 %v11100_v16  ;;  %v11106_v16 = vld [vmem:[#allocation9 + $0x38] sm:$0xff]   ;;  %v466_v9 = vld [vmem:[%s11982_s21 + $0x88] sm:$0xff] }
 0x123   : > { %v12158_v12 = vmul.f32 %v12002_v23, %v465_v35  ;;  %v1347_v52 = vrot.slane %v1346_v46, 4  ;;  %v1160_v53 = vld [vmem:[#allocation2 + $0x3c] sm:$0xf]  ;;  %v815_v54 = vshrl.u32 %v9123_v48, 16  ;;  %v818_v55 = vshll.u32 %v9123_v48, 16  ;;  %9729 = vmatpush3.bf16.msra.mxu1 %v11101_v30  ;;  %9634 = vmatprep.subr.bf16.mxu0 %v11102_v37 }
 0x124   : > { %v12161_v56 = vadd.f32 %v12004_v28, %v503_v49  ;;  %v1342_v58 = vsel %vm12010_vm4, %v1337_v34, %v1341_v39  ;;  %v1161_v59 = vld [vmem:[#allocation2 + $0x40] sm:$0xf]  ;;  %v1354_v61 = vshrl.u32 %v1160_v53, 16  ;;  %v1357_v0 = vshll.u32 %v1160_v53, 16  ;;  %9730 = vmatprep.subr.bf16.mxu1 %v11103_v38  ;;  %v1080_v62 = vld [vmem:[#allocation2 + $0x54] sm:$0xf] }
 0x125   : > { %v1219_v21 = vld [vmem:[#allocation2 + $0x44] sm:$0x1]  ;;  %v12165_v2 = vpack.c.bf16 %v541_v51, %v541_v51  ;;  %v1352_v3 = vsel %vm12010_vm4, %v1347_v52, %v1351_v41  ;;  %v1363_v4 = vshll.u32 %v1161_v59, 16  ;;  %v1367_v6 = vshrl.u32 %v1161_v59, 16  ;;  %v11110_v45 = vld [vmem:[#allocation9 + $0x80] sm:$0xff]   ;;  %v467_v34 = vld [vmem:[%s11982_s21 + $0x90] sm:$0xff] }
 0x126   : > { %v1373_v1 = vshll.u32 %v1219_v21, 16  ;;  %v8767_v8 = vcombine.low %v1342_v58, %v1352_v3  ;;  %v1356_v13 = vrot.slane %v1354_v61, 4  ;;  %v1359_v14 = vrot.slane %v1357_v0, 5  ;;  %9635 = vmatpush3.bf16.msra.mxu0 %v11102_v37 }
 0x127   : > { %v817_v15 = vrot.slane %v815_v54, 7  ;;  %v1365_v18 = vrot.slane %v1363_v4, 5  ;;  %v1369_v19 = vrot.slane %v1367_v6, 4  ;;  %v823_v22 = vshrl.u32 %v12154_v50, 16  ;;  %9731 = vmatpush3.bf16.msra.mxu1 %v11103_v38  ;;  %9636 = vmatprep.subr.bf16.mxu0 %v11104_v57  ;;  %v11111_v54 = vld [vmem:[#allocation11 + $0x80] sm:$0xff]   ;;  %v468_v4 = vld [vmem:[%s11982_s21 + $0x98] sm:$0xff] }
 0x128   : > { %v1375_v20 = vrot.slane %v1373_v1, 5  ;;  %9600 = vmatprep.mubr.bf16.mxu0 %v8767_v8  ;;  %9696 = vmatprep.mubr.bf16.mxu1 %v8767_v8  ;;  %v1360_v24 = vor.u32 %v1359_v14, %v1356_v13  ;;  %v1162_v25 = vld [vmem:[#allocation2 + $0x48] sm:$0xf]  ;;  %v1163_v26 = vld [vmem:[#allocation2 + $0x4c] sm:$0xf]  ;;  %v826_v29 = vshll.u32 %v12154_v50, 16  ;;  %v9126_v59 = vpack.c.bf16 %v12161_v56, %v12161_v56 }
 0x129   : > { %v820_v27 = vor.u32 %v818_v55, %v817_v15  ;;  %v821_v63 = vrot.slane %v817_v15, 4  ;;  %v1370_v30 = vor.u32 %v1369_v19, %v1365_v18  ;;  %v1220_v11 = vld [vmem:[#allocation2 + $0x50] sm:$0x1]  ;;  %v1378_v31 = vshrl.u32 %v1162_v25, 16  ;;  %9732 = vmatprep.subr.bf16.mxu1 %v11105_v7  ;;  %v1087_v8 = vld [vmem:[#allocation2 + $0x60] sm:$0xf] }
 0x12a   : > { %v1381_v32 = vshll.u32 %v1162_v25, 16  ;;  %v1387_v33 = vshll.u32 %v1163_v26, 16  ;;  %v1361_v35 = vrot.slane %v1360_v24, 4  ;;  %v1391_v37 = vshrl.u32 %v1163_v26, 16  ;;  %9637 = vmatpush3.bf16.msra.mxu0 %v11104_v57 }
 0x12b   : > { %v1397_v38 = vshll.u32 %v1220_v11, 16  ;;  %v825_v39 = vrot.slane %v823_v22, 7  ;;  %v1371_v41 = vrot.slane %v1370_v30, 4  ;;  %v1380_v42 = vrot.slane %v1378_v31, 4  ;;  %9733 = vmatpush3.bf16.msra.mxu1 %v11105_v7  ;;  %9638 = vmatprep.subr.bf16.mxu0 %v11106_v16 }
 0x12c   : > { %v1383_v43 = vrot.slane %v1381_v32, 5  ;;  %v1389_v44 = vrot.slane %v1387_v33, 5  ;;  %v1366_v46 = vsel %vm12010_vm4, %v1361_v35, %v1365_v18  ;;  %v1393_v47 = vrot.slane %v1391_v37, 4  ;;  %9734 = vmatprep.subr.bf16.mxu1 %v11107_v17  ;;  %v1091_v18 = vld [vmem:[#allocation2 + $0x68] sm:$0x1] }
 0x12d   : > { %v1399_v48 = vrot.slane %v1397_v38, 5  ;;  %v828_v49 = vor.u32 %v826_v29, %v825_v39  ;;  %v1376_v50 = vsel %vm12010_vm4, %v1371_v41, %v1375_v20  ;;  %v830_v52 = vrot.slane %v825_v39, 4  ;;  %v1094_v39 = vld [vmem:[#allocation2 + $0x6c] sm:$0xf] }
 0x12e   : > { %v1384_v51 = vor.u32 %v1383_v43, %v1380_v42  ;;  %v1081_v53 = vsel %vm12041_vm9, %v820_v27, %v1080_v62  ;;  %v8768_v55 = vcombine.low %v1366_v46, %v1376_v50  ;;  %v1394_v57 = vor.u32 %v1393_v47, %v1389_v44  ;;  %9639 = vmatpush3.bf16.msra.mxu0 %v11106_v16 }
 0x12f   : > { %v829_v58 = vsel %vm12031_vm8, %v821_v63, %v828_v49  ;;  %1082 = vst [vmem:[#allocation2 + $0x54] sm:$0xf] %v1081_v53  ;;  %v1085_v61 = vsel %vm12049_vm10, %v830_v52, %v1084_v40  ;;  %v832_v0 = vshrl.u32 %v12165_v2, 16  ;;  %v835_v3 = vshll.u32 %v12165_v2, 16  ;;  %9735 = vmatpush3.bf16.msra.mxu1 %v11107_v17  ;;  %9768 = vmatprep.subr.bf16.mxu0 %v11110_v45  ;;  %v469_v40 = vld [vmem:[%s11982_s21 + $0xa0] sm:$0xff] }
 0x130   : > { %v1385_v21 = vrot.slane %v1384_v51, 4  ;;  %1083 = vst [vmem:[#allocation2 + $0x58] sm:$0xf] %v829_v58  ;;  %9601 = vmatmul.mubr.bf16.gmra.mrb[8].mxu0 %v8768_v55  ;;  %9697 = vmatmul.mubr.bf16.gmra.mrb[8].mxu1 %v8768_v55  ;;  %v1395_v6 = vrot.slane %v1394_v57, 4  ;;  %1086 = vst [vmem:[#allocation2 + $0x5c] sm:$0x1] %v1085_v61  ;;  %v505_v56 = vmul.f32 %v12002_v23, %v466_v9 }
 0x131   : > { %v840_v1 = vshrl.u32 %v9126_v59, 16  ;;  %v843_v7 = vshll.u32 %v9126_v59, 16  ;;  %v834_v14 = vrot.slane %v832_v0, 7  ;;  %v543_v15 = vadd.f32 %v12004_v28, %v12158_v12  ;;  %9816 = vmatprep.subr.bf16.mxu1 %v11111_v54  ;;  %v1098_v58 = vld [vmem:[#allocation2 + $0x74] sm:$0x1] }
 0x132   : > { %v1390_v13 = vsel %vm12010_vm4, %v1385_v21, %v1389_v44  ;;  %v506_v2 = vmul.f32 %v12002_v23, %v467_v34  ;;  %v1400_v16 = vsel %vm12010_vm4, %v1395_v6, %v1399_v48  ;;  %v544_v19 = vadd.f32 %v12004_v28, %v505_v56  ;;  %v12209_v21 = vld [vmem:[#allocation6] ss:$0 sm:$0xff] }
 0x133   : > { %v842_v17 = vrot.slane %v840_v1, 7  ;;  %v507_v20 = vmul.f32 %v12002_v23, %v468_v4  ;;  %v8769_v22 = vcombine.low %v1390_v13, %v1400_v16  ;;  %v837_v24 = vor.u32 %v835_v3, %v834_v14 }
 0x134   : > { %v838_v25 = vrot.slane %v834_v14, 4  ;;  %v9127_v26 = vpack.c.bf16 %v543_v15, %v543_v15  ;;  %v9128_v12 = vpack.c.bf16 %v544_v19, %v544_v19  ;;  %v545_v29 = vadd.f32 %v12004_v28, %v506_v2  ;;  %v470_v14 = vld [vmem:[%s11982_s21 + $0xa8] sm:$0xff] }
 0x135   : > { %v845_v27 = vor.u32 %v843_v7, %v842_v17  ;;  %v847_v63 = vrot.slane %v842_v17, 4  ;;  %9604 = vmatprep.mubr.bf16.mxu0 %v8769_v22  ;;  %9700 = vmatprep.mubr.bf16.mxu1 %v8769_v22  ;;  %v1088_v30 = vsel %vm12041_vm9, %v837_v24, %v1087_v8  ;;  %v546_v23 = vadd.f32 %v12004_v28, %v507_v20 }
 0x136   : > { %v1164_v62 = vld [vmem:[#allocation2 + $0x54] sm:$0xf]  ;;  %v849_v11 = vshrl.u32 %v9127_v26, 16  ;;  %v852_v31 = vshll.u32 %v9127_v26, 16  ;;  %1089 = vst [vmem:[#allocation2 + $0x60] sm:$0xf] %v1088_v30  ;;  %v9129_v54 = vpack.c.bf16 %v545_v29, %v545_v29  ;;  %v508_v61 = vmul.f32 %v12209_v21, %v469_v40 }
 0x137   : > { %v1165_v32 = vld [vmem:[#allocation2 + $0x58] sm:$0xf]  ;;  %v1402_v33 = vshrl.u32 %v1164_v62, 16  ;;  %v1405_v35 = vshll.u32 %v1164_v62, 16  ;;  %v846_v37 = vsel %vm12031_vm8, %v838_v25, %v845_v27  ;;  %v1092_v38 = vsel %vm12049_vm10, %v847_v63, %v1091_v18  ;;  %v1221_v41 = vld [vmem:[#allocation2 + $0x5c] sm:$0x1] }
 0x138   : > { %v1411_v42 = vshll.u32 %v1165_v32, 16  ;;  %v1415_v43 = vshrl.u32 %v1165_v32, 16  ;;  %1090 = vst [vmem:[#allocation2 + $0x64] sm:$0xf] %v846_v37  ;;  %1093 = vst [vmem:[#allocation2 + $0x68] sm:$0x1] %v1092_v38  ;;  %v9130_v59 = vpack.c.bf16 %v546_v23, %v546_v23  ;;  %v509_v37 = vmul.f32 %v12209_v21, %v470_v14 }
 0x139   : > { %v851_v44 = vrot.slane %v849_v11, 7  ;;  %v857_v9 = vshrl.u32 %v9128_v12, 16  ;;  %v1404_v28 = vrot.slane %v1402_v33, 4  ;;  %v1407_v45 = vrot.slane %v1405_v35, 5  ;;  %v471_v26 = vld [vmem:[%s11982_s21 + $0xb0] sm:$0xff] }
 0x13a   : > { %v1421_v46 = vshll.u32 %v1221_v41, 16  ;;  %v860_v47 = vshll.u32 %v9128_v12, 16  ;;  %v1413_v48 = vrot.slane %v1411_v42, 5  ;;  %v1417_v49 = vrot.slane %v1415_v43, 4  ;;  %v1101_v62 = vld [vmem:[#allocation2 + $0x78] sm:$0xf] }
 0x13b   : > { %v854_v34 = vor.u32 %v852_v31, %v851_v44  ;;  %v855_v50 = vrot.slane %v851_v44, 4  ;;  %v1408_v51 = vor.u32 %v1407_v45, %v1404_v28  ;;  %v859_v53 = vrot.slane %v857_v9, 7  ;;  %v1105_v35 = vld [vmem:[#allocation2 + $0x80] sm:$0x1]  ;;  %v12223_v38 = vld [vmem:[#allocation8] ss:$0 sm:$0xff] }
 0x13c   : > { %v1423_v52 = vrot.slane %v1421_v46, 5  ;;  %v1418_v55 = vor.u32 %v1417_v49, %v1413_v48  ;;  %v866_v6 = vshrl.u32 %v9129_v54, 16  ;;  %v869_v8 = vshll.u32 %v9129_v54, 16 }
 0x13d   : > { %v1095_v57 = vsel %vm12041_vm9, %v854_v34, %v1094_v39  ;;  %v1409_v0 = vrot.slane %v1408_v51, 4  ;;  %v862_v3 = vor.u32 %v860_v47, %v859_v53  ;;  %v864_v4 = vrot.slane %v859_v53, 4  ;;  %v1166_v7 = vld [vmem:[#allocation2 + $0x60] sm:$0xf]  ;;  %v472_v47 = vld [vmem:[%s11982_s21 + $0xb8] sm:$0xff] }
 0x13e   : > { %1096 = vst [vmem:[#allocation2 + $0x6c] sm:$0xf] %v1095_v57  ;;  %v1419_v1 = vrot.slane %v1418_v55, 4  ;;  %v874_v56 = vshrl.u32 %v9130_v59, 16  ;;  %v877_v13 = vshll.u32 %v9130_v59, 16  ;;  %v1426_v17 = vshrl.u32 %v1166_v7, 16 }
 0x13f   : > { %v1414_v15 = vsel %vm12010_vm4, %v1409_v0, %v1413_v48  ;;  %v1167_v2 = vld [vmem:[#allocation2 + $0x64] sm:$0xf]  ;;  %v1222_v16 = vld [vmem:[#allocation2 + $0x68] sm:$0x1]  ;;  %v1429_v18 = vshll.u32 %v1166_v7, 16  ;;  %v863_v19 = vsel %vm12031_vm8, %v855_v50, %v862_v3  ;;  %v1099_v29 = vsel %vm12049_vm10, %v864_v4, %v1098_v58 }
 0x140   : > { %v1424_v20 = vsel %vm12010_vm4, %v1419_v1, %v1423_v52  ;;  %v1435_v22 = vshll.u32 %v1167_v2, 16  ;;  %v1439_v24 = vshrl.u32 %v1167_v2, 16  ;;  %v1445_v25 = vshll.u32 %v1222_v16, 16  ;;  %1097 = vst [vmem:[#allocation2 + $0x70] sm:$0xf] %v863_v19 }
 0x141   : > { %v8770_v27 = vcombine.low %v1414_v15, %v1424_v20  ;;  %v1428_v63 = vrot.slane %v1426_v17, 4  ;;  %v1431_v12 = vrot.slane %v1429_v18, 5  ;;  %1100 = vst [vmem:[#allocation2 + $0x74] sm:$0x1] %v1099_v29  ;;  %v868_v23 = vrot.slane %v866_v6, 7  ;;  %v473_v17 = vld [vmem:[%s11982_s21 + $0xc0] sm:$0xff] }
 0x142   : > { %v1437_v30 = vrot.slane %v1435_v22, 5  ;;  %v1441_v11 = vrot.slane %v1439_v24, 4  ;;  %v1447_v31 = vrot.slane %v1445_v25, 5  ;;  %v876_v33 = vrot.slane %v874_v56, 7  ;;  %v474_v18 = vld [vmem:[%s11982_s21 + $0xc8] sm:$0xff] }
 0x143   : > { %9605 = vmatmul.mubr.bf16.gmra.mrb[12].mxu0 %v8770_v27  ;;  %9701 = vmatmul.mubr.bf16.gmra.mrb[12].mxu1 %v8770_v27  ;;  %v1432_v32 = vor.u32 %v1431_v12, %v1428_v63  ;;  %v547_v39 = vadd.f32 %v12223_v38, %v508_v61  ;;  %v871_v42 = vor.u32 %v869_v8, %v868_v23  ;;  %v872_v43 = vrot.slane %v868_v23, 4 }
 0x144   : > { %v1442_v40 = vor.u32 %v1441_v11, %v1437_v30  ;;  %v510_v44 = vmul.f32 %v12209_v21, %v471_v26  ;;  %v879_v46 = vor.u32 %v877_v13, %v876_v33  ;;  %v881_v49 = vrot.slane %v876_v33, 4 }
 0x145   : > { %v1168_v41 = vld [vmem:[#allocation2 + $0x6c] sm:$0xf]  ;;  %v1433_v9 = vrot.slane %v1432_v32, 4  ;;  %v1102_v34 = vsel %vm12041_vm9, %v871_v42, %v1101_v62  ;;  %v548_v50 = vadd.f32 %v12223_v38, %v509_v37  ;;  %v9131_v6 = vpack.c.bf16 %v547_v39, %v547_v39  ;;  %v1108_v62 = vld [vmem:[#allocation2 + $0x84] sm:$0xf] }
 0x146   : > { %v1450_v28 = vshrl.u32 %v1168_v41, 16  ;;  %v1453_v45 = vshll.u32 %v1168_v41, 16  ;;  %v1443_v48 = vrot.slane %v1442_v40, 4  ;;  %v880_v55 = vsel %vm12031_vm8, %v872_v43, %v879_v46  ;;  %1103 = vst [vmem:[#allocation2 + $0x78] sm:$0xf] %v1102_v34 }
 0x147   : > { %v1438_v51 = vsel %vm12010_vm4, %v1433_v9, %v1437_v30  ;;  %v1169_v52 = vld [vmem:[#allocation2 + $0x70] sm:$0xf]  ;;  %1104 = vst [vmem:[#allocation2 + $0x7c] sm:$0xf] %v880_v55  ;;  %v1106_v61 = vsel %vm12049_vm10, %v881_v49, %v1105_v35  ;;  %v9132_v1 = vpack.c.bf16 %v548_v50, %v548_v50  ;;  %v511_v13 = vmul.f32 %v12209_v21, %v472_v47  ;;  %v1112_v39 = vld [vmem:[#allocation2 + $0x8c] sm:$0x1] }
 0x148   : > { %v1452_v53 = vrot.slane %v1450_v28, 4  ;;  %v1455_v54 = vrot.slane %v1453_v45, 5  ;;  %v1448_v57 = vsel %vm12010_vm4, %v1443_v48, %v1447_v31  ;;  %v1459_v58 = vshll.u32 %v1169_v52, 16  ;;  %v1223_v3 = vld [vmem:[#allocation2 + $0x74] sm:$0x1] }
 0x149   : > { %v1463_v59 = vshrl.u32 %v1169_v52, 16  ;;  %v8771_v0 = vcombine.low %v1438_v51, %v1448_v57  ;;  %1107 = vst [vmem:[#allocation2 + $0x80] sm:$0x1] %v1106_v61  ;;  %v1469_v56 = vshll.u32 %v1223_v3, 16  ;;  %v883_v15 = vshrl.u32 %v9131_v6, 16  ;;  %v476_v61 = vld [vmem:[%s11982_s21 + $0xd8] sm:$0xff] }
 0x14a   : > { %v1456_v4 = vor.u32 %v1455_v54, %v1452_v53  ;;  %v1461_v7 = vrot.slane %v1459_v58, 5  ;;  %v886_v2 = vshll.u32 %v9131_v6, 16  ;;  %v891_v16 = vshrl.u32 %v9132_v1, 16  ;;  %v475_v54 = vld [vmem:[%s11982_s21 + $0xd0] sm:$0xff]  ;;  %v1115_v6 = vld [vmem:[#allocation2 + $0x90] sm:$0xf] }
 0x14b   : > { %v1465_v8 = vrot.slane %v1463_v59, 4  ;;  %9608 = vmatprep.mubr.bf16.mxu0 %v8771_v0  ;;  %9704 = vmatprep.mubr.bf16.mxu1 %v8771_v0  ;;  %v1471_v20 = vrot.slane %v1469_v56, 5  ;;  %v894_v22 = vshll.u32 %v9132_v1, 16  ;;  %v549_v24 = vadd.f32 %v12223_v38, %v510_v44  ;;  %v1119_v56 = vld [vmem:[#allocation2 + $0x98] sm:$0x1] }
 0x14c   : > { %v1457_v14 = vrot.slane %v1456_v4, 4  ;;  %v885_v26 = vrot.slane %v883_v15, 7  ;;  %v893_v27 = vrot.slane %v891_v16, 7  ;;  %v550_v63 = vadd.f32 %v12223_v38, %v511_v13 }
 0x14d   : > { %v1466_v19 = vor.u32 %v1465_v8, %v1461_v7  ;;  %v12246_v29 = vld [vmem:[#allocation2 + $0x78] sm:$0xf]  ;;  %v9133_v30 = vpack.c.bf16 %v549_v24, %v549_v24  ;;  %v512_v11 = vmul.f32 %v12209_v21, %v473_v17  ;;  %v513_v31 = vmul.f32 %v12209_v21, %v474_v18 }
 0x14e   : > { %v1462_v25 = vsel %vm12010_vm4, %v1457_v14, %v1461_v7  ;;  %v12250_v23 = vld [vmem:[#allocation2 + $0x7c] sm:$0xf]  ;;  %v1474_v32 = vshrl.u32 %v12246_v29, 16  ;;  %v1477_v33 = vshll.u32 %v12246_v29, 16  ;;  %v888_v35 = vor.u32 %v886_v2, %v885_v26 }
 0x14f   : > { %v1467_v12 = vrot.slane %v1466_v19, 4  ;;  %v889_v37 = vrot.slane %v885_v26, 4  ;;  %v1483_v42 = vshll.u32 %v12250_v23, 16  ;;  %v1487_v43 = vshrl.u32 %v12250_v23, 16 }
 0x150   : > { %v1224_v41 = vld [vmem:[#allocation2 + $0x80] sm:$0x1]  ;;  %v896_v44 = vor.u32 %v894_v22, %v893_v27  ;;  %v1476_v28 = vrot.slane %v1474_v32, 4  ;;  %v1479_v45 = vrot.slane %v1477_v33, 5  ;;  %v898_v34 = vrot.slane %v893_v27, 4 }
 0x151   : > { %v1472_v40 = vsel %vm12010_vm4, %v1467_v12, %v1471_v20  ;;  %v1493_v46 = vshll.u32 %v1224_v41, 16  ;;  %v1485_v47 = vrot.slane %v1483_v42, 5  ;;  %v1489_v48 = vrot.slane %v1487_v43, 4 }
 0x152   : > { %v8772_v9 = vcombine.low %v1462_v25, %v1472_v40  ;;  %v897_v49 = vsel %vm12031_vm8, %v889_v37, %v896_v44  ;;  %v1480_v50 = vor.u32 %v1479_v45, %v1476_v28  ;;  %v1109_v52 = vsel %vm12041_vm9, %v888_v35, %v1108_v62 }
 0x153   : > { %v1495_v51 = vrot.slane %v1493_v46, 5  ;;  %1111 = vst [vmem:[#allocation2 + $0x88] sm:$0xf] %v897_v49  ;;  %v9134_v53 = vpack.c.bf16 %v550_v63, %v550_v63  ;;  %v1490_v55 = vor.u32 %v1489_v48, %v1485_v47  ;;  %1110 = vst [vmem:[#allocation2 + $0x84] sm:$0xf] %v1109_v52  ;;  %v1113_v57 = vsel %vm12049_vm10, %v898_v34, %v1112_v39  ;;  %v478_v52 = vld [vmem:[%s11982_s21 + $0xe8] sm:$0xff] }
 0x154   : > { %9609 = vmatmul.mubr.bf16.gmra.mrb[16].mxu0 %v8772_v9  ;;  %9705 = vmatmul.mubr.bf16.gmra.mrb[16].mxu1 %v8772_v9  ;;  %v900_v58 = vshrl.u32 %v9133_v30, 16  ;;  %v903_v59 = vshll.u32 %v9133_v30, 16  ;;  %v1481_v0 = vrot.slane %v1480_v50, 4  ;;  %1114 = vst [vmem:[#allocation2 + $0x8c] sm:$0x1] %v1113_v57  ;;  %v551_v1 = vadd.f32 %v12223_v38, %v512_v11 }
 0x155   : > { %v908_v3 = vshrl.u32 %v9134_v53, 16  ;;  %v911_v4 = vshll.u32 %v9134_v53, 16  ;;  %v1491_v7 = vrot.slane %v1490_v55, 4  ;;  %v552_v13 = vadd.f32 %v12223_v38, %v513_v31  ;;  %v1122_v39 = vld [vmem:[#allocation2 + $0x9c] sm:$0xf] }
 0x156   : > { %v902_v8 = vrot.slane %v900_v58, 7  ;;  %v514_v14 = vmul.f32 %v12209_v21, %v475_v54  ;;  %v1486_v15 = vsel %vm12010_vm4, %v1481_v0, %v1485_v47  ;;  %v9135_v16 = vpack.c.bf16 %v551_v1, %v551_v1  ;;  %v1126_v46 = vld [vmem:[#allocation2 + $0xa4] sm:$0x1] }
 0x157   : > { %v910_v2 = vrot.slane %v908_v3, 7  ;;  %v515_v17 = vmul.f32 %v12209_v21, %v476_v61  ;;  %v1496_v18 = vsel %vm12010_vm4, %v1491_v7, %v1495_v51  ;;  %v9136_v22 = vpack.c.bf16 %v552_v13, %v552_v13  ;;  %v477_v51 = vld [vmem:[%s11982_s21 + $0xe0] sm:$0xff] }
 0x158   : > { %v905_v19 = vor.u32 %v903_v59, %v902_v8  ;;  %v906_v20 = vrot.slane %v902_v8, 4  ;;  %v8773_v24 = vcombine.low %v1486_v15, %v1496_v18  ;;  %v917_v27 = vshrl.u32 %v9135_v16, 16 }
 0x159   : > { %v913_v25 = vor.u32 %v911_v4, %v910_v2  ;;  %v915_v26 = vrot.slane %v910_v2, 4  ;;  %v920_v62 = vshll.u32 %v9135_v16, 16  ;;  %v925_v30 = vshrl.u32 %v9136_v22, 16 }
 0x15a   : > { %v12274_v63 = vld [vmem:[#allocation2 + $0x88] sm:$0xf]  ;;  %v1116_v12 = vsel %vm12041_vm9, %v905_v19, %v1115_v6  ;;  %v928_v11 = vshll.u32 %v9136_v22, 16  ;;  %9612 = vmatprep.mubr.bf16.mxu0 %v8773_v24  ;;  %9708 = vmatprep.mubr.bf16.mxu1 %v8773_v24  ;;  %v12278_v31 = vld [vmem:[#allocation2 + $0x84] sm:$0xf]  ;;  %v919_v43 = vrot.slane %v917_v27, 7  ;;  %v553_v47 = vadd.f32 %v12223_v38, %v514_v14 }
 0x15b   : > { %v1507_v32 = vshll.u32 %v12274_v63, 16  ;;  %v1511_v33 = vshrl.u32 %v12274_v63, 16  ;;  %v914_v35 = vsel %vm12031_vm8, %v906_v20, %v913_v25  ;;  %1117 = vst [vmem:[#allocation2 + $0x90] sm:$0xf] %v1116_v12  ;;  %v1120_v37 = vsel %vm12049_vm10, %v915_v26, %v1119_v56  ;;  %v12286_v40 = vld [vmem:[#allocation2 + $0x8c] sm:$0x1] }
 0x15c   : > { %v1498_v41 = vshrl.u32 %v12278_v31, 16  ;;  %v1501_v42 = vshll.u32 %v12278_v31, 16  ;;  %1118 = vst [vmem:[#allocation2 + $0x94] sm:$0xf] %v914_v35  ;;  %1121 = vst [vmem:[#allocation2 + $0x98] sm:$0x1] %v1120_v37  ;;  %v922_v34 = vor.u32 %v920_v62, %v919_v43  ;;  %v554_v61 = vadd.f32 %v12223_v38, %v515_v17 }
 0x15d   : > { %v927_v44 = vrot.slane %v925_v30, 7  ;;  %v1509_v9 = vrot.slane %v1507_v32, 5  ;;  %v1513_v28 = vrot.slane %v1511_v33, 4  ;;  %v1517_v45 = vshll.u32 %v12286_v40, 16  ;;  %v1129_v33 = vld [vmem:[#allocation2 + $0xa8] sm:$0xf] }
 0x15e   : > { %v1500_v48 = vrot.slane %v1498_v41, 4  ;;  %v1503_v49 = vrot.slane %v1501_v42, 5  ;;  %v923_v50 = vrot.slane %v919_v43, 4  ;;  %v1123_v59 = vsel %vm12041_vm9, %v922_v34, %v1122_v39 }
 0x15f   : > { %v1514_v53 = vor.u32 %v1513_v28, %v1509_v9  ;;  %v1519_v54 = vrot.slane %v1517_v45, 5  ;;  %v930_v55 = vor.u32 %v928_v11, %v927_v44  ;;  %v932_v57 = vrot.slane %v927_v44, 4  ;;  %1124 = vst [vmem:[#allocation2 + $0x9c] sm:$0xf] %v1123_v59 }
 0x160   : > { %v1504_v58 = vor.u32 %v1503_v49, %v1500_v48  ;;  %v9137_v0 = vpack.c.bf16 %v553_v47, %v553_v47  ;;  %v516_v1 = vmul.f32 %v12209_v21, %v477_v51  ;;  %v9138_v56 = vpack.c.bf16 %v554_v61, %v554_v61 }
 0x161   : > { %v1515_v3 = vrot.slane %v1514_v53, 4  ;;  %v931_v4 = vsel %vm12031_vm8, %v923_v50, %v930_v55  ;;  %v1127_v6 = vsel %vm12049_vm10, %v932_v57, %v1126_v46  ;;  %v517_v19 = vmul.f32 %v12209_v21, %v478_v52 }
 0x162   : > { %v1505_v7 = vrot.slane %v1504_v58, 4  ;;  %v12302_v8 = vld [vmem:[#allocation2 + $0x90] sm:$0xf]  ;;  %1125 = vst [vmem:[#allocation2 + $0xa0] sm:$0xf] %v931_v4  ;;  %v934_v13 = vshrl.u32 %v9137_v0, 16 }
 0x163   : > { %1128 = vst [vmem:[#allocation2 + $0xa4] sm:$0x1] %v1127_v6  ;;  %v937_v14 = vshll.u32 %v9137_v0, 16  ;;  %v1520_v15 = vsel %vm12010_vm4, %v1515_v3, %v1519_v54  ;;  %v12306_v2 = vld [vmem:[#allocation2 + $0x94] sm:$0xf]  ;;  %v1522_v17 = vshrl.u32 %v12302_v8, 16  ;;  %v556_v49 = vadd.f32 %v12223_v38, %v517_v19 }
 0x164   : > { %v12308_v16 = vld [vmem:[#allocation2 + $0x98] sm:$0x1]  ;;  %v1525_v18 = vshll.u32 %v12302_v8, 16  ;;  %v1510_v20 = vsel %vm12010_vm4, %v1505_v7, %v1509_v9  ;;  %v1531_v22 = vshll.u32 %v12306_v2, 16  ;;  %v1535_v24 = vshrl.u32 %v12306_v2, 16 }
 0x165   : > { %v1541_v25 = vshll.u32 %v12308_v16, 16  ;;  %v8774_v26 = vcombine.low %v1510_v20, %v1520_v15  ;;  %v1524_v27 = vrot.slane %v1522_v17, 4  ;;  %v936_v62 = vrot.slane %v934_v13, 7  ;;  %v1133_v0 = vld [vmem:[#allocation2 + $0xb0] sm:$0x1] }
 0x166   : > { %v1527_v12 = vrot.slane %v1525_v18, 5  ;;  %v1533_v30 = vrot.slane %v1531_v22, 5  ;;  %v1537_v11 = vrot.slane %v1535_v24, 4  ;;  %v942_v32 = vshrl.u32 %v9138_v56, 16  ;;  %v12318_v42 = vld [vmem:[#allocation2 + $0x9c] sm:$0xf] }
 0x167   : > { %9613 = vmatmul.mubr.bf16.gmra.mrb[20].mxu0 %v8774_v26  ;;  %9709 = vmatmul.mubr.bf16.gmra.mrb[20].mxu1 %v8774_v26  ;;  %v1543_v35 = vrot.slane %v1541_v25, 5  ;;  %v939_v37 = vor.u32 %v937_v14, %v936_v62  ;;  %v945_v39 = vshll.u32 %v9138_v56, 16  ;;  %v940_v43 = vrot.slane %v936_v62, 4 }
 0x168   : > { %v1528_v21 = vor.u32 %v1527_v12, %v1524_v27  ;;  %v1538_v41 = vor.u32 %v1537_v11, %v1533_v30  ;;  %v944_v44 = vrot.slane %v942_v32, 7  ;;  %v555_v9 = vadd.f32 %v12223_v38, %v516_v1 }
 0x169   : > { %v12321_v45 = vld [vmem:[#allocation2 + $0xa0] sm:$0xf]  ;;  %v1546_v47 = vshrl.u32 %v12318_v42, 16  ;;  %v1130_v48 = vsel %vm12041_vm9, %v939_v37, %v1129_v33  ;;  %v1549_v50 = vshll.u32 %v12318_v42, 16  ;;  %v9140_v14 = vpack.c.bf16 %v556_v49, %v556_v49  ;;  %v1136_v33 = vld [vmem:[#allocation2 + $0xb4] sm:$0xf] }
 0x16a   : > { %v1529_v28 = vrot.slane %v1528_v21, 4  ;;  %v12323_v46 = vld [vmem:[#allocation2 + $0xa4] sm:$0x1]  ;;  %v1539_v34 = vrot.slane %v1538_v41, 4  ;;  %v1555_v51 = vshll.u32 %v12321_v45, 16  ;;  %v1559_v52 = vshrl.u32 %v12321_v45, 16 }
 0x16b   : > { %1131 = vst [vmem:[#allocation2 + $0xa8] sm:$0xf] %v1130_v48  ;;  %v1548_v54 = vrot.slane %v1546_v47, 4  ;;  %v1565_v55 = vshll.u32 %v12323_v46, 16  ;;  %v947_v57 = vor.u32 %v945_v39, %v944_v44  ;;  %v1551_v59 = vrot.slane %v1549_v50, 5 }
 0x16c   : > { %v1534_v53 = vsel %vm12010_vm4, %v1529_v28, %v1533_v30  ;;  %v1544_v58 = vsel %vm12010_vm4, %v1539_v34, %v1543_v35  ;;  %v1557_v38 = vrot.slane %v1555_v51, 5  ;;  %v1561_v61 = vrot.slane %v1559_v52, 4  ;;  %v1140_v37 = vld [vmem:[#allocation2 + $0xbc] sm:$0x1] }
 0x16d   : > { %v8775_v3 = vcombine.low %v1534_v53, %v1544_v58  ;;  %v1567_v4 = vrot.slane %v1565_v55, 5  ;;  %v948_v6 = vsel %vm12031_vm8, %v940_v43, %v947_v57  ;;  %v949_v1 = vrot.slane %v944_v44, 4 }
 0x16e   : > { %v1552_v7 = vor.u32 %v1551_v59, %v1548_v54  ;;  %v1562_v56 = vor.u32 %v1561_v61, %v1557_v38  ;;  %1132 = vst [vmem:[#allocation2 + $0xac] sm:$0xf] %v948_v6  ;;  %v9139_v13 = vpack.c.bf16 %v555_v9, %v555_v9  ;;  %v959_v24 = vshrl.u32 %v9140_v14, 16 }
 0x16f   : > { %9616 = vmatprep.mubr.bf16.mxu0 %v8775_v3  ;;  %9712 = vmatprep.mubr.bf16.mxu1 %v8775_v3  ;;  %v1134_v15 = vsel %vm12049_vm10, %v949_v1, %v1133_v0  ;;  %v962_v25 = vshll.u32 %v9140_v14, 16  ;;  %v12360_v57 = vcombine.low %v12278_v31, %v12274_v63  ;;  %v12364_v58 = vcombine.low %v12302_v8, %v12306_v2 }
 0x170   : > { %v1553_v17 = vrot.slane %v1552_v7, 4  ;;  %v1563_v18 = vrot.slane %v1562_v56, 4  ;;  %1135 = vst [vmem:[#allocation2 + $0xb0] sm:$0x1] %v1134_v15  ;;  %v951_v19 = vshrl.u32 %v9139_v13, 16  ;;  %v954_v20 = vshll.u32 %v9139_v13, 16 }
 0x171   : > { %v961_v32 = vrot.slane %v959_v24, 7  ;;  %v12368_v59 = vcombine.low %v12318_v42, %v12321_v45  ;;  %vm2695_vm11 = vcmask 1042432   ;;  %vm2696_vm12 = vcmask 1046532  }
 0x172   : > { %v1178_v22 = vld [vmem:[#allocation2 + $0xa8] sm:$0xf]  ;;  %v1558_v26 = vsel %vm12010_vm4, %v1553_v17, %v1557_v38  ;;  %v1568_v27 = vsel %vm12010_vm4, %v1563_v18, %v1567_v4  ;;  %v953_v11 = vrot.slane %v951_v19, 7  ;;  %vm12401_vm13 = vmor %vm2695_vm11, %vm2696_vm12 }
 0x173   : > { %v1570_v12 = vshrl.u32 %v1178_v22, 16  ;;  %v1573_v62 = vshll.u32 %v1178_v22, 16  ;;  %v8776_v30 = vcombine.low %v1558_v26, %v1568_v27  ;;  %v964_v44 = vor.u32 %v962_v25, %v961_v32 }
 0x174   : > { %v956_v41 = vor.u32 %v954_v20, %v953_v11  ;;  %v957_v43 = vrot.slane %v953_v11, 4  ;;  %v966_v9 = vrot.slane %v961_v32, 4  ;;  %v11270_v11 = vld [vmem:[#allocation2] sm:$0xf]  ;;  %v12391_v32 = vld [vmem:[#allocation2 + $0x4] sm:$0xf] }
 0x175   : > { %v1572_v21 = vrot.slane %v1570_v12, 4  ;;  %v1575_v35 = vrot.slane %v1573_v62, 5  ;;  %9617 = vmatmul.mubr.bf16.gmra.mrb[24].mxu0 %v8776_v30  ;;  %9713 = vmatmul.mubr.bf16.gmra.mrb[24].mxu1 %v8776_v30  ;;  %v12345_v39 = vld [vmem:[#allocation2 + $0xac] sm:$0xf] }
 0x176   : > { %v1579_v47 = vshll.u32 %v12345_v39, 16  ;;  %v1583_v48 = vshrl.u32 %v12345_v39, 16  ;;  %v965_v34 = vsel %vm12031_vm8, %v957_v43, %v964_v44  ;;  %v1137_v50 = vsel %vm12041_vm9, %v956_v41, %v1136_v33  ;;  %v2658_v43 = vld [vmem:[#allocation2 + $0x84] sm:$0xe] }
 0x177   : > { %v1576_v28 = vor.u32 %v1575_v35, %v1572_v21  ;;  %v12349_v49 = vld [vmem:[#allocation2 + $0xb0] sm:$0x1]  ;;  %v1141_v51 = vsel %vm12049_vm10, %v966_v9, %v1140_v37  ;;  %1138 = vst [vmem:[#allocation2 + $0xb4] sm:$0xf] %v1137_v50  ;;  %1139 = vst [vmem:[#allocation2 + $0xb8] sm:$0xf] %v965_v34  ;;  %v12371_v0 = vcombine.low %v1178_v22, %v12345_v39 }
 0x178   : > { %v1581_v53 = vrot.slane %v1579_v47, 5  ;;  %v1585_v54 = vrot.slane %v1583_v48, 4  ;;  %v1589_v55 = vshll.u32 %v12349_v49, 16  ;;  %1142 = vst [vmem:[#allocation2 + $0xbc] sm:$0x1] %v1141_v51  ;;  %v8787_v33 = vcombine.low %v11270_v11, %v12391_v32  ;;  %v11114_v44 = vld [vmem:[#allocation9 + $0x88] sm:$0xff]  }
 0x179   : > { %v1577_v52 = vrot.slane %v1576_v28, 4  ;;  %v11272_v35 = vld [vmem:[#allocation2 + $0xc] sm:$0xf]  ;;  %v12394_v37 = vld [vmem:[#allocation2 + $0x10] sm:$0xf]  ;;  %v11115_v9 = vld [vmem:[#allocation11 + $0x88] sm:$0xff]  }
 0x17a   : > { %v1586_v38 = vor.u32 %v1585_v54, %v1581_v53  ;;  %v1591_v61 = vrot.slane %v1589_v55, 5  ;;  %v8788_v41 = vcombine.low %v11272_v35, %v12394_v37  ;;  %v11274_v28 = vld [vmem:[#allocation2 + $0x18] sm:$0xf]  ;;  %v12397_v47 = vld [vmem:[#allocation2 + $0x1c] sm:$0xf]  ;;  %v8838_v51 = vrot.slane %v2658_v43, 9 }
 0x17b   : > { %v1582_v3 = vsel %vm12010_vm4, %v1577_v52, %v1581_v53  ;;  %v8789_v48 = vcombine.low %v11274_v28, %v12397_v47  ;;  %v2659_v34 = vld [vmem:[#allocation2 + $0x90] sm:$0xe]  ;;  %v2660_v50 = vld [vmem:[#allocation2 + $0x9c] sm:$0xe]  ;;  %v2777_v52 = vrot.slane %v12274_v63, 5  ;;  %v2780_v54 = vrot.slane %v12286_v40, 5 }
 0x17c   : > { %v1587_v4 = vrot.slane %v1586_v38, 4  ;;  %v2661_v55 = vld [vmem:[#allocation2 + $0xa8] sm:$0xe]  ;;  %v11276_v38 = vld [vmem:[#allocation9 + $0x80] sm:$0xff]   ;;  %v2784_v63 = vrot.slane %v12306_v2, 5 }
 0x17d   : > { %v8841_v11 = vrot.slane %v2661_v55, 9  ;;  %v12450_v55 = vld [vmem:[#allocation2 + $0x40] sm:$0xf]  ;;  %v13422_v53 = vld [vmem:[#allocation12] ss:$0 sm:$0xff] }
 0x17e   : > { %v1592_v31 = vsel %vm12010_vm4, %v1587_v4, %v1591_v61  ;;  %v1180_v1 = vld [vmem:[#allocation2 + $0xb4] sm:$0xf]  ;;  %v12377_v8 = vld [vmem:[#allocation2 + $0xb8] sm:$0xf]  ;;  %v11277_v61 = vld [vmem:[#allocation11 + $0x80] sm:$0xff]   ;;  %v2778_v4 = vsel %vm12401_vm13, %v8838_v51, %v2777_v52 }
 0x17f   : > { %v8777_v6 = vcombine.low %v1582_v3, %v1592_v31  ;;  %v12379_v7 = vld [vmem:[#allocation2 + $0xbc] sm:$0x1]  ;;  %v1594_v42 = vshrl.u32 %v1180_v1, 16  ;;  %v1597_v56 = vshll.u32 %v1180_v1, 16  ;;  %v1603_v13 = vshll.u32 %v12377_v8, 16  ;;  %v11118_v3 = vld [vmem:[#allocation9 + $0x90] sm:$0xff]  }
 0x180   : > { %v1607_v14 = vshrl.u32 %v12377_v8, 16  ;;  %v1613_v15 = vshll.u32 %v12379_v7, 16  ;;  %v12385_v17 = vcombine.low %v1180_v1, %v12377_v8  ;;  %v2779_v31 = vrot.slane %v2777_v52, 4  ;;  %v2662_v1 = vld [vmem:[#allocation2 + $0xb4] sm:$0xe] }
 0x181   : > { %9620 = vmatprep.mubr.bf16.mxu0 %v8777_v6  ;;  %9716 = vmatprep.mubr.bf16.mxu1 %v8777_v6  ;;  %v1596_v18 = vrot.slane %v1594_v42, 4  ;;  %v1599_v19 = vrot.slane %v1597_v56, 5  ;;  %v1605_v20 = vrot.slane %v1603_v13, 5  ;;  %v8839_v6 = vrot.slane %v2659_v34, 9  ;;  %v11278_v42 = vld [vmem:[#allocation2 + $0x24] sm:$0xf] }
 0x182   : > { %v1609_v22 = vrot.slane %v1607_v14, 4  ;;  %v1615_v26 = vrot.slane %v1613_v15, 5  ;;  %v12409_v56 = vld [vmem:[#allocation2 + $0x28] sm:$0xf]  ;;  %v11119_v13 = vld [vmem:[#allocation11 + $0x90] sm:$0xff]   ;;  %v2787_v14 = vrot.slane %v12308_v16, 5 }
 0x183   : > { %v1600_v24 = vor.u32 %v1599_v19, %v1596_v18  ;;  %v8790_v40 = vcombine.low %v11278_v42, %v12409_v56  ;;  %v8840_v15 = vrot.slane %v2660_v50, 9  ;;  %v2791_v18 = vrot.slane %v12321_v45, 5  ;;  %v11280_v19 = vld [vmem:[#allocation2 + $0x30] sm:$0xf]  ;;  %v11126_v34 = vld [vmem:[#allocation9 + $0xa0] sm:$0xff]  }
 0x184   : > { %v1610_v25 = vor.u32 %v1609_v22, %v1605_v20  ;;  %v2781_v22 = vsel %vm12401_vm13, %v2779_v31, %v2780_v54  ;;  %v2805_v43 = vrot.slane %v12377_v8, 5  ;;  %v11127_v50 = vld [vmem:[#allocation11 + $0xa0] sm:$0xff]   ;;  %v11130_v31 = vld [vmem:[#allocation9 + $0xa8] sm:$0xff]   ;;  %v11286_v42 = vld [vmem:[#allocation2 + $0x54] sm:$0xf] }
 0x185   : > { %v1601_v27 = vrot.slane %v1600_v24, 4  ;;  %v2785_v24 = vsel %vm12401_vm13, %v8839_v6, %v2784_v63  ;;  %v2792_v16 = vsel %vm12401_vm13, %v8840_v15, %v2791_v18  ;;  %v2793_v45 = vrot.slane %v2791_v18, 4  ;;  %v11282_v54 = vld [vmem:[#allocation2 + $0x3c] sm:$0xf]  ;;  %v11131_v6 = vld [vmem:[#allocation11 + $0xa8] sm:$0xff]  }
 0x186   : > { %v1611_v12 = vrot.slane %v1610_v25, 4  ;;  %v2786_v25 = vrot.slane %v2784_v63, 4  ;;  %v11134_v63 = vld [vmem:[#allocation9 + $0xb0] sm:$0xff]   ;;  %v12459_v15 = vld [vmem:[#allocation2 + $0x64] sm:$0xf] }
 0x187   : > { %v1606_v62 = vsel %vm12010_vm4, %v1601_v27, %v1605_v20  ;;  %v12414_v20 = vld [vmem:[#allocation2 + $0x34] sm:$0xf]  ;;  %v2794_v27 = vrot.slane %v12323_v46, 5  ;;  %v8842_v46 = vrot.slane %v2662_v1, 9  ;;  %v11135_v1 = vld [vmem:[#allocation11 + $0xb0] sm:$0xff]  }
 0x188   : > { %v1616_v30 = vsel %vm12010_vm4, %v1611_v12, %v1615_v26  ;;  %v8791_v2 = vcombine.low %v11280_v19, %v12414_v20  ;;  %v12421_v26 = vcombine.low %v2778_v4, %v2781_v22  ;;  %v11122_v12 = vld [vmem:[#allocation9 + $0x98] sm:$0xff]   ;;  %v12453_v4 = vld [vmem:[#allocation2 + $0x4c] sm:$0xf]  ;;  %v12462_v22 = vld [vmem:[#allocation9 + $0xc0] sm:$0xff]  }
 0x189   : > { %v8778_v21 = vcombine.low %v1606_v62, %v1616_v30  ;;  %v11123_v62 = vld [vmem:[#allocation11 + $0x98] sm:$0xff]   ;;  %v2788_v30 = vsel %vm12401_vm13, %v2786_v25, %v2787_v14  ;;  %v11288_v14 = vld [vmem:[#allocation2 + $0x60] sm:$0xf]  ;;  %v11290_v25 = vld [vmem:[#allocation2 + $0x6c] sm:$0xf] }
 0x18a   : > { %v12430_v35 = vcombine.low %v2785_v24, %v2788_v30  ;;  %v8795_v18 = vcombine.low %v11288_v14, %v12459_v15  ;;  %v11138_v19 = vld [vmem:[#allocation9 + $0xb8] sm:$0xff]   ;;  %v12464_v24 = vld [vmem:[#allocation11 + $0xc0] sm:$0xff]  }
 0x18b   : > { %9621 = vmatmul.mubr.bf16.gmra.mrb[28].mxu0 %v8778_v21  ;;  %9717 = vmatmul.mubr.bf16.gmra.mrb[28].mxu1 %v8778_v21  ;;  %v2801_v21 = vrot.slane %v12349_v49, 5  ;;  %v2806_v49 = vsel %vm12401_vm13, %v8842_v46, %v2805_v43  ;;  %v11292_v30 = vld [vmem:[#allocation6] ss:$0 sm:$0xff] }
 0x18c   : > { %9640 = vmatprep.mubr.bf16.mxu0 %v8787_v33  ;;  %9736 = vmatprep.mubr.bf16.mxu1 %v8787_v33  ;;  %v2798_v33 = vrot.slane %v12345_v39, 5  ;;  %v2808_v39 = vrot.slane %v12379_v7, 5 }
 0x18e   : > { %v2800_v28 = vrot.slane %v2798_v33, 4 }
 0x190   : > { %v2802_v8 = vsel %vm12401_vm13, %v2800_v28, %v2801_v21  ;;  %v2647_v21 = vld [vmem:[#allocation2] sm:$0xe] }
 0x193   : > { %9641 = vmatmul.mubr.bf16.vlgmr.msra.gmra.mrb[0].mxu0 %v8788_v41  ;;  %9737 = vmatmul.mubr.bf16.vlgmr.msra.gmra.mrb[0].mxu1 %v8788_v41  ;;  %v2795_v41 = vsel %vm12401_vm13, %v2793_v45, %v2794_v27  ;;  %v8797_v27 = vcombine.low %v12246_v29, %v12250_v23 }
 0x194   : > { %9769 = vmatpush3.bf16.msra.mxu0 %v11276_v38  ;;  %9817 = vmatpush3.bf16.msra.mxu1 %v11277_v61  ;;  %v8792_v38 = vcombine.low %v11282_v54, %v12450_v55  ;;  %v11284_v61 = vld [vmem:[#allocation2 + $0x48] sm:$0xf] }
 0x195   : > { %9644 = vmatprep.mubr.bf16.mxu0 %v8789_v48  ;;  %9740 = vmatprep.mubr.bf16.mxu1 %v8789_v48  ;;  %v2807_v48 = vrot.slane %v2805_v43, 4 }
 0x196   : > { %9770 = vmatprep.subr.bf16.mxu0 %v11114_v44  ;;  %9818 = vmatprep.subr.bf16.mxu1 %v11115_v9 }
 0x197   : > { %v2809_v7 = vsel %vm12401_vm13, %v2807_v48, %v2808_v39  ;;  %v11294_v48 = vld [vmem:[#allocation2 + $0x8] sm:$0x1] }
 0x198   : > { %9771 = vmatpush3.bf16.msra.mxu0 %v11114_v44  ;;  %9819 = vmatpush3.bf16.msra.mxu1 %v11115_v9  ;;  %v12435_v44 = vcombine.low %v2792_v16, %v2795_v41  ;;  %v2799_v9 = vsel %vm12401_vm13, %v8841_v11, %v2798_v33  ;;  %v12448_v52 = vcombine.low %v2806_v49, %v2809_v7  ;;  %v12466_v16 = vld [vmem:[#allocation2 + $0x70] sm:$0xf]  ;;  %v11293_v41 = vld [vmem:[#allocation8] ss:$0 sm:$0xff]  ;;  %v8827_v49 = vrot.slane %v2647_v21, 9 }
 0x199   : > { %9772 = vmatprep.subr.bf16.mxu0 %v11118_v3  ;;  %9820 = vmatprep.subr.bf16.mxu1 %v11119_v13  ;;  %v12444_v51 = vcombine.low %v2799_v9, %v2802_v8  ;;  %v8796_v45 = vcombine.low %v11290_v25, %v12466_v16  ;;  %v2700_v9 = vrot.slane %v12391_v32, 5  ;;  %v1143_v32 = vld [vmem:[#allocation2 + $0xc0] sm:$0xf] }
 0x19b   : > { %9645 = vmatmul.mubr.bf16.gmra.mrb[4].mxu0 %v8790_v40  ;;  %9741 = vmatmul.mubr.bf16.gmra.mrb[4].mxu1 %v8790_v40  ;;  %v12456_v40 = vld [vmem:[#allocation2 + $0x58] sm:$0xf]  ;;  %v2701_v60 = vsel %vm12401_vm13, %v8827_v49, %v2700_v9  ;;  %v11142_v49 = vld [vmem:[#allocation9 + $0xc8] sm:$0xff]  }
 0x19c   : > { %9648 = vmatprep.mubr.bf16.mxu0 %v8791_v2  ;;  %9744 = vmatprep.mubr.bf16.mxu1 %v8791_v2  ;;  %v11139_v2 = vld [vmem:[#allocation11 + $0xb8] sm:$0xff]  }
 0x19d   : > { %9773 = vmatpush3.bf16.msra.mxu0 %v11118_v3  ;;  %9821 = vmatpush3.bf16.msra.mxu1 %v11119_v13  ;;  %v8793_v3 = vcombine.low %v11284_v61, %v12453_v4  ;;  %v8794_v13 = vcombine.low %v11286_v42, %v12456_v40  ;;  %v2649_v42 = vld [vmem:[#allocation2 + $0x18] sm:$0xe] }
 0x19e   : > { %9774 = vmatprep.subr.bf16.mxu0 %v11122_v12  ;;  %9822 = vmatprep.subr.bf16.mxu1 %v11123_v62 }
 0x1a1   : > { %9775 = vmatpush3.bf16.msra.mxu0 %v11122_v12  ;;  %9823 = vmatpush3.bf16.msra.mxu1 %v11123_v62  ;;  %v479_v12 = vld [vmem:[%s11982_s21 + $0xf0] sm:$0xff]  ;;  %v480_v62 = vld [vmem:[%s11982_s21 + $0xf8] sm:$0xff] }
 0x1a2   : > { %9776 = vmatprep.subr.bf16.mxu0 %v11126_v34  ;;  %9824 = vmatprep.subr.bf16.mxu1 %v11127_v50  ;;  %v518_v11 = vmul.f32 %v11292_v30, %v479_v12  ;;  %v519_v33 = vmul.f32 %v11292_v30, %v480_v62  ;;  %v2721_v62 = vrot.slane %v12409_v56, 5  ;;  %v2728_v30 = vrot.slane %v12414_v20, 5  ;;  %v11143_v56 = vld [vmem:[#allocation11 + $0xc8] sm:$0xff]  }
 0x1a3   : > { %9649 = vmatmul.mubr.bf16.gmra.mrb[8].mxu0 %v8792_v38  ;;  %9745 = vmatmul.mubr.bf16.gmra.mrb[8].mxu1 %v8792_v38  ;;  %v2702_v38 = vrot.slane %v2700_v9, 4 }
 0x1a4   : > { %9652 = vmatprep.mubr.bf16.mxu0 %v8793_v3  ;;  %9748 = vmatprep.mubr.bf16.mxu1 %v8793_v3  ;;  %v557_v46 = vadd.f32 %v11293_v41, %v518_v11  ;;  %v558_v43 = vadd.f32 %v11293_v41, %v519_v33  ;;  %v2723_v41 = vrot.slane %v2721_v62, 4  ;;  %v2730_v9 = vrot.slane %v2728_v30, 4 }
 0x1a5   : > { %9777 = vmatpush3.bf16.msra.mxu0 %v11126_v34  ;;  %9825 = vmatpush3.bf16.msra.mxu1 %v11127_v50  ;;  %v2703_v34 = vrot.slane %v11294_v48, 5 }
 0x1a6   : > { %9778 = vmatprep.subr.bf16.mxu0 %v11130_v31  ;;  %9826 = vmatprep.subr.bf16.mxu1 %v11131_v6  ;;  %v9141_v29 = vpack.c.bf16 %v557_v46, %v557_v46  ;;  %v9142_v23 = vpack.c.bf16 %v558_v43, %v558_v43  ;;  %v11297_v46 = vld [vmem:[#allocation2 + $0x2c] sm:$0x1] }
 0x1a7   : > { %v2704_v5 = vsel %vm12401_vm13, %v2702_v38, %v2703_v34  ;;  %v2724_v43 = vrot.slane %v11297_v46, 5  ;;  %v2652_v34 = vld [vmem:[#allocation2 + $0x3c] sm:$0xe]  ;;  %v11145_v38 = vld [vmem:[#allocation11 + $0xd0] sm:$0xff]  }
 0x1a8   : > { %v968_v28 = vshrl.u32 %v9141_v29, 16  ;;  %v976_v39 = vshrl.u32 %v9142_v23, 16  ;;  %v971_v8 = vshll.u32 %v9141_v29, 16  ;;  %v979_v54 = vshll.u32 %v9142_v23, 16 }
 0x1a9   : > { %9779 = vmatpush3.bf16.msra.mxu0 %v11130_v31  ;;  %9827 = vmatpush3.bf16.msra.mxu1 %v11131_v6  ;;  %v2648_v6 = vld [vmem:[#allocation2 + $0xc] sm:$0xe]  ;;  %v2725_v48 = vsel %vm12401_vm13, %v2723_v41, %v2724_v43 }
 0x1aa   : > { %9780 = vmatprep.subr.bf16.mxu0 %v11134_v63  ;;  %9828 = vmatprep.subr.bf16.mxu1 %v11135_v1  ;;  %v970_v50 = vrot.slane %v968_v28, 7  ;;  %v12480_v7 = vrot.slane %v976_v39, 7  ;;  %v11298_v28 = vld [vmem:[#allocation2 + $0x38] sm:$0x1]  ;;  %v2656_v43 = vld [vmem:[#allocation2 + $0x6c] sm:$0xe] }
 0x1ab   : > { %9653 = vmatmul.mubr.bf16.gmra.mrb[12].mxu0 %v8794_v13  ;;  %9749 = vmatmul.mubr.bf16.gmra.mrb[12].mxu1 %v8794_v13  ;;  %v11295_v13 = vld [vmem:[#allocation2 + $0x14] sm:$0x1]  ;;  %v2731_v39 = vrot.slane %v11298_v28, 5  ;;  %v11303_v28 = vld [vmem:[#allocation2 + $0x7c] sm:$0xf] }
 0x1ac   : > { %9656 = vmatprep.mubr.bf16.mxu0 %v8795_v18  ;;  %9752 = vmatprep.mubr.bf16.mxu1 %v8795_v18  ;;  %v973_v61 = vor.u32 %v971_v8, %v970_v50  ;;  %v974_v3 = vrot.slane %v970_v50, 4  ;;  %v2710_v14 = vrot.slane %v11295_v13, 5  ;;  %v8843_v18 = vcombine.low %v2701_v60, %v2704_v5  ;;  %v11300_v60 = vld [vmem:[#allocation2 + $0x50] sm:$0x1] }
 0x1ad   : > { %9781 = vmatpush3.bf16.msra.mxu0 %v11134_v63  ;;  %9829 = vmatpush3.bf16.msra.mxu1 %v11135_v1  ;;  %v2707_v63 = vrot.slane %v12394_v37, 5  ;;  %v2714_v1 = vrot.slane %v12397_v47, 5  ;;  %v2650_v37 = vld [vmem:[#allocation2 + $0x24] sm:$0xe]  ;;  %v2735_v50 = vrot.slane %v12450_v55, 5  ;;  %v8832_v55 = vrot.slane %v2652_v34, 9 }
 0x1ae   : > { %9782 = vmatprep.subr.bf16.mxu0 %v11138_v19  ;;  %9830 = vmatprep.subr.bf16.mxu1 %v11139_v2  ;;  %v8830_v21 = vrot.slane %v2650_v37, 9  ;;  %v2745_v5 = vrot.slane %v11300_v60, 5 }
 0x1af   : > { %v2716_v25 = vrot.slane %v2714_v1, 4 }
 0x1b0   : > { %v2722_v20 = vsel %vm12401_vm13, %v8830_v21, %v2721_v62  ;;  %v11151_v21 = vld [vmem:[#allocation11 + $0xe8] sm:$0xff]  }
 0x1b1   : > { %9783 = vmatpush3.bf16.msra.mxu0 %v11138_v19  ;;  %9831 = vmatpush3.bf16.msra.mxu1 %v11139_v2  ;;  %v2709_v19 = vrot.slane %v2707_v63, 4  ;;  %v8829_v2 = vrot.slane %v2649_v42, 9  ;;  %v11147_v42 = vld [vmem:[#allocation11 + $0xd8] sm:$0xff]  }
 0x1b2   : > { %9864 = vmatprep.subr.bf16.mxu0 %v12462_v22  ;;  %9912 = vmatprep.subr.bf16.mxu1 %v12464_v24 }
 0x1b3   : > { %9657 = vmatmul.mubr.bf16.gmra.mrb[16].mxu0 %v8796_v45  ;;  %9753 = vmatmul.mubr.bf16.gmra.mrb[16].mxu1 %v8796_v45  ;;  %v11296_v45 = vld [vmem:[#allocation2 + $0x20] sm:$0x1]  ;;  %v2711_v12 = vsel %vm12401_vm13, %v2709_v19, %v2710_v14  ;;  %v2715_v11 = vsel %vm12401_vm13, %v8829_v2, %v2714_v1  ;;  %v11146_v1 = vld [vmem:[#allocation9 + $0xd8] sm:$0xff]   ;;  %v2749_v14 = vrot.slane %v12456_v40, 5  ;;  %v2756_v2 = vrot.slane %v12459_v15, 5  ;;  %v11150_v15 = vld [vmem:[#allocation9 + $0xe8] sm:$0xff]  }
 0x1b4   : > { %9660 = vmatprep.mubr.bf16.mxu0 %v8797_v27  ;;  %9756 = vmatprep.mubr.bf16.mxu1 %v8797_v27  ;;  %v2651_v27 = vld [vmem:[#allocation2 + $0x30] sm:$0xe]  ;;  %v2654_v19 = vld [vmem:[#allocation2 + $0x54] sm:$0xe] }
 0x1b5   : > { %v8831_v29 = vrot.slane %v2651_v27, 9  ;;  %v2751_v40 = vrot.slane %v2749_v14, 4 }
 0x1b7   : > { %v2729_v8 = vsel %vm12401_vm13, %v8831_v29, %v2728_v30  ;;  %v2763_v29 = vrot.slane %v12466_v16, 5  ;;  %v11304_v16 = vld [vmem:[#allocation2 + $0x74] sm:$0x1] }
 0x1bb   : > { %9661 = vmatmul.mubr.bf16.gmra.mrb[20].mxu0 %v12360_v57  ;;  %9757 = vmatmul.mubr.bf16.gmra.mrb[20].mxu1 %v12360_v57  ;;  %v981_v57 = vor.u32 %v979_v54, %v12480_v7  ;;  %v2732_v54 = vsel %vm12401_vm13, %v2730_v9, %v2731_v39  ;;  %v2770_v39 = vrot.slane %v11303_v28, 5  ;;  %v4034_v28 = vld [vmem:[#allocation2 + $0xc] sm:$0xf] }
 0x1bc   : > { %9664 = vmatprep.mubr.bf16.mxu0 %v12364_v58  ;;  %9760 = vmatprep.mubr.bf16.mxu1 %v12364_v58  ;;  %v1144_v58 = vsel %vm12041_vm9, %v973_v61, %v1143_v32  ;;  %v2653_v61 = vld [vmem:[#allocation2 + $0x48] sm:$0xe]  ;;  %v2737_v32 = vrot.slane %v2735_v50, 4 }
 0x1bd   : > { %v982_v31 = vsel %vm12031_vm8, %v974_v3, %v981_v57  ;;  %1145 = vst [vmem:[#allocation2 + $0xc0] sm:$0xf] %v1144_v58  ;;  %v8846_v3 = vcombine.low %v2722_v20, %v2725_v48  ;;  %v8847_v57 = vcombine.low %v2729_v8, %v2732_v54  ;;  %v11153_v20 = vld [vmem:[#allocation11 + $0xf0] sm:$0xff]   ;;  %v2765_v8 = vrot.slane %v2763_v29, 4 }
 0x1be   : > { %1146 = vst [vmem:[#allocation2 + $0xc4] sm:$0xf] %v982_v31  ;;  %v11299_v31 = vld [vmem:[#allocation2 + $0x44] sm:$0x1]  ;;  %v2766_v54 = vrot.slane %v11304_v16, 5 }
 0x1bf   : > { %v2738_v58 = vrot.slane %v11299_v31, 5  ;;  %v5053_v16 = vld [vmem:[#allocation2 + $0x60] sm:$0xe] }
 0x1c1   : > { %v2739_v13 = vsel %vm12401_vm13, %v2737_v32, %v2738_v58  ;;  %v2767_v32 = vsel %vm12401_vm13, %v2765_v8, %v2766_v54  ;;  %v4086_v8 = vshll.u32 %v4034_v28, 16 }
 0x1c3   : > { %9665 = vmatmul.mubr.bf16.gmra.mrb[24].mxu0 %v12368_v59  ;;  %9761 = vmatmul.mubr.bf16.gmra.mrb[24].mxu1 %v12368_v59  ;;  %v8828_v59 = vrot.slane %v2648_v6, 9  ;;  %v8833_v6 = vrot.slane %v2653_v61, 9 }
 0x1c4   : > { %9668 = vmatprep.mubr.bf16.mxu0 %v12371_v0  ;;  %9764 = vmatprep.mubr.bf16.mxu1 %v12371_v0  ;;  %v2717_v0 = vrot.slane %v11296_v45, 5  ;;  %v11148_v45 = vld [vmem:[#allocation9 + $0xe0] sm:$0xff]  }
 0x1c5   : > { %v2708_v47 = vsel %vm12401_vm13, %v8828_v59, %v2707_v63 }
 0x1c6   : > { %v8844_v33 = vcombine.low %v2708_v47, %v2711_v12  ;;  %v8834_v47 = vrot.slane %v2654_v19, 9  ;;  %v11301_v12 = vld [vmem:[#allocation2 + $0x5c] sm:$0x1]  ;;  %v5136_v19 = vrot.slane %v12563_v10, 5 }
 0x1c7   : > { %v2752_v62 = vrot.slane %v11301_v12, 5  ;;  %v11171_v12 = vld [vmem:[#allocation11 + $0x118] sm:$0xff]  }
 0x1c8   : > { %v2750_v41 = vsel %vm12401_vm13, %v8834_v47, %v2749_v14  ;;  %v12561_v14 = vld [vmem:[#allocation2 + $0x34] sm:$0xf] }
 0x1c9   : > { %v2753_v46 = vsel %vm12401_vm13, %v2751_v40, %v2752_v62  ;;  %v11170_v40 = vld [vmem:[#allocation9 + $0x118] sm:$0xff]   ;;  %v12573_v62 = vld [vmem:[#allocation2 + $0x4c] sm:$0xf] }
 0x1ca   : > { %v8850_v48 = vcombine.low %v2750_v41, %v2753_v46  ;;  %v11175_v41 = vld [vmem:[#allocation11 + $0x120] sm:$0xff]  }
 0x1cb   : > { %9669 = vmatmul.mubr.bf16.gmra.mrb[28].mxu0 %v12385_v17  ;;  %9765 = vmatmul.mubr.bf16.gmra.mrb[28].mxu1 %v12385_v17  ;;  %v2718_v17 = vsel %vm12401_vm13, %v2716_v25, %v2717_v0  ;;  %v2655_v25 = vld [vmem:[#allocation2 + $0x60] sm:$0xe] }
 0x1cc   : > { %9784 = vmatprep.mubr.bf16.mxu0 %v8843_v18  ;;  %9832 = vmatprep.mubr.bf16.mxu1 %v8843_v18  ;;  %v8845_v23 = vcombine.low %v2715_v11, %v2718_v17  ;;  %v11149_v0 = vld [vmem:[#allocation11 + $0xe0] sm:$0xff]   ;;  %v8835_v30 = vrot.slane %v2655_v25, 9  ;;  %v2758_v11 = vrot.slane %v2756_v2, 4  ;;  %v11302_v17 = vld [vmem:[#allocation2 + $0x68] sm:$0x1] }
 0x1d3   : > { %9785 = vmatmul.mubr.bf16.vlgmr.msra.gmra.mrb[0].mxu0 %v8844_v33  ;;  %9833 = vmatmul.mubr.bf16.vlgmr.msra.gmra.mrb[0].mxu1 %v8844_v33  ;;  %v2759_v33 = vrot.slane %v11302_v17, 5  ;;  %v5147_v17 = vrot.slane %v12573_v62, 5 }
 0x1d4   : > { %9865 = vmatpush3.bf16.msra.mxu0 %v12462_v22  ;;  %9913 = vmatpush3.bf16.msra.mxu1 %v12464_v24  ;;  %v11144_v22 = vld [vmem:[#allocation9 + $0xd0] sm:$0xff]   ;;  %v2742_v24 = vrot.slane %v12453_v4, 5  ;;  %v2736_v4 = vsel %vm12401_vm13, %v8832_v55, %v2735_v50  ;;  %v8836_v50 = vrot.slane %v2656_v43, 9 }
 0x1d5   : > { %9788 = vmatprep.mubr.bf16.mxu0 %v8845_v23  ;;  %9836 = vmatprep.mubr.bf16.mxu1 %v8845_v23  ;;  %v8848_v37 = vcombine.low %v2736_v4, %v2739_v13  ;;  %v2757_v23 = vsel %vm12401_vm13, %v8835_v30, %v2756_v2  ;;  %v2760_v9 = vsel %vm12401_vm13, %v2758_v11, %v2759_v33  ;;  %v11162_v13 = vld [vmem:[#allocation9 + $0x108] sm:$0xff]   ;;  %v12575_v30 = vld [vmem:[#allocation2 + $0x50] sm:$0x1]  ;;  %v5149_v46 = vrot.slane %v5147_v17, 4 }
 0x1d6   : > { %9866 = vmatprep.subr.bf16.mxu0 %v11142_v49  ;;  %9914 = vmatprep.subr.bf16.mxu1 %v11143_v56  ;;  %v2744_v63 = vrot.slane %v2742_v24, 4  ;;  %v2743_v18 = vsel %vm12401_vm13, %v8833_v6, %v2742_v24  ;;  %v8851_v34 = vcombine.low %v2757_v23, %v2760_v9  ;;  %v11305_v24 = vld [vmem:[#allocation2 + $0x80] sm:$0x1]  ;;  %v2764_v55 = vsel %vm12401_vm13, %v8836_v50, %v2763_v29  ;;  %v5051_v11 = vld [vmem:[#allocation2 + $0x48] sm:$0xe]  ;;  %v11168_v23 = vld [vmem:[#allocation2 + $0x54] sm:$0xff]  }
 0x1d7   : > { %v2773_v61 = vrot.slane %v11305_v24, 5  ;;  %v11158_v6 = vld [vmem:[#allocation9 + $0x100] sm:$0xff]   ;;  %v8852_v60 = vcombine.low %v2764_v55, %v2767_v32  ;;  %v5150_v33 = vrot.slane %v12575_v30, 5  ;;  %v11165_v43 = vld [vmem:[#allocation2 + $0x48] sm:$0xff]   ;;  %v4083_v50 = vshrl.u32 %v4034_v28, 16 }
 0x1d8   : > { %9867 = vmatpush3.bf16.msra.mxu0 %v11142_v49  ;;  %9915 = vmatpush3.bf16.msra.mxu1 %v11143_v56  ;;  %v2746_v59 = vsel %vm12401_vm13, %v2744_v63, %v2745_v5  ;;  %v2657_v49 = vld [vmem:[#allocation2 + $0x78] sm:$0xe]  ;;  %v11152_v56 = vld [vmem:[#allocation9 + $0xf0] sm:$0xff]   ;;  %v11159_v63 = vld [vmem:[#allocation11 + $0x100] sm:$0xff]  }
 0x1d9   : > { %9868 = vmatprep.subr.bf16.mxu0 %v11144_v22  ;;  %9916 = vmatprep.subr.bf16.mxu1 %v11145_v38  ;;  %v8849_v27 = vcombine.low %v2743_v18, %v2746_v59  ;;  %v11166_v18 = vld [vmem:[#allocation9 + $0x110] sm:$0xff]   ;;  %v5151_v9 = vsel %vm12401_vm13, %v5149_v46, %v5150_v33  ;;  %v11169_v32 = vld [vmem:[#allocation2 + $0x60] sm:$0xff]  }
 0x1da   : > { %v5049_v59 = vld [vmem:[#allocation2 + $0x30] sm:$0xe]  ;;  %v4040_v33 = vld [vmem:[#allocation2 + $0x24] sm:$0xf] }
 0x1db   : > { %9789 = vmatmul.mubr.bf16.gmra.mrb[4].mxu0 %v8846_v3  ;;  %9837 = vmatmul.mubr.bf16.gmra.mrb[4].mxu1 %v8846_v3  ;;  %v11154_v3 = vld [vmem:[#allocation9 + $0xf8] sm:$0xff]   ;;  %v8942_v2 = vrot.slane %v5049_v59, 9 }
 0x1dc   : > { %9792 = vmatprep.mubr.bf16.mxu0 %v8847_v57  ;;  %9840 = vmatprep.mubr.bf16.mxu1 %v8847_v57  ;;  %v11155_v57 = vld [vmem:[#allocation11 + $0xf8] sm:$0xff]  }
 0x1dd   : > { %9869 = vmatpush3.bf16.msra.mxu0 %v11144_v22  ;;  %9917 = vmatpush3.bf16.msra.mxu1 %v11145_v38  ;;  %v8837_v22 = vrot.slane %v2657_v49, 9  ;;  %v2772_v38 = vrot.slane %v2770_v39, 4  ;;  %v11178_v49 = vld [vmem:[#allocation9 + $0x128] sm:$0xff]  }
 0x1de   : > { %9870 = vmatprep.subr.bf16.mxu0 %v11146_v1  ;;  %9918 = vmatprep.subr.bf16.mxu1 %v11147_v42 }
 0x1df   : > { %v2771_v31 = vsel %vm12401_vm13, %v8837_v22, %v2770_v39  ;;  %v2774_v58 = vsel %vm12401_vm13, %v2772_v38, %v2773_v61  ;;  %v8946_v61 = vrot.slane %v5053_v16, 9 }
 0x1e0   : > { %v8853_v5 = vcombine.low %v2771_v31, %v2774_v58  ;;  %v11172_v58 = vld [vmem:[#allocation2 + $0x6c] sm:$0xff]  }
 0x1e1   : > { %9871 = vmatpush3.bf16.msra.mxu0 %v11146_v1  ;;  %9919 = vmatpush3.bf16.msra.mxu1 %v11147_v42  ;;  %v983_v1 = vrot.slane %v12480_v7, 4  ;;  %v1147_v42 = vld [vmem:[#allocation2 + $0xc8] sm:$0x1] }
 0x1e2   : > { %9872 = vmatprep.subr.bf16.mxu0 %v11148_v45  ;;  %9920 = vmatprep.subr.bf16.mxu1 %v11149_v0  ;;  %v11160_v7 = vld [vmem:[#allocation2 + $0x24] sm:$0xff]  }
 0x1e3   : > { %9793 = vmatmul.mubr.bf16.gmra.mrb[8].mxu0 %v8848_v37  ;;  %9841 = vmatmul.mubr.bf16.gmra.mrb[8].mxu1 %v8848_v37  ;;  %v1148_v4 = vsel %vm12049_vm10, %v983_v1, %v1147_v42  ;;  %v12599_v1 = vld [vmem:[#allocation2 + $0x14] sm:$0x1] }
 0x1e4   : > { %9796 = vmatprep.mubr.bf16.mxu0 %v8849_v27  ;;  %9844 = vmatprep.mubr.bf16.mxu1 %v8849_v27  ;;  %1149 = vst [vmem:[#allocation2 + $0xc8] sm:$0x1] %v1148_v4 }
 0x1e5   : > { %9873 = vmatpush3.bf16.msra.mxu0 %v11148_v45  ;;  %9921 = vmatpush3.bf16.msra.mxu1 %v11149_v0  ;;  %v11161_v45 = vld [vmem:[#allocation2 + $0x30] sm:$0xff]   ;;  %v11164_v0 = vld [vmem:[#allocation2 + $0x3c] sm:$0xff]  }
 0x1e6   : > { %9874 = vmatprep.subr.bf16.mxu0 %v11150_v15  ;;  %9922 = vmatprep.subr.bf16.mxu1 %v11151_v21 }
 0x1e9   : > { %9875 = vmatpush3.bf16.msra.mxu0 %v11150_v15  ;;  %9923 = vmatpush3.bf16.msra.mxu1 %v11151_v21  ;;  %v8944_v15 = vrot.slane %v5051_v11, 9  ;;  %v11174_v21 = vld [vmem:[#allocation9 + $0x120] sm:$0xff]  }
 0x1ea   : > { %9876 = vmatprep.subr.bf16.mxu0 %v11152_v56  ;;  %9924 = vmatprep.subr.bf16.mxu1 %v11153_v20  ;;  %v12619_v11 = vld [vmem:[#allocation9 + $0x140] sm:$0xff]  }
 0x1eb   : > { %9797 = vmatmul.mubr.bf16.gmra.mrb[12].mxu0 %v8850_v48  ;;  %9845 = vmatmul.mubr.bf16.gmra.mrb[12].mxu1 %v8850_v48  ;;  %v5148_v29 = vsel %vm12401_vm13, %v8944_v15, %v5147_v17  ;;  %v12587_v48 = vld [vmem:[#allocation2 + $0x64] sm:$0xf]  ;;  %v12621_v17 = vld [vmem:[#allocation11 + $0x140] sm:$0xff]  }
 0x1ec   : > { %9800 = vmatprep.mubr.bf16.mxu0 %v8851_v34  ;;  %9848 = vmatprep.mubr.bf16.mxu1 %v8851_v34  ;;  %v12583_v39 = vcombine.low %v5148_v29, %v5151_v9  ;;  %v12589_v34 = vld [vmem:[#allocation2 + $0x68] sm:$0x1]  ;;  %v5161_v54 = vrot.slane %v12587_v48, 5 }
 0x1ed   : > { %9877 = vmatpush3.bf16.msra.mxu0 %v11152_v56  ;;  %9925 = vmatpush3.bf16.msra.mxu1 %v11153_v20  ;;  %v11179_v56 = vld [vmem:[#allocation11 + $0x128] sm:$0xff]   ;;  %v12585_v20 = vld [vmem:[#allocation2 + $0x10] sm:$0xf]  ;;  %v5164_v22 = vrot.slane %v12589_v34, 5 }
 0x1ee   : > { %9878 = vmatprep.subr.bf16.mxu0 %v11154_v3  ;;  %9926 = vmatprep.subr.bf16.mxu1 %v11155_v57  ;;  %13714 = vst [vmem:[#allocation26_spill] sm:$0xff] %v12583_v39  ;;  %v4092_v38 = vshll.u32 %v12585_v20, 16  ;;  %v4096_v24 = vshrl.u32 %v12585_v20, 16  ;;  %v5163_v55 = vrot.slane %v5161_v54, 4  ;;  %v5162_v31 = vsel %vm12401_vm13, %v8946_v61, %v5161_v54 }
 0x1ef   : > { %v4131_v54 = vshrl.u32 %v4040_v33, 16 }
 0x1f0   : > { %v12601_v42 = vrot.slane %v4092_v38, 5  ;;  %v4098_v4 = vrot.slane %v4096_v24, 4  ;;  %v4134_v24 = vshll.u32 %v4040_v33, 16  ;;  %v11180_v33 = vld [vmem:[#allocation2 + $0x9c] sm:$0xff]  }
 0x1f1   : > { %9879 = vmatpush3.bf16.msra.mxu0 %v11154_v3  ;;  %9927 = vmatpush3.bf16.msra.mxu1 %v11155_v57  ;;  %v11182_v3 = vld [vmem:[#allocation9 + $0x130] sm:$0xff]  }
 0x1f2   : > { %9960 = vmatprep.subr.bf16.mxu0 %v11158_v6  ;;  %10008 = vmatprep.subr.bf16.mxu1 %v11159_v63  ;;  %v11183_v57 = vld [vmem:[#allocation11 + $0x130] sm:$0xff]  }
 0x1f3   : > { %9801 = vmatmul.mubr.bf16.gmra.mrb[16].mxu0 %v8852_v60  ;;  %9849 = vmatmul.mubr.bf16.gmra.mrb[16].mxu1 %v8852_v60  ;;  %v4037_v60 = vld [vmem:[#allocation2 + $0x18] sm:$0xf] }
 0x1f4   : > { %9804 = vmatprep.mubr.bf16.mxu0 %v8853_v5  ;;  %9852 = vmatprep.mubr.bf16.mxu1 %v8853_v5  ;;  %v5165_v5 = vsel %vm12401_vm13, %v5163_v55, %v5164_v22 }
 0x1fb   : > { %9805 = vmatmul.mubr.bf16.gmra.mrb[20].mxu0 %v12421_v26  ;;  %9853 = vmatmul.mubr.bf16.gmra.mrb[20].mxu1 %v12421_v26  ;;  %v11156_v26 = vld [vmem:[#allocation2 + $0xc] sm:$0xff]  }
 0x1fc   : > { %9808 = vmatprep.mubr.bf16.mxu0 %v12430_v35  ;;  %9856 = vmatprep.mubr.bf16.mxu1 %v12430_v35  ;;  %v11157_v35 = vld [vmem:[#allocation2 + $0x18] sm:$0xff]  }
 0x203   : > { %9809 = vmatmul.mubr.bf16.gmra.mrb[24].mxu0 %v12435_v44  ;;  %9857 = vmatmul.mubr.bf16.gmra.mrb[24].mxu1 %v12435_v44  ;;  %v11163_v44 = vld [vmem:[#allocation11 + $0x108] sm:$0xff]  }
 0x204   : > { %9812 = vmatprep.mubr.bf16.mxu0 %v12444_v51  ;;  %9860 = vmatprep.mubr.bf16.mxu1 %v12444_v51  ;;  %v5133_v51 = vrot.slane %v12561_v14, 5 }
 0x206   : > { %v5135_v25 = vrot.slane %v5133_v51, 4  ;;  %v5134_v37 = vsel %vm12401_vm13, %v8942_v2, %v5133_v51  ;;  %v4110_v51 = vshll.u32 %v4037_v60, 16  ;;  %v5055_v2 = vld [vmem:[#allocation2 + $0x78] sm:$0xe] }
 0x208   : > { %v5137_v27 = vsel %vm12401_vm13, %v5135_v25, %v5136_v19  ;;  %v4102_v19 = vshll.u32 %v12599_v1, 16  ;;  %v4112_v46 = vrot.slane %v4110_v51, 5  ;;  %v4136_v51 = vrot.slane %v4134_v24, 5 }
 0x209   : > { %v12571_v47 = vcombine.low %v5134_v37, %v5137_v27  ;;  %v12615_v37 = vld [vmem:[#allocation2 + $0x20] sm:$0x1] }
 0x20a   : > { %13716 = vst [vmem:[#allocation28_spill] sm:$0xff] %v12615_v37  ;;  %v12629_v28 = vrot.slane %v4102_v19, 5 }
 0x20b   : > { %9813 = vmatmul.mubr.bf16.gmra.mrb[28].mxu0 %v12448_v52  ;;  %9861 = vmatmul.mubr.bf16.gmra.mrb[28].mxu1 %v12448_v52  ;;  %v11167_v52 = vld [vmem:[#allocation11 + $0x110] sm:$0xff]   ;;  %13713 = vst [vmem:[#allocation25_spill] sm:$0xff] %v12571_v47 }
 0x20c   : > { %9880 = vmatprep.mubr.bf16.mxu0 %v11156_v26  ;;  %9928 = vmatprep.mubr.bf16.mxu1 %v11156_v26  ;;  %v12603_v26 = vcombine.low %v5162_v31, %v5165_v5  ;;  %v12648_v31 = vld [vmem:[#allocation2 + $0x98] sm:$0x1] }
 0x20d   : > { %v5192_v5 = vrot.slane %v12648_v31, 5 }
 0x20e   : > { %13715 = vst [vmem:[#allocation27_spill] sm:$0xff] %v12603_v26  ;;  %v4216_v26 = vshrl.u32 %v12573_v62, 16 }
 0x213   : > { %9881 = vmatmul.mubr.bf16.vlgmr.msra.gmra.mrb[0].mxu0 %v11157_v35  ;;  %9929 = vmatmul.mubr.bf16.vlgmr.msra.gmra.mrb[0].mxu1 %v11157_v35  ;;  %v11186_v35 = vld [vmem:[#allocation9 + $0x138] sm:$0xff]  }
 0x214   : > { %9961 = vmatpush3.bf16.msra.mxu0 %v11158_v6  ;;  %10009 = vmatpush3.bf16.msra.mxu1 %v11159_v63  ;;  %v4085_v6 = vrot.slane %v4083_v50, 4  ;;  %v4088_v63 = vrot.slane %v4086_v8, 5 }
 0x215   : > { %9884 = vmatprep.mubr.bf16.mxu0 %v11160_v7  ;;  %9932 = vmatprep.mubr.bf16.mxu1 %v11160_v7  ;;  %v11187_v7 = vld [vmem:[#allocation11 + $0x138] sm:$0xff]  }
 0x216   : > { %9962 = vmatprep.subr.bf16.mxu0 %v11162_v13  ;;  %10010 = vmatprep.subr.bf16.mxu1 %v11163_v44  ;;  %v4089_v59 = vor.u32 %v4088_v63, %v4085_v6  ;;  %v4046_v6 = vld [vmem:[#allocation2 + $0x3c] sm:$0xf]  ;;  %v5057_v63 = vld [vmem:[#allocation2 + $0x90] sm:$0xe] }
 0x218   : > { %9963 = vmatpush3.bf16.msra.mxu0 %v11162_v13  ;;  %10011 = vmatpush3.bf16.msra.mxu1 %v11163_v44  ;;  %v12605_v13 = vld [vmem:[#allocation2 + $0x1c] sm:$0xf]  ;;  %v4107_v44 = vshrl.u32 %v4037_v60, 16  ;;  %v12627_v9 = vrot.slane %v4089_v59, 4 }
 0x219   : > { %9964 = vmatprep.subr.bf16.mxu0 %v11166_v18  ;;  %10012 = vmatprep.subr.bf16.mxu1 %v11167_v52  ;;  %v4116_v27 = vshll.u32 %v12605_v13, 16 }
 0x21b   : > { %9885 = vmatmul.mubr.bf16.gmra.mrb[4].mxu0 %v11161_v45  ;;  %9933 = vmatmul.mubr.bf16.gmra.mrb[4].mxu1 %v11161_v45  ;;  %v12636_v16 = vrot.slane %v4116_v27, 5 }
 0x21c   : > { %9888 = vmatprep.mubr.bf16.mxu0 %v11164_v0  ;;  %9936 = vmatprep.mubr.bf16.mxu1 %v11164_v0  ;;  %v4099_v0 = vor.u32 %v4098_v4, %v12601_v42  ;;  %v4133_v4 = vrot.slane %v4131_v54, 4 }
 0x21d   : > { %9965 = vmatpush3.bf16.msra.mxu0 %v11166_v18  ;;  %10013 = vmatpush3.bf16.msra.mxu1 %v11167_v52  ;;  %v12607_v18 = vld [vmem:[#allocation2 + $0x7c] sm:$0xf]  ;;  %v12609_v52 = vld [vmem:[#allocation2 + $0x80] sm:$0x1] }
 0x21e   : > { %9966 = vmatprep.subr.bf16.mxu0 %v11170_v40  ;;  %10014 = vmatprep.subr.bf16.mxu1 %v11171_v12  ;;  %v5175_v25 = vrot.slane %v12607_v18, 5  ;;  %v5178_v45 = vrot.slane %v12609_v52, 5  ;;  %v12634_v8 = vrot.slane %v4099_v0, 4  ;;  %v4137_v54 = vor.u32 %v4136_v51, %v4133_v4 }
 0x220   : > { %v5177_v15 = vrot.slane %v5175_v25, 4  ;;  %v4105_v4 = vsel %vm12010_vm4, %v12634_v8, %v12629_v28 }
 0x221   : > { %9967 = vmatpush3.bf16.msra.mxu0 %v11170_v40  ;;  %10015 = vmatpush3.bf16.msra.mxu1 %v11171_v12  ;;  %v8948_v40 = vrot.slane %v5055_v2, 9  ;;  %v4120_v12 = vshrl.u32 %v12605_v13, 16 }
 0x222   : > { %9968 = vmatprep.subr.bf16.mxu0 %v11174_v21  ;;  %10016 = vmatprep.subr.bf16.mxu1 %v11175_v41  ;;  %v5179_v50 = vsel %vm12401_vm13, %v5177_v15, %v5178_v45  ;;  %v12656_v45 = vld [vmem:[#allocation2 + $0x2c] sm:$0x1] }
 0x223   : > { %9889 = vmatmul.mubr.bf16.gmra.mrb[8].mxu0 %v11165_v43  ;;  %9937 = vmatmul.mubr.bf16.gmra.mrb[8].mxu1 %v11165_v43  ;;  %v12623_v43 = vld [vmem:[#allocation2 + $0x28] sm:$0xf]  ;;  %v5176_v29 = vsel %vm12401_vm13, %v8948_v40, %v5175_v25  ;;  %v12640_v38 = vrot.slane %v4120_v12, 4  ;;  %v11177_v25 = vld [vmem:[#allocation2 + $0x90] sm:$0xff]   ;;  %13718 = vst [vmem:[#allocation30_spill] sm:$0xff] %v12656_v45  ;;  %v4179_v40 = vshrl.u32 %v4046_v6, 16 }
 0x224   : > { %9892 = vmatprep.mubr.bf16.mxu0 %v11168_v23  ;;  %9940 = vmatprep.mubr.bf16.mxu1 %v11168_v23  ;;  %v11176_v23 = vld [vmem:[#allocation2 + $0x84] sm:$0xff]   ;;  %v12638_v22 = vcombine.low %v5176_v29, %v5179_v50  ;;  %v4140_v61 = vshll.u32 %v12623_v43, 16  ;;  %v4095_v29 = vsel %vm12010_vm4, %v12627_v9, %v12601_v42  ;;  %v4150_v24 = vshll.u32 %v12656_v45, 16 }
 0x225   : > { %9969 = vmatpush3.bf16.msra.mxu0 %v11174_v21  ;;  %10017 = vmatpush3.bf16.msra.mxu1 %v11175_v41  ;;  %v11173_v21 = vld [vmem:[#allocation2 + $0x78] sm:$0xff]   ;;  %v4109_v41 = vrot.slane %v4107_v44, 4  ;;  %v8950_v44 = vrot.slane %v5057_v63, 9  ;;  %v4181_v9 = vrot.slane %v4179_v40, 4 }
 0x226   : > { %9970 = vmatprep.subr.bf16.mxu0 %v11178_v49  ;;  %10018 = vmatprep.subr.bf16.mxu1 %v11179_v56  ;;  %13717 = vst [vmem:[#allocation29_spill] sm:$0xff] %v12638_v22  ;;  %v12654_v59 = vrot.slane %v4140_v61, 5  ;;  %v4174_v61 = vshll.u32 %v12563_v10, 16  ;;  %v5059_v10 = vld [vmem:[#allocation2 + $0xa8] sm:$0xe]  ;;  %v4212_v22 = vshll.u32 %v12573_v62, 16 }
 0x228   : > { %v12709_v28 = vrot.slane %v4174_v61, 5  ;;  %v4052_v61 = vld [vmem:[#allocation2 + $0x54] sm:$0xf] }
 0x229   : > { %9971 = vmatpush3.bf16.msra.mxu0 %v11178_v49  ;;  %10019 = vmatpush3.bf16.msra.mxu1 %v11179_v56  ;;  %v4126_v49 = vshll.u32 %v12615_v37, 16  ;;  %v4043_v56 = vld [vmem:[#allocation2 + $0x30] sm:$0xf]  ;;  %v4227_v39 = vshrl.u32 %v4052_v61, 16  ;;  %v4230_v47 = vshll.u32 %v4052_v61, 16 }
 0x22a   : > { %9972 = vmatprep.subr.bf16.mxu0 %v11182_v3  ;;  %10020 = vmatprep.subr.bf16.mxu1 %v11183_v57  ;;  %v4158_v55 = vshll.u32 %v4043_v56, 16 }
 0x22b   : > { %9893 = vmatmul.mubr.bf16.gmra.mrb[12].mxu0 %v11169_v32  ;;  %9941 = vmatmul.mubr.bf16.gmra.mrb[12].mxu1 %v11169_v32  ;;  %v12646_v32 = vld [vmem:[#allocation2 + $0x94] sm:$0xf] }
 0x22c   : > { %9896 = vmatprep.mubr.bf16.mxu0 %v11172_v58  ;;  %9944 = vmatprep.mubr.bf16.mxu1 %v11172_v58  ;;  %v4113_v58 = vor.u32 %v4112_v46, %v4109_v41  ;;  %v5189_v60 = vrot.slane %v12646_v32, 5  ;;  %v4160_v27 = vrot.slane %v4158_v55, 5  ;;  %v4182_v41 = vshll.u32 %v4046_v6, 16  ;;  %v12686_v6 = vld [vmem:[#allocation2 + $0xb0] sm:$0x1] }
 0x22d   : > { %9973 = vmatpush3.bf16.msra.mxu0 %v11182_v3  ;;  %10021 = vmatpush3.bf16.msra.mxu1 %v11183_v57  ;;  %v4144_v3 = vshrl.u32 %v12623_v43, 16  ;;  %v4155_v57 = vshrl.u32 %v4043_v56, 16 }
 0x22e   : > { %9974 = vmatprep.subr.bf16.mxu0 %v11186_v35  ;;  %10022 = vmatprep.subr.bf16.mxu1 %v11187_v7  ;;  %v5191_v2 = vrot.slane %v5189_v60, 4  ;;  %v5190_v12 = vsel %vm12401_vm13, %v8950_v44, %v5189_v60  ;;  %v12660_v15 = vrot.slane %v4113_v58, 4  ;;  %v12684_v58 = vld [vmem:[#allocation2 + $0xac] sm:$0xf]  ;;  %v8952_v44 = vrot.slane %v5059_v10, 9 }
 0x22f   : > { %v4146_v19 = vrot.slane %v4144_v3, 4  ;;  %v4157_v0 = vrot.slane %v4155_v57, 4  ;;  %v12680_v3 = vld [vmem:[#allocation2 + $0x48] sm:$0xf]  ;;  %v5203_v60 = vrot.slane %v12684_v58, 5 }
 0x230   : > { %v5193_v46 = vsel %vm12401_vm13, %v5191_v2, %v5192_v5  ;;  %v5206_v5 = vrot.slane %v12686_v6, 5  ;;  %v12701_v2 = vrot.slane %v4150_v24, 5  ;;  %v12724_v10 = vld [vmem:[#allocation2 + $0xb8] sm:$0xf]  ;;  %v4119_v61 = vsel %vm12010_vm4, %v12660_v15, %v12636_v16 }
 0x231   : > { %9975 = vmatpush3.bf16.msra.mxu0 %v11186_v35  ;;  %10023 = vmatpush3.bf16.msra.mxu1 %v11187_v7  ;;  %v4164_v35 = vshll.u32 %v12561_v14, 16  ;;  %v4168_v7 = vshrl.u32 %v12561_v14, 16  ;;  %v12664_v14 = vld [vmem:[#allocation2 + $0x40] sm:$0xf]  ;;  %v12674_v50 = vcombine.low %v5190_v12, %v5193_v46  ;;  %v4147_v57 = vor.u32 %v4146_v19, %v12654_v59 }
 0x232   : > { %10056 = vmatprep.subr.bf16.mxu0 %v12619_v11  ;;  %10104 = vmatprep.subr.bf16.mxu1 %v12621_v17  ;;  %13719 = vst [vmem:[#allocation31_spill] sm:$0xff] %v12664_v14  ;;  %v4161_v42 = vor.u32 %v4160_v27, %v4157_v0  ;;  %v4188_v55 = vshll.u32 %v12664_v14, 16  ;;  %v4192_v63 = vshrl.u32 %v12664_v14, 16  ;;  %v12699_v19 = vrot.slane %v4137_v54, 4  ;;  %v11181_v27 = vld [vmem:[#allocation2 + $0xa8] sm:$0xff]  }
 0x233   : > { %9897 = vmatmul.mubr.bf16.gmra.mrb[16].mxu0 %v11173_v21  ;;  %9945 = vmatmul.mubr.bf16.gmra.mrb[16].mxu1 %v11173_v21  ;;  %v12662_v21 = vrot.slane %v4126_v49, 5  ;;  %v4170_v56 = vrot.slane %v4168_v7, 4  ;;  %13720 = vst [vmem:[#allocation32_spill] sm:$0xff] %v12674_v50  ;;  %v4123_v49 = vor.u32 %v12640_v38, %v12636_v16  ;;  %v4184_v38 = vrot.slane %v4182_v41, 5 }
 0x234   : > { %9900 = vmatprep.mubr.bf16.mxu0 %v11176_v23  ;;  %9948 = vmatprep.mubr.bf16.mxu1 %v11176_v23  ;;  %v12672_v23 = vrot.slane %v4164_v35, 5  ;;  %v4203_v7 = vshrl.u32 %v12680_v3, 16  ;;  %v5205_v0 = vrot.slane %v5203_v60, 4  ;;  %v12705_v40 = vrot.slane %v4147_v57, 4 }
 0x235   : > { %v12697_v51 = vrot.slane %v4123_v49, 4  ;;  %v12707_v12 = vrot.slane %v4161_v42, 4  ;;  %v5204_v8 = vsel %vm12401_vm13, %v8952_v44, %v5203_v60  ;;  %v4185_v41 = vor.u32 %v4184_v38, %v4181_v9  ;;  %v12726_v60 = vld [vmem:[#allocation2 + $0xbc] sm:$0x1]  ;;  %v12728_v9 = vld [vmem:[#allocation2 + $0xc4] sm:$0xf] }
 0x236   : > { %v4171_v35 = vor.u32 %v4170_v56, %v12672_v23  ;;  %v12713_v46 = vrot.slane %v4188_v55, 5  ;;  %v4194_v56 = vrot.slane %v4192_v63, 4  ;;  %v5207_v49 = vsel %vm12401_vm13, %v5205_v0, %v5206_v5  ;;  %v12730_v38 = vld [vmem:[#allocation2 + $0xc8] sm:$0x1]  ;;  %v5060_v63 = vld [vmem:[#allocation2 + $0xb4] sm:$0xe] }
 0x237   : > { %v12720_v57 = vrot.slane %v4203_v7, 4  ;;  %v12722_v42 = vcombine.low %v5204_v8, %v5207_v49  ;;  %v8907_v55 = vcombine.low %v4095_v29, %v4105_v4  ;;  %v5210_v5 = vrot.slane %v12724_v10, 5  ;;  %v5061_v0 = vld [vmem:[#allocation2 + $0xc0] sm:$0xe]  ;;  %v12738_v4 = vld [vmem:[#allocation2 + $0x58] sm:$0xf] }
 0x238   : > { %v12717_v54 = vrot.slane %v4171_v35, 4  ;;  %v5213_v35 = vrot.slane %v12726_v60, 5  ;;  %v4206_v7 = vshll.u32 %v12680_v3, 16  ;;  %v8953_v44 = vrot.slane %v5060_v63, 9  ;;  %v11185_v63 = vld [vmem:[#allocation2 + $0xc0] sm:$0xff]  }
 0x239   : > { %13722 = vst [vmem:[#allocation34_spill] sm:$0xff] %v12722_v42  ;;  %v5217_v8 = vrot.slane %v12728_v9, 5  ;;  %v5220_v49 = vrot.slane %v12730_v38, 5  ;;  %v4186_v42 = vrot.slane %v4185_v41, 4  ;;  %v4195_v29 = vor.u32 %v4194_v56, %v12713_v46 }
 0x23a   : > { %v8954_v50 = vrot.slane %v5061_v0, 9  ;;  %v5211_v3 = vsel %vm12401_vm13, %v8953_v44, %v5210_v5  ;;  %v4240_v0 = vshrl.u32 %v12738_v4, 16  ;;  %v4208_v45 = vrot.slane %v4206_v7, 5 }
 0x23b   : > { %9901 = vmatmul.mubr.bf16.gmra.mrb[20].mxu0 %v11177_v25  ;;  %9949 = vmatmul.mubr.bf16.gmra.mrb[20].mxu1 %v11177_v25  ;;  %v12703_v25 = vld [vmem:[#allocation2 + $0x44] sm:$0x1]  ;;  %v4167_v16 = vsel %vm12010_vm4, %v12707_v12, %v12672_v23  ;;  %v4177_v15 = vsel %vm12010_vm4, %v12717_v54, %v12709_v28  ;;  %v4191_v23 = vsel %vm12010_vm4, %v4186_v42, %v12713_v46 }
 0x23c   : > { %9904 = vmatprep.mubr.bf16.mxu0 %v11180_v33  ;;  %9952 = vmatprep.mubr.bf16.mxu1 %v11180_v33  ;;  %13721 = vst [vmem:[#allocation33_spill] sm:$0xff] %v12703_v25  ;;  %v11184_v33 = vld [vmem:[#allocation2 + $0xb4] sm:$0xff]   ;;  %v4198_v24 = vshll.u32 %v12703_v25, 16  ;;  %v5218_v56 = vsel %vm12401_vm13, %v8954_v50, %v5217_v8  ;;  %v4236_v25 = vshll.u32 %v12738_v4, 16  ;;  %v4129_v50 = vsel %vm12010_vm4, %v12697_v51, %v12662_v21  ;;  %v4055_v51 = vld [vmem:[#allocation2 + $0x60] sm:$0xf] }
 0x23d   : > { %v12780_v21 = vrot.slane %v4212_v22, 5  ;;  %v4242_v7 = vrot.slane %v4240_v0, 4  ;;  %v4209_v28 = vor.u32 %v4208_v45, %v12720_v57  ;;  %v4222_v22 = vshll.u32 %v12575_v30, 16  ;;  %v4058_v45 = vld [vmem:[#allocation2 + $0x6c] sm:$0xf] }
 0x23e   : > { %v4200_v44 = vrot.slane %v4198_v24, 5  ;;  %v4153_v24 = vsel %vm12010_vm4, %v12705_v40, %v12701_v2  ;;  %v4232_v2 = vrot.slane %v4230_v47, 5  ;;  %v12782_v40 = vrot.slane %v4236_v25, 5  ;;  %v12798_v57 = vld [vmem:[#allocation2 + $0x70] sm:$0xf] }
 0x23f   : > { %v4251_v54 = vshrl.u32 %v4055_v51, 16  ;;  %v4260_v47 = vshll.u32 %v12587_v48, 16  ;;  %v8908_v25 = vcombine.low %v4119_v61, %v4129_v50  ;;  %v8910_v30 = vcombine.low %v4167_v16, %v4177_v15 }
 0x240   : > { %v4243_v42 = vor.u32 %v4242_v7, %v12782_v40  ;;  %v4278_v61 = vshll.u32 %v4058_v45, 16  ;;  %v4284_v50 = vshll.u32 %v12798_v57, 16 }
 0x241   : > { %v12806_v0 = vrot.slane %v4260_v47, 5 }
 0x242   : > { %v4244_v15 = vrot.slane %v4243_v42, 4  ;;  %v4280_v47 = vrot.slane %v4278_v61, 5 }
 0x243   : > { %9905 = vmatmul.mubr.bf16.gmra.mrb[24].mxu0 %v11181_v27  ;;  %9953 = vmatmul.mubr.bf16.gmra.mrb[24].mxu1 %v11181_v27  ;;  %v5212_v27 = vrot.slane %v5210_v5, 4  ;;  %v4196_v5 = vrot.slane %v4195_v29, 4 }
 0x244   : > { %9908 = vmatprep.mubr.bf16.mxu0 %v11184_v33  ;;  %9956 = vmatprep.mubr.bf16.mxu1 %v11184_v33  ;;  %v5219_v33 = vrot.slane %v5217_v8, 4 }
 0x245   : > { %v5214_v41 = vsel %vm12401_vm13, %v5212_v27, %v5213_v35  ;;  %v4143_v35 = vsel %vm12010_vm4, %v12699_v19, %v12654_v59  ;;  %v4218_v59 = vrot.slane %v4216_v26, 4  ;;  %v4229_v19 = vrot.slane %v4227_v39, 4  ;;  %v12791_v26 = vld [vmem:[#allocation2 + $0x5c] sm:$0x1]  ;;  %v11190_v27 = vld [vmem:[#allocation9 + $0x148] sm:$0xff]  }
 0x246   : > { %v12750_v14 = vcombine.low %v5211_v3, %v5214_v41  ;;  %v5221_v62 = vsel %vm12401_vm13, %v5219_v33, %v5220_v49  ;;  %v4201_v12 = vsel %vm12010_vm4, %v4196_v5, %v4200_v44  ;;  %v4264_v39 = vshrl.u32 %v12587_v48, 16  ;;  %v11191_v3 = vld [vmem:[#allocation11 + $0x148] sm:$0xff]   ;;  %v4061_v5 = vld [vmem:[#allocation2 + $0x78] sm:$0xf] }
 0x247   : > { %v12754_v37 = vcombine.low %v5218_v56, %v5221_v62  ;;  %v8909_v8 = vcombine.low %v4143_v35, %v4153_v24  ;;  %v4219_v49 = vor.u32 %v4218_v59, %v12780_v21  ;;  %v4233_v46 = vor.u32 %v4232_v2, %v4229_v19  ;;  %v11193_v19 = vld [vmem:[#allocation11 + $0x150] sm:$0xff]  }
 0x248   : > { %v4246_v29 = vshll.u32 %v12791_v26, 16  ;;  %v12800_v33 = vcombine.low %v4191_v23, %v4201_v12  ;;  %v12804_v48 = vrot.slane %v4222_v22, 5  ;;  %v4253_v41 = vrot.slane %v4251_v54, 4  ;;  %v12820_v54 = vld [vmem:[#allocation2 + $0x74] sm:$0x1] }
 0x249   : > { %v4266_v62 = vrot.slane %v4264_v39, 4  ;;  %v4275_v44 = vshrl.u32 %v4058_v45, 16  ;;  %v4288_v35 = vshrl.u32 %v12798_v57, 16  ;;  %v4220_v24 = vrot.slane %v4219_v49, 4  ;;  %v12834_v45 = vld [vmem:[#allocation2 + $0x88] sm:$0xf] }
 0x24a   : > { %v4234_v16 = vrot.slane %v4233_v46, 4  ;;  %v4248_v59 = vrot.slane %v4246_v29, 5  ;;  %v4299_v2 = vshrl.u32 %v4061_v5, 16  ;;  %v4302_v7 = vshll.u32 %v4061_v5, 16 }
 0x24b   : > { %9909 = vmatmul.mubr.bf16.gmra.mrb[28].mxu0 %v11185_v63  ;;  %9957 = vmatmul.mubr.bf16.gmra.mrb[28].mxu1 %v11185_v63  ;;  %v12802_v63 = vrot.slane %v4209_v28, 4  ;;  %v4308_v23 = vshll.u32 %v12607_v18, 16  ;;  %v4312_v12 = vshrl.u32 %v12607_v18, 16  ;;  %v4267_v28 = vor.u32 %v4266_v62, %v12806_v0 }
 0x24c   : > { %9976 = vmatprep.mubr.bf16.mxu0 %v8907_v55  ;;  %10024 = vmatprep.mubr.bf16.mxu1 %v8907_v55  ;;  %v4254_v55 = vshll.u32 %v4055_v51, 16  ;;  %v11192_v51 = vld [vmem:[#allocation9 + $0x150] sm:$0xff]   ;;  %v4270_v22 = vshll.u32 %v12589_v34, 16  ;;  %v12822_v39 = vrot.slane %v4284_v50, 5  ;;  %v4225_v18 = vsel %vm12010_vm4, %v4220_v24, %v12804_v48  ;;  %v11195_v48 = vld [vmem:[#allocation11 + $0x158] sm:$0xff]  }
 0x24d   : > { %v4249_v34 = vsel %vm12010_vm4, %v4244_v15, %v4248_v59  ;;  %v4301_v49 = vrot.slane %v4299_v2, 4  ;;  %v4304_v46 = vrot.slane %v4302_v7, 5  ;;  %v12832_v42 = vrot.slane %v4308_v23, 5  ;;  %v4067_v15 = vld [vmem:[#allocation2 + $0x90] sm:$0xf]  ;;  %v11197_v7 = vld [vmem:[#allocation11 + $0x160] sm:$0xff]  }
 0x24e   : > { %v4256_v56 = vrot.slane %v4254_v55, 5  ;;  %v4277_v55 = vrot.slane %v4275_v44, 4  ;;  %v4314_v29 = vrot.slane %v4312_v12, 4  ;;  %v4332_v61 = vshll.u32 %v12834_v45, 16  ;;  %v12858_v23 = vld [vmem:[#allocation2 + $0x8c] sm:$0x1] }
 0x24f   : > { %v4336_v50 = vshrl.u32 %v12834_v45, 16  ;;  %v4305_v24 = vor.u32 %v4304_v46, %v4301_v49  ;;  %v4356_v49 = vshll.u32 %v12646_v32, 16  ;;  %v4360_v46 = vshrl.u32 %v12646_v32, 16 }
 0x253   : > { %9977 = vmatmul.mubr.bf16.vlgmr.msra.gmra.mrb[0].mxu0 %v8908_v25  ;;  %10025 = vmatmul.mubr.bf16.vlgmr.msra.gmra.mrb[0].mxu1 %v8908_v25  ;;  %v4290_v25 = vrot.slane %v4288_v35, 4 }
 0x254   : > { %10057 = vmatpush3.bf16.msra.mxu0 %v12619_v11  ;;  %10105 = vmatpush3.bf16.msra.mxu1 %v12621_v17  ;;  %v4215_v11 = vsel %vm12010_vm4, %v12802_v63, %v12780_v21  ;;  %v4257_v17 = vor.u32 %v4256_v56, %v4253_v41  ;;  %v4239_v21 = vsel %vm12010_vm4, %v4234_v16, %v12782_v40  ;;  %v12840_v63 = vrot.slane %v4270_v22, 5  ;;  %v11194_v40 = vld [vmem:[#allocation9 + $0x158] sm:$0xff]  }
 0x255   : > { %9980 = vmatprep.mubr.bf16.mxu0 %v8909_v8  ;;  %10028 = vmatprep.mubr.bf16.mxu1 %v8909_v8  ;;  %v4064_v8 = vld [vmem:[#allocation2 + $0x84] sm:$0xf]  ;;  %v4294_v41 = vshll.u32 %v12820_v54, 16  ;;  %v4281_v56 = vor.u32 %v4280_v47, %v4277_v55  ;;  %v4291_v62 = vor.u32 %v4290_v25, %v12822_v39  ;;  %v8912_v35 = vcombine.low %v4215_v11, %v4225_v18  ;;  %v12862_v25 = vld [vmem:[#allocation2 + $0xa0] sm:$0xf] }
 0x256   : > { %10058 = vmatprep.subr.bf16.mxu0 %v11190_v27  ;;  %10106 = vmatprep.subr.bf16.mxu1 %v11191_v3  ;;  %v4323_v5 = vshrl.u32 %v4064_v8, 16  ;;  %v4326_v44 = vshll.u32 %v4064_v8, 16  ;;  %v4315_v16 = vor.u32 %v4314_v29, %v12832_v42  ;;  %v8913_v59 = vcombine.low %v4239_v21, %v4249_v34  ;;  %v11198_v29 = vld [vmem:[#allocation9 + $0x168] sm:$0xff]  }
 0x257   : > { %v4292_v12 = vrot.slane %v4291_v62, 4  ;;  %v12860_v22 = vrot.slane %v4332_v61, 5  ;;  %v4347_v55 = vshrl.u32 %v4067_v15, 16  ;;  %v4350_v47 = vshll.u32 %v4067_v15, 16  ;;  %v11200_v15 = vld [vmem:[#allocation9 + $0x170] sm:$0xff]  }
 0x258   : > { %10059 = vmatpush3.bf16.msra.mxu0 %v11190_v27  ;;  %10107 = vmatpush3.bf16.msra.mxu1 %v11191_v3  ;;  %v12836_v27 = vrot.slane %v4257_v17, 4  ;;  %v12838_v3 = vrot.slane %v4267_v28, 4  ;;  %v4325_v11 = vrot.slane %v4323_v5, 4  ;;  %v4328_v17 = vrot.slane %v4326_v44, 5  ;;  %v4070_v28 = vld [vmem:[#allocation2 + $0x9c] sm:$0xf] }
 0x259   : > { %10060 = vmatprep.subr.bf16.mxu0 %v11192_v51  ;;  %10108 = vmatprep.subr.bf16.mxu1 %v11193_v19  ;;  %v4306_v18 = vrot.slane %v4305_v24, 4  ;;  %v4316_v21 = vrot.slane %v4315_v16, 4  ;;  %v4342_v8 = vshll.u32 %v12858_v23, 16  ;;  %v4349_v5 = vrot.slane %v4347_v55, 4 }
 0x25a   : > { %v4263_v2 = vsel %vm12010_vm4, %v12836_v27, %v12806_v0  ;;  %v4338_v0 = vrot.slane %v4336_v50, 4  ;;  %v11199_v27 = vld [vmem:[#allocation11 + $0x168] sm:$0xff]   ;;  %v4329_v32 = vor.u32 %v4328_v17, %v4325_v11  ;;  %v4352_v44 = vrot.slane %v4350_v47, 5 }
 0x25b   : > { %9981 = vmatmul.mubr.bf16.gmra.mrb[4].mxu0 %v8910_v30  ;;  %10029 = vmatmul.mubr.bf16.gmra.mrb[4].mxu1 %v8910_v30  ;;  %v4318_v30 = vshll.u32 %v12609_v52, 16  ;;  %v4282_v52 = vrot.slane %v4281_v56, 4  ;;  %v4384_v56 = vshrl.u32 %v12862_v25, 16  ;;  %v4311_v61 = vsel %vm12010_vm4, %v4306_v18, %v12832_v42  ;;  %v4073_v17 = vld [vmem:[#allocation2 + $0xa8] sm:$0xf] }
 0x25c   : > { %9984 = vmatprep.mubr.bf16.mxu0 %v12800_v33  ;;  %10032 = vmatprep.mubr.bf16.mxu1 %v12800_v33  ;;  %v4273_v33 = vsel %vm12010_vm4, %v12838_v3, %v12840_v63  ;;  %v4371_v3 = vshrl.u32 %v4070_v28, 16  ;;  %v4374_v63 = vshll.u32 %v4070_v28, 16  ;;  %v4339_v62 = vor.u32 %v4338_v0, %v12860_v22 }
 0x25d   : > { %10061 = vmatpush3.bf16.msra.mxu0 %v11192_v51  ;;  %10109 = vmatpush3.bf16.msra.mxu1 %v11193_v19  ;;  %v4296_v51 = vrot.slane %v4294_v41, 5  ;;  %v11196_v19 = vld [vmem:[#allocation9 + $0x160] sm:$0xff]   ;;  %v4320_v34 = vrot.slane %v4318_v30, 5  ;;  %v4380_v41 = vshll.u32 %v12862_v25, 16  ;;  %v4344_v50 = vrot.slane %v4342_v8, 5  ;;  %v11203_v8 = vld [vmem:[#allocation11 + $0x178] sm:$0xff]  }
 0x25e   : > { %10062 = vmatprep.subr.bf16.mxu0 %v11194_v40  ;;  %10110 = vmatprep.subr.bf16.mxu1 %v11195_v48  ;;  %v4362_v24 = vrot.slane %v4360_v46, 4  ;;  %v4373_v16 = vrot.slane %v4371_v3, 4  ;;  %v4376_v30 = vrot.slane %v4374_v63, 5  ;;  %v4386_v11 = vrot.slane %v4384_v56, 4 }
 0x25f   : > { %v12884_v42 = vrot.slane %v4380_v41, 5  ;;  %v4353_v28 = vor.u32 %v4352_v44, %v4349_v5  ;;  %v4366_v0 = vshll.u32 %v12648_v31, 16  ;;  %v4398_v46 = vshll.u32 %v4073_v17, 16 }
 0x260   : > { %v4377_v18 = vor.u32 %v4376_v30, %v4373_v16  ;;  %v4404_v31 = vshll.u32 %v12684_v58, 16  ;;  %v4428_v56 = vshll.u32 %v12724_v10, 16 }
 0x261   : > { %10063 = vmatpush3.bf16.msra.mxu0 %v11194_v40  ;;  %10111 = vmatpush3.bf16.msra.mxu1 %v11195_v48  ;;  %v4287_v40 = vsel %vm12010_vm4, %v4282_v52, %v12822_v39  ;;  %v4297_v48 = vsel %vm12010_vm4, %v4292_v12, %v4296_v51  ;;  %v4321_v39 = vsel %vm12010_vm4, %v4316_v21, %v4320_v34  ;;  %v12882_v12 = vld [vmem:[#allocation2 + $0xa4] sm:$0x1]  ;;  %v4076_v21 = vld [vmem:[#allocation2 + $0xb4] sm:$0xf]  ;;  %v4354_v63 = vrot.slane %v4353_v28, 4 }
 0x262   : > { %10064 = vmatprep.subr.bf16.mxu0 %v11196_v19  ;;  %10112 = vmatprep.subr.bf16.mxu1 %v11197_v7  ;;  %v8914_v51 = vcombine.low %v4263_v2, %v4273_v33  ;;  %v8915_v52 = vcombine.low %v4287_v40, %v4297_v48  ;;  %v8916_v55 = vcombine.low %v4311_v61, %v4321_v39  ;;  %v4390_v2 = vshll.u32 %v12882_v12, 16  ;;  %v11202_v34 = vld [vmem:[#allocation9 + $0x178] sm:$0xff]   ;;  %v12901_v61 = vld [vmem:[#allocation11 + $0x180] sm:$0xff]  }
 0x263   : > { %9985 = vmatmul.mubr.bf16.gmra.mrb[8].mxu0 %v8912_v35  ;;  %10033 = vmatmul.mubr.bf16.gmra.mrb[8].mxu1 %v8912_v35  ;;  %v12880_v35 = vrot.slane %v4356_v49, 5  ;;  %v4395_v33 = vshrl.u32 %v4073_v17, 16  ;;  %v4387_v49 = vor.u32 %v4386_v11, %v12884_v42  ;;  %v4368_v40 = vrot.slane %v4366_v0, 5 }
 0x264   : > { %9988 = vmatprep.mubr.bf16.mxu0 %v8913_v59  ;;  %10036 = vmatprep.mubr.bf16.mxu1 %v8913_v59  ;;  %v11201_v59 = vld [vmem:[#allocation11 + $0x170] sm:$0xff]   ;;  %v4419_v48 = vshrl.u32 %v4076_v21, 16  ;;  %v4422_v41 = vshll.u32 %v4076_v21, 16  ;;  %v4392_v5 = vrot.slane %v4390_v2, 5  ;;  %v4452_v2 = vshll.u32 %v12728_v9, 16 }
 0x265   : > { %10065 = vmatpush3.bf16.msra.mxu0 %v11196_v19  ;;  %10113 = vmatpush3.bf16.msra.mxu1 %v11197_v7  ;;  %v4330_v19 = vrot.slane %v4329_v32, 4  ;;  %v4340_v7 = vrot.slane %v4339_v62, 4  ;;  %v4363_v47 = vor.u32 %v4362_v24, %v12880_v35  ;;  %v4432_v32 = vshrl.u32 %v12724_v10, 16  ;;  %v4079_v10 = vld [vmem:[#allocation2 + $0xc0] sm:$0xf] }
 0x266   : > { %10066 = vmatprep.subr.bf16.mxu0 %v11198_v29  ;;  %10114 = vmatprep.subr.bf16.mxu1 %v11199_v27  ;;  %v4378_v62 = vrot.slane %v4377_v18, 4  ;;  %v4397_v44 = vrot.slane %v4395_v33, 4  ;;  %v4388_v39 = vrot.slane %v4387_v49, 4  ;;  %v4406_v24 = vrot.slane %v4404_v31, 5 }
 0x267   : > { %v4345_v3 = vsel %vm12010_vm4, %v4340_v7, %v4344_v50  ;;  %v4400_v50 = vrot.slane %v4398_v46, 5  ;;  %v4359_v11 = vsel %vm12010_vm4, %v4354_v63, %v12880_v35  ;;  %v4414_v35 = vshll.u32 %v12686_v6, 16 }
 0x268   : > { %v4393_v7 = vsel %vm12010_vm4, %v4388_v39, %v4392_v5  ;;  %v4446_v18 = vshll.u32 %v4079_v10, 16  ;;  %v4454_v6 = vrot.slane %v4452_v2, 5  ;;  %v5112_v5 = vrot.slane %v12585_v20, 5 }
 0x269   : > { %10067 = vmatpush3.bf16.msra.mxu0 %v11198_v29  ;;  %10115 = vmatpush3.bf16.msra.mxu1 %v11199_v27  ;;  %v4408_v29 = vshrl.u32 %v12684_v58, 16  ;;  %v4335_v27 = vsel %vm12010_vm4, %v4330_v19, %v12860_v22  ;;  %v4364_v58 = vrot.slane %v4363_v47, 4  ;;  %v12899_v22 = vld [vmem:[#allocation9 + $0x180] sm:$0xff]   ;;  %v4383_v19 = vsel %vm12010_vm4, %v4378_v62, %v12884_v42 }
 0x26a   : > { %10068 = vmatprep.subr.bf16.mxu0 %v11200_v15  ;;  %10116 = vmatprep.subr.bf16.mxu1 %v11201_v59  ;;  %v8917_v30 = vcombine.low %v4335_v27, %v4345_v3  ;;  %v4401_v28 = vor.u32 %v4400_v50, %v4397_v44  ;;  %v4443_v47 = vshrl.u32 %v4079_v10, 16  ;;  %v4456_v42 = vshrl.u32 %v12728_v9, 16  ;;  %v5046_v44 = vld [vmem:[#allocation2 + $0xc] sm:$0xe] }
 0x26b   : > { %9989 = vmatmul.mubr.bf16.gmra.mrb[12].mxu0 %v8914_v51  ;;  %10037 = vmatmul.mubr.bf16.gmra.mrb[12].mxu1 %v8914_v51  ;;  %v4410_v16 = vrot.slane %v4408_v29, 4  ;;  %v4430_v51 = vrot.slane %v4428_v56, 5  ;;  %v4369_v17 = vsel %vm12010_vm4, %v4364_v58, %v4368_v40  ;;  %v4416_v31 = vrot.slane %v4414_v35, 5 }
 0x26c   : > { %9992 = vmatprep.mubr.bf16.mxu0 %v8915_v52  ;;  %10040 = vmatprep.mubr.bf16.mxu1 %v8915_v52  ;;  %v4434_v52 = vrot.slane %v4432_v32, 4  ;;  %v4402_v49 = vrot.slane %v4401_v28, 4  ;;  %v4445_v29 = vrot.slane %v4443_v47, 4  ;;  %v4448_v27 = vrot.slane %v4446_v18, 5  ;;  %v13723_v47 = vld [vmem:[#allocation28_spill] sm:$0xff] }
 0x26d   : > { %10069 = vmatpush3.bf16.msra.mxu0 %v11200_v15  ;;  %10117 = vmatpush3.bf16.msra.mxu1 %v11201_v59  ;;  %v4421_v15 = vrot.slane %v4419_v48, 4  ;;  %v4424_v59 = vrot.slane %v4422_v41, 5  ;;  %v4411_v0 = vor.u32 %v4410_v16, %v4406_v24  ;;  %v4458_v3 = vrot.slane %v4456_v42, 4 }
 0x26e   : > { %10070 = vmatprep.subr.bf16.mxu0 %v11202_v34  ;;  %10118 = vmatprep.subr.bf16.mxu1 %v11203_v8  ;;  %v4435_v21 = vor.u32 %v4434_v52, %v4430_v51  ;;  %v4407_v9 = vsel %vm12010_vm4, %v4402_v49, %v4406_v24  ;;  %v4449_v41 = vor.u32 %v4448_v27, %v4445_v29  ;;  %v4462_v32 = vshll.u32 %v12730_v38, 16 }
 0x26f   : > { %v4425_v33 = vor.u32 %v4424_v59, %v4421_v15  ;;  %v4412_v46 = vrot.slane %v4411_v0, 4  ;;  %v4459_v56 = vor.u32 %v4458_v3, %v4454_v6  ;;  %v8939_v15 = vrot.slane %v5046_v44, 9  ;;  %v13726_v3 = vld [vmem:[#allocation33_spill] sm:$0xff]  ;;  %v11210_v44 = vld [vmem:[#allocation9 + $0x198] sm:$0xff]  }
 0x270   : > { %v4436_v40 = vrot.slane %v4435_v21, 4  ;;  %v4450_v24 = vrot.slane %v4449_v41, 4  ;;  %v5114_v59 = vrot.slane %v5112_v5, 4  ;;  %v5115_v52 = vrot.slane %v12599_v1, 5  ;;  %v11208_v41 = vld [vmem:[#allocation9 + $0x190] sm:$0xff]  }
 0x271   : > { %10071 = vmatpush3.bf16.msra.mxu0 %v11202_v34  ;;  %10119 = vmatpush3.bf16.msra.mxu1 %v11203_v8  ;;  %v4438_v34 = vshll.u32 %v12726_v60, 16  ;;  %v8919_v8 = vcombine.low %v4383_v19, %v4393_v7  ;;  %v4426_v63 = vrot.slane %v4425_v33, 4  ;;  %v4417_v60 = vsel %vm12010_vm4, %v4412_v46, %v4416_v31  ;;  %v5048_v7 = vld [vmem:[#allocation2 + $0x24] sm:$0xe]  ;;  %v13724_v33 = vld [vmem:[#allocation30_spill] sm:$0xff] }
 0x272   : > { %10152 = vmatprep.subr.bf16.mxu0 %v12899_v22  ;;  %10200 = vmatprep.subr.bf16.mxu1 %v12901_v61  ;;  %v8920_v39 = vcombine.low %v4407_v9, %v4417_v60  ;;  %v4460_v16 = vrot.slane %v4459_v56, 4  ;;  %v4455_v38 = vsel %vm12010_vm4, %v4450_v24, %v4454_v6  ;;  %v5113_v10 = vsel %vm12401_vm13, %v8939_v15, %v5112_v5  ;;  %v5050_v46 = vld [vmem:[#allocation2 + $0x3c] sm:$0xe]  ;;  %v11209_v56 = vld [vmem:[#allocation11 + $0x190] sm:$0xff]  }
 0x273   : > { %9993 = vmatmul.mubr.bf16.gmra.mrb[16].mxu0 %v8916_v55  ;;  %10041 = vmatmul.mubr.bf16.gmra.mrb[16].mxu1 %v8916_v55  ;;  %v8918_v55 = vcombine.low %v4359_v11, %v4369_v17  ;;  %v4440_v48 = vrot.slane %v4438_v34, 5  ;;  %v4431_v58 = vsel %vm12010_vm4, %v4426_v63, %v4430_v51  ;;  %v5119_v51 = vrot.slane %v12605_v13, 5  ;;  %v5047_v17 = vld [vmem:[#allocation2 + $0x18] sm:$0xe]  ;;  %v13725_v34 = vld [vmem:[#allocation31_spill] sm:$0xff]  ;;  %v11213_v15 = vld [vmem:[#allocation11 + $0x1a0] sm:$0xff]  }
 0x274   : > { %9996 = vmatprep.mubr.bf16.mxu0 %v8917_v30  ;;  %10044 = vmatprep.mubr.bf16.mxu1 %v8917_v30  ;;  %v4464_v30 = vrot.slane %v4462_v32, 5  ;;  %v5116_v11 = vsel %vm12401_vm13, %v5114_v59, %v5115_v52  ;;  %v5126_v1 = vrot.slane %v12623_v43, 5  ;;  %v8940_v0 = vrot.slane %v5047_v17, 9 }
 0x275   : > { %v4441_v62 = vsel %vm12010_vm4, %v4436_v40, %v4440_v48  ;;  %v8955_v28 = vcombine.low %v5113_v10, %v5116_v11  ;;  %v5121_v35 = vrot.slane %v5119_v51, 4  ;;  %v5122_v18 = vrot.slane %v13723_v47, 5  ;;  %v11206_v40 = vld [vmem:[#allocation9 + $0x188] sm:$0xff]  }
 0x276   : > { %v8921_v50 = vcombine.low %v4431_v58, %v4441_v62  ;;  %v4465_v20 = vsel %vm12010_vm4, %v4460_v16, %v4464_v30  ;;  %v8941_v2 = vrot.slane %v5048_v7, 9  ;;  %v5128_v42 = vrot.slane %v5126_v1, 4  ;;  %v11207_v48 = vld [vmem:[#allocation11 + $0x188] sm:$0xff]   ;;  %v5052_v58 = vld [vmem:[#allocation2 + $0x54] sm:$0xe]  ;;  %v11212_v30 = vld [vmem:[#allocation9 + $0x1a0] sm:$0xff]  }
 0x277   : > { %v8922_v19 = vcombine.low %v4455_v38, %v4465_v20  ;;  %v5129_v13 = vrot.slane %v13724_v33, 5  ;;  %v5120_v21 = vsel %vm12401_vm13, %v8940_v0, %v5119_v51  ;;  %v5123_v43 = vsel %vm12401_vm13, %v5121_v35, %v5122_v18  ;;  %v11214_v51 = vld [vmem:[#allocation9 + $0x1a8] sm:$0xff]   ;;  %v11217_v7 = vld [vmem:[#allocation11 + $0x1b0] sm:$0xff]   ;;  %v11218_v18 = vld [vmem:[#allocation9 + $0x1b8] sm:$0xff]  }
 0x278   : > { %v8956_v31 = vcombine.low %v5120_v21, %v5123_v43  ;;  %v8943_v27 = vrot.slane %v5050_v46, 9  ;;  %v5143_v63 = vrot.slane %v13726_v3, 5  ;;  %v5154_v32 = vrot.slane %v12738_v4, 5  ;;  %v11215_v10 = vld [vmem:[#allocation11 + $0x1a8] sm:$0xff]   ;;  %v11222_v21 = vld [vmem:[#allocation9 + $0x1c0] sm:$0xff]  }
 0x279   : > { %v5130_v49 = vsel %vm12401_vm13, %v5128_v42, %v5129_v13  ;;  %v5157_v5 = vrot.slane %v12791_v26, 5  ;;  %v5168_v16 = vrot.slane %v12798_v57, 5  ;;  %v5054_v26 = vld [vmem:[#allocation2 + $0x6c] sm:$0xe]  ;;  %v5171_v20 = vrot.slane %v12820_v54, 5  ;;  %v13729_v42 = vld [vmem:[#allocation27_spill] sm:$0xff] }
 0x27a   : > { %v5156_v62 = vrot.slane %v5154_v32, 4  ;;  %v8947_v52 = vrot.slane %v5054_v26, 9  ;;  %v13728_v11 = vld [vmem:[#allocation26_spill] sm:$0xff]  ;;  %v5182_v54 = vrot.slane %v12834_v45, 5  ;;  %v5185_v47 = vrot.slane %v12858_v23, 5  ;;  %v11223_v43 = vld [vmem:[#allocation11 + $0x1c0] sm:$0xff]  }
 0x27b   : > { %9997 = vmatmul.mubr.bf16.gmra.mrb[20].mxu0 %v8918_v55  ;;  %10045 = vmatmul.mubr.bf16.gmra.mrb[20].mxu1 %v8918_v55  ;;  %v5140_v55 = vrot.slane %v13725_v34, 5  ;;  %v5170_v38 = vrot.slane %v5168_v16, 4  ;;  %v5196_v23 = vrot.slane %v12862_v25, 5  ;;  %v5058_v13 = vld [vmem:[#allocation2 + $0x9c] sm:$0xe]  ;;  %v13730_v46 = vld [vmem:[#allocation29_spill] sm:$0xff] }
 0x27c   : > { %10000 = vmatprep.mubr.bf16.mxu0 %v8919_v8  ;;  %10048 = vmatprep.mubr.bf16.mxu1 %v8919_v8  ;;  %v5127_v8 = vsel %vm12401_vm13, %v8941_v2, %v5126_v1  ;;  %v5158_v24 = vsel %vm12401_vm13, %v5156_v62, %v5157_v5  ;;  %v5169_v57 = vsel %vm12401_vm13, %v8947_v52, %v5168_v16  ;;  %v5056_v1 = vld [vmem:[#allocation2 + $0x84] sm:$0xe]  ;;  %v5184_v35 = vrot.slane %v5182_v54, 4  ;;  %v11219_v2 = vld [vmem:[#allocation11 + $0x1b8] sm:$0xff]   ;;  %v13010_v52 = vld [vmem:[#allocation2 + $0x70] sm:$0xf] }
 0x27d   : > { %v8957_v29 = vcombine.low %v5127_v8, %v5130_v49  ;;  %v5142_v6 = vrot.slane %v5140_v55, 4  ;;  %v5141_v9 = vsel %vm12401_vm13, %v8943_v27, %v5140_v55  ;;  %v5172_v17 = vsel %vm12401_vm13, %v5170_v38, %v5171_v20  ;;  %v13731_v27 = vld [vmem:[#allocation32_spill] sm:$0xff]  ;;  %v11221_v3 = vld [vmem:[#allocation2 + $0x24] sm:$0xff]   ;;  %v13012_v38 = vld [vmem:[#allocation2 + $0x74] sm:$0x1] }
 0x27e   : > { %v8949_v0 = vrot.slane %v5056_v1, 9  ;;  %v5186_v33 = vsel %vm12401_vm13, %v5184_v35, %v5185_v47  ;;  %v8951_v55 = vrot.slane %v5058_v13, 9  ;;  %v5198_v8 = vrot.slane %v5196_v23, 4  ;;  %v11232_v16 = vld [vmem:[#allocation2 + $0x60] sm:$0xff]   ;;  %v6447_v20 = vld [vmem:[#allocation2 + $0x18] sm:$0xf] }
 0x27f   : > { %v5144_v60 = vsel %vm12401_vm13, %v5142_v6, %v5143_v63  ;;  %v5199_v49 = vrot.slane %v12882_v12, 5  ;;  %v13732_v12 = vld [vmem:[#allocation34_spill] sm:$0xff]  ;;  %v11220_v6 = vld [vmem:[#allocation2 + $0x18] sm:$0xff]   ;;  %v11224_v63 = vld [vmem:[#allocation2 + $0x30] sm:$0xff]  }
 0x280   : > { %v5183_v45 = vsel %vm12401_vm13, %v8949_v0, %v5182_v54  ;;  %v5197_v25 = vsel %vm12401_vm13, %v8951_v55, %v5196_v23  ;;  %v11246_v54 = vld [vmem:[#allocation9 + $0x1f0] sm:$0xff]   ;;  %v6499_v0 = vshll.u32 %v6447_v20, 16  ;;  %v6450_v35 = vld [vmem:[#allocation2 + $0x24] sm:$0xf]  ;;  %v11250_v23 = vld [vmem:[#allocation9 + $0x1f8] sm:$0xff]  }
 0x281   : > { %v8965_v34 = vcombine.low %v5183_v45, %v5186_v33  ;;  %v11247_v1 = vld [vmem:[#allocation11 + $0x1f0] sm:$0xff]   ;;  %v11251_v13 = vld [vmem:[#allocation11 + $0x1f8] sm:$0xff]  }
 0x283   : > { %10001 = vmatmul.mubr.bf16.gmra.mrb[24].mxu0 %v8920_v39  ;;  %10049 = vmatmul.mubr.bf16.gmra.mrb[24].mxu1 %v8920_v39  ;;  %v11211_v39 = vld [vmem:[#allocation11 + $0x198] sm:$0xff]  }
 0x284   : > { %10004 = vmatprep.mubr.bf16.mxu0 %v8921_v50  ;;  %10052 = vmatprep.mubr.bf16.mxu1 %v8921_v50  ;;  %v13727_v50 = vld [vmem:[#allocation25_spill] sm:$0xff] }
 0x28b   : > { %10005 = vmatmul.mubr.bf16.gmra.mrb[28].mxu0 %v8922_v19  ;;  %10053 = vmatmul.mubr.bf16.gmra.mrb[28].mxu1 %v8922_v19  ;;  %v11216_v19 = vld [vmem:[#allocation9 + $0x1b0] sm:$0xff]  }
 0x28c   : > { %10072 = vmatprep.mubr.bf16.mxu0 %v8955_v28  ;;  %10120 = vmatprep.mubr.bf16.mxu1 %v8955_v28  ;;  %v8963_v28 = vcombine.low %v5169_v57, %v5172_v17  ;;  %v13016_v57 = vld [vmem:[#allocation2 + $0x1c] sm:$0xf] }
 0x293   : > { %10073 = vmatmul.mubr.bf16.vlgmr.msra.gmra.mrb[0].mxu0 %v8956_v31  ;;  %10121 = vmatmul.mubr.bf16.vlgmr.msra.gmra.mrb[0].mxu1 %v8956_v31  ;;  %v5200_v31 = vsel %vm12401_vm13, %v5198_v8, %v5199_v49  ;;  %v6501_v8 = vrot.slane %v6499_v0, 5  ;;  %v13028_v49 = vld [vmem:[#allocation2 + $0x88] sm:$0xf] }
 0x294   : > { %10153 = vmatpush3.bf16.msra.mxu0 %v12899_v22  ;;  %10201 = vmatpush3.bf16.msra.mxu1 %v12901_v61  ;;  %v8959_v22 = vcombine.low %v5141_v9, %v5144_v60  ;;  %v8945_v61 = vrot.slane %v5052_v58, 9  ;;  %v11230_v9 = vld [vmem:[#allocation9 + $0x1d0] sm:$0xff]   ;;  %v13000_v58 = vld [vmem:[#allocation2 + $0x5c] sm:$0x1] }
 0x295   : > { %10076 = vmatprep.mubr.bf16.mxu0 %v8957_v29  ;;  %10124 = vmatprep.mubr.bf16.mxu1 %v8957_v29  ;;  %v8967_v29 = vcombine.low %v5197_v25, %v5200_v31  ;;  %v11231_v60 = vld [vmem:[#allocation11 + $0x1d0] sm:$0xff]   ;;  %v7563_v62 = vrot.slane %v13000_v58, 5 }
 0x296   : > { %10154 = vmatprep.subr.bf16.mxu0 %v11206_v40  ;;  %10202 = vmatprep.subr.bf16.mxu1 %v11207_v48  ;;  %v5155_v4 = vsel %vm12401_vm13, %v8945_v61, %v5154_v32  ;;  %v12998_v32 = vld [vmem:[#allocation2 + $0x58] sm:$0xf] }
 0x297   : > { %v8961_v59 = vcombine.low %v5155_v4, %v5158_v24  ;;  %v7560_v61 = vrot.slane %v12998_v32, 5  ;;  %v11229_v4 = vld [vmem:[#allocation2 + $0x54] sm:$0xff]  }
 0x298   : > { %10155 = vmatpush3.bf16.msra.mxu0 %v11206_v40  ;;  %10203 = vmatpush3.bf16.msra.mxu1 %v11207_v48  ;;  %v11226_v40 = vld [vmem:[#allocation9 + $0x1c8] sm:$0xff]  }
 0x299   : > { %10156 = vmatprep.subr.bf16.mxu0 %v11208_v41  ;;  %10204 = vmatprep.subr.bf16.mxu1 %v11209_v56  ;;  %v11227_v48 = vld [vmem:[#allocation11 + $0x1c8] sm:$0xff]  }
 0x29b   : > { %10077 = vmatmul.mubr.bf16.gmra.mrb[4].mxu0 %v13727_v50  ;;  %10125 = vmatmul.mubr.bf16.gmra.mrb[4].mxu1 %v13727_v50  ;;  %v7562_v50 = vrot.slane %v7560_v61, 4 }
 0x29c   : > { %10080 = vmatprep.mubr.bf16.mxu0 %v8959_v22  ;;  %10128 = vmatprep.mubr.bf16.mxu1 %v8959_v22  ;;  %v7464_v22 = vld [vmem:[#allocation2 + $0x54] sm:$0xe] }
 0x29d   : > { %10157 = vmatpush3.bf16.msra.mxu0 %v11208_v41  ;;  %10205 = vmatpush3.bf16.msra.mxu1 %v11209_v56  ;;  %v11234_v41 = vld [vmem:[#allocation9 + $0x1d8] sm:$0xff]   ;;  %v9056_v5 = vrot.slane %v7464_v22, 9  ;;  %v7564_v26 = vsel %vm12401_vm13, %v7562_v50, %v7563_v62  ;;  %v6453_v22 = vld [vmem:[#allocation2 + $0x30] sm:$0xf] }
 0x29e   : > { %10158 = vmatprep.subr.bf16.mxu0 %v11210_v44  ;;  %10206 = vmatprep.subr.bf16.mxu1 %v11211_v39  ;;  %v11235_v56 = vld [vmem:[#allocation11 + $0x1d8] sm:$0xff]  }
 0x29f   : > { %v7561_v24 = vsel %vm12401_vm13, %v9056_v5, %v7560_v61  ;;  %v13046_v61 = vld [vmem:[#allocation2 + $0x34] sm:$0xf] }
 0x2a0   : > { %v11240_v5 = vld [vmem:[#allocation2 + $0x90] sm:$0xff]  }
 0x2a1   : > { %10159 = vmatpush3.bf16.msra.mxu0 %v11210_v44  ;;  %10207 = vmatpush3.bf16.msra.mxu1 %v11211_v39  ;;  %v11238_v44 = vld [vmem:[#allocation9 + $0x1e0] sm:$0xff]  }
 0x2a2   : > { %10160 = vmatprep.subr.bf16.mxu0 %v11212_v30  ;;  %10208 = vmatprep.subr.bf16.mxu1 %v11213_v15  ;;  %v11239_v39 = vld [vmem:[#allocation11 + $0x1e0] sm:$0xff]  }
 0x2a3   : > { %10081 = vmatmul.mubr.bf16.gmra.mrb[8].mxu0 %v13728_v11  ;;  %10129 = vmatmul.mubr.bf16.gmra.mrb[8].mxu1 %v13728_v11  ;;  %v7577_v11 = vrot.slane %v13012_v38, 5 }
 0x2a4   : > { %10084 = vmatprep.mubr.bf16.mxu0 %v8961_v59  ;;  %10132 = vmatprep.mubr.bf16.mxu1 %v8961_v59  ;;  %v11243_v59 = vld [vmem:[#allocation11 + $0x1e8] sm:$0xff]  }
 0x2a5   : > { %10161 = vmatpush3.bf16.msra.mxu0 %v11212_v30  ;;  %10209 = vmatpush3.bf16.msra.mxu1 %v11213_v15  ;;  %v13008_v30 = vcombine.low %v7561_v24, %v7564_v26  ;;  %v11242_v15 = vld [vmem:[#allocation9 + $0x1e8] sm:$0xff]  }
 0x2a6   : > { %10162 = vmatprep.subr.bf16.mxu0 %v11214_v51  ;;  %10210 = vmatprep.subr.bf16.mxu1 %v11215_v10 }
 0x2a7   : > { %13733 = vst [vmem:[#allocation28_spill] sm:$0xff] %v13008_v30 }
 0x2a9   : > { %10163 = vmatpush3.bf16.msra.mxu0 %v11214_v51  ;;  %10211 = vmatpush3.bf16.msra.mxu1 %v11215_v10  ;;  %v7466_v51 = vld [vmem:[#allocation2 + $0x6c] sm:$0xe]  ;;  %v7574_v10 = vrot.slane %v13010_v52, 5 }
 0x2aa   : > { %10164 = vmatprep.subr.bf16.mxu0 %v11216_v19  ;;  %10212 = vmatprep.subr.bf16.mxu1 %v11217_v7  ;;  %v9058_v17 = vrot.slane %v7466_v51, 9  ;;  %v6544_v51 = vshrl.u32 %v6453_v22, 16 }
 0x2ab   : > { %10085 = vmatmul.mubr.bf16.gmra.mrb[12].mxu0 %v13729_v42  ;;  %10133 = vmatmul.mubr.bf16.gmra.mrb[12].mxu1 %v13729_v42  ;;  %v6509_v42 = vshrl.u32 %v13016_v57, 16 }
 0x2ac   : > { %10088 = vmatprep.mubr.bf16.mxu0 %v8963_v28  ;;  %10136 = vmatprep.mubr.bf16.mxu1 %v8963_v28  ;;  %v6496_v28 = vshrl.u32 %v6447_v20, 16  ;;  %v7575_v47 = vsel %vm12401_vm13, %v9058_v17, %v7574_v10  ;;  %v6557_v17 = vshrl.u32 %v13046_v61, 16 }
 0x2ad   : > { %10165 = vmatpush3.bf16.msra.mxu0 %v11216_v19  ;;  %10213 = vmatpush3.bf16.msra.mxu1 %v11217_v7  ;;  %v7576_v19 = vrot.slane %v7574_v10, 4  ;;  %v11233_v7 = vld [vmem:[#allocation2 + $0x6c] sm:$0xff]   ;;  %v6511_v31 = vrot.slane %v6509_v42, 4  ;;  %v6547_v10 = vshll.u32 %v6453_v22, 16 }
 0x2ae   : > { %10166 = vmatprep.subr.bf16.mxu0 %v11218_v18  ;;  %10214 = vmatprep.subr.bf16.mxu1 %v11219_v2  ;;  %v6498_v55 = vrot.slane %v6496_v28, 4  ;;  %v13069_v28 = vld [vmem:[#allocation2 + $0xa4] sm:$0x1] }
 0x2af   : > { %v7578_v45 = vsel %vm12401_vm13, %v7576_v19, %v7577_v11  ;;  %v6553_v11 = vshll.u32 %v13046_v61, 16 }
 0x2b0   : > { %v13024_v33 = vcombine.low %v7575_v47, %v7578_v45  ;;  %v7470_v47 = vld [vmem:[#allocation2 + $0x9c] sm:$0xe] }
 0x2b1   : > { %10167 = vmatpush3.bf16.msra.mxu0 %v11218_v18  ;;  %10215 = vmatpush3.bf16.msra.mxu1 %v11219_v2  ;;  %v11236_v18 = vld [vmem:[#allocation2 + $0x78] sm:$0xff]   ;;  %v6505_v2 = vshll.u32 %v13016_v57, 16 }
 0x2b2   : > { %10248 = vmatprep.subr.bf16.mxu0 %v11222_v21  ;;  %10296 = vmatprep.subr.bf16.mxu1 %v11223_v43  ;;  %13734 = vst [vmem:[#allocation30_spill] sm:$0xff] %v13024_v33  ;;  %v13165_v33 = vld [vmem:[#allocation2 + $0x64] sm:$0xf] }
 0x2b3   : > { %10089 = vmatmul.mubr.bf16.gmra.mrb[16].mxu0 %v13730_v46  ;;  %10137 = vmatmul.mubr.bf16.gmra.mrb[16].mxu1 %v13730_v46  ;;  %v13030_v46 = vld [vmem:[#allocation2 + $0x8c] sm:$0x1]  ;;  %v13032_v25 = vrot.slane %v6505_v2, 5  ;;  %v7605_v2 = vrot.slane %v13069_v28, 5 }
 0x2b4   : > { %10092 = vmatprep.mubr.bf16.mxu0 %v8965_v34  ;;  %10140 = vmatprep.mubr.bf16.mxu1 %v8965_v34  ;;  %v6523_v34 = vshll.u32 %v6450_v35, 16 }
 0x2bb   : > { %10093 = vmatmul.mubr.bf16.gmra.mrb[20].mxu0 %v13731_v27  ;;  %10141 = vmatmul.mubr.bf16.gmra.mrb[20].mxu1 %v13731_v27  ;;  %v7588_v27 = vrot.slane %v13028_v49, 5 }
 0x2bc   : > { %10096 = vmatprep.mubr.bf16.mxu0 %v8967_v29  ;;  %10144 = vmatprep.mubr.bf16.mxu1 %v8967_v29  ;;  %v7468_v29 = vld [vmem:[#allocation2 + $0x84] sm:$0xe] }
 0x2c3   : > { %10097 = vmatmul.mubr.bf16.gmra.mrb[24].mxu0 %v13732_v12  ;;  %10145 = vmatmul.mubr.bf16.gmra.mrb[24].mxu1 %v13732_v12  ;;  %v7591_v12 = vrot.slane %v13030_v46, 5 }
 0x2c4   : > { %10100 = vmatprep.mubr.bf16.mxu0 %v12750_v14  ;;  %10148 = vmatprep.mubr.bf16.mxu1 %v12750_v14  ;;  %v11225_v14 = vld [vmem:[#allocation2 + $0x3c] sm:$0xff]  }
 0x2cb   : > { %10101 = vmatmul.mubr.bf16.gmra.mrb[28].mxu0 %v12754_v37  ;;  %10149 = vmatmul.mubr.bf16.gmra.mrb[28].mxu1 %v12754_v37  ;;  %v11228_v37 = vld [vmem:[#allocation2 + $0x48] sm:$0xff]  }
 0x2cc   : > { %10168 = vmatprep.mubr.bf16.mxu0 %v11220_v6  ;;  %10216 = vmatprep.mubr.bf16.mxu1 %v11220_v6  ;;  %v11237_v6 = vld [vmem:[#allocation2 + $0x84] sm:$0xff]  }
 0x2d3   : > { %10169 = vmatmul.mubr.bf16.vlgmr.msra.gmra.mrb[0].mxu0 %v11221_v3  ;;  %10217 = vmatmul.mubr.bf16.vlgmr.msra.gmra.mrb[0].mxu1 %v11221_v3  ;;  %v13036_v3 = vld [vmem:[#allocation2 + $0x20] sm:$0x1] }
 0x2d4   : > { %10249 = vmatpush3.bf16.msra.mxu0 %v11222_v21  ;;  %10297 = vmatpush3.bf16.msra.mxu1 %v11223_v43  ;;  %v13026_v21 = vld [vmem:[#allocation2 + $0x28] sm:$0xf]  ;;  %v6520_v43 = vshrl.u32 %v6450_v35, 16  ;;  %v6515_v50 = vshll.u32 %v13036_v3, 16 }
 0x2d5   : > { %10172 = vmatprep.mubr.bf16.mxu0 %v11224_v63  ;;  %10220 = vmatprep.mubr.bf16.mxu1 %v11224_v63  ;;  %v6529_v63 = vshll.u32 %v13026_v21, 16 }
 0x2d6   : > { %10250 = vmatprep.subr.bf16.mxu0 %v11226_v40  ;;  %10298 = vmatprep.subr.bf16.mxu1 %v11227_v48 }
 0x2d8   : > { %10251 = vmatpush3.bf16.msra.mxu0 %v11226_v40  ;;  %10299 = vmatpush3.bf16.msra.mxu1 %v11227_v48  ;;  %v6533_v40 = vshrl.u32 %v13026_v21, 16  ;;  %v9060_v48 = vrot.slane %v7468_v29, 9  ;;  %v13083_v29 = vld [vmem:[#allocation2 + $0x38] sm:$0x1] }
 0x2d9   : > { %10252 = vmatprep.subr.bf16.mxu0 %v11230_v9  ;;  %10300 = vmatprep.subr.bf16.mxu1 %v11231_v60 }
 0x2da   : > { %v7589_v62 = vsel %vm12401_vm13, %v9060_v48, %v7588_v27  ;;  %v13056_v26 = vrot.slane %v6533_v40, 4  ;;  %v11244_v40 = vld [vmem:[#allocation2 + $0xa8] sm:$0xff]   ;;  %v13087_v48 = vld [vmem:[#allocation2 + $0x44] sm:$0x1] }
 0x2db   : > { %10173 = vmatmul.mubr.bf16.gmra.mrb[4].mxu0 %v11225_v14  ;;  %10221 = vmatmul.mubr.bf16.gmra.mrb[4].mxu1 %v11225_v14  ;;  %v13044_v14 = vld [vmem:[#allocation11 + $0x200] sm:$0xff]   ;;  %13737 = vst [vmem:[#allocation25_spill] sm:$0xff] %v13087_v48 }
 0x2dc   : > { %10176 = vmatprep.mubr.bf16.mxu0 %v11228_v37  ;;  %10224 = vmatprep.mubr.bf16.mxu1 %v11228_v37  ;;  %v7590_v37 = vrot.slane %v7588_v27, 4  ;;  %v6559_v27 = vrot.slane %v6557_v17, 4  ;;  %v6587_v17 = vshll.u32 %v13087_v48, 16  ;;  %v6629_v48 = vshrl.u32 %v12998_v32, 16 }
 0x2dd   : > { %10253 = vmatpush3.bf16.msra.mxu0 %v11230_v9  ;;  %10301 = vmatpush3.bf16.msra.mxu1 %v11231_v60  ;;  %v13040_v9 = vld [vmem:[#allocation2 + $0x2c] sm:$0x1]  ;;  %v13042_v60 = vld [vmem:[#allocation9 + $0x200] sm:$0xff]  }
 0x2de   : > { %10254 = vmatprep.subr.bf16.mxu0 %v11234_v41  ;;  %10302 = vmatprep.subr.bf16.mxu1 %v11235_v56  ;;  %v7592_v24 = vsel %vm12401_vm13, %v7590_v37, %v7591_v12 }
 0x2df   : > { %v13061_v20 = vcombine.low %v7589_v62, %v7592_v24  ;;  %v6563_v24 = vshll.u32 %v13083_v29, 16 }
 0x2e1   : > { %10255 = vmatpush3.bf16.msra.mxu0 %v11234_v41  ;;  %10303 = vmatpush3.bf16.msra.mxu1 %v11235_v56  ;;  %v6522_v41 = vrot.slane %v6520_v43, 4  ;;  %v6525_v56 = vrot.slane %v6523_v34, 5  ;;  %13736 = vst [vmem:[#allocation33_spill] sm:$0xff] %v13061_v20  ;;  %v6546_v43 = vrot.slane %v6544_v51, 4  ;;  %v6549_v34 = vrot.slane %v6547_v10, 5 }
 0x2e2   : > { %10256 = vmatprep.subr.bf16.mxu0 %v11238_v44  ;;  %10304 = vmatprep.subr.bf16.mxu1 %v11239_v39  ;;  %v13106_v51 = vld [vmem:[#allocation2 + $0x4c] sm:$0xf]  ;;  %v6625_v20 = vshll.u32 %v12998_v32, 16 }
 0x2e3   : > { %10177 = vmatmul.mubr.bf16.gmra.mrb[8].mxu0 %v11229_v4  ;;  %10225 = vmatmul.mubr.bf16.gmra.mrb[8].mxu1 %v11229_v4  ;;  %v6456_v4 = vld [vmem:[#allocation2 + $0x3c] sm:$0xf]  ;;  %13739 = vst [vmem:[#allocation27_spill] sm:$0xff] %v13106_v51 }
 0x2e4   : > { %10180 = vmatprep.mubr.bf16.mxu0 %v11232_v16  ;;  %10228 = vmatprep.mubr.bf16.mxu1 %v11232_v16  ;;  %v13054_v16 = vrot.slane %v6529_v63, 5  ;;  %v6571_v19 = vshll.u32 %v6456_v4, 16 }
 0x2e5   : > { %10257 = vmatpush3.bf16.msra.mxu0 %v11238_v44  ;;  %10305 = vmatpush3.bf16.msra.mxu1 %v11239_v39  ;;  %v6502_v44 = vor.u32 %v6501_v8, %v6498_v55  ;;  %v6512_v39 = vor.u32 %v6511_v31, %v13032_v25  ;;  %v13081_v55 = vrot.slane %v6553_v11, 5  ;;  %v11241_v31 = vld [vmem:[#allocation2 + $0x9c] sm:$0xff]  }
 0x2e6   : > { %10258 = vmatprep.subr.bf16.mxu0 %v11242_v15  ;;  %10306 = vmatprep.subr.bf16.mxu1 %v11243_v59  ;;  %v6536_v62 = vor.u32 %v13056_v26, %v13054_v16 }
 0x2e7   : > { %v13075_v42 = vrot.slane %v6502_v44, 4  ;;  %v13077_v45 = vrot.slane %v6512_v39, 4  ;;  %v6560_v10 = vor.u32 %v6559_v27, %v13081_v55 }
 0x2e9   : > { %10259 = vmatpush3.bf16.msra.mxu0 %v11242_v15  ;;  %10307 = vmatpush3.bf16.msra.mxu1 %v11243_v59  ;;  %v6539_v15 = vshll.u32 %v13040_v9, 16  ;;  %v13059_v59 = vld [vmem:[#allocation2 + $0x40] sm:$0xf]  ;;  %v6508_v39 = vsel %vm12010_vm4, %v13075_v42, %v13032_v25  ;;  %v13114_v25 = vld [vmem:[#allocation2 + $0xb8] sm:$0xf] }
 0x2ea   : > { %10260 = vmatprep.subr.bf16.mxu0 %v11246_v54  ;;  %10308 = vmatprep.subr.bf16.mxu1 %v11247_v1  ;;  %13735 = vst [vmem:[#allocation31_spill] sm:$0xff] %v13059_v59  ;;  %v6577_v0 = vshll.u32 %v13059_v59, 16  ;;  %v6581_v35 = vshrl.u32 %v13059_v59, 16  ;;  %v6462_v42 = vld [vmem:[#allocation2 + $0x54] sm:$0xf] }
 0x2eb   : > { %10181 = vmatmul.mubr.bf16.gmra.mrb[12].mxu0 %v11233_v7  ;;  %10229 = vmatmul.mubr.bf16.gmra.mrb[12].mxu1 %v11233_v7  ;;  %v13067_v7 = vld [vmem:[#allocation2 + $0xa0] sm:$0xf] }
 0x2ec   : > { %10184 = vmatprep.mubr.bf16.mxu0 %v11236_v18  ;;  %10232 = vmatprep.mubr.bf16.mxu1 %v11236_v18  ;;  %v7602_v18 = vrot.slane %v13067_v7, 5  ;;  %v13089_v37 = vrot.slane %v6577_v0, 5  ;;  %v7616_v0 = vrot.slane %v13114_v25, 5 }
 0x2ed   : > { %10261 = vmatpush3.bf16.msra.mxu0 %v11246_v54  ;;  %10309 = vmatpush3.bf16.msra.mxu1 %v11247_v1  ;;  %v6526_v54 = vor.u32 %v6525_v56, %v6522_v41  ;;  %v6568_v1 = vshrl.u32 %v6456_v4, 16  ;;  %v6583_v41 = vrot.slane %v6581_v35, 4  ;;  %v6550_v4 = vor.u32 %v6549_v34, %v6546_v43 }
 0x2ee   : > { %10262 = vmatprep.subr.bf16.mxu0 %v11250_v23  ;;  %10310 = vmatprep.subr.bf16.mxu1 %v11251_v13  ;;  %v7604_v8 = vrot.slane %v7602_v18, 4  ;;  %v13127_v43 = vrot.slane %v6563_v24, 5  ;;  %v7618_v34 = vrot.slane %v7616_v0, 4 }
 0x2ef   : > { %v6570_v12 = vrot.slane %v6568_v1, 4  ;;  %v13093_v22 = vrot.slane %v6526_v54, 4  ;;  %v6584_v54 = vor.u32 %v6583_v41, %v13089_v37 }
 0x2f0   : > { %v7606_v56 = vsel %vm12401_vm13, %v7604_v8, %v7605_v2  ;;  %v6605_v2 = vshrl.u32 %v13106_v51, 16  ;;  %v11245_v8 = vld [vmem:[#allocation2 + $0xb4] sm:$0xff]  }
 0x2f1   : > { %10263 = vmatpush3.bf16.msra.mxu0 %v11250_v23  ;;  %10311 = vmatpush3.bf16.msra.mxu1 %v11251_v13  ;;  %v13079_v23 = vrot.slane %v6515_v50, 5  ;;  %v9062_v13 = vrot.slane %v7470_v47, 9  ;;  %v13103_v50 = vrot.slane %v6539_v15, 5  ;;  %v13116_v15 = vld [vmem:[#allocation2 + $0xbc] sm:$0x1] }
 0x2f2   : > { %10344 = vmatprep.subr.bf16.mxu0 %v13042_v60  ;;  %10392 = vmatprep.subr.bf16.mxu1 %v13044_v14  ;;  %v7619_v35 = vrot.slane %v13116_v15, 5 }
 0x2f3   : > { %10185 = vmatmul.mubr.bf16.gmra.mrb[16].mxu0 %v11237_v6  ;;  %10233 = vmatmul.mubr.bf16.gmra.mrb[16].mxu1 %v11237_v6  ;;  %v6573_v6 = vrot.slane %v6571_v19, 5  ;;  %v7603_v63 = vsel %vm12401_vm13, %v9062_v13, %v7602_v18  ;;  %v6518_v26 = vsel %vm12010_vm4, %v13077_v45, %v13079_v23  ;;  %v7472_v19 = vld [vmem:[#allocation2 + $0xb4] sm:$0xe]  ;;  %v6601_v18 = vshll.u32 %v13106_v51, 16 }
 0x2f4   : > { %10188 = vmatprep.mubr.bf16.mxu0 %v11240_v5  ;;  %10236 = vmatprep.mubr.bf16.mxu1 %v11240_v5  ;;  %v6459_v5 = vld [vmem:[#allocation2 + $0x48] sm:$0xf]  ;;  %v13097_v44 = vcombine.low %v7603_v63, %v7606_v56  ;;  %v9064_v45 = vrot.slane %v7472_v19, 9  ;;  %v13123_v23 = vrot.slane %v6536_v62, 4  ;;  %v13125_v13 = vrot.slane %v6550_v4, 4  ;;  %v11248_v63 = vld [vmem:[#allocation2 + $0xc0] sm:$0xff]  }
 0x2f5   : > { %v6574_v11 = vor.u32 %v6573_v6, %v6570_v12  ;;  %v6592_v1 = vshrl.u32 %v6459_v5, 16  ;;  %v6595_v47 = vshll.u32 %v6459_v5, 16  ;;  %v13133_v12 = vrot.slane %v6587_v17, 5  ;;  %v13141_v5 = vld [vmem:[#allocation2 + $0x50] sm:$0x1] }
 0x2f6   : > { %13738 = vst [vmem:[#allocation26_spill] sm:$0xff] %v13097_v44  ;;  %v7617_v6 = vsel %vm12401_vm13, %v9064_v45, %v7616_v0  ;;  %v6616_v56 = vshrl.u32 %v6462_v42, 16  ;;  %v7620_v62 = vsel %vm12401_vm13, %v7618_v34, %v7619_v35  ;;  %13740 = vst [vmem:[#allocation29_spill] sm:$0xff] %v13141_v5  ;;  %v13143_v24 = vrot.slane %v6601_v18, 5  ;;  %v13147_v17 = vld [vmem:[#allocation2 + $0xc4] sm:$0xf] }
 0x2f7   : > { %v13131_v27 = vrot.slane %v6574_v11, 4  ;;  %v6594_v41 = vrot.slane %v6592_v1, 4  ;;  %v6597_v4 = vrot.slane %v6595_v47, 5  ;;  %v13145_v11 = vcombine.low %v7617_v6, %v7620_v62  ;;  %v13149_v19 = vld [vmem:[#allocation2 + $0xc8] sm:$0x1] }
 0x2f8   : > { %v13151_v0 = vld [vmem:[#allocation2 + $0xd0] sm:$0xf]  ;;  %v6532_v1 = vsel %vm12010_vm4, %v13093_v22, %v13054_v16  ;;  %v13157_v35 = vld [vmem:[#allocation2 + $0xd4] sm:$0x1]  ;;  %v7473_v47 = vld [vmem:[#allocation2 + $0xc0] sm:$0xe]  ;;  %v6542_v32 = vsel %vm12010_vm4, %v13123_v23, %v13103_v50 }
 0x2f9   : > { %13741 = vst [vmem:[#allocation32_spill] sm:$0xff] %v13145_v11  ;;  %v7623_v18 = vrot.slane %v13147_v17, 5  ;;  %v6611_v45 = vshll.u32 %v13141_v5, 16  ;;  %v9065_v34 = vrot.slane %v7473_v47, 9  ;;  %v7474_v6 = vld [vmem:[#allocation2 + $0xcc] sm:$0xe]  ;;  %v6598_v44 = vor.u32 %v6597_v4, %v6594_v41 }
 0x2fa   : > { %v6619_v62 = vshll.u32 %v6462_v42, 16  ;;  %v6465_v16 = vld [vmem:[#allocation2 + $0x60] sm:$0xf]  ;;  %v9066_v11 = vrot.slane %v7474_v6, 9  ;;  %v11249_v47 = vld [vmem:[#allocation2 + $0xcc] sm:$0xff]  }
 0x2fb   : > { %10189 = vmatmul.mubr.bf16.gmra.mrb[20].mxu0 %v11241_v31  ;;  %10237 = vmatmul.mubr.bf16.gmra.mrb[20].mxu1 %v11241_v31  ;;  %v13129_v31 = vrot.slane %v6560_v10, 4  ;;  %v6607_v10 = vrot.slane %v6605_v2, 4  ;;  %v7626_v2 = vrot.slane %v13149_v19, 5  ;;  %v7625_v22 = vrot.slane %v7623_v18, 4 }
 0x2fc   : > { %10192 = vmatprep.mubr.bf16.mxu0 %v11244_v40  ;;  %10240 = vmatprep.mubr.bf16.mxu1 %v11244_v40  ;;  %v13137_v40 = vrot.slane %v6584_v54, 4  ;;  %v9019_v54 = vcombine.low %v6508_v39, %v6518_v26  ;;  %v7630_v39 = vrot.slane %v13151_v0, 5  ;;  %v7633_v26 = vrot.slane %v13157_v35, 5 }
 0x2fd   : > { %v6608_v5 = vor.u32 %v6607_v10, %v13143_v24  ;;  %v7627_v42 = vsel %vm12401_vm13, %v7625_v22, %v7626_v2  ;;  %v6640_v41 = vshrl.u32 %v6465_v16, 16  ;;  %v6643_v4 = vshll.u32 %v6465_v16, 16  ;;  %v6468_v2 = vld [vmem:[#allocation2 + $0x6c] sm:$0xf] }
 0x2fe   : > { %v7632_v30 = vrot.slane %v7630_v39, 4  ;;  %v6653_v10 = vshrl.u32 %v13165_v33, 16  ;;  %v6590_v50 = vsel %vm12010_vm4, %v13137_v40, %v13133_v12  ;;  %v13203_v23 = vrot.slane %v6598_v44, 4 }
 0x2ff   : > { %v9020_v12 = vcombine.low %v6532_v1, %v6542_v32  ;;  %v6664_v40 = vshrl.u32 %v6468_v2, 16 }
 0x300   : > { %v7634_v51 = vsel %vm12401_vm13, %v7632_v30, %v7633_v26  ;;  %v6566_v30 = vsel %vm12010_vm4, %v13129_v31, %v13127_v43  ;;  %v6631_v43 = vrot.slane %v6629_v48, 4  ;;  %v6635_v31 = vshll.u32 %v13000_v58, 16  ;;  %v6471_v58 = vld [vmem:[#allocation2 + $0x78] sm:$0xf] }
 0x301   : > { %v6655_v44 = vrot.slane %v6653_v10, 4  ;;  %v6677_v48 = vshrl.u32 %v13010_v52, 16  ;;  %v6688_v10 = vshrl.u32 %v6471_v58, 16  ;;  %v6691_v32 = vshll.u32 %v6471_v58, 16 }
 0x303   : > { %10193 = vmatmul.mubr.bf16.gmra.mrb[24].mxu0 %v11245_v8  ;;  %10241 = vmatmul.mubr.bf16.gmra.mrb[24].mxu1 %v11245_v8  ;;  %v6618_v8 = vrot.slane %v6616_v56, 4  ;;  %v7631_v56 = vsel %vm12401_vm13, %v9066_v11, %v7630_v39  ;;  %v6556_v11 = vsel %vm12010_vm4, %v13125_v13, %v13081_v55  ;;  %v13205_v55 = vrot.slane %v6611_v45, 5 }
 0x304   : > { %10196 = vmatprep.mubr.bf16.mxu0 %v11248_v63  ;;  %10244 = vmatprep.mubr.bf16.mxu1 %v11248_v63  ;;  %v7624_v63 = vsel %vm12401_vm13, %v9065_v34, %v7623_v18  ;;  %v6621_v18 = vrot.slane %v6619_v62, 5  ;;  %v6649_v34 = vshll.u32 %v13165_v33, 16  ;;  %v13181_v59 = vcombine.low %v7631_v56, %v7634_v51  ;;  %v13210_v62 = vld [vmem:[#allocation2 + $0x68] sm:$0x1] }
 0x305   : > { %v13175_v6 = vcombine.low %v7624_v63, %v7627_v42  ;;  %v6580_v51 = vsel %vm12010_vm4, %v13131_v27, %v13089_v37  ;;  %v13207_v13 = vrot.slane %v6625_v20, 5  ;;  %v6642_v37 = vrot.slane %v6640_v41, 4  ;;  %v11254_v42 = vld [vmem:[#allocation9 + $0x208] sm:$0xff]  }
 0x306   : > { %v6645_v27 = vrot.slane %v6643_v4, 5  ;;  %v6609_v39 = vrot.slane %v6608_v5, 4  ;;  %v6622_v26 = vor.u32 %v6621_v18, %v6618_v8  ;;  %v13212_v16 = vrot.slane %v6649_v34, 5  ;;  %v11255_v56 = vld [vmem:[#allocation11 + $0x208] sm:$0xff]  }
 0x307   : > { %v6667_v45 = vshll.u32 %v6468_v2, 16  ;;  %v9021_v20 = vcombine.low %v6556_v11, %v6566_v30  ;;  %v13214_v22 = vcombine.low %v6580_v51, %v6590_v50  ;;  %v6604_v5 = vsel %vm12010_vm4, %v13203_v23, %v13143_v24  ;;  %v6474_v11 = vld [vmem:[#allocation2 + $0x84] sm:$0xf] }
 0x308   : > { %v6632_v8 = vor.u32 %v6631_v43, %v13207_v13  ;;  %v6646_v63 = vor.u32 %v6645_v27, %v6642_v37  ;;  %v6659_v1 = vshll.u32 %v13210_v62, 16  ;;  %v6614_v41 = vsel %vm12010_vm4, %v6609_v39, %v13205_v55  ;;  %v11256_v37 = vld [vmem:[#allocation9 + $0x210] sm:$0xff]  }
 0x309   : > { %v13231_v4 = vrot.slane %v6635_v31, 5  ;;  %v6656_v18 = vor.u32 %v6655_v44, %v13212_v16  ;;  %v6666_v24 = vrot.slane %v6664_v40, 4  ;;  %v6669_v34 = vrot.slane %v6667_v45, 5  ;;  %v11257_v27 = vld [vmem:[#allocation11 + $0x210] sm:$0xff]  }
 0x30a   : > { %v6679_v51 = vrot.slane %v6677_v48, 4  ;;  %v6633_v55 = vrot.slane %v6632_v8, 4  ;;  %v6647_v2 = vrot.slane %v6646_v63, 4  ;;  %v6661_v43 = vrot.slane %v6659_v1, 5  ;;  %v6477_v1 = vld [vmem:[#allocation2 + $0x90] sm:$0xf] }
 0x30b   : > { %10197 = vmatmul.mubr.bf16.gmra.mrb[28].mxu0 %v11249_v47  ;;  %10245 = vmatmul.mubr.bf16.gmra.mrb[28].mxu1 %v11249_v47  ;;  %v13224_v47 = vld [vmem:[#allocation2 + $0x7c] sm:$0xf]  ;;  %v6683_v31 = vshll.u32 %v13012_v38, 16  ;;  %v6712_v39 = vshrl.u32 %v6474_v11, 16  ;;  %v6721_v44 = vshll.u32 %v13028_v49, 16  ;;  %v6670_v40 = vor.u32 %v6669_v34, %v6666_v24  ;;  %v11259_v34 = vld [vmem:[#allocation11 + $0x218] sm:$0xff]  }
 0x30c   : > { %10264 = vmatprep.mubr.bf16.mxu0 %v9019_v54  ;;  %10312 = vmatprep.mubr.bf16.mxu1 %v9019_v54  ;;  %v6673_v54 = vshll.u32 %v13010_v52, 16  ;;  %v13229_v52 = vrot.slane %v6622_v26, 4  ;;  %v6697_v50 = vshll.u32 %v13224_v47, 16  ;;  %v6701_v23 = vshrl.u32 %v13224_v47, 16  ;;  %v13244_v38 = vld [vmem:[#allocation2 + $0x80] sm:$0x1] }
 0x30d   : > { %v6715_v26 = vshll.u32 %v6474_v11, 16  ;;  %v6693_v45 = vrot.slane %v6691_v32, 5  ;;  %v6638_v8 = vsel %vm12010_vm4, %v6633_v55, %v13231_v4  ;;  %v13258_v63 = vrot.slane %v6683_v31, 5  ;;  %v13262_v24 = vld [vmem:[#allocation2 + $0x94] sm:$0xf] }
 0x30e   : > { %v13234_v30 = vrot.slane %v6673_v54, 5  ;;  %v9023_v54 = vcombine.low %v6604_v5, %v6614_v41  ;;  %v6703_v58 = vrot.slane %v6701_v23, 4  ;;  %v6652_v5 = vsel %vm12010_vm4, %v6647_v2, %v13212_v16  ;;  %v11258_v4 = vld [vmem:[#allocation9 + $0x218] sm:$0xff]  }
 0x30f   : > { %v13260_v41 = vrot.slane %v6721_v44, 5  ;;  %v6745_v23 = vshll.u32 %v13262_v24, 16  ;;  %v6749_v55 = vshrl.u32 %v13262_v24, 16 }
 0x310   : > { %v6680_v48 = vor.u32 %v6679_v51, %v13234_v30  ;;  %v6736_v51 = vshrl.u32 %v6477_v1, 16 }
 0x312   : > { %v13271_v32 = vrot.slane %v6680_v48, 4  ;;  %v6483_v48 = vld [vmem:[#allocation2 + $0xa8] sm:$0xf] }
 0x313   : > { %10265 = vmatmul.mubr.bf16.vlgmr.msra.gmra.mrb[0].mxu0 %v9020_v12  ;;  %10313 = vmatmul.mubr.bf16.vlgmr.msra.gmra.mrb[0].mxu1 %v9020_v12  ;;  %v6725_v12 = vshrl.u32 %v13028_v49, 16  ;;  %v6628_v49 = vsel %vm12010_vm4, %v13229_v52, %v13207_v13  ;;  %v13266_v52 = vrot.slane %v6670_v40, 4  ;;  %v11260_v40 = vld [vmem:[#allocation9 + $0x220] sm:$0xff]  }
 0x314   : > { %10345 = vmatpush3.bf16.msra.mxu0 %v13042_v60  ;;  %10393 = vmatpush3.bf16.msra.mxu1 %v13044_v14  ;;  %v6657_v60 = vrot.slane %v6656_v18, 4  ;;  %v6690_v14 = vrot.slane %v6688_v10, 4  ;;  %v6707_v10 = vshll.u32 %v13244_v38, 16  ;;  %v9024_v2 = vcombine.low %v6628_v49, %v6638_v8 }
 0x315   : > { %10268 = vmatprep.mubr.bf16.mxu0 %v9021_v20  ;;  %10316 = vmatprep.mubr.bf16.mxu1 %v9021_v20  ;;  %v13246_v20 = vrot.slane %v6697_v50, 5  ;;  %v6727_v18 = vrot.slane %v6725_v12, 4  ;;  %v6739_v50 = vshll.u32 %v6477_v1, 16  ;;  %v6676_v44 = vsel %vm12010_vm4, %v13266_v52, %v13234_v30  ;;  %v11262_v52 = vld [vmem:[#allocation9 + $0x228] sm:$0xff]  }
 0x316   : > { %10346 = vmatprep.subr.bf16.mxu0 %v11254_v42  ;;  %10394 = vmatprep.subr.bf16.mxu1 %v11255_v56  ;;  %v6662_v13 = vsel %vm12010_vm4, %v6657_v60, %v6661_v43  ;;  %v6694_v16 = vor.u32 %v6693_v45, %v6690_v14  ;;  %v6709_v60 = vrot.slane %v6707_v10, 5  ;;  %v11261_v14 = vld [vmem:[#allocation11 + $0x220] sm:$0xff]   ;;  %v6738_v45 = vrot.slane %v6736_v51, 4 }
 0x317   : > { %v6704_v11 = vor.u32 %v6703_v58, %v13246_v20  ;;  %v6728_v31 = vor.u32 %v6727_v18, %v13260_v41  ;;  %v13288_v58 = vrot.slane %v6745_v23, 5  ;;  %v6751_v30 = vrot.slane %v6749_v55, 4 }
 0x318   : > { %10347 = vmatpush3.bf16.msra.mxu0 %v11254_v42  ;;  %10395 = vmatpush3.bf16.msra.mxu1 %v11255_v56  ;;  %v6714_v42 = vrot.slane %v6712_v39, 4  ;;  %v6717_v56 = vrot.slane %v6715_v26, 5  ;;  %v6480_v39 = vld [vmem:[#allocation2 + $0x9c] sm:$0xf]  ;;  %v9025_v26 = vcombine.low %v6652_v5, %v6662_v13  ;;  %v6695_v12 = vrot.slane %v6694_v16, 4  ;;  %v11263_v16 = vld [vmem:[#allocation11 + $0x228] sm:$0xff]  }
 0x319   : > { %10348 = vmatprep.subr.bf16.mxu0 %v11256_v37  ;;  %10396 = vmatprep.subr.bf16.mxu1 %v11257_v27  ;;  %v6760_v49 = vshrl.u32 %v6480_v39, 16  ;;  %v6763_v8 = vshll.u32 %v6480_v39, 16  ;;  %v13290_v5 = vld [vmem:[#allocation2 + $0xac] sm:$0xf]  ;;  %v6773_v13 = vshrl.u32 %v13067_v7, 16  ;;  %v6784_v10 = vshrl.u32 %v6483_v48, 16 }
 0x31a   : > { %v6718_v43 = vor.u32 %v6717_v56, %v6714_v42  ;;  %v6729_v42 = vrot.slane %v6728_v31, 4  ;;  %v6797_v51 = vshrl.u32 %v13290_v5, 16 }
 0x31b   : > { %10269 = vmatmul.mubr.bf16.gmra.mrb[4].mxu0 %v13214_v22  ;;  %10317 = vmatmul.mubr.bf16.gmra.mrb[4].mxu1 %v13214_v22  ;;  %v6731_v22 = vshll.u32 %v13030_v46, 16  ;;  %v6686_v46 = vsel %vm12010_vm4, %v13271_v32, %v13258_v63  ;;  %v6769_v63 = vshll.u32 %v13067_v7, 16  ;;  %v6787_v32 = vshll.u32 %v6483_v48, 16 }
 0x31c   : > { %10272 = vmatprep.mubr.bf16.mxu0 %v9023_v54  ;;  %10320 = vmatprep.mubr.bf16.mxu1 %v9023_v54  ;;  %v6741_v54 = vrot.slane %v6739_v50, 5  ;;  %v6719_v1 = vrot.slane %v6718_v43, 4  ;;  %v6752_v50 = vor.u32 %v6751_v30, %v13288_v58  ;;  %v6762_v23 = vrot.slane %v6760_v49, 4  ;;  %v6486_v30 = vld [vmem:[#allocation2 + $0xb4] sm:$0xf] }
 0x31d   : > { %10349 = vmatpush3.bf16.msra.mxu0 %v11256_v37  ;;  %10397 = vmatpush3.bf16.msra.mxu1 %v11257_v27  ;;  %v13282_v37 = vld [vmem:[#allocation2 + $0x98] sm:$0x1]  ;;  %v6705_v27 = vrot.slane %v6704_v11, 4  ;;  %v6733_v56 = vrot.slane %v6731_v22, 5  ;;  %v6793_v11 = vshll.u32 %v13290_v5, 16  ;;  %v6765_v55 = vrot.slane %v6763_v8, 5 }
 0x31e   : > { %10350 = vmatprep.subr.bf16.mxu0 %v11258_v4  ;;  %10398 = vmatprep.subr.bf16.mxu1 %v11259_v34  ;;  %v6755_v18 = vshll.u32 %v13282_v37, 16  ;;  %v6742_v7 = vor.u32 %v6741_v54, %v6738_v45  ;;  %v13308_v31 = vrot.slane %v6769_v63, 5  ;;  %v6775_v22 = vrot.slane %v6773_v13, 4  ;;  %v13310_v54 = vld [vmem:[#allocation2 + $0xb0] sm:$0x1]  ;;  %v11266_v63 = vld [vmem:[#allocation9 + $0x238] sm:$0xff]  }
 0x31f   : > { %v6786_v39 = vrot.slane %v6784_v10, 4  ;;  %v6799_v48 = vrot.slane %v6797_v51, 4  ;;  %v6766_v49 = vor.u32 %v6765_v55, %v6762_v23  ;;  %v6779_v8 = vshll.u32 %v13069_v28, 16  ;;  %v11267_v13 = vld [vmem:[#allocation11 + $0x238] sm:$0xff]  }
 0x320   : > { %v6757_v43 = vrot.slane %v6755_v18, 5  ;;  %v6489_v18 = vld [vmem:[#allocation2 + $0xc0] sm:$0xf]  ;;  %v6817_v28 = vshll.u32 %v13114_v25, 16  ;;  %v6845_v23 = vshrl.u32 %v13147_v17, 16 }
 0x321   : > { %10351 = vmatpush3.bf16.msra.mxu0 %v11258_v4  ;;  %10399 = vmatpush3.bf16.msra.mxu1 %v11259_v34  ;;  %v6700_v4 = vsel %vm12010_vm4, %v6695_v12, %v13246_v20  ;;  %v6710_v34 = vsel %vm12010_vm4, %v6705_v27, %v6709_v60  ;;  %v6734_v20 = vsel %vm12010_vm4, %v6729_v42, %v6733_v56  ;;  %v11264_v12 = vld [vmem:[#allocation9 + $0x230] sm:$0xff]   ;;  %v6832_v51 = vshrl.u32 %v6489_v18, 16 }
 0x322   : > { %10352 = vmatprep.subr.bf16.mxu0 %v11260_v40  ;;  %10400 = vmatprep.subr.bf16.mxu1 %v11261_v14  ;;  %v11265_v60 = vld [vmem:[#allocation11 + $0x230] sm:$0xff]   ;;  %v9026_v27 = vcombine.low %v6676_v44, %v6686_v46  ;;  %v9027_v45 = vcombine.low %v6700_v4, %v6710_v34  ;;  %v6776_v42 = vor.u32 %v6775_v22, %v13308_v31  ;;  %v6803_v44 = vshll.u32 %v13310_v54, 16 }
 0x323   : > { %10273 = vmatmul.mubr.bf16.gmra.mrb[8].mxu0 %v9024_v2  ;;  %10321 = vmatmul.mubr.bf16.gmra.mrb[8].mxu1 %v9024_v2  ;;  %v6724_v2 = vsel %vm12010_vm4, %v6719_v1, %v13260_v41  ;;  %v13312_v41 = vrot.slane %v6793_v11, 5  ;;  %v6808_v46 = vshrl.u32 %v6486_v30, 16  ;;  %v6767_v34 = vrot.slane %v6766_v49, 4 }
 0x324   : > { %10276 = vmatprep.mubr.bf16.mxu0 %v9025_v26  ;;  %10324 = vmatprep.mubr.bf16.mxu1 %v9025_v26  ;;  %v6789_v26 = vrot.slane %v6787_v32, 5  ;;  %v9028_v1 = vcombine.low %v6724_v2, %v6734_v20  ;;  %v6811_v32 = vshll.u32 %v6486_v30, 16  ;;  %v6781_v11 = vrot.slane %v6779_v8, 5 }
 0x325   : > { %10353 = vmatpush3.bf16.msra.mxu0 %v11260_v40  ;;  %10401 = vmatpush3.bf16.msra.mxu1 %v11261_v14  ;;  %v6743_v40 = vrot.slane %v6742_v7, 4  ;;  %v6753_v14 = vrot.slane %v6752_v50, 4  ;;  %v6800_v10 = vor.u32 %v6799_v48, %v13312_v41  ;;  %v6835_v7 = vshll.u32 %v6489_v18, 16  ;;  %v6492_v48 = vld [vmem:[#allocation2 + $0xcc] sm:$0xf] }
 0x326   : > { %10354 = vmatprep.subr.bf16.mxu0 %v11262_v52  ;;  %10402 = vmatprep.subr.bf16.mxu1 %v11263_v16  ;;  %v6790_v56 = vor.u32 %v6789_v26, %v6786_v39  ;;  %v6841_v50 = vshll.u32 %v13147_v17, 16  ;;  %v6805_v2 = vrot.slane %v6803_v44, 5  ;;  %v6810_v20 = vrot.slane %v6808_v46, 4 }
 0x327   : > { %v6758_v4 = vsel %vm12010_vm4, %v6753_v14, %v6757_v43  ;;  %v6813_v22 = vrot.slane %v6811_v32, 5  ;;  %v6819_v39 = vrot.slane %v6817_v28, 5  ;;  %v6772_v17 = vsel %vm12010_vm4, %v6767_v34, %v13308_v31 }
 0x328   : > { %v6791_v55 = vrot.slane %v6790_v56, 4  ;;  %v6856_v56 = vshrl.u32 %v6492_v48, 16  ;;  %v6859_v31 = vshll.u32 %v6492_v48, 16  ;;  %v6865_v44 = vshll.u32 %v13151_v0, 16 }
 0x329   : > { %10355 = vmatpush3.bf16.msra.mxu0 %v11262_v52  ;;  %10403 = vmatpush3.bf16.msra.mxu1 %v11263_v16  ;;  %v6821_v52 = vshrl.u32 %v13114_v25, 16  ;;  %v6748_v16 = vsel %vm12010_vm4, %v6743_v40, %v13288_v58  ;;  %v6777_v25 = vrot.slane %v6776_v42, 4  ;;  %v6801_v58 = vrot.slane %v6800_v10, 4 }
 0x32a   : > { %10356 = vmatprep.subr.bf16.mxu0 %v11264_v12  ;;  %10404 = vmatprep.subr.bf16.mxu1 %v11265_v60  ;;  %v9029_v26 = vcombine.low %v6748_v16, %v6758_v4  ;;  %v6796_v40 = vsel %vm12010_vm4, %v6791_v55, %v13312_v41  ;;  %v6814_v49 = vor.u32 %v6813_v22, %v6810_v20  ;;  %v6827_v42 = vshll.u32 %v13116_v15, 16  ;;  %v7459_v20 = vld [vmem:[#allocation2 + $0x18] sm:$0xe] }
 0x32b   : > { %10277 = vmatmul.mubr.bf16.gmra.mrb[12].mxu0 %v9026_v27  ;;  %10325 = vmatmul.mubr.bf16.gmra.mrb[12].mxu1 %v9026_v27  ;;  %v6823_v43 = vrot.slane %v6821_v52, 4  ;;  %v6834_v27 = vrot.slane %v6832_v51, 4  ;;  %v6782_v30 = vsel %vm12010_vm4, %v6777_v25, %v6781_v11  ;;  %v6806_v14 = vsel %vm12010_vm4, %v6801_v58, %v6805_v2 }
 0x32c   : > { %10280 = vmatprep.mubr.bf16.mxu0 %v9027_v45  ;;  %10328 = vmatprep.mubr.bf16.mxu1 %v9027_v45  ;;  %v6847_v45 = vrot.slane %v6845_v23, 4  ;;  %v6869_v46 = vshrl.u32 %v13151_v0, 16  ;;  %v6851_v41 = vshll.u32 %v13149_v19, 16  ;;  %v6815_v10 = vrot.slane %v6814_v49, 4 }
 0x32d   : > { %10357 = vmatpush3.bf16.msra.mxu0 %v11264_v12  ;;  %10405 = vmatpush3.bf16.msra.mxu1 %v11265_v60  ;;  %v6837_v12 = vrot.slane %v6835_v7, 5  ;;  %v6843_v60 = vrot.slane %v6841_v50, 5  ;;  %v6824_v8 = vor.u32 %v6823_v43, %v6819_v39  ;;  %v6829_v28 = vrot.slane %v6827_v42, 5 }
 0x32e   : > { %10358 = vmatprep.subr.bf16.mxu0 %v11266_v63  ;;  %10406 = vmatprep.subr.bf16.mxu1 %v11267_v13  ;;  %v6858_v52 = vrot.slane %v6856_v56, 4  ;;  %v6861_v16 = vrot.slane %v6859_v31, 5  ;;  %v6867_v15 = vrot.slane %v6865_v44, 5  ;;  %v6871_v4 = vrot.slane %v6869_v46, 4  ;;  %v13742_v46 = vld [vmem:[#allocation31_spill] sm:$0xff] }
 0x32f   : > { %v6838_v18 = vor.u32 %v6837_v12, %v6834_v27  ;;  %v6825_v32 = vrot.slane %v6824_v8, 4  ;;  %v6853_v51 = vrot.slane %v6851_v41, 5  ;;  %v6820_v0 = vsel %vm12010_vm4, %v6815_v10, %v6819_v39  ;;  %v7462_v41 = vld [vmem:[#allocation2 + $0x3c] sm:$0xe] }
 0x330   : > { %v6862_v7 = vor.u32 %v6861_v16, %v6858_v52  ;;  %v6872_v50 = vor.u32 %v6871_v4, %v6867_v15  ;;  %v6875_v23 = vshll.u32 %v13157_v35, 16  ;;  %v7525_v2 = vrot.slane %v13016_v57, 5  ;;  %v13744_v16 = vld [vmem:[#allocation25_spill] sm:$0xff] }
 0x331   : > { %10359 = vmatpush3.bf16.msra.mxu0 %v11266_v63  ;;  %10407 = vmatpush3.bf16.msra.mxu1 %v11267_v13  ;;  %v6848_v63 = vor.u32 %v6847_v45, %v6843_v60  ;;  %v9031_v13 = vcombine.low %v6796_v40, %v6806_v14  ;;  %v6839_v34 = vrot.slane %v6838_v18, 4  ;;  %v6830_v19 = vsel %vm12010_vm4, %v6825_v32, %v6829_v28  ;;  %v7461_v40 = vld [vmem:[#allocation2 + $0x30] sm:$0xe] }
 0x332   : > { %v9032_v58 = vcombine.low %v6820_v0, %v6830_v19  ;;  %v6863_v39 = vrot.slane %v6862_v7, 4  ;;  %v6873_v43 = vrot.slane %v6872_v50, 4  ;;  %v9051_v27 = vrot.slane %v7459_v20, 9 }
 0x333   : > { %10281 = vmatmul.mubr.bf16.gmra.mrb[16].mxu0 %v9028_v1  ;;  %10329 = vmatmul.mubr.bf16.gmra.mrb[16].mxu1 %v9028_v1  ;;  %v9030_v1 = vcombine.low %v6772_v17, %v6782_v30  ;;  %v6849_v11 = vrot.slane %v6848_v63, 4  ;;  %v6844_v25 = vsel %vm12010_vm4, %v6839_v34, %v6843_v60  ;;  %v7527_v12 = vrot.slane %v7525_v2, 4  ;;  %v7460_v30 = vld [vmem:[#allocation2 + $0x24] sm:$0xe] }
 0x334   : > { %10284 = vmatprep.mubr.bf16.mxu0 %v9029_v26  ;;  %10332 = vmatprep.mubr.bf16.mxu1 %v9029_v26  ;;  %v6877_v26 = vrot.slane %v6875_v23, 5  ;;  %v7528_v45 = vrot.slane %v13036_v3, 5  ;;  %v6868_v35 = vsel %vm12010_vm4, %v6863_v39, %v6867_v15  ;;  %v7532_v60 = vrot.slane %v13026_v21, 5 }
 0x335   : > { %v6854_v55 = vsel %vm12010_vm4, %v6849_v11, %v6853_v51  ;;  %v7526_v48 = vsel %vm12401_vm13, %v9051_v27, %v7525_v2  ;;  %v7539_v3 = vrot.slane %v13046_v61, 5  ;;  %v9052_v8 = vrot.slane %v7460_v30, 9  ;;  %v13745_v11 = vld [vmem:[#allocation29_spill] sm:$0xff] }
 0x336   : > { %v9033_v22 = vcombine.low %v6844_v25, %v6854_v55  ;;  %v6878_v57 = vsel %vm12010_vm4, %v6873_v43, %v6877_v26  ;;  %v7529_v17 = vsel %vm12401_vm13, %v7527_v12, %v7528_v45  ;;  %v7534_v42 = vrot.slane %v7532_v60, 4  ;;  %v7465_v25 = vld [vmem:[#allocation2 + $0x60] sm:$0xe] }
 0x337   : > { %v9034_v14 = vcombine.low %v6868_v35, %v6878_v57  ;;  %v9067_v49 = vcombine.low %v7526_v48, %v7529_v17  ;;  %v7535_v56 = vrot.slane %v13040_v9, 5  ;;  %v9053_v36 = vrot.slane %v7461_v40, 9  ;;  %v13746_v57 = vld [vmem:[#allocation28_spill] sm:$0xff]  ;;  %v7469_v48 = vld [vmem:[#allocation2 + $0x90] sm:$0xe]  ;;  %v13747_v40 = vld [vmem:[#allocation30_spill] sm:$0xff] }
 0x338   : > { %v7541_v31 = vrot.slane %v7539_v3, 4  ;;  %v7542_v21 = vrot.slane %v13083_v29, 5  ;;  %v7533_v44 = vsel %vm12401_vm13, %v9052_v8, %v7532_v60  ;;  %v7546_v18 = vrot.slane %v13742_v46, 5  ;;  %v13743_v29 = vld [vmem:[#allocation27_spill] sm:$0xff]  ;;  %v7471_v8 = vld [vmem:[#allocation2 + $0xa8] sm:$0xe] }
 0x339   : > { %v7536_v61 = vsel %vm12401_vm13, %v7534_v42, %v7535_v56  ;;  %v7540_v63 = vsel %vm12401_vm13, %v9053_v36, %v7539_v3  ;;  %v9054_v28 = vrot.slane %v7462_v41, 9  ;;  %v7549_v15 = vrot.slane %v13744_v16, 5  ;;  %v13424_v46 = vld [vmem:[#allocation14] ss:$0 sm:$0xff] }
 0x33a   : > { %v7543_v9 = vsel %vm12401_vm13, %v7541_v31, %v7542_v21  ;;  %v9068_v10 = vcombine.low %v7533_v44, %v7536_v61  ;;  %v7548_v52 = vrot.slane %v7546_v18, 4  ;;  %v7556_v51 = vrot.slane %v13745_v11, 5  ;;  %v13748_v31 = vld [vmem:[#allocation33_spill] sm:$0xff] }
 0x33b   : > { %10285 = vmatmul.mubr.bf16.gmra.mrb[20].mxu0 %v9030_v1  ;;  %10333 = vmatmul.mubr.bf16.gmra.mrb[20].mxu1 %v9030_v1  ;;  %v7553_v1 = vrot.slane %v13743_v29, 5  ;;  %v9069_v32 = vcombine.low %v7540_v63, %v7543_v9  ;;  %v7547_v0 = vsel %vm12401_vm13, %v9054_v28, %v7546_v18  ;;  %v7567_v23 = vrot.slane %v13165_v33, 5  ;;  %v7467_v33 = vld [vmem:[#allocation2 + $0x78] sm:$0xe] }
 0x33c   : > { %10288 = vmatprep.mubr.bf16.mxu0 %v9031_v13  ;;  %10336 = vmatprep.mubr.bf16.mxu1 %v9031_v13  ;;  %v7463_v13 = vld [vmem:[#allocation2 + $0x48] sm:$0xe]  ;;  %v7550_v19 = vsel %vm12401_vm13, %v7548_v52, %v7549_v15  ;;  %v9057_v20 = vrot.slane %v7465_v25, 9  ;;  %v7581_v26 = vrot.slane %v13224_v47, 5  ;;  %v9059_v12 = vrot.slane %v7467_v33, 9 }
 0x33d   : > { %v9055_v4 = vrot.slane %v7463_v13, 9  ;;  %v7555_v34 = vrot.slane %v7553_v1, 4  ;;  %v9070_v55 = vcombine.low %v7547_v0, %v7550_v19  ;;  %v7584_v35 = vrot.slane %v13244_v38, 5 }
 0x33e   : > { %v7568_v39 = vsel %vm12401_vm13, %v9057_v20, %v7567_v23  ;;  %v7583_v45 = vrot.slane %v7581_v26, 4  ;;  %v7595_v47 = vrot.slane %v13262_v24, 5  ;;  %v9061_v30 = vrot.slane %v7469_v48, 9 }
 0x33f   : > { %v7554_v7 = vsel %vm12401_vm13, %v9055_v4, %v7553_v1  ;;  %v7557_v50 = vsel %vm12401_vm13, %v7555_v34, %v7556_v51  ;;  %v7598_v38 = vrot.slane %v13282_v37, 5  ;;  %v7609_v24 = vrot.slane %v13290_v5, 5  ;;  %v13749_v5 = vld [vmem:[#allocation26_spill] sm:$0xff] }
 0x340   : > { %v9071_v2 = vcombine.low %v7554_v7, %v7557_v50  ;;  %v7585_v60 = vsel %vm12401_vm13, %v7583_v45, %v7584_v35  ;;  %v7597_v3 = vrot.slane %v7595_v47, 4  ;;  %v9063_v56 = vrot.slane %v7471_v8, 9 }
 0x341   : > { %v7611_v36 = vrot.slane %v7609_v24, 4  ;;  %v7612_v37 = vrot.slane %v13310_v54, 5  ;;  %v13750_v54 = vld [vmem:[#allocation32_spill] sm:$0xff] }
 0x342   : > { %v7610_v21 = vsel %vm12401_vm13, %v9063_v56, %v7609_v24 }
 0x343   : > { %10289 = vmatmul.mubr.bf16.gmra.mrb[24].mxu0 %v9032_v58  ;;  %10337 = vmatmul.mubr.bf16.gmra.mrb[24].mxu1 %v9032_v58  ;;  %v7569_v58 = vrot.slane %v7567_v23, 4  ;;  %v7613_v44 = vsel %vm12401_vm13, %v7611_v36, %v7612_v37 }
 0x344   : > { %10292 = vmatprep.mubr.bf16.mxu0 %v9033_v22  ;;  %10340 = vmatprep.mubr.bf16.mxu1 %v9033_v22  ;;  %v7570_v22 = vrot.slane %v13210_v62, 5  ;;  %v7582_v62 = vsel %vm12401_vm13, %v9059_v12, %v7581_v26  ;;  %v9079_v61 = vcombine.low %v7610_v21, %v7613_v44 }
 0x345   : > { %v9075_v17 = vcombine.low %v7582_v62, %v7585_v60 }
 0x346   : > { %v7571_v43 = vsel %vm12401_vm13, %v7569_v58, %v7570_v22 }
 0x347   : > { %v9073_v27 = vcombine.low %v7568_v39, %v7571_v43 }
 0x34b   : > { %10293 = vmatmul.mubr.bf16.gmra.mrb[28].mxu0 %v9034_v14  ;;  %10341 = vmatmul.mubr.bf16.gmra.mrb[28].mxu1 %v9034_v14  ;;  %v7596_v14 = vsel %vm12401_vm13, %v9061_v30, %v7595_v47 }
 0x34c   : > { %10360 = vmatprep.mubr.bf16.mxu0 %v9067_v49  ;;  %10408 = vmatprep.mubr.bf16.mxu1 %v9067_v49  ;;  %v7599_v49 = vsel %vm12401_vm13, %v7597_v3, %v7598_v38 }
 0x34d   : > { %v9077_v42 = vcombine.low %v7596_v14, %v7599_v49 }
 0x353   : > { %10361 = vmatmul.mubr.bf16.vlgmr.msra.gmra.mrb[0].mxu0 %v9068_v10  ;;  %10409 = vmatmul.mubr.bf16.vlgmr.msra.gmra.mrb[0].mxu1 %v9068_v10 }
 0x354   : > { %10364 = vmatprep.mubr.bf16.mxu0 %v9069_v32  ;;  %10412 = vmatprep.mubr.bf16.mxu1 %v9069_v32 }
 0x35b   : > { %10365 = vmatmul.mubr.bf16.gmra.mrb[4].mxu0 %v9070_v55  ;;  %10413 = vmatmul.mubr.bf16.gmra.mrb[4].mxu1 %v9070_v55 }
 0x35c   : > { %10368 = vmatprep.mubr.bf16.mxu0 %v9071_v2  ;;  %10416 = vmatprep.mubr.bf16.mxu1 %v9071_v2 }
 0x363   : > { %10369 = vmatmul.mubr.bf16.gmra.mrb[8].mxu0 %v13746_v57  ;;  %10417 = vmatmul.mubr.bf16.gmra.mrb[8].mxu1 %v13746_v57 }
 0x364   : > { %10372 = vmatprep.mubr.bf16.mxu0 %v9073_v27  ;;  %10420 = vmatprep.mubr.bf16.mxu1 %v9073_v27 }
 0x36b   : > { %10373 = vmatmul.mubr.bf16.gmra.mrb[12].mxu0 %v13747_v40  ;;  %10421 = vmatmul.mubr.bf16.gmra.mrb[12].mxu1 %v13747_v40 }
 0x36c   : > { %10376 = vmatprep.mubr.bf16.mxu0 %v9075_v17  ;;  %10424 = vmatprep.mubr.bf16.mxu1 %v9075_v17 }
 0x373   : > { %10377 = vmatmul.mubr.bf16.gmra.mrb[16].mxu0 %v13748_v31  ;;  %10425 = vmatmul.mubr.bf16.gmra.mrb[16].mxu1 %v13748_v31 }
 0x374   : > { %10380 = vmatprep.mubr.bf16.mxu0 %v9077_v42  ;;  %10428 = vmatprep.mubr.bf16.mxu1 %v9077_v42 }
 0x37b   : > { %10381 = vmatmul.mubr.bf16.gmra.mrb[20].mxu0 %v13749_v5  ;;  %10429 = vmatmul.mubr.bf16.gmra.mrb[20].mxu1 %v13749_v5 }
 0x37c   : > { %10384 = vmatprep.mubr.bf16.mxu0 %v9079_v61  ;;  %10432 = vmatprep.mubr.bf16.mxu1 %v9079_v61 }
 0x383   : > { %10385 = vmatmul.mubr.bf16.gmra.mrb[24].mxu0 %v13750_v54  ;;  %10433 = vmatmul.mubr.bf16.gmra.mrb[24].mxu1 %v13750_v54 }
 0x384   : > { %10388 = vmatprep.mubr.bf16.mxu0 %v13175_v6  ;;  %10436 = vmatprep.mubr.bf16.mxu1 %v13175_v6 }
 0x38b   : > { %10389 = vmatmul.mubr.bf16.gmra.mrb[28].mxu0 %v13181_v59  ;;  %10437 = vmatmul.mubr.bf16.gmra.mrb[28].mxu1 %v13181_v59 }
 0x426   : > { %v10362_v18 = vpop.f32.mrb[0].mxu0  ;;  %v10410_v63 = vpop.f32.mrb[0].mxu1 }
 0x427   : > { %v8224_v9 = vadd.f32 %v10362_v18, %v13422_v53  ;;  %v8263_v41 = vadd.f32 %v10410_v63, %v13424_v46  ;;  %v7798_v29 = vpop.f32.mrb[1].mxu0  ;;  %v8056_v1 = vpop.f32.mrb[1].mxu1 }
 0x428   : > { %v8222_v13 = vadd.f32 %v13422_v53, %v7798_v29  ;;  %v8261_v6 = vadd.f32 %v13424_v46, %v8056_v1  ;;  %v10363_v10 = vpop.f32.mrb[2].mxu0  ;;  %v10411_v32 = vpop.f32.mrb[2].mxu1 }
 0x429   : > { %v8295_v59 = vmax.f32 %v8224_v9, %v8263_v41  ;;  %v8225_v28 = vadd.f32 %v10363_v10, %v13422_v53  ;;  %v8264_v52 = vadd.f32 %v10411_v32, %v13424_v46  ;;  %v7801_v16 = vpop.f32.mrb[3].mxu0  ;;  %v8059_v15 = vpop.f32.mrb[3].mxu1 }
 0x42a   : > { %v8293_v4 = vmax.f32 %v8222_v13, %v8261_v6  ;;  %v8223_v34 = vadd.f32 %v13422_v53, %v7801_v16  ;;  %v8262_v11 = vadd.f32 %v13424_v46, %v8059_v15 }
 0x42b   : > { %8327 = vst [vmem:[%s13436_s16 + $0x10] sm:$0xff] %v8295_v59  ;;  %v8296_v51 = vmax.f32 %v8225_v28, %v8264_v52  ;;  %v8396_v55 = vmul.f32 %v8295_v59, %v8295_v59 }
 0x42c   : > { %8325 = vst [vmem:[%s13436_s16] sm:$0xff] %v8293_v4  ;;  %v8294_v0 = vmax.f32 %v8223_v34, %v8262_v11  ;;  %v8394_v19 = vmul.f32 %v8293_v4, %v8293_v4 }
 0x42d   : > { %8328 = vst [vmem:[%s13436_s16 + $0x18] sm:$0xff] %v8296_v51  ;;  %v8397_v45 = vmul.f32 %v8296_v51, %v8296_v51 }
 0x42e   : > { %8326 = vst [vmem:[%s13436_s16 + $0x8] sm:$0xff] %v8294_v0  ;;  %v8357_v7 = vadd.f32 %v8294_v0, %v8293_v4  ;;  %v8395_v50 = vmul.f32 %v8294_v0, %v8294_v0  ;;  %v10366_v23 = vpop.f32.mrb[4].mxu0  ;;  %v10414_v25 = vpop.f32.mrb[4].mxu1 }
 0x42f   : > { %v8228_v2 = vadd.f32 %v10366_v23, %v13422_v53  ;;  %v8267_v20 = vadd.f32 %v10414_v25, %v13424_v46  ;;  %v7814_v58 = vpop.f32.mrb[5].mxu0  ;;  %v8072_v22 = vpop.f32.mrb[5].mxu1 }
 0x430   : > { %v8358_v39 = vadd.f32 %v8357_v7, %v8295_v59  ;;  %v8426_v43 = vadd.f32 %v8395_v50, %v8394_v19  ;;  %v8226_v26 = vadd.f32 %v13422_v53, %v7814_v58  ;;  %v8265_v33 = vadd.f32 %v13424_v46, %v8072_v22  ;;  %v10367_v27 = vpop.f32.mrb[6].mxu0  ;;  %v10415_v12 = vpop.f32.mrb[6].mxu1 }
 0x431   : > { %v8299_v35 = vmax.f32 %v8228_v2, %v8267_v20  ;;  %v8229_v57 = vadd.f32 %v10367_v27, %v13422_v53  ;;  %v8268_v62 = vadd.f32 %v10415_v12, %v13424_v46  ;;  %v7817_v60 = vpop.f32.mrb[7].mxu0  ;;  %v8075_v47 = vpop.f32.mrb[7].mxu1 }
 0x432   : > { %v8427_v48 = vadd.f32 %v8426_v43, %v8396_v55  ;;  %v8297_v17 = vmax.f32 %v8226_v26, %v8265_v33  ;;  %v8359_v30 = vadd.f32 %v8358_v39, %v8296_v51  ;;  %v8227_v3 = vadd.f32 %v13422_v53, %v7817_v60 }
 0x433   : > { %8331 = vst [vmem:[%s13436_s16 + $0x30] sm:$0xff] %v8299_v35  ;;  %v8300_v38 = vmax.f32 %v8229_v57, %v8268_v62  ;;  %v8266_v40 = vadd.f32 %v13424_v46, %v8075_v47  ;;  %v8400_v54 = vmul.f32 %v8299_v35, %v8299_v35 }
 0x434   : > { %8329 = vst [vmem:[%s13436_s16 + $0x20] sm:$0xff] %v8297_v17  ;;  %v8360_v14 = vadd.f32 %v8359_v30, %v8297_v17  ;;  %v8398_v49 = vmul.f32 %v8297_v17, %v8297_v17  ;;  %v8428_v24 = vadd.f32 %v8427_v48, %v8397_v45 }
 0x435   : > { %8332 = vst [vmem:[%s13436_s16 + $0x38] sm:$0xff] %v8300_v38  ;;  %v8298_v8 = vmax.f32 %v8227_v3, %v8266_v40  ;;  %v8401_v15 = vmul.f32 %v8300_v38, %v8300_v38 }
 0x436   : > { %v8429_v42 = vadd.f32 %v8428_v24, %v8398_v49  ;;  %v10370_v56 = vpop.f32.mrb[8].mxu0  ;;  %v10418_v36 = vpop.f32.mrb[8].mxu1 }
 0x437   : > { %8330 = vst [vmem:[%s13436_s16 + $0x28] sm:$0xff] %v8298_v8  ;;  %v8361_v37 = vadd.f32 %v8360_v14, %v8298_v8  ;;  %v8399_v31 = vmul.f32 %v8298_v8, %v8298_v8  ;;  %v8232_v21 = vadd.f32 %v10370_v56, %v13422_v53  ;;  %v8271_v44 = vadd.f32 %v10418_v36, %v13424_v46  ;;  %v7830_v61 = vpop.f32.mrb[9].mxu0  ;;  %v8088_v5 = vpop.f32.mrb[9].mxu1 }
 0x438   : > { %v8230_v18 = vadd.f32 %v13422_v53, %v7830_v61  ;;  %v8269_v63 = vadd.f32 %v13424_v46, %v8088_v5  ;;  %v10371_v9 = vpop.f32.mrb[10].mxu0  ;;  %v10419_v41 = vpop.f32.mrb[10].mxu1 }
 0x439   : > { %v8362_v29 = vadd.f32 %v8361_v37, %v8299_v35  ;;  %v8430_v1 = vadd.f32 %v8429_v42, %v8399_v31  ;;  %v8303_v13 = vmax.f32 %v8232_v21, %v8271_v44  ;;  %v8233_v6 = vadd.f32 %v10371_v9, %v13422_v53  ;;  %v7833_v10 = vpop.f32.mrb[11].mxu0  ;;  %v8091_v32 = vpop.f32.mrb[11].mxu1 }
 0x43a   : > { %v8301_v59 = vmax.f32 %v8230_v18, %v8269_v63  ;;  %v8272_v28 = vadd.f32 %v10419_v41, %v13424_v46  ;;  %v8231_v52 = vadd.f32 %v13422_v53, %v7833_v10  ;;  %v8270_v16 = vadd.f32 %v13424_v46, %v8091_v32 }
 0x43b   : > { %v8431_v4 = vadd.f32 %v8430_v1, %v8400_v54  ;;  %8335 = vst [vmem:[%s13436_s16 + $0x50] sm:$0xff] %v8303_v13  ;;  %v8363_v34 = vadd.f32 %v8362_v29, %v8300_v38  ;;  %v8404_v43 = vmul.f32 %v8303_v13, %v8303_v13 }
 0x43c   : > { %8333 = vst [vmem:[%s13436_s16 + $0x40] sm:$0xff] %v8301_v59  ;;  %v8402_v11 = vmul.f32 %v8301_v59, %v8301_v59  ;;  %v8304_v51 = vmax.f32 %v8233_v6, %v8272_v28  ;;  %v8302_v0 = vmax.f32 %v8231_v52, %v8270_v16 }
 0x43d   : > { %v8364_v19 = vadd.f32 %v8363_v34, %v8301_v59  ;;  %v8432_v7 = vadd.f32 %v8431_v4, %v8401_v15 }
 0x43e   : > { %8336 = vst [vmem:[%s13436_s16 + $0x58] sm:$0xff] %v8304_v51  ;;  %8334 = vst [vmem:[%s13436_s16 + $0x48] sm:$0xff] %v8302_v0  ;;  %v8403_v50 = vmul.f32 %v8302_v0, %v8302_v0  ;;  %v10374_v23 = vpop.f32.mrb[12].mxu0  ;;  %v10422_v25 = vpop.f32.mrb[12].mxu1  ;;  %v8405_v38 = vmul.f32 %v8304_v51, %v8304_v51 }
 0x43f   : > { %v8433_v55 = vadd.f32 %v8432_v7, %v8402_v11  ;;  %v8365_v2 = vadd.f32 %v8364_v19, %v8302_v0  ;;  %v8236_v20 = vadd.f32 %v10374_v23, %v13422_v53  ;;  %v8275_v58 = vadd.f32 %v10422_v25, %v13424_v46  ;;  %v7846_v22 = vpop.f32.mrb[13].mxu0  ;;  %v8104_v39 = vpop.f32.mrb[13].mxu1 }
 0x440   : > { %v8234_v26 = vadd.f32 %v13422_v53, %v7846_v22  ;;  %v8273_v33 = vadd.f32 %v13424_v46, %v8104_v39  ;;  %v10375_v27 = vpop.f32.mrb[14].mxu0  ;;  %v10423_v12 = vpop.f32.mrb[14].mxu1 }
 0x441   : > { %v8366_v45 = vadd.f32 %v8365_v2, %v8303_v13  ;;  %v8434_v35 = vadd.f32 %v8433_v55, %v8403_v50  ;;  %v8307_v57 = vmax.f32 %v8236_v20, %v8275_v58  ;;  %v8237_v62 = vadd.f32 %v10375_v27, %v13422_v53  ;;  %v7849_v60 = vpop.f32.mrb[15].mxu0  ;;  %v8107_v47 = vpop.f32.mrb[15].mxu1 }
 0x442   : > { %v8305_v48 = vmax.f32 %v8234_v26, %v8273_v33  ;;  %v8276_v17 = vadd.f32 %v10423_v12, %v13424_v46  ;;  %v8235_v30 = vadd.f32 %v13422_v53, %v7849_v60  ;;  %v8274_v3 = vadd.f32 %v13424_v46, %v8107_v47 }
 0x443   : > { %v8435_v40 = vadd.f32 %v8434_v35, %v8404_v43  ;;  %8339 = vst [vmem:[%s13436_s16 + $0x70] sm:$0xff] %v8307_v57  ;;  %v8367_v14 = vadd.f32 %v8366_v45, %v8304_v51  ;;  %v8408_v63 = vmul.f32 %v8307_v57, %v8307_v57 }
 0x444   : > { %8337 = vst [vmem:[%s13436_s16 + $0x60] sm:$0xff] %v8305_v48  ;;  %v8406_v49 = vmul.f32 %v8305_v48, %v8305_v48  ;;  %v8308_v24 = vmax.f32 %v8237_v62, %v8276_v17  ;;  %v8306_v8 = vmax.f32 %v8235_v30, %v8274_v3 }
 0x445   : > { %v8368_v42 = vadd.f32 %v8367_v14, %v8305_v48  ;;  %v8436_v56 = vadd.f32 %v8435_v40, %v8405_v38 }
 0x446   : > { %8340 = vst [vmem:[%s13436_s16 + $0x78] sm:$0xff] %v8308_v24  ;;  %8338 = vst [vmem:[%s13436_s16 + $0x68] sm:$0xff] %v8306_v8  ;;  %v8407_v36 = vmul.f32 %v8306_v8, %v8306_v8  ;;  %v10378_v37 = vpop.f32.mrb[16].mxu0  ;;  %v10426_v31 = vpop.f32.mrb[16].mxu1  ;;  %v8409_v34 = vmul.f32 %v8308_v24, %v8308_v24 }
 0x447   : > { %v8437_v21 = vadd.f32 %v8436_v56, %v8406_v49  ;;  %v8369_v44 = vadd.f32 %v8368_v42, %v8306_v8  ;;  %v8240_v61 = vadd.f32 %v10378_v37, %v13422_v53  ;;  %v8279_v5 = vadd.f32 %v10426_v31, %v13424_v46  ;;  %v7862_v54 = vpop.f32.mrb[17].mxu0  ;;  %v8120_v18 = vpop.f32.mrb[17].mxu1 }
 0x448   : > { %v8238_v9 = vadd.f32 %v13422_v53, %v7862_v54  ;;  %v8277_v41 = vadd.f32 %v13424_v46, %v8120_v18  ;;  %v10379_v29 = vpop.f32.mrb[18].mxu0  ;;  %v10427_v1 = vpop.f32.mrb[18].mxu1 }
 0x449   : > { %v8370_v13 = vadd.f32 %v8369_v44, %v8307_v57  ;;  %v8438_v6 = vadd.f32 %v8437_v21, %v8407_v36  ;;  %v8311_v10 = vmax.f32 %v8240_v61, %v8279_v5  ;;  %v8241_v32 = vadd.f32 %v10379_v29, %v13422_v53  ;;  %v7865_v59 = vpop.f32.mrb[19].mxu0  ;;  %v8123_v28 = vpop.f32.mrb[19].mxu1 }
 0x44a   : > { %v8309_v52 = vmax.f32 %v8238_v9, %v8277_v41  ;;  %v8280_v16 = vadd.f32 %v10427_v1, %v13424_v46  ;;  %v8239_v15 = vadd.f32 %v13422_v53, %v7865_v59  ;;  %v8278_v4 = vadd.f32 %v13424_v46, %v8123_v28 }
 0x44b   : > { %v8439_v11 = vadd.f32 %v8438_v6, %v8408_v63  ;;  %8343 = vst [vmem:[%s13436_s16 + $0x90] sm:$0xff] %v8311_v10  ;;  %v8371_v51 = vadd.f32 %v8370_v13, %v8308_v24  ;;  %v8412_v33 = vmul.f32 %v8311_v10, %v8311_v10 }
 0x44c   : > { %8341 = vst [vmem:[%s13436_s16 + $0x80] sm:$0xff] %v8309_v52  ;;  %v8410_v0 = vmul.f32 %v8309_v52, %v8309_v52  ;;  %v8312_v19 = vmax.f32 %v8241_v32, %v8280_v16  ;;  %v8310_v7 = vmax.f32 %v8239_v15, %v8278_v4 }
 0x44d   : > { %v8372_v50 = vadd.f32 %v8371_v51, %v8309_v52  ;;  %v8440_v23 = vadd.f32 %v8439_v11, %v8409_v34 }
 0x44e   : > { %8344 = vst [vmem:[%s13436_s16 + $0x98] sm:$0xff] %v8312_v19  ;;  %8342 = vst [vmem:[%s13436_s16 + $0x88] sm:$0xff] %v8310_v7  ;;  %v8411_v25 = vmul.f32 %v8310_v7, %v8310_v7  ;;  %v10382_v55 = vpop.f32.mrb[20].mxu0  ;;  %v10430_v2 = vpop.f32.mrb[20].mxu1  ;;  %v8413_v14 = vmul.f32 %v8312_v19, %v8312_v19 }
 0x44f   : > { %v8441_v20 = vadd.f32 %v8440_v23, %v8410_v0  ;;  %v8373_v58 = vadd.f32 %v8372_v50, %v8310_v7  ;;  %v8244_v22 = vadd.f32 %v10382_v55, %v13422_v53  ;;  %v8283_v39 = vadd.f32 %v10430_v2, %v13424_v46  ;;  %v7878_v43 = vpop.f32.mrb[21].mxu0  ;;  %v8136_v26 = vpop.f32.mrb[21].mxu1 }
 0x450   : > { %v8242_v27 = vadd.f32 %v13422_v53, %v7878_v43  ;;  %v8281_v12 = vadd.f32 %v13424_v46, %v8136_v26  ;;  %v10383_v45 = vpop.f32.mrb[22].mxu0  ;;  %v10431_v35 = vpop.f32.mrb[22].mxu1 }
 0x451   : > { %v8374_v57 = vadd.f32 %v8373_v58, %v8311_v10  ;;  %v8442_v62 = vadd.f32 %v8441_v20, %v8411_v25  ;;  %v8315_v60 = vmax.f32 %v8244_v22, %v8283_v39  ;;  %v8245_v47 = vadd.f32 %v10383_v45, %v13422_v53  ;;  %v7881_v48 = vpop.f32.mrb[23].mxu0  ;;  %v8139_v17 = vpop.f32.mrb[23].mxu1 }
 0x452   : > { %v8313_v30 = vmax.f32 %v8242_v27, %v8281_v12  ;;  %v8284_v3 = vadd.f32 %v10431_v35, %v13424_v46  ;;  %v8243_v38 = vadd.f32 %v13422_v53, %v7881_v48  ;;  %v8282_v40 = vadd.f32 %v13424_v46, %v8139_v17 }
 0x453   : > { %v8443_v49 = vadd.f32 %v8442_v62, %v8412_v33  ;;  %8347 = vst [vmem:[%s13436_s16 + $0xb0] sm:$0xff] %v8315_v60  ;;  %v8375_v24 = vadd.f32 %v8374_v57, %v8312_v19  ;;  %v8416_v41 = vmul.f32 %v8315_v60, %v8315_v60 }
 0x454   : > { %8345 = vst [vmem:[%s13436_s16 + $0xa0] sm:$0xff] %v8313_v30  ;;  %v8414_v8 = vmul.f32 %v8313_v30, %v8313_v30  ;;  %v8316_v42 = vmax.f32 %v8245_v47, %v8284_v3  ;;  %v8314_v56 = vmax.f32 %v8243_v38, %v8282_v40 }
 0x455   : > { %v8376_v36 = vadd.f32 %v8375_v24, %v8313_v30  ;;  %v8444_v37 = vadd.f32 %v8443_v49, %v8413_v14 }
 0x456   : > { %8348 = vst [vmem:[%s13436_s16 + $0xb8] sm:$0xff] %v8316_v42  ;;  %8346 = vst [vmem:[%s13436_s16 + $0xa8] sm:$0xff] %v8314_v56  ;;  %v8415_v31 = vmul.f32 %v8314_v56, %v8314_v56  ;;  %v10386_v21 = vpop.f32.mrb[24].mxu0  ;;  %v10434_v44 = vpop.f32.mrb[24].mxu1  ;;  %v8417_v51 = vmul.f32 %v8316_v42, %v8316_v42 }
 0x457   : > { %v8445_v61 = vadd.f32 %v8444_v37, %v8414_v8  ;;  %v8377_v5 = vadd.f32 %v8376_v36, %v8314_v56  ;;  %v8248_v54 = vadd.f32 %v10386_v21, %v13422_v53  ;;  %v8287_v18 = vadd.f32 %v10434_v44, %v13424_v46  ;;  %v7894_v63 = vpop.f32.mrb[25].mxu0  ;;  %v8152_v9 = vpop.f32.mrb[25].mxu1 }
 0x458   : > { %v8246_v29 = vadd.f32 %v13422_v53, %v7894_v63  ;;  %v8285_v1 = vadd.f32 %v13424_v46, %v8152_v9  ;;  %v10387_v13 = vpop.f32.mrb[26].mxu0  ;;  %v10435_v6 = vpop.f32.mrb[26].mxu1 }
 0x459   : > { %v8378_v10 = vadd.f32 %v8377_v5, %v8315_v60  ;;  %v8446_v32 = vadd.f32 %v8445_v61, %v8415_v31  ;;  %v8319_v59 = vmax.f32 %v8248_v54, %v8287_v18  ;;  %v8249_v28 = vadd.f32 %v10387_v13, %v13422_v53  ;;  %v7897_v52 = vpop.f32.mrb[27].mxu0  ;;  %v8155_v16 = vpop.f32.mrb[27].mxu1 }
 0x45a   : > { %v8317_v15 = vmax.f32 %v8246_v29, %v8285_v1  ;;  %v8288_v4 = vadd.f32 %v10435_v6, %v13424_v46  ;;  %v8247_v34 = vadd.f32 %v13422_v53, %v7897_v52  ;;  %v8286_v11 = vadd.f32 %v13424_v46, %v8155_v16 }
 0x45b   : > { %v8447_v0 = vadd.f32 %v8446_v32, %v8416_v41  ;;  %8351 = vst [vmem:[%s13436_s16 + $0xd0] sm:$0xff] %v8319_v59  ;;  %v8379_v19 = vadd.f32 %v8378_v10, %v8316_v42  ;;  %v8420_v12 = vmul.f32 %v8319_v59, %v8319_v59 }
 0x45c   : > { %8349 = vst [vmem:[%s13436_s16 + $0xc0] sm:$0xff] %v8317_v15  ;;  %v8418_v7 = vmul.f32 %v8317_v15, %v8317_v15  ;;  %v8320_v50 = vmax.f32 %v8249_v28, %v8288_v4  ;;  %v8318_v23 = vmax.f32 %v8247_v34, %v8286_v11 }
 0x45d   : > { %v8380_v25 = vadd.f32 %v8379_v19, %v8317_v15  ;;  %v8448_v55 = vadd.f32 %v8447_v0, %v8417_v51 }
 0x45e   : > { %8352 = vst [vmem:[%s13436_s16 + $0xd8] sm:$0xff] %v8320_v50  ;;  %8350 = vst [vmem:[%s13436_s16 + $0xc8] sm:$0xff] %v8318_v23  ;;  %v8419_v2 = vmul.f32 %v8318_v23, %v8318_v23  ;;  %v10390_v20 = vpop.f32.mrb[28].mxu0  ;;  %v10438_v58 = vpop.f32.mrb[28].mxu1  ;;  %v8421_v24 = vmul.f32 %v8320_v50, %v8320_v50 }
 0x45f   : > { %v8449_v22 = vadd.f32 %v8448_v55, %v8418_v7  ;;  %v8381_v39 = vadd.f32 %v8380_v25, %v8318_v23  ;;  %v8252_v43 = vadd.f32 %v10390_v20, %v13422_v53  ;;  %v8291_v26 = vadd.f32 %v10438_v58, %v13424_v46  ;;  %v7910_v33 = vpop.f32.mrb[29].mxu0  ;;  %v8168_v27 = vpop.f32.mrb[29].mxu1 }
 0x460   : > { %v8250_v45 = vadd.f32 %v13422_v53, %v7910_v33  ;;  %v8289_v35 = vadd.f32 %v13424_v46, %v8168_v27  ;;  %v10391_v57 = vpop.f32.mrb[30].mxu0  ;;  %v10439_v62 = vpop.f32.mrb[30].mxu1 }
 0x461   : > { %v8382_v60 = vadd.f32 %v8381_v39, %v8319_v59  ;;  %v8450_v47 = vadd.f32 %v8449_v22, %v8419_v2  ;;  %v8323_v48 = vmax.f32 %v8252_v43, %v8291_v26  ;;  %v8253_v17 = vadd.f32 %v10391_v57, %v13422_v53  ;;  %v7913_v30 = vpop.f32.mrb[31].mxu0  ;;  %v8171_v3 = vpop.f32.mrb[31].mxu1 }
 0x462   : > { %v8321_v38 = vmax.f32 %v8250_v45, %v8289_v35  ;;  %v8292_v40 = vadd.f32 %v10439_v62, %v13424_v46  ;;  %v8251_v14 = vadd.f32 %v13422_v53, %v7913_v30  ;;  %v8290_v49 = vadd.f32 %v13424_v46, %v8171_v3 }
 0x463   : > { %v8451_v8 = vadd.f32 %v8450_v47, %v8420_v12  ;;  %8355 = vst [vmem:[%s13436_s16 + $0xf0] sm:$0xff] %v8323_v48  ;;  %v8383_v42 = vadd.f32 %v8382_v60, %v8320_v50 }
 0x464   : > { %8353 = vst [vmem:[%s13436_s16 + $0xe0] sm:$0xff] %v8321_v38  ;;  %v8422_v56 = vmul.f32 %v8321_v38, %v8321_v38  ;;  %v8324_v53 = vmax.f32 %v8253_v17, %v8292_v40  ;;  %v8322_v36 = vmax.f32 %v8251_v14, %v8290_v49 }
 0x465   : > { %v8384_v46 = vadd.f32 %v8383_v42, %v8321_v38  ;;  %v8452_v37 = vadd.f32 %v8451_v8, %v8421_v24 }
 0x466   : > { %8356 = vst [vmem:[%s13436_s16 + $0xf8] sm:$0xff] %v8324_v53  ;;  %8354 = vst [vmem:[%s13436_s16 + $0xe8] sm:$0xff] %v8322_v36  ;;  %v8423_v31 = vmul.f32 %v8322_v36, %v8322_v36 }
 0x467   : > { %v8453_v21 = vadd.f32 %v8452_v37, %v8422_v56  ;;  %v8385_v44 = vadd.f32 %v8384_v46, %v8322_v36 }
 0x468   : > { %11517 = shalt.err (!%p11514_p8)
}
 0x469   : > { %s11518_s21 = scalar_lea.hbm %s13528_s25, 4096  ;;  %s11522_s24 = scalar_lea.hbm %s13653_s7, 8192 }
 0x46a   : > { %p11519_p10 = scmp.ne.s32.totalorder %s13528_s25, %s11518_s21  ;;  %p11523_p0 = scmp.lt.u32.totalorder %s13528_s25, %s13653_s7 }
 0x46b   : > { %p11524_p5 = scmp.lt.u32.totalorder %s11522_s24, %s11518_s21  ;;  %p11526_p6 = scmp.lt.u32.totalorder %s11518_s21, %s13528_s25 }
 0x46c   : > { %p11520_p11 = pnand %p11519_p10, %p13751_p9 }
 0x46d   : > { %p11525_p7 = por %p11524_p5, %p11523_p0 }
 0x46e   : > { %p11521_p12 = pneg %p11520_p11 }
 0x46f   : > { %p11527_p4 = por %p11526_p6, %p11525_p7 }
 0x471   : > { %p11528_p13 = pnand %p11527_p4, %p11521_p12 }
 0x473   : > { %11531 = shalt.err (!%p11528_p13)
}
 0x474   : > { %s11657_s29 = smov 128   ;;  %s11658_s14 = smov 8   ;;  %v8424_v61 = vmul.f32 %v8323_v48, %v8323_v48  ;;  %v8386_v5 = vadd.f32 %v8385_v44, %v8323_v48  ;;  %v8454_v54 = vadd.f32 %v8453_v21, %v8423_v31  ;;  %v8425_v18 = vmul.f32 %v8324_v53, %v8324_v53 }
 0x475   : > { %10978 = dma.vmem_to_hbm [thread:$0]  (%p13751_p9), %s13530_s28, 4096, %s13528_s25, %s8466_s26, %s11657_s29, %s11657_s29, %s11658_s14  }
 0x476   : > { %v8387_v63 = vadd.f32 %v8386_v5, %v8324_v53  ;;  %v8455_v9 = vadd.f32 %v8454_v54, %v8424_v61  ;;  %s8727_s23 = sshll.u32 %s11976_s17, 3  ;;  %s8470_s21 = sand.u32 1, %s11732_s15  }
 0x477   : > { %s9106_s16 = sshll.u32 %s11732_s15, 7  ;;  %s440_s1 = scalar_lea.vmem [#allocation16], %s8727_s23 }
 0x478   : > { %v8388_v41 = vrot.slane %v8387_v63, 4  ;;  %v8456_v29 = vadd.f32 %v8455_v9, %v8425_v18  ;;  %s8505_s28 = sshll.u32 %s440_s1, 4  ;;  %s13562_s25 = scalar_lea.vmem [#allocation18], %s8727_s23  ;;  %s13570_s28 = int_to_ptr.vmem [resolvable:$true] %s8505_s28 }
 0x479   : > { %s8518_s26 = sshll.u32 %s13562_s25, 4  ;;  %s13568_s27 = scalar_lea.hbm %s13654_s8, %s9106_s16  ;;  %s13577_s26 = int_to_ptr.vmem [resolvable:$true] %s8518_s26 }
 0x47a   : > { %v8389_v1 = vadd.f32 %v8388_v41, %v8387_v63  ;;  %v8457_v13 = vrot.slane %v8456_v29, 4  ;;  %s13575_s29 = scalar_lea.hbm %s13655_s9, %s9106_s16  ;;  %s13579_s14 = scalar_lea.sflag [#allocation17], %s8470_s21 }
 0x47b   : > { %s11532_s23 = scalar_lea.vmem %s13570_s28, 128  ;;  %s11659_s24 = smov [#allocation16]  }
 0x47c   : > { %v8458_v6 = vadd.f32 %v8457_v13, %v8456_v29  ;;  %v8390_v10 = vrot.slane %v8389_v1, 2  ;;  %p11533_p1 = scmp.ne.s32.totalorder %s13570_s28, %s11532_s23  ;;  %s11536_s17 = sshll.u32 %s11659_s24, 4  ;;  %s11537_s17 = int_to_ptr.vmem [resolvable:$false] %s11536_s17 }
 0x47d   : > { %s11538_s0 = scalar_lea.vmem %s11537_s17, 256  ;;  %p11539_p8 = scmp.lt.s32.totalorder %s13570_s28, %s11537_s17 }
 0x47e   : > { %v8391_v32 = vadd.f32 %v8390_v10, %v8389_v1  ;;  %v8459_v59 = vrot.slane %v8458_v6, 2  ;;  %p11534_p3 = pnand %p11533_p1, %p13751_p9  ;;  %p11540_p10 = scmp.lt.s32.totalorder %s11538_s0, %s11532_s23 }
 0x480   : > { %v8392_v28 = vrot.slane %v8391_v32, 1  ;;  %v8460_v52 = vadd.f32 %v8459_v59, %v8458_v6  ;;  %p11535_p2 = pneg %p11534_p3  ;;  %p11541_p11 = por %p11540_p10, %p11539_p8 }
 0x482   : > { %v8393_v16 = vadd.f32 %v8392_v28, %v8391_v32  ;;  %v8461_v15 = vrot.slane %v8460_v52, 1  ;;  %p11542_p12 = pnand %p11541_p11, %p11535_p2 }
 0x484   : > { %8463 = vst [vmem:[%s440_s1] sm:$0xff] %v8393_v16  ;;  %v8462_v4 = vadd.f32 %v8461_v15, %v8460_v52 }
 0x485   : > { %11545 = shalt.err (!%p11542_p12)
}
 0x486   : > { %s11546_s21 = scalar_lea.hbm %s13568_s27, 128  ;;  %s11550_s15 = scalar_lea.hbm %s13654_s8, 256 }
 0x487   : > { %p11547_p0 = scmp.ne.s32.totalorder %s13568_s27, %s11546_s21  ;;  %p11551_p6 = scmp.lt.u32.totalorder %s13568_s27, %s13654_s8 }
 0x488   : > { %p11552_p4 = scmp.lt.u32.totalorder %s11550_s15, %s11546_s21  ;;  %p11554_p1 = scmp.lt.u32.totalorder %s11546_s21, %s13568_s27 }
 0x489   : > { %p11548_p5 = pnand %p11547_p0, %p13751_p9 }
 0x48a   : > { %p11553_p13 = por %p11552_p4, %p11551_p6 }
 0x48b   : > { %p11549_p7 = pneg %p11548_p5 }
 0x48c   : > { %p11555_p3 = por %p11554_p1, %p11553_p13 }
 0x48e   : > { %p11556_p2 = pnand %p11555_p3, %p11549_p7 }
 0x490   : > { %11559 = shalt.err (!%p11556_p2)
}
 0x491   : > { %10979 = dma.vmem_to_hbm [thread:$0]  (%p13751_p9), %s13570_s28, 128, %s13568_s27, %s13579_s14   ;;  %8464 = vst [vmem:[%s13562_s25] sm:$0xff] %v8462_v4 }
 0x492   : > { %s11560_s0 = scalar_lea.vmem %s13577_s26, 128  ;;  %s11660_s23 = smov [#allocation18]  }
 0x493   : > { %p11561_p8 = scmp.ne.s32.totalorder %s13577_s26, %s11560_s0  ;;  %s11564_s17 = sshll.u32 %s11660_s23, 4  ;;  %s11565_s17 = int_to_ptr.vmem [resolvable:$false] %s11564_s17 }
 0x494   : > { %s11566_s21 = scalar_lea.vmem %s11565_s17, 256  ;;  %p11567_p12 = scmp.lt.s32.totalorder %s13577_s26, %s11565_s17 }
 0x495   : > { %p11562_p10 = pnand %p11561_p8, %p13751_p9  ;;  %p11568_p0 = scmp.lt.s32.totalorder %s11566_s21, %s11560_s0 }
 0x497   : > { %p11563_p11 = pneg %p11562_p10  ;;  %p11569_p5 = por %p11568_p0, %p11567_p12 }
 0x499   : > { %p11570_p7 = pnand %p11569_p5, %p11563_p11 }
 0x49b   : > { %11573 = shalt.err (!%p11570_p7)
}
 0x49c   : > { %s11574_s28 = scalar_lea.hbm %s13575_s29, 128  ;;  %s11578_s16 = scalar_lea.hbm %s13655_s9, 256 }
 0x49d   : > { %p11575_p6 = scmp.ne.s32.totalorder %s13575_s29, %s11574_s28  ;;  %p11579_p1 = scmp.lt.u32.totalorder %s13575_s29, %s13655_s9 }
 0x49e   : > { %p11580_p3 = scmp.lt.u32.totalorder %s11578_s16, %s11574_s28  ;;  %p11582_p8 = scmp.lt.u32.totalorder %s11574_s28, %s13575_s29 }
 0x49f   : > { %p11576_p4 = pnand %p11575_p6, %p13751_p9 }
 0x4a0   : > { %p11581_p2 = por %p11580_p3, %p11579_p1 }
 0x4a1   : > { %p11577_p13 = pneg %p11576_p4 }
 0x4a2   : > { %p11583_p10 = por %p11582_p8, %p11581_p2 }
 0x4a4   : > { %p11584_p11 = pnand %p11583_p10, %p11577_p13 }
 0x4a6   : > { %11587 = shalt.err (!%p11584_p11)
}
 0x4a7   : > { %10980 = dma.vmem_to_hbm [thread:$0]  (%p13751_p9), %s13577_s26, 128, %s13575_s29, %s13579_s14  }
 0x4a8 PF: > { %s8530_s13 = sand.u32 1, %s11630_s30   ;;  %p13752_p12 = scmp.ne.s32.totalorder %s13693_s22, 0 }
 0x4a9   : > { %p13753_p0 = scmp.ge.s32.totalorder %s11642_s12, 2  ;;  %s8531_s24 = scalar_lea.sflag [#allocation5], %s8530_s13 }
 0x4ab   : > { %p11008_p5 = pnand %p13753_p0, %p13752_p12 }
 0x4ad   : > { %11621 = dma.done.wait (!%p11008_p5), %s8531_s24, 4096  }
 0x4ae   : > { %11623 = vsyncadd (!%p11008_p5), %s8531_s24, 4294963200  ;;  %s13754_s0 = sadd.s32 4294967294, %s11642_s12  }
 0x4af   : > { %s8539_s23 = sand.u32 1, %s13754_s0  }
 0x4b0   : > { %s8540_s17 = scalar_lea.sflag [#allocation17], %s8539_s23 }
 0x4b1   : > { %11625 = dma.done.wait (!%p11008_p5), %s8540_s17, 256  }
 0x4b2   : > { %11627 = vsyncadd (!%p11008_p5), %s8540_s17, 4294967040  ;;  %p29_p9 = scmp.ge.s32.totalorder %s11895_s19, 4   ;;  %s13755_s30 = smov %s11634_s10 }
 0x4b3   : > { %s13756_s10 = smov %s11638_s11  ;;  %s13757_s11 = smov %s11906_s20 }
 0x4b4   : > { %s13758_s12 = smov %s11895_s19  ;;  %31 = sbr.rel (!%p29_p9) target bundleno = 13 (0xd), region = 167 }
 0x4bb   :  { %8554 = vsyncpa [#allocation4], 1 }
 0x4bc   :  { %8556 = vsyncpa [#allocation4 + $0x1], 1 }
 0x4bd   :  { %8557 = vsyncpa [#allocation7], 1 }
 0x4be   :  { %8558 = vsyncpa [#allocation10], 1 }
 0x4bf   :  { %8559 = vsyncpa [#allocation13], 1 }
 0x4c0   :  { %8560 = vsyncpa [#allocation5], 1 }
 0x4c1   :  { %8562 = vsyncpa [#allocation5 + $0x1], 1 }
 0x4c2   :  { %8563 = vsyncpa [#allocation17], 1 }
 0x4c3   :  { %8565 = vsyncpa [#allocation17 + $0x1], 1 }

</bundles_post_ra>
